<compile_context>
chip_gen: v6e
topology: v6e:2x2x1
jax: 0.10.0
libtpu: 0.0.40
codegen_flags: <defaults>
</compile_context>

<pallas_src>
import functools

import numpy as np
import jax
import jax.numpy as jnp
from jax.experimental import pallas as pl
from jax.experimental.pallas import tpu as pltpu

EPS = 1e-5


# ------------------------------ Pallas kernel ------------------------------ #

def _instance_norm(y):
    # y: (C, S) f32; per-(sample, channel) biased variance over spatial dims.
    m = jnp.mean(y, axis=1, keepdims=True)
    c = y - m
    v = jnp.mean(c * c, axis=1, keepdims=True)
    return c * jax.lax.rsqrt(v + EPS)


def resblock_kernel(*refs, D, H, W, pad, use_extra):
    if use_extra:
        (x_ref, w1_ref, w2_ref, w3_ref, w4_ref, b4_ref, mask_ref,
         o_ref, buf_ref) = refs
    else:
        x_ref, w1_ref, w2_ref, w3_ref, mask_ref, o_ref, buf_ref = refs
        w4_ref = b4_ref = None

    S = D * H * W

    # Zero the scratch once so the halo strips read as exact zeros.
    buf_ref[...] = jnp.zeros_like(buf_ref)

    def conv3x3(h, w_ref):
        # h: (Ci, S) f32; w_ref: (27, Co, Ci) bf16, taps ordered (kd, kh, kw).
        ci = h.shape[0]
        co = w_ref.shape[1]
        buf_ref[0:ci, pad:pad + S] = h            # flat, lane-dense scratch
        acc = jnp.zeros((co, S), jnp.float32)
        t = 0
        for kd in (-1, 0, 1):
            for kh in (-1, 0, 1):
                for kw in (-1, 0, 1):
                    off = kd * H * W + kh * W + kw
                    a = pad + off
                    # Shifted window; mask kills out-of-bounds (wrapped) taps.
                    win = buf_ref[0:ci, a:a + S] * mask_ref[t]       # (Ci, S)
                    # NOTE: for tiny channel counts this could be a VPU FMA
                    # loop instead of the MXU; dot keeps the code general.
                    acc = acc + jnp.dot(w_ref[t], win.astype(jnp.bfloat16),
                                        preferred_element_type=jnp.float32)
                    t += 1
        return acc

    x = x_ref[0]                                  # (Cin, S) f32
    xb = x.astype(jnp.bfloat16)

    # conv1 (1x1x1) + InstanceNorm + ReLU  (bias dropped: IN cancels it)
    h = jnp.dot(w1_ref[...], xb, preferred_element_type=jnp.float32)
    h = jnp.maximum(_instance_norm(h), 0.0)

    # conv2 (3x3x3, pad=1) + InstanceNorm + ReLU
    h = jnp.maximum(_instance_norm(conv3x3(h, w2_ref)), 0.0)

    # conv3 (1x1x1) + InstanceNorm
    out = _instance_norm(
        jnp.dot(w3_ref[...], h.astype(jnp.bfloat16),
                preferred_element_type=jnp.float32))

    # conv_extral (3x3x3, pad=1), only when Cout != Cin (static decision).
    if use_extra:
        out = conv3x3(out, w4_ref) + b4_ref[...]

    # residual add + ReLU
    o_ref[0] = jnp.maximum(out + x, 0.0).astype(o_ref.dtype)


# ------------------------------ Pallas wrapper ------------------------------ #

def _tap_masks(D, H, W):
    """(27, 1, S) f32 validity masks for 3x3x3 taps with padding=1."""
    d = np.arange(D)[:, None, None]
    h = np.arange(H)[None, :, None]
    w = np.arange(W)[None, None, :]
    masks = []
    for kd in (-1, 0, 1):
        for kh in (-1, 0, 1):
            for kw in (-1, 0, 1):
                valid = ((d + kd >= 0) & (d + kd < D) &
                         (h + kh >= 0) & (h + kh < H) &
                         (w + kw >= 0) & (w + kw < W))
                masks.append(valid.reshape(-1))
    m = np.stack(masks).astype(np.float32).reshape(27, 1, D * H * W)
    return jnp.asarray(m)


def residual_block_forward(x_ncdhw, p):
    N, Cin, D, H, W = x_ncdhw.shape
    S = D * H * W
    Cmid = p["w1"].shape[0]
    Cout = p["w3"].shape[0]
    use_extra = (Cout != Cin)

    # NCDHW -> lane-dense (N, C, S): pure reshape, no transpose needed.
    x_ncs = x_ncdhw.reshape(N, Cin, S).astype(jnp.float32)

    def taps(w):  # OIDHW -> (27, O, I), (kd, kh, kw) outer order, bf16
        o, i = w.shape[0], w.shape[1]
        return jnp.transpose(w, (2, 3, 4, 0, 1)).reshape(27, o, i).astype(jnp.bfloat16)

    w1 = p["w1"][:, :, 0, 0, 0].astype(jnp.bfloat16)          # (Cmid, Cin)
    w2 = taps(p["w2"])                                        # (27, Cmid, Cmid)
    w3 = p["w3"][:, :, 0, 0, 0].astype(jnp.bfloat16)          # (Cout, Cmid)
    mask = _tap_masks(D, H, W)                                # (27, 1, S)

    halo = H * W + W + 1                                      # max |tap offset|
    pad = pl.cdiv(halo, 128) * 128                            # lane-aligned halo
    buf_ch = max(Cmid, Cout) if use_extra else Cmid

    in_specs = [
        pl.BlockSpec((1, Cin, S), lambda n: (n, 0, 0)),
        pl.BlockSpec((Cmid, Cin), lambda n: (0, 0)),
        pl.BlockSpec((27, Cmid, Cmid), lambda n: (0, 0, 0)),
        pl.BlockSpec((Cout, Cmid), lambda n: (0, 0)),
    ]
    args = [x_ncs, w1, w2, w3]
    if use_extra:
        w4 = taps(p["w4"])                                    # (27, Cin, Cout)
        b4 = p["b4"].reshape(Cin, 1).astype(jnp.float32)
        in_specs += [pl.BlockSpec((27, Cin, Cout), lambda n: (0, 0, 0)),
                     pl.BlockSpec((Cin, 1), lambda n: (0, 0))]
        args += [w4, b4]
    in_specs.append(pl.BlockSpec((27, 1, S), lambda n: (0, 0, 0)))
    args.append(mask)

    kernel = functools.partial(resblock_kernel, D=D, H=H, W=W, pad=pad,
                               use_extra=use_extra)

    # TODO(synk): for large spatial volumes add an S-tiling grid axis with
    # streaming sum/sumsq InstanceNorm statistics (two-pass normalize) so a
    # full (C, S) slab need not be VMEM-resident (matters first on v7x 64 MiB).
    y = pl.pallas_call(
        kernel,
        out_shape=jax.ShapeDtypeStruct((N, Cin, S), jnp.float32),
        grid=(N,),
        in_specs=in_specs,
        out_specs=pl.BlockSpec((1, Cin, S), lambda n: (n, 0, 0)),
        scratch_shapes=[pltpu.VMEM((buf_ch, S + 2 * pad), jnp.float32)],
        compiler_params=pltpu.CompilerParams(
            dimension_semantics=("parallel",)),
    )(*args)
    return y.reshape(N, Cin, D, H, W)


# ----------------------- deterministic parameter init ---------------------- #

def init_params(key, cin, cout):
    cmid = cin // 2
    ks = jax.random.split(key, 8)

    def w_init(k, co, ci, ksz):
        bound = 1.0 / (ci * ksz ** 3) ** 0.5
        return jax.random.uniform(k, (co, ci, ksz, ksz, ksz), jnp.float32, -bound, bound)

    def b_init(k, co, ci, ksz):
        bound = 1.0 / (ci * ksz ** 3) ** 0.5
        return jax.random.uniform(k, (co,), jnp.float32, -bound, bound)

    return {
        "w1": w_init(ks[0], cmid, cin, 1), "b1": b_init(ks[1], cmid, cin, 1),
        "w2": w_init(ks[2], cmid, cmid, 3), "b2": b_init(ks[3], cmid, cmid, 3),
        "w3": w_init(ks[4], cout, cmid, 1), "b3": b_init(ks[5], cout, cmid, 1),
        "w4": w_init(ks[6], cin, cout, 3), "b4": b_init(ks[7], cin, cout, 3),
    }


# --------------------------- pure-JAX reference ----------------------------- #

def _ref_conv3d(x, w, b, pad):
    out = jax.lax.conv_general_dilated(
        x, w, (1, 1, 1), [(pad, pad)] * 3,
        dimension_numbers=("NCDHW", "OIDHW", "NCDHW"),
        precision=jax.lax.Precision.HIGHEST)
    return out + b[None, :, None, None, None]


def _ref_in(x):
    m = x.mean(axis=(2, 3, 4), keepdims=True)
    v = ((x - m) ** 2).mean(axis=(2, 3, 4), keepdims=True)
    return (x - m) / jnp.sqrt(v + EPS)


def ref_forward(x, p):
    h = jnp.maximum(_ref_in(_ref_conv3d(x, p["w1"], p["b1"], 0)), 0.0)
    h = jnp.maximum(_ref_in(_ref_conv3d(h, p["w2"], p["b2"], 1)), 0.0)
    out = _ref_in(_ref_conv3d(h, p["w3"], p["b3"], 0))
    if out.shape != x.shape:
        out = _ref_conv3d(out, p["w4"], p["b4"], 1)
    return jnp.maximum(out + x, 0.0)


# ----------------------------------- main ----------------------------------- #

if __name__ == "__main__":
    key = jax.random.PRNGKey(0)
    kx, kp = jax.random.split(key)

    N, Cin, Cout, D, H, W = 2, 4, 8, 8, 8, 8   # Cin != Cout -> exercises conv_extral
    x = jax.random.normal(kx, (N, Cin, D, H, W), jnp.float32)
    params = init_params(kp, Cin, Cout)

    out = jax.block_until_ready(residual_block_forward(x, params))

    ref = ref_forward(x, params)
    assert out.shape == (N, Cin, D, H, W), out.shape
    err = float(jnp.max(jnp.abs(out - ref)))
    assert err < 5e-2, f"max abs err vs reference: {err}"

    print("KERNEL_OK")
</pallas_src>

<mosaic_0001>
module attributes {stable_mosaic.version = 11 : i64} {
  func.func @resblock_kernel(%arg0: i32, %arg1: memref<1x4x512xf32, #tpu.memory_space<vmem>>, %arg2: memref<2x4xbf16, #tpu.memory_space<vmem>>, %arg3: memref<27x2x2xbf16, #tpu.memory_space<vmem>>, %arg4: memref<8x2xbf16, #tpu.memory_space<vmem>>, %arg5: memref<27x4x8xbf16, #tpu.memory_space<vmem>>, %arg6: memref<4x1xf32, #tpu.memory_space<vmem>>, %arg7: memref<27x1x512xf32, #tpu.memory_space<vmem>>, %arg8: memref<1x4x512xf32, #tpu.memory_space<vmem>>, %arg9: memref<8x768xf32, #tpu.memory_space<vmem>>) attributes {dimension_semantics = [#tpu.dimension_semantics<parallel>], iteration_bounds = array<i64: 2>, scalar_prefetch = 0 : i64, scratch_operands = 1 : i64, tpu.core_type = #tpu.core_type<tc>, window_params = [{transform_indices = @transform_0, window_bounds = array<i64: 1, 4, 512>}, {pipeline_mode = #tpu.pipeline_mode<synchronous>, transform_indices = @transform_1, window_bounds = array<i64: 2, 4>}, {pipeline_mode = #tpu.pipeline_mode<synchronous>, transform_indices = @transform_2, window_bounds = array<i64: 27, 2, 2>}, {pipeline_mode = #tpu.pipeline_mode<synchronous>, transform_indices = @transform_3, window_bounds = array<i64: 8, 2>}, {pipeline_mode = #tpu.pipeline_mode<synchronous>, transform_indices = @transform_4, window_bounds = array<i64: 27, 4, 8>}, {pipeline_mode = #tpu.pipeline_mode<synchronous>, transform_indices = @transform_5, window_bounds = array<i64: 4, 1>}, {pipeline_mode = #tpu.pipeline_mode<synchronous>, transform_indices = @transform_6, window_bounds = array<i64: 27, 1, 512>}, {transform_indices = @transform_7, window_bounds = array<i64: 1, 4, 512>}]} {
    %cst = arith.constant 0.000000e+00 : f32
    %0 = vector.broadcast %cst : f32 to vector<8x768xf32>
    %c0 = arith.constant 0 : index
    %c0_0 = arith.constant 0 : index
    %1 = vector.load %arg9[%c0, %c0_0] : memref<8x768xf32, #tpu.memory_space<vmem>>, vector<8x768xf32>
    tpu.vector_store %arg9[%c0, %c0_0], %0 {strides = array<i32>} : memref<8x768xf32, #tpu.memory_space<vmem>>, vector<8x768xf32>,
    %c0_1 = arith.constant 0 : index
    %c0_2 = arith.constant 0 : index
    %c0_3 = arith.constant 0 : index
    %2 = vector.load %arg1[%c0_1, %c0_2, %c0_3] : memref<1x4x512xf32, #tpu.memory_space<vmem>>, vector<1x4x512xf32>
    %3 = vector.shape_cast %2 : vector<1x4x512xf32> to vector<4x512xf32>
    %4 = arith.truncf %3 : vector<4x512xf32> to vector<4x512xbf16>
    %c0_4 = arith.constant 0 : index
    %c0_5 = arith.constant 0 : index
    %5 = vector.load %arg2[%c0_4, %c0_5] : memref<2x4xbf16, #tpu.memory_space<vmem>>, vector<2x4xbf16>
    %cst_6 = arith.constant dense<0.000000e+00> : vector<2x512xf32>
    %6 = tpu.matmul %5, %4, %cst_6 {dimension_numbers = #tpu.dot_dimension_numbers<[1], [0], [0], [1], [0, 0, 1, 1], [], []>} : vector<2x4xbf16>, vector<4x512xbf16>, vector<2x512xf32> -> vector<2x512xf32>
    %cst_7 = arith.constant dense<0.000000e+00> : vector<2xf32>
    %7 = vector.multi_reduction <add>, %6, %cst_7 [1] : vector<2x512xf32> to vector<2xf32>
    %8 = vector.shape_cast %7 : vector<2xf32> to vector<2x1xf32>
    %cst_8 = arith.constant 5.120000e+02 : f32
    %9 = vector.broadcast %cst_8 : f32 to vector<2x1xf32>
    %10 = arith.divf %8, %9 : vector<2x1xf32>
    %11 = vector.broadcast %10 : vector<2x1xf32> to vector<2x512xf32>
    %12 = arith.subf %6, %11 : vector<2x512xf32>
    %13 = arith.mulf %12, %12 : vector<2x512xf32>
    %cst_9 = arith.constant dense<0.000000e+00> : vector<2xf32>
    %14 = vector.multi_reduction <add>, %13, %cst_9 [1] : vector<2x512xf32> to vector<2xf32>
    %15 = vector.shape_cast %14 : vector<2xf32> to vector<2x1xf32>
    %cst_10 = arith.constant 5.120000e+02 : f32
    %16 = vector.broadcast %cst_10 : f32 to vector<2x1xf32>
    %17 = arith.divf %15, %16 : vector<2x1xf32>
    %cst_11 = arith.constant 9.99999974E-6 : f32
    %18 = vector.broadcast %cst_11 : f32 to vector<2x1xf32>
    %19 = arith.addf %17, %18 : vector<2x1xf32>
    %20 = math.rsqrt %19 : vector<2x1xf32>
    %21 = vector.broadcast %20 : vector<2x1xf32> to vector<2x512xf32>
    %22 = arith.mulf %12, %21 : vector<2x512xf32>
    %cst_12 = arith.constant 0.000000e+00 : f32
    %23 = vector.broadcast %cst_12 : f32 to vector<2x512xf32>
    %24 = arith.maximumf %22, %23 : vector<2x512xf32>
    %c0_13 = arith.constant 0 : index
    %c128 = arith.constant 128 : index
    %25 = vector.load %arg9[%c0_13, %c128] : memref<8x768xf32, #tpu.memory_space<vmem>>, vector<2x512xf32>
    tpu.vector_store %arg9[%c0_13, %c128], %24 {strides = array<i32>} : memref<8x768xf32, #tpu.memory_space<vmem>>, vector<2x512xf32>,
    %cst_14 = arith.constant 0.000000e+00 : f32
    %26 = vector.broadcast %cst_14 : f32 to vector<2x512xf32>
    %c0_15 = arith.constant 0 : index
    %c55 = arith.constant 55 : index
    %27 = vector.load %arg9[%c0_15, %c55] : memref<8x768xf32, #tpu.memory_space<vmem>>, vector<2x512xf32>
    %c0_16 = arith.constant 0 : index
    %c0_17 = arith.constant 0 : index
    %c0_18 = arith.constant 0 : index
    %28 = vector.load %arg7[%c0_16, %c0_17, %c0_18] : memref<27x1x512xf32, #tpu.memory_space<vmem>>, vector<1x1x512xf32>
    %29 = vector.shape_cast %28 : vector<1x1x512xf32> to vector<1x512xf32>
    %30 = vector.broadcast %29 : vector<1x512xf32> to vector<2x512xf32>
    %31 = arith.mulf %27, %30 : vector<2x512xf32>
    %c0_19 = arith.constant 0 : index
    %c0_20 = arith.constant 0 : index
    %c0_21 = arith.constant 0 : index
    %32 = vector.load %arg3[%c0_19, %c0_20, %c0_21] : memref<27x2x2xbf16, #tpu.memory_space<vmem>>, vector<1x2x2xbf16>
    %33 = vector.shape_cast %32 : vector<1x2x2xbf16> to vector<2x2xbf16>
    %34 = arith.truncf %31 : vector<2x512xf32> to vector<2x512xbf16>
    %cst_22 = arith.constant dense<0.000000e+00> : vector<2x512xf32>
    %35 = tpu.matmul %33, %34, %cst_22 {dimension_numbers = #tpu.dot_dimension_numbers<[1], [0], [0], [1], [0, 0, 1, 1], [], []>} : vector<2x2xbf16>, vector<2x512xbf16>, vector<2x512xf32> -> vector<2x512xf32>
    %36 = arith.addf %26, %35 : vector<2x512xf32>
    %c0_23 = arith.constant 0 : index
    %c56 = arith.constant 56 : index
    %37 = vector.load %arg9[%c0_23, %c56] : memref<8x768xf32, #tpu.memory_space<vmem>>, vector<2x512xf32>
    %c1 = arith.constant 1 : index
    %c0_24 = arith.constant 0 : index
    %c0_25 = arith.constant 0 : index
    %38 = vector.load %arg7[%c1, %c0_24, %c0_25] : memref<27x1x512xf32, #tpu.memory_space<vmem>>, vector<1x1x512xf32>
    %39 = vector.shape_cast %38 : vector<1x1x512xf32> to vector<1x512xf32>
    %40 = vector.broadcast %39 : vector<1x512xf32> to vector<2x512xf32>
    %41 = arith.mulf %37, %40 : vector<2x512xf32>
    %c1_26 = arith.constant 1 : index
    %c0_27 = arith.constant 0 : index
    %c0_28 = arith.constant 0 : index
    %42 = vector.load %arg3[%c1_26, %c0_27, %c0_28] : memref<27x2x2xbf16, #tpu.memory_space<vmem>>, vector<1x2x2xbf16>
    %43 = vector.shape_cast %42 : vector<1x2x2xbf16> to vector<2x2xbf16>
    %44 = arith.truncf %41 : vector<2x512xf32> to vector<2x512xbf16>
    %cst_29 = arith.constant dense<0.000000e+00> : vector<2x512xf32>
    %45 = tpu.matmul %43, %44, %cst_29 {dimension_numbers = #tpu.dot_dimension_numbers<[1], [0], [0], [1], [0, 0, 1, 1], [], []>} : vector<2x2xbf16>, vector<2x512xbf16>, vector<2x512xf32> -> vector<2x512xf32>
    %46 = arith.addf %36, %45 : vector<2x512xf32>
    %c0_30 = arith.constant 0 : index
    %c57 = arith.constant 57 : index
    %47 = vector.load %arg9[%c0_30, %c57] : memref<8x768xf32, #tpu.memory_space<vmem>>, vector<2x512xf32>
    %c2 = arith.constant 2 : index
    %c0_31 = arith.constant 0 : index
    %c0_32 = arith.constant 0 : index
    %48 = vector.load %arg7[%c2, %c0_31, %c0_32] : memref<27x1x512xf32, #tpu.memory_space<vmem>>, vector<1x1x512xf32>
    %49 = vector.shape_cast %48 : vector<1x1x512xf32> to vector<1x512xf32>
    %50 = vector.broadcast %49 : vector<1x512xf32> to vector<2x512xf32>
    %51 = arith.mulf %47, %50 : vector<2x512xf32>
    %c2_33 = arith.constant 2 : index
    %c0_34 = arith.constant 0 : index
    %c0_35 = arith.constant 0 : index
    %52 = vector.load %arg3[%c2_33, %c0_34, %c0_35] : memref<27x2x2xbf16, #tpu.memory_space<vmem>>, vector<1x2x2xbf16>
    %53 = vector.shape_cast %52 : vector<1x2x2xbf16> to vector<2x2xbf16>
    %54 = arith.truncf %51 : vector<2x512xf32> to vector<2x512xbf16>
    %cst_36 = arith.constant dense<0.000000e+00> : vector<2x512xf32>
    %55 = tpu.matmul %53, %54, %cst_36 {dimension_numbers = #tpu.dot_dimension_numbers<[1], [0], [0], [1], [0, 0, 1, 1], [], []>} : vector<2x2xbf16>, vector<2x512xbf16>, vector<2x512xf32> -> vector<2x512xf32>
    %56 = arith.addf %46, %55 : vector<2x512xf32>
    %c0_37 = arith.constant 0 : index
    %c63 = arith.constant 63 : index
    %57 = vector.load %arg9[%c0_37, %c63] : memref<8x768xf32, #tpu.memory_space<vmem>>, vector<2x512xf32>
    %c3 = arith.constant 3 : index
    %c0_38 = arith.constant 0 : index
    %c0_39 = arith.constant 0 : index
    %58 = vector.load %arg7[%c3, %c0_38, %c0_39] : memref<27x1x512xf32, #tpu.memory_space<vmem>>, vector<1x1x512xf32>
    %59 = vector.shape_cast %58 : vector<1x1x512xf32> to vector<1x512xf32>
    %60 = vector.broadcast %59 : vector<1x512xf32> to vector<2x512xf32>
    %61 = arith.mulf %57, %60 : vector<2x512xf32>
    %c3_40 = arith.constant 3 : index
    %c0_41 = arith.constant 0 : index
    %c0_42 = arith.constant 0 : index
    %62 = vector.load %arg3[%c3_40, %c0_41, %c0_42] : memref<27x2x2xbf16, #tpu.memory_space<vmem>>, vector<1x2x2xbf16>
    %63 = vector.shape_cast %62 : vector<1x2x2xbf16> to vector<2x2xbf16>
    %64 = arith.truncf %61 : vector<2x512xf32> to vector<2x512xbf16>
    %cst_43 = arith.constant dense<0.000000e+00> : vector<2x512xf32>
    %65 = tpu.matmul %63, %64, %cst_43 {dimension_numbers = #tpu.dot_dimension_numbers<[1], [0], [0], [1], [0, 0, 1, 1], [], []>} : vector<2x2xbf16>, vector<2x512xbf16>, vector<2x512xf32> -> vector<2x512xf32>
    %66 = arith.addf %56, %65 : vector<2x512xf32>
    %c0_44 = arith.constant 0 : index
    %c64 = arith.constant 64 : index
    %67 = vector.load %arg9[%c0_44, %c64] : memref<8x768xf32, #tpu.memory_space<vmem>>, vector<2x512xf32>
    %c4 = arith.constant 4 : index
    %c0_45 = arith.constant 0 : index
    %c0_46 = arith.constant 0 : index
    %68 = vector.load %arg7[%c4, %c0_45, %c0_46] : memref<27x1x512xf32, #tpu.memory_space<vmem>>, vector<1x1x512xf32>
    %69 = vector.shape_cast %68 : vector<1x1x512xf32> to vector<1x512xf32>
    %70 = vector.broadcast %69 : vector<1x512xf32> to vector<2x512xf32>
    %71 = arith.mulf %67, %70 : vector<2x512xf32>
    %c4_47 = arith.constant 4 : index
    %c0_48 = arith.constant 0 : index
    %c0_49 = arith.constant 0 : index
    %72 = vector.load %arg3[%c4_47, %c0_48, %c0_49] : memref<27x2x2xbf16, #tpu.memory_space<vmem>>, vector<1x2x2xbf16>
    %73 = vector.shape_cast %72 : vector<1x2x2xbf16> to vector<2x2xbf16>
    %74 = arith.truncf %71 : vector<2x512xf32> to vector<2x512xbf16>
    %cst_50 = arith.constant dense<0.000000e+00> : vector<2x512xf32>
    %75 = tpu.matmul %73, %74, %cst_50 {dimension_numbers = #tpu.dot_dimension_numbers<[1], [0], [0], [1], [0, 0, 1, 1], [], []>} : vector<2x2xbf16>, vector<2x512xbf16>, vector<2x512xf32> -> vector<2x512xf32>
    %76 = arith.addf %66, %75 : vector<2x512xf32>
    %c0_51 = arith.constant 0 : index
    %c65 = arith.constant 65 : index
    %77 = vector.load %arg9[%c0_51, %c65] : memref<8x768xf32, #tpu.memory_space<vmem>>, vector<2x512xf32>
    %c5 = arith.constant 5 : index
    %c0_52 = arith.constant 0 : index
    %c0_53 = arith.constant 0 : index
    %78 = vector.load %arg7[%c5, %c0_52, %c0_53] : memref<27x1x512xf32, #tpu.memory_space<vmem>>, vector<1x1x512xf32>
    %79 = vector.shape_cast %78 : vector<1x1x512xf32> to vector<1x512xf32>
    %80 = vector.broadcast %79 : vector<1x512xf32> to vector<2x512xf32>
    %81 = arith.mulf %77, %80 : vector<2x512xf32>
    %c5_54 = arith.constant 5 : index
    %c0_55 = arith.constant 0 : index
    %c0_56 = arith.constant 0 : index
    %82 = vector.load %arg3[%c5_54, %c0_55, %c0_56] : memref<27x2x2xbf16, #tpu.memory_space<vmem>>, vector<1x2x2xbf16>
    %83 = vector.shape_cast %82 : vector<1x2x2xbf16> to vector<2x2xbf16>
    %84 = arith.truncf %81 : vector<2x512xf32> to vector<2x512xbf16>
    %cst_57 = arith.constant dense<0.000000e+00> : vector<2x512xf32>
    %85 = tpu.matmul %83, %84, %cst_57 {dimension_numbers = #tpu.dot_dimension_numbers<[1], [0], [0], [1], [0, 0, 1, 1], [], []>} : vector<2x2xbf16>, vector<2x512xbf16>, vector<2x512xf32> -> vector<2x512xf32>
    %86 = arith.addf %76, %85 : vector<2x512xf32>
    %c0_58 = arith.constant 0 : index
    %c71 = arith.constant 71 : index
    %87 = vector.load %arg9[%c0_58, %c71] : memref<8x768xf32, #tpu.memory_space<vmem>>, vector<2x512xf32>
    %c6 = arith.constant 6 : index
    %c0_59 = arith.constant 0 : index
    %c0_60 = arith.constant 0 : index
    %88 = vector.load %arg7[%c6, %c0_59, %c0_60] : memref<27x1x512xf32, #tpu.memory_space<vmem>>, vector<1x1x512xf32>
    %89 = vector.shape_cast %88 : vector<1x1x512xf32> to vector<1x512xf32>
    %90 = vector.broadcast %89 : vector<1x512xf32> to vector<2x512xf32>
    %91 = arith.mulf %87, %90 : vector<2x512xf32>
    %c6_61 = arith.constant 6 : index
    %c0_62 = arith.constant 0 : index
    %c0_63 = arith.constant 0 : index
    %92 = vector.load %arg3[%c6_61, %c0_62, %c0_63] : memref<27x2x2xbf16, #tpu.memory_space<vmem>>, vector<1x2x2xbf16>
    %93 = vector.shape_cast %92 : vector<1x2x2xbf16> to vector<2x2xbf16>
    %94 = arith.truncf %91 : vector<2x512xf32> to vector<2x512xbf16>
    %cst_64 = arith.constant dense<0.000000e+00> : vector<2x512xf32>
    %95 = tpu.matmul %93, %94, %cst_64 {dimension_numbers = #tpu.dot_dimension_numbers<[1], [0], [0], [1], [0, 0, 1, 1], [], []>} : vector<2x2xbf16>, vector<2x512xbf16>, vector<2x512xf32> -> vector<2x512xf32>
    %96 = arith.addf %86, %95 : vector<2x512xf32>
    %c0_65 = arith.constant 0 : index
    %c72 = arith.constant 72 : index
    %97 = vector.load %arg9[%c0_65, %c72] : memref<8x768xf32, #tpu.memory_space<vmem>>, vector<2x512xf32>
    %c7 = arith.constant 7 : index
    %c0_66 = arith.constant 0 : index
    %c0_67 = arith.constant 0 : index
    %98 = vector.load %arg7[%c7, %c0_66, %c0_67] : memref<27x1x512xf32, #tpu.memory_space<vmem>>, vector<1x1x512xf32>
    %99 = vector.shape_cast %98 : vector<1x1x512xf32> to vector<1x512xf32>
    %100 = vector.broadcast %99 : vector<1x512xf32> to vector<2x512xf32>
    %101 = arith.mulf %97, %100 : vector<2x512xf32>
    %c7_68 = arith.constant 7 : index
    %c0_69 = arith.constant 0 : index
    %c0_70 = arith.constant 0 : index
    %102 = vector.load %arg3[%c7_68, %c0_69, %c0_70] : memref<27x2x2xbf16, #tpu.memory_space<vmem>>, vector<1x2x2xbf16>
    %103 = vector.shape_cast %102 : vector<1x2x2xbf16> to vector<2x2xbf16>
    %104 = arith.truncf %101 : vector<2x512xf32> to vector<2x512xbf16>
    %cst_71 = arith.constant dense<0.000000e+00> : vector<2x512xf32>
    %105 = tpu.matmul %103, %104, %cst_71 {dimension_numbers = #tpu.dot_dimension_numbers<[1], [0], [0], [1], [0, 0, 1, 1], [], []>} : vector<2x2xbf16>, vector<2x512xbf16>, vector<2x512xf32> -> vector<2x512xf32>
    %106 = arith.addf %96, %105 : vector<2x512xf32>
    %c0_72 = arith.constant 0 : index
    %c73 = arith.constant 73 : index
    %107 = vector.load %arg9[%c0_72, %c73] : memref<8x768xf32, #tpu.memory_space<vmem>>, vector<2x512xf32>
    %c8 = arith.constant 8 : index
    %c0_73 = arith.constant 0 : index
    %c0_74 = arith.constant 0 : index
    %108 = vector.load %arg7[%c8, %c0_73, %c0_74] : memref<27x1x512xf32, #tpu.memory_space<vmem>>, vector<1x1x512xf32>
    %109 = vector.shape_cast %108 : vector<1x1x512xf32> to vector<1x512xf32>
    %110 = vector.broadcast %109 : vector<1x512xf32> to vector<2x512xf32>
    %111 = arith.mulf %107, %110 : vector<2x512xf32>
    %c8_75 = arith.constant 8 : index
    %c0_76 = arith.constant 0 : index
    %c0_77 = arith.constant 0 : index
    %112 = vector.load %arg3[%c8_75, %c0_76, %c0_77] : memref<27x2x2xbf16, #tpu.memory_space<vmem>>, vector<1x2x2xbf16>
    %113 = vector.shape_cast %112 : vector<1x2x2xbf16> to vector<2x2xbf16>
    %114 = arith.truncf %111 : vector<2x512xf32> to vector<2x512xbf16>
    %cst_78 = arith.constant dense<0.000000e+00> : vector<2x512xf32>
    %115 = tpu.matmul %113, %114, %cst_78 {dimension_numbers = #tpu.dot_dimension_numbers<[1], [0], [0], [1], [0, 0, 1, 1], [], []>} : vector<2x2xbf16>, vector<2x512xbf16>, vector<2x512xf32> -> vector<2x512xf32>
    %116 = arith.addf %106, %115 : vector<2x512xf32>
    %c0_79 = arith.constant 0 : index
    %c119 = arith.constant 119 : index
    %117 = vector.load %arg9[%c0_79, %c119] : memref<8x768xf32, #tpu.memory_space<vmem>>, vector<2x512xf32>
    %c9 = arith.constant 9 : index
    %c0_80 = arith.constant 0 : index
    %c0_81 = arith.constant 0 : index
    %118 = vector.load %arg7[%c9, %c0_80, %c0_81] : memref<27x1x512xf32, #tpu.memory_space<vmem>>, vector<1x1x512xf32>
    %119 = vector.shape_cast %118 : vector<1x1x512xf32> to vector<1x512xf32>
    %120 = vector.broadcast %119 : vector<1x512xf32> to vector<2x512xf32>
    %121 = arith.mulf %117, %120 : vector<2x512xf32>
    %c9_82 = arith.constant 9 : index
    %c0_83 = arith.constant 0 : index
    %c0_84 = arith.constant 0 : index
    %122 = vector.load %arg3[%c9_82, %c0_83, %c0_84] : memref<27x2x2xbf16, #tpu.memory_space<vmem>>, vector<1x2x2xbf16>
    %123 = vector.shape_cast %122 : vector<1x2x2xbf16> to vector<2x2xbf16>
    %124 = arith.truncf %121 : vector<2x512xf32> to vector<2x512xbf16>
    %cst_85 = arith.constant dense<0.000000e+00> : vector<2x512xf32>
    %125 = tpu.matmul %123, %124, %cst_85 {dimension_numbers = #tpu.dot_dimension_numbers<[1], [0], [0], [1], [0, 0, 1, 1], [], []>} : vector<2x2xbf16>, vector<2x512xbf16>, vector<2x512xf32> -> vector<2x512xf32>
    %126 = arith.addf %116, %125 : vector<2x512xf32>
    %c0_86 = arith.constant 0 : index
    %c120 = arith.constant 120 : index
    %127 = vector.load %arg9[%c0_86, %c120] : memref<8x768xf32, #tpu.memory_space<vmem>>, vector<2x512xf32>
    %c10 = arith.constant 10 : index
    %c0_87 = arith.constant 0 : index
    %c0_88 = arith.constant 0 : index
    %128 = vector.load %arg7[%c10, %c0_87, %c0_88] : memref<27x1x512xf32, #tpu.memory_space<vmem>>, vector<1x1x512xf32>
    %129 = vector.shape_cast %128 : vector<1x1x512xf32> to vector<1x512xf32>
    %130 = vector.broadcast %129 : vector<1x512xf32> to vector<2x512xf32>
    %131 = arith.mulf %127, %130 : vector<2x512xf32>
    %c10_89 = arith.constant 10 : index
    %c0_90 = arith.constant 0 : index
    %c0_91 = arith.constant 0 : index
    %132 = vector.load %arg3[%c10_89, %c0_90, %c0_91] : memref<27x2x2xbf16, #tpu.memory_space<vmem>>, vector<1x2x2xbf16>
    %133 = vector.shape_cast %132 : vector<1x2x2xbf16> to vector<2x2xbf16>
    %134 = arith.truncf %131 : vector<2x512xf32> to vector<2x512xbf16>
    %cst_92 = arith.constant dense<0.000000e+00> : vector<2x512xf32>
    %135 = tpu.matmul %133, %134, %cst_92 {dimension_numbers = #tpu.dot_dimension_numbers<[1], [0], [0], [1], [0, 0, 1, 1], [], []>} : vector<2x2xbf16>, vector<2x512xbf16>, vector<2x512xf32> -> vector<2x512xf32>
    %136 = arith.addf %126, %135 : vector<2x512xf32>
    %c0_93 = arith.constant 0 : index
    %c121 = arith.constant 121 : index
    %137 = vector.load %arg9[%c0_93, %c121] : memref<8x768xf32, #tpu.memory_space<vmem>>, vector<2x512xf32>
    %c11 = arith.constant 11 : index
    %c0_94 = arith.constant 0 : index
    %c0_95 = arith.constant 0 : index
    %138 = vector.load %arg7[%c11, %c0_94, %c0_95] : memref<27x1x512xf32, #tpu.memory_space<vmem>>, vector<1x1x512xf32>
    %139 = vector.shape_cast %138 : vector<1x1x512xf32> to vector<1x512xf32>
    %140 = vector.broadcast %139 : vector<1x512xf32> to vector<2x512xf32>
    %141 = arith.mulf %137, %140 : vector<2x512xf32>
    %c11_96 = arith.constant 11 : index
    %c0_97 = arith.constant 0 : index
    %c0_98 = arith.constant 0 : index
    %142 = vector.load %arg3[%c11_96, %c0_97, %c0_98] : memref<27x2x2xbf16, #tpu.memory_space<vmem>>, vector<1x2x2xbf16>
    %143 = vector.shape_cast %142 : vector<1x2x2xbf16> to vector<2x2xbf16>
    %144 = arith.truncf %141 : vector<2x512xf32> to vector<2x512xbf16>
    %cst_99 = arith.constant dense<0.000000e+00> : vector<2x512xf32>
    %145 = tpu.matmul %143, %144, %cst_99 {dimension_numbers = #tpu.dot_dimension_numbers<[1], [0], [0], [1], [0, 0, 1, 1], [], []>} : vector<2x2xbf16>, vector<2x512xbf16>, vector<2x512xf32> -> vector<2x512xf32>
    %146 = arith.addf %136, %145 : vector<2x512xf32>
    %c0_100 = arith.constant 0 : index
    %c127 = arith.constant 127 : index
    %147 = vector.load %arg9[%c0_100, %c127] : memref<8x768xf32, #tpu.memory_space<vmem>>, vector<2x512xf32>
    %c12 = arith.constant 12 : index
    %c0_101 = arith.constant 0 : index
    %c0_102 = arith.constant 0 : index
    %148 = vector.load %arg7[%c12, %c0_101, %c0_102] : memref<27x1x512xf32, #tpu.memory_space<vmem>>, vector<1x1x512xf32>
    %149 = vector.shape_cast %148 : vector<1x1x512xf32> to vector<1x512xf32>
    %150 = vector.broadcast %149 : vector<1x512xf32> to vector<2x512xf32>
    %151 = arith.mulf %147, %150 : vector<2x512xf32>
    %c12_103 = arith.constant 12 : index
    %c0_104 = arith.constant 0 : index
    %c0_105 = arith.constant 0 : index
    %152 = vector.load %arg3[%c12_103, %c0_104, %c0_105] : memref<27x2x2xbf16, #tpu.memory_space<vmem>>, vector<1x2x2xbf16>
    %153 = vector.shape_cast %152 : vector<1x2x2xbf16> to vector<2x2xbf16>
    %154 = arith.truncf %151 : vector<2x512xf32> to vector<2x512xbf16>
    %cst_106 = arith.constant dense<0.000000e+00> : vector<2x512xf32>
    %155 = tpu.matmul %153, %154, %cst_106 {dimension_numbers = #tpu.dot_dimension_numbers<[1], [0], [0], [1], [0, 0, 1, 1], [], []>} : vector<2x2xbf16>, vector<2x512xbf16>, vector<2x512xf32> -> vector<2x512xf32>
    %156 = arith.addf %146, %155 : vector<2x512xf32>
    %c0_107 = arith.constant 0 : index
    %c128_108 = arith.constant 128 : index
    %157 = vector.load %arg9[%c0_107, %c128_108] : memref<8x768xf32, #tpu.memory_space<vmem>>, vector<2x512xf32>
    %c13 = arith.constant 13 : index
    %c0_109 = arith.constant 0 : index
    %c0_110 = arith.constant 0 : index
    %158 = vector.load %arg7[%c13, %c0_109, %c0_110] : memref<27x1x512xf32, #tpu.memory_space<vmem>>, vector<1x1x512xf32>
    %159 = vector.shape_cast %158 : vector<1x1x512xf32> to vector<1x512xf32>
    %160 = vector.broadcast %159 : vector<1x512xf32> to vector<2x512xf32>
    %161 = arith.mulf %157, %160 : vector<2x512xf32>
    %c13_111 = arith.constant 13 : index
    %c0_112 = arith.constant 0 : index
    %c0_113 = arith.constant 0 : index
    %162 = vector.load %arg3[%c13_111, %c0_112, %c0_113] : memref<27x2x2xbf16, #tpu.memory_space<vmem>>, vector<1x2x2xbf16>
    %163 = vector.shape_cast %162 : vector<1x2x2xbf16> to vector<2x2xbf16>
    %164 = arith.truncf %161 : vector<2x512xf32> to vector<2x512xbf16>
    %cst_114 = arith.constant dense<0.000000e+00> : vector<2x512xf32>
    %165 = tpu.matmul %163, %164, %cst_114 {dimension_numbers = #tpu.dot_dimension_numbers<[1], [0], [0], [1], [0, 0, 1, 1], [], []>} : vector<2x2xbf16>, vector<2x512xbf16>, vector<2x512xf32> -> vector<2x512xf32>
    %166 = arith.addf %156, %165 : vector<2x512xf32>
    %c0_115 = arith.constant 0 : index
    %c129 = arith.constant 129 : index
    %167 = vector.load %arg9[%c0_115, %c129] : memref<8x768xf32, #tpu.memory_space<vmem>>, vector<2x512xf32>
    %c14 = arith.constant 14 : index
    %c0_116 = arith.constant 0 : index
    %c0_117 = arith.constant 0 : index
    %168 = vector.load %arg7[%c14, %c0_116, %c0_117] : memref<27x1x512xf32, #tpu.memory_space<vmem>>, vector<1x1x512xf32>
    %169 = vector.shape_cast %168 : vector<1x1x512xf32> to vector<1x512xf32>
    %170 = vector.broadcast %169 : vector<1x512xf32> to vector<2x512xf32>
    %171 = arith.mulf %167, %170 : vector<2x512xf32>
    %c14_118 = arith.constant 14 : index
    %c0_119 = arith.constant 0 : index
    %c0_120 = arith.constant 0 : index
    %172 = vector.load %arg3[%c14_118, %c0_119, %c0_120] : memref<27x2x2xbf16, #tpu.memory_space<vmem>>, vector<1x2x2xbf16>
    %173 = vector.shape_cast %172 : vector<1x2x2xbf16> to vector<2x2xbf16>
    %174 = arith.truncf %171 : vector<2x512xf32> to vector<2x512xbf16>
    %cst_121 = arith.constant dense<0.000000e+00> : vector<2x512xf32>
    %175 = tpu.matmul %173, %174, %cst_121 {dimension_numbers = #tpu.dot_dimension_numbers<[1], [0], [0], [1], [0, 0, 1, 1], [], []>} : vector<2x2xbf16>, vector<2x512xbf16>, vector<2x512xf32> -> vector<2x512xf32>
    %176 = arith.addf %166, %175 : vector<2x512xf32>
    %c0_122 = arith.constant 0 : index
    %c135 = arith.constant 135 : index
    %177 = vector.load %arg9[%c0_122, %c135] : memref<8x768xf32, #tpu.memory_space<vmem>>, vector<2x512xf32>
    %c15 = arith.constant 15 : index
    %c0_123 = arith.constant 0 : index
    %c0_124 = arith.constant 0 : index
    %178 = vector.load %arg7[%c15, %c0_123, %c0_124] : memref<27x1x512xf32, #tpu.memory_space<vmem>>, vector<1x1x512xf32>
    %179 = vector.shape_cast %178 : vector<1x1x512xf32> to vector<1x512xf32>
    %180 = vector.broadcast %179 : vector<1x512xf32> to vector<2x512xf32>
    %181 = arith.mulf %177, %180 : vector<2x512xf32>
    %c15_125 = arith.constant 15 : index
    %c0_126 = arith.constant 0 : index
    %c0_127 = arith.constant 0 : index
    %182 = vector.load %arg3[%c15_125, %c0_126, %c0_127] : memref<27x2x2xbf16, #tpu.memory_space<vmem>>, vector<1x2x2xbf16>
    %183 = vector.shape_cast %182 : vector<1x2x2xbf16> to vector<2x2xbf16>
    %184 = arith.truncf %181 : vector<2x512xf32> to vector<2x512xbf16>
    %cst_128 = arith.constant dense<0.000000e+00> : vector<2x512xf32>
    %185 = tpu.matmul %183, %184, %cst_128 {dimension_numbers = #tpu.dot_dimension_numbers<[1], [0], [0], [1], [0, 0, 1, 1], [], []>} : vector<2x2xbf16>, vector<2x512xbf16>, vector<2x512xf32> -> vector<2x512xf32>
    %186 = arith.addf %176, %185 : vector<2x512xf32>
    %c0_129 = arith.constant 0 : index
    %c136 = arith.constant 136 : index
    %187 = vector.load %arg9[%c0_129, %c136] : memref<8x768xf32, #tpu.memory_space<vmem>>, vector<2x512xf32>
    %c16 = arith.constant 16 : index
    %c0_130 = arith.constant 0 : index
    %c0_131 = arith.constant 0 : index
    %188 = vector.load %arg7[%c16, %c0_130, %c0_131] : memref<27x1x512xf32, #tpu.memory_space<vmem>>, vector<1x1x512xf32>
    %189 = vector.shape_cast %188 : vector<1x1x512xf32> to vector<1x512xf32>
    %190 = vector.broadcast %189 : vector<1x512xf32> to vector<2x512xf32>
    %191 = arith.mulf %187, %190 : vector<2x512xf32>
    %c16_132 = arith.constant 16 : index
    %c0_133 = arith.constant 0 : index
    %c0_134 = arith.constant 0 : index
    %192 = vector.load %arg3[%c16_132, %c0_133, %c0_134] : memref<27x2x2xbf16, #tpu.memory_space<vmem>>, vector<1x2x2xbf16>
    %193 = vector.shape_cast %192 : vector<1x2x2xbf16> to vector<2x2xbf16>
    %194 = arith.truncf %191 : vector<2x512xf32> to vector<2x512xbf16>
    %cst_135 = arith.constant dense<0.000000e+00> : vector<2x512xf32>
    %195 = tpu.matmul %193, %194, %cst_135 {dimension_numbers = #tpu.dot_dimension_numbers<[1], [0], [0], [1], [0, 0, 1, 1], [], []>} : vector<2x2xbf16>, vector<2x512xbf16>, vector<2x512xf32> -> vector<2x512xf32>
    %196 = arith.addf %186, %195 : vector<2x512xf32>
    %c0_136 = arith.constant 0 : index
    %c137 = arith.constant 137 : index
    %197 = vector.load %arg9[%c0_136, %c137] : memref<8x768xf32, #tpu.memory_space<vmem>>, vector<2x512xf32>
    %c17 = arith.constant 17 : index
    %c0_137 = arith.constant 0 : index
    %c0_138 = arith.constant 0 : index
    %198 = vector.load %arg7[%c17, %c0_137, %c0_138] : memref<27x1x512xf32, #tpu.memory_space<vmem>>, vector<1x1x512xf32>
    %199 = vector.shape_cast %198 : vector<1x1x512xf32> to vector<1x512xf32>
    %200 = vector.broadcast %199 : vector<1x512xf32> to vector<2x512xf32>
    %201 = arith.mulf %197, %200 : vector<2x512xf32>
    %c17_139 = arith.constant 17 : index
    %c0_140 = arith.constant 0 : index
    %c0_141 = arith.constant 0 : index
    %202 = vector.load %arg3[%c17_139, %c0_140, %c0_141] : memref<27x2x2xbf16, #tpu.memory_space<vmem>>, vector<1x2x2xbf16>
    %203 = vector.shape_cast %202 : vector<1x2x2xbf16> to vector<2x2xbf16>
    %204 = arith.truncf %201 : vector<2x512xf32> to vector<2x512xbf16>
    %cst_142 = arith.constant dense<0.000000e+00> : vector<2x512xf32>
    %205 = tpu.matmul %203, %204, %cst_142 {dimension_numbers = #tpu.dot_dimension_numbers<[1], [0], [0], [1], [0, 0, 1, 1], [], []>} : vector<2x2xbf16>, vector<2x512xbf16>, vector<2x512xf32> -> vector<2x512xf32>
    %206 = arith.addf %196, %205 : vector<2x512xf32>
    %c0_143 = arith.constant 0 : index
    %c183 = arith.constant 183 : index
    %207 = vector.load %arg9[%c0_143, %c183] : memref<8x768xf32, #tpu.memory_space<vmem>>, vector<2x512xf32>
    %c18 = arith.constant 18 : index
    %c0_144 = arith.constant 0 : index
    %c0_145 = arith.constant 0 : index
    %208 = vector.load %arg7[%c18, %c0_144, %c0_145] : memref<27x1x512xf32, #tpu.memory_space<vmem>>, vector<1x1x512xf32>
    %209 = vector.shape_cast %208 : vector<1x1x512xf32> to vector<1x512xf32>
    %210 = vector.broadcast %209 : vector<1x512xf32> to vector<2x512xf32>
    %211 = arith.mulf %207, %210 : vector<2x512xf32>
    %c18_146 = arith.constant 18 : index
    %c0_147 = arith.constant 0 : index
    %c0_148 = arith.constant 0 : index
    %212 = vector.load %arg3[%c18_146, %c0_147, %c0_148] : memref<27x2x2xbf16, #tpu.memory_space<vmem>>, vector<1x2x2xbf16>
    %213 = vector.shape_cast %212 : vector<1x2x2xbf16> to vector<2x2xbf16>
    %214 = arith.truncf %211 : vector<2x512xf32> to vector<2x512xbf16>
    %cst_149 = arith.constant dense<0.000000e+00> : vector<2x512xf32>
    %215 = tpu.matmul %213, %214, %cst_149 {dimension_numbers = #tpu.dot_dimension_numbers<[1], [0], [0], [1], [0, 0, 1, 1], [], []>} : vector<2x2xbf16>, vector<2x512xbf16>, vector<2x512xf32> -> vector<2x512xf32>
    %216 = arith.addf %206, %215 : vector<2x512xf32>
    %c0_150 = arith.constant 0 : index
    %c184 = arith.constant 184 : index
    %217 = vector.load %arg9[%c0_150, %c184] : memref<8x768xf32, #tpu.memory_space<vmem>>, vector<2x512xf32>
    %c19 = arith.constant 19 : index
    %c0_151 = arith.constant 0 : index
    %c0_152 = arith.constant 0 : index
    %218 = vector.load %arg7[%c19, %c0_151, %c0_152] : memref<27x1x512xf32, #tpu.memory_space<vmem>>, vector<1x1x512xf32>
    %219 = vector.shape_cast %218 : vector<1x1x512xf32> to vector<1x512xf32>
    %220 = vector.broadcast %219 : vector<1x512xf32> to vector<2x512xf32>
    %221 = arith.mulf %217, %220 : vector<2x512xf32>
    %c19_153 = arith.constant 19 : index
    %c0_154 = arith.constant 0 : index
    %c0_155 = arith.constant 0 : index
    %222 = vector.load %arg3[%c19_153, %c0_154, %c0_155] : memref<27x2x2xbf16, #tpu.memory_space<vmem>>, vector<1x2x2xbf16>
    %223 = vector.shape_cast %222 : vector<1x2x2xbf16> to vector<2x2xbf16>
    %224 = arith.truncf %221 : vector<2x512xf32> to vector<2x512xbf16>
    %cst_156 = arith.constant dense<0.000000e+00> : vector<2x512xf32>
    %225 = tpu.matmul %223, %224, %cst_156 {dimension_numbers = #tpu.dot_dimension_numbers<[1], [0], [0], [1], [0, 0, 1, 1], [], []>} : vector<2x2xbf16>, vector<2x512xbf16>, vector<2x512xf32> -> vector<2x512xf32>
    %226 = arith.addf %216, %225 : vector<2x512xf32>
    %c0_157 = arith.constant 0 : index
    %c185 = arith.constant 185 : index
    %227 = vector.load %arg9[%c0_157, %c185] : memref<8x768xf32, #tpu.memory_space<vmem>>, vector<2x512xf32>
    %c20 = arith.constant 20 : index
    %c0_158 = arith.constant 0 : index
    %c0_159 = arith.constant 0 : index
    %228 = vector.load %arg7[%c20, %c0_158, %c0_159] : memref<27x1x512xf32, #tpu.memory_space<vmem>>, vector<1x1x512xf32>
    %229 = vector.shape_cast %228 : vector<1x1x512xf32> to vector<1x512xf32>
    %230 = vector.broadcast %229 : vector<1x512xf32> to vector<2x512xf32>
    %231 = arith.mulf %227, %230 : vector<2x512xf32>
    %c20_160 = arith.constant 20 : index
    %c0_161 = arith.constant 0 : index
    %c0_162 = arith.constant 0 : index
    %232 = vector.load %arg3[%c20_160, %c0_161, %c0_162] : memref<27x2x2xbf16, #tpu.memory_space<vmem>>, vector<1x2x2xbf16>
    %233 = vector.shape_cast %232 : vector<1x2x2xbf16> to vector<2x2xbf16>
    %234 = arith.truncf %231 : vector<2x512xf32> to vector<2x512xbf16>
    %cst_163 = arith.constant dense<0.000000e+00> : vector<2x512xf32>
    %235 = tpu.matmul %233, %234, %cst_163 {dimension_numbers = #tpu.dot_dimension_numbers<[1], [0], [0], [1], [0, 0, 1, 1], [], []>} : vector<2x2xbf16>, vector<2x512xbf16>, vector<2x512xf32> -> vector<2x512xf32>
    %236 = arith.addf %226, %235 : vector<2x512xf32>
    %c0_164 = arith.constant 0 : index
    %c191 = arith.constant 191 : index
    %237 = vector.load %arg9[%c0_164, %c191] : memref<8x768xf32, #tpu.memory_space<vmem>>, vector<2x512xf32>
    %c21 = arith.constant 21 : index
    %c0_165 = arith.constant 0 : index
    %c0_166 = arith.constant 0 : index
    %238 = vector.load %arg7[%c21, %c0_165, %c0_166] : memref<27x1x512xf32, #tpu.memory_space<vmem>>, vector<1x1x512xf32>
    %239 = vector.shape_cast %238 : vector<1x1x512xf32> to vector<1x512xf32>
    %240 = vector.broadcast %239 : vector<1x512xf32> to vector<2x512xf32>
    %241 = arith.mulf %237, %240 : vector<2x512xf32>
    %c21_167 = arith.constant 21 : index
    %c0_168 = arith.constant 0 : index
    %c0_169 = arith.constant 0 : index
    %242 = vector.load %arg3[%c21_167, %c0_168, %c0_169] : memref<27x2x2xbf16, #tpu.memory_space<vmem>>, vector<1x2x2xbf16>
    %243 = vector.shape_cast %242 : vector<1x2x2xbf16> to vector<2x2xbf16>
    %244 = arith.truncf %241 : vector<2x512xf32> to vector<2x512xbf16>
    %cst_170 = arith.constant dense<0.000000e+00> : vector<2x512xf32>
    %245 = tpu.matmul %243, %244, %cst_170 {dimension_numbers = #tpu.dot_dimension_numbers<[1], [0], [0], [1], [0, 0, 1, 1], [], []>} : vector<2x2xbf16>, vector<2x512xbf16>, vector<2x512xf32> -> vector<2x512xf32>
    %246 = arith.addf %236, %245 : vector<2x512xf32>
    %c0_171 = arith.constant 0 : index
    %c192 = arith.constant 192 : index
    %247 = vector.load %arg9[%c0_171, %c192] : memref<8x768xf32, #tpu.memory_space<vmem>>, vector<2x512xf32>
    %c22 = arith.constant 22 : index
    %c0_172 = arith.constant 0 : index
    %c0_173 = arith.constant 0 : index
    %248 = vector.load %arg7[%c22, %c0_172, %c0_173] : memref<27x1x512xf32, #tpu.memory_space<vmem>>, vector<1x1x512xf32>
    %249 = vector.shape_cast %248 : vector<1x1x512xf32> to vector<1x512xf32>
    %250 = vector.broadcast %249 : vector<1x512xf32> to vector<2x512xf32>
    %251 = arith.mulf %247, %250 : vector<2x512xf32>
    %c22_174 = arith.constant 22 : index
    %c0_175 = arith.constant 0 : index
    %c0_176 = arith.constant 0 : index
    %252 = vector.load %arg3[%c22_174, %c0_175, %c0_176] : memref<27x2x2xbf16, #tpu.memory_space<vmem>>, vector<1x2x2xbf16>
    %253 = vector.shape_cast %252 : vector<1x2x2xbf16> to vector<2x2xbf16>
    %254 = arith.truncf %251 : vector<2x512xf32> to vector<2x512xbf16>
    %cst_177 = arith.constant dense<0.000000e+00> : vector<2x512xf32>
    %255 = tpu.matmul %253, %254, %cst_177 {dimension_numbers = #tpu.dot_dimension_numbers<[1], [0], [0], [1], [0, 0, 1, 1], [], []>} : vector<2x2xbf16>, vector<2x512xbf16>, vector<2x512xf32> -> vector<2x512xf32>
    %256 = arith.addf %246, %255 : vector<2x512xf32>
    %c0_178 = arith.constant 0 : index
    %c193 = arith.constant 193 : index
    %257 = vector.load %arg9[%c0_178, %c193] : memref<8x768xf32, #tpu.memory_space<vmem>>, vector<2x512xf32>
    %c23 = arith.constant 23 : index
    %c0_179 = arith.constant 0 : index
    %c0_180 = arith.constant 0 : index
    %258 = vector.load %arg7[%c23, %c0_179, %c0_180] : memref<27x1x512xf32, #tpu.memory_space<vmem>>, vector<1x1x512xf32>
    %259 = vector.shape_cast %258 : vector<1x1x512xf32> to vector<1x512xf32>
    %260 = vector.broadcast %259 : vector<1x512xf32> to vector<2x512xf32>
    %261 = arith.mulf %257, %260 : vector<2x512xf32>
    %c23_181 = arith.constant 23 : index
    %c0_182 = arith.constant 0 : index
    %c0_183 = arith.constant 0 : index
    %262 = vector.load %arg3[%c23_181, %c0_182, %c0_183] : memref<27x2x2xbf16, #tpu.memory_space<vmem>>, vector<1x2x2xbf16>
    %263 = vector.shape_cast %262 : vector<1x2x2xbf16> to vector<2x2xbf16>
    %264 = arith.truncf %261 : vector<2x512xf32> to vector<2x512xbf16>
    %cst_184 = arith.constant dense<0.000000e+00> : vector<2x512xf32>
    %265 = tpu.matmul %263, %264, %cst_184 {dimension_numbers = #tpu.dot_dimension_numbers<[1], [0], [0], [1], [0, 0, 1, 1], [], []>} : vector<2x2xbf16>, vector<2x512xbf16>, vector<2x512xf32> -> vector<2x512xf32>
    %266 = arith.addf %256, %265 : vector<2x512xf32>
    %c0_185 = arith.constant 0 : index
    %c199 = arith.constant 199 : index
    %267 = vector.load %arg9[%c0_185, %c199] : memref<8x768xf32, #tpu.memory_space<vmem>>, vector<2x512xf32>
    %c24 = arith.constant 24 : index
    %c0_186 = arith.constant 0 : index
    %c0_187 = arith.constant 0 : index
    %268 = vector.load %arg7[%c24, %c0_186, %c0_187] : memref<27x1x512xf32, #tpu.memory_space<vmem>>, vector<1x1x512xf32>
    %269 = vector.shape_cast %268 : vector<1x1x512xf32> to vector<1x512xf32>
    %270 = vector.broadcast %269 : vector<1x512xf32> to vector<2x512xf32>
    %271 = arith.mulf %267, %270 : vector<2x512xf32>
    %c24_188 = arith.constant 24 : index
    %c0_189 = arith.constant 0 : index
    %c0_190 = arith.constant 0 : index
    %272 = vector.load %arg3[%c24_188, %c0_189, %c0_190] : memref<27x2x2xbf16, #tpu.memory_space<vmem>>, vector<1x2x2xbf16>
    %273 = vector.shape_cast %272 : vector<1x2x2xbf16> to vector<2x2xbf16>
    %274 = arith.truncf %271 : vector<2x512xf32> to vector<2x512xbf16>
    %cst_191 = arith.constant dense<0.000000e+00> : vector<2x512xf32>
    %275 = tpu.matmul %273, %274, %cst_191 {dimension_numbers = #tpu.dot_dimension_numbers<[1], [0], [0], [1], [0, 0, 1, 1], [], []>} : vector<2x2xbf16>, vector<2x512xbf16>, vector<2x512xf32> -> vector<2x512xf32>
    %276 = arith.addf %266, %275 : vector<2x512xf32>
    %c0_192 = arith.constant 0 : index
    %c200 = arith.constant 200 : index
    %277 = vector.load %arg9[%c0_192, %c200] : memref<8x768xf32, #tpu.memory_space<vmem>>, vector<2x512xf32>
    %c25 = arith.constant 25 : index
    %c0_193 = arith.constant 0 : index
    %c0_194 = arith.constant 0 : index
    %278 = vector.load %arg7[%c25, %c0_193, %c0_194] : memref<27x1x512xf32, #tpu.memory_space<vmem>>, vector<1x1x512xf32>
    %279 = vector.shape_cast %278 : vector<1x1x512xf32> to vector<1x512xf32>
    %280 = vector.broadcast %279 : vector<1x512xf32> to vector<2x512xf32>
    %281 = arith.mulf %277, %280 : vector<2x512xf32>
    %c25_195 = arith.constant 25 : index
    %c0_196 = arith.constant 0 : index
    %c0_197 = arith.constant 0 : index
    %282 = vector.load %arg3[%c25_195, %c0_196, %c0_197] : memref<27x2x2xbf16, #tpu.memory_space<vmem>>, vector<1x2x2xbf16>
    %283 = vector.shape_cast %282 : vector<1x2x2xbf16> to vector<2x2xbf16>
    %284 = arith.truncf %281 : vector<2x512xf32> to vector<2x512xbf16>
    %cst_198 = arith.constant dense<0.000000e+00> : vector<2x512xf32>
    %285 = tpu.matmul %283, %284, %cst_198 {dimension_numbers = #tpu.dot_dimension_numbers<[1], [0], [0], [1], [0, 0, 1, 1], [], []>} : vector<2x2xbf16>, vector<2x512xbf16>, vector<2x512xf32> -> vector<2x512xf32>
    %286 = arith.addf %276, %285 : vector<2x512xf32>
    %c0_199 = arith.constant 0 : index
    %c201 = arith.constant 201 : index
    %287 = vector.load %arg9[%c0_199, %c201] : memref<8x768xf32, #tpu.memory_space<vmem>>, vector<2x512xf32>
    %c26 = arith.constant 26 : index
    %c0_200 = arith.constant 0 : index
    %c0_201 = arith.constant 0 : index
    %288 = vector.load %arg7[%c26, %c0_200, %c0_201] : memref<27x1x512xf32, #tpu.memory_space<vmem>>, vector<1x1x512xf32>
    %289 = vector.shape_cast %288 : vector<1x1x512xf32> to vector<1x512xf32>
    %290 = vector.broadcast %289 : vector<1x512xf32> to vector<2x512xf32>
    %291 = arith.mulf %287, %290 : vector<2x512xf32>
    %c26_202 = arith.constant 26 : index
    %c0_203 = arith.constant 0 : index
    %c0_204 = arith.constant 0 : index
    %292 = vector.load %arg3[%c26_202, %c0_203, %c0_204] : memref<27x2x2xbf16, #tpu.memory_space<vmem>>, vector<1x2x2xbf16>
    %293 = vector.shape_cast %292 : vector<1x2x2xbf16> to vector<2x2xbf16>
    %294 = arith.truncf %291 : vector<2x512xf32> to vector<2x512xbf16>
    %cst_205 = arith.constant dense<0.000000e+00> : vector<2x512xf32>
    %295 = tpu.matmul %293, %294, %cst_205 {dimension_numbers = #tpu.dot_dimension_numbers<[1], [0], [0], [1], [0, 0, 1, 1], [], []>} : vector<2x2xbf16>, vector<2x512xbf16>, vector<2x512xf32> -> vector<2x512xf32>
    %296 = arith.addf %286, %295 : vector<2x512xf32>
    %cst_206 = arith.constant dense<0.000000e+00> : vector<2xf32>
    %297 = vector.multi_reduction <add>, %296, %cst_206 [1] : vector<2x512xf32> to vector<2xf32>
    %298 = vector.shape_cast %297 : vector<2xf32> to vector<2x1xf32>
    %cst_207 = arith.constant 5.120000e+02 : f32
    %299 = vector.broadcast %cst_207 : f32 to vector<2x1xf32>
    %300 = arith.divf %298, %299 : vector<2x1xf32>
    %301 = vector.broadcast %300 : vector<2x1xf32> to vector<2x512xf32>
    %302 = arith.subf %296, %301 : vector<2x512xf32>
    %303 = arith.mulf %302, %302 : vector<2x512xf32>
    %cst_208 = arith.constant dense<0.000000e+00> : vector<2xf32>
    %304 = vector.multi_reduction <add>, %303, %cst_208 [1] : vector<2x512xf32> to vector<2xf32>
    %305 = vector.shape_cast %304 : vector<2xf32> to vector<2x1xf32>
    %cst_209 = arith.constant 5.120000e+02 : f32
    %306 = vector.broadcast %cst_209 : f32 to vector<2x1xf32>
    %307 = arith.divf %305, %306 : vector<2x1xf32>
    %cst_210 = arith.constant 9.99999974E-6 : f32
    %308 = vector.broadcast %cst_210 : f32 to vector<2x1xf32>
    %309 = arith.addf %307, %308 : vector<2x1xf32>
    %310 = math.rsqrt %309 : vector<2x1xf32>
    %311 = vector.broadcast %310 : vector<2x1xf32> to vector<2x512xf32>
    %312 = arith.mulf %302, %311 : vector<2x512xf32>
    %cst_211 = arith.constant 0.000000e+00 : f32
    %313 = vector.broadcast %cst_211 : f32 to vector<2x512xf32>
    %314 = arith.maximumf %312, %313 : vector<2x512xf32>
    %c0_212 = arith.constant 0 : index
    %c0_213 = arith.constant 0 : index
    %315 = vector.load %arg4[%c0_212, %c0_213] : memref<8x2xbf16, #tpu.memory_space<vmem>>, vector<8x2xbf16>
    %316 = arith.truncf %314 : vector<2x512xf32> to vector<2x512xbf16>
    %cst_214 = arith.constant dense<0.000000e+00> : vector<8x512xf32>
    %317 = tpu.matmul %315, %316, %cst_214 {dimension_numbers = #tpu.dot_dimension_numbers<[1], [0], [0], [1], [0, 0, 1, 1], [], []>} : vector<8x2xbf16>, vector<2x512xbf16>, vector<8x512xf32> -> vector<8x512xf32>
    %cst_215 = arith.constant dense<0.000000e+00> : vector<8xf32>
    %318 = vector.multi_reduction <add>, %317, %cst_215 [1] : vector<8x512xf32> to vector<8xf32>
    %319 = vector.shape_cast %318 : vector<8xf32> to vector<8x1xf32>
    %cst_216 = arith.constant 5.120000e+02 : f32
    %320 = vector.broadcast %cst_216 : f32 to vector<8x1xf32>
    %321 = arith.divf %319, %320 : vector<8x1xf32>
    %322 = vector.broadcast %321 : vector<8x1xf32> to vector<8x512xf32>
    %323 = arith.subf %317, %322 : vector<8x512xf32>
    %324 = arith.mulf %323, %323 : vector<8x512xf32>
    %cst_217 = arith.constant dense<0.000000e+00> : vector<8xf32>
    %325 = vector.multi_reduction <add>, %324, %cst_217 [1] : vector<8x512xf32> to vector<8xf32>
    %326 = vector.shape_cast %325 : vector<8xf32> to vector<8x1xf32>
    %cst_218 = arith.constant 5.120000e+02 : f32
    %327 = vector.broadcast %cst_218 : f32 to vector<8x1xf32>
    %328 = arith.divf %326, %327 : vector<8x1xf32>
    %cst_219 = arith.constant 9.99999974E-6 : f32
    %329 = vector.broadcast %cst_219 : f32 to vector<8x1xf32>
    %330 = arith.addf %328, %329 : vector<8x1xf32>
    %331 = math.rsqrt %330 : vector<8x1xf32>
    %332 = vector.broadcast %331 : vector<8x1xf32> to vector<8x512xf32>
    %333 = arith.mulf %323, %332 : vector<8x512xf32>
    %c0_220 = arith.constant 0 : index
    %c128_221 = arith.constant 128 : index
    %334 = vector.load %arg9[%c0_220, %c128_221] : memref<8x768xf32, #tpu.memory_space<vmem>>, vector<8x512xf32>
    tpu.vector_store %arg9[%c0_220, %c128_221], %333 {strides = array<i32>} : memref<8x768xf32, #tpu.memory_space<vmem>>, vector<8x512xf32>,
    %cst_222 = arith.constant 0.000000e+00 : f32
    %335 = vector.broadcast %cst_222 : f32 to vector<4x512xf32>
    %c0_223 = arith.constant 0 : index
    %c55_224 = arith.constant 55 : index
    %336 = vector.load %arg9[%c0_223, %c55_224] : memref<8x768xf32, #tpu.memory_space<vmem>>, vector<8x512xf32>
    %c0_225 = arith.constant 0 : index
    %c0_226 = arith.constant 0 : index
    %c0_227 = arith.constant 0 : index
    %337 = vector.load %arg7[%c0_225, %c0_226, %c0_227] : memref<27x1x512xf32, #tpu.memory_space<vmem>>, vector<1x1x512xf32>
    %338 = vector.shape_cast %337 : vector<1x1x512xf32> to vector<1x512xf32>
    %339 = vector.broadcast %338 : vector<1x512xf32> to vector<8x512xf32>
    %340 = arith.mulf %336, %339 : vector<8x512xf32>
    %c0_228 = arith.constant 0 : index
    %c0_229 = arith.constant 0 : index
    %c0_230 = arith.constant 0 : index
    %341 = vector.load %arg5[%c0_228, %c0_229, %c0_230] : memref<27x4x8xbf16, #tpu.memory_space<vmem>>, vector<1x4x8xbf16>
    %342 = vector.shape_cast %341 : vector<1x4x8xbf16> to vector<4x8xbf16>
    %343 = arith.truncf %340 : vector<8x512xf32> to vector<8x512xbf16>
    %cst_231 = arith.constant dense<0.000000e+00> : vector<4x512xf32>
    %344 = tpu.matmul %342, %343, %cst_231 {dimension_numbers = #tpu.dot_dimension_numbers<[1], [0], [0], [1], [0, 0, 1, 1], [], []>} : vector<4x8xbf16>, vector<8x512xbf16>, vector<4x512xf32> -> vector<4x512xf32>
    %345 = arith.addf %335, %344 : vector<4x512xf32>
    %c0_232 = arith.constant 0 : index
    %c56_233 = arith.constant 56 : index
    %346 = vector.load %arg9[%c0_232, %c56_233] : memref<8x768xf32, #tpu.memory_space<vmem>>, vector<8x512xf32>
    %c1_234 = arith.constant 1 : index
    %c0_235 = arith.constant 0 : index
    %c0_236 = arith.constant 0 : index
    %347 = vector.load %arg7[%c1_234, %c0_235, %c0_236] : memref<27x1x512xf32, #tpu.memory_space<vmem>>, vector<1x1x512xf32>
    %348 = vector.shape_cast %347 : vector<1x1x512xf32> to vector<1x512xf32>
    %349 = vector.broadcast %348 : vector<1x512xf32> to vector<8x512xf32>
    %350 = arith.mulf %346, %349 : vector<8x512xf32>
    %c1_237 = arith.constant 1 : index
    %c0_238 = arith.constant 0 : index
    %c0_239 = arith.constant 0 : index
    %351 = vector.load %arg5[%c1_237, %c0_238, %c0_239] : memref<27x4x8xbf16, #tpu.memory_space<vmem>>, vector<1x4x8xbf16>
    %352 = vector.shape_cast %351 : vector<1x4x8xbf16> to vector<4x8xbf16>
    %353 = arith.truncf %350 : vector<8x512xf32> to vector<8x512xbf16>
    %cst_240 = arith.constant dense<0.000000e+00> : vector<4x512xf32>
    %354 = tpu.matmul %352, %353, %cst_240 {dimension_numbers = #tpu.dot_dimension_numbers<[1], [0], [0], [1], [0, 0, 1, 1], [], []>} : vector<4x8xbf16>, vector<8x512xbf16>, vector<4x512xf32> -> vector<4x512xf32>
    %355 = arith.addf %345, %354 : vector<4x512xf32>
    %c0_241 = arith.constant 0 : index
    %c57_242 = arith.constant 57 : index
    %356 = vector.load %arg9[%c0_241, %c57_242] : memref<8x768xf32, #tpu.memory_space<vmem>>, vector<8x512xf32>
    %c2_243 = arith.constant 2 : index
    %c0_244 = arith.constant 0 : index
    %c0_245 = arith.constant 0 : index
    %357 = vector.load %arg7[%c2_243, %c0_244, %c0_245] : memref<27x1x512xf32, #tpu.memory_space<vmem>>, vector<1x1x512xf32>
    %358 = vector.shape_cast %357 : vector<1x1x512xf32> to vector<1x512xf32>
    %359 = vector.broadcast %358 : vector<1x512xf32> to vector<8x512xf32>
    %360 = arith.mulf %356, %359 : vector<8x512xf32>
    %c2_246 = arith.constant 2 : index
    %c0_247 = arith.constant 0 : index
    %c0_248 = arith.constant 0 : index
    %361 = vector.load %arg5[%c2_246, %c0_247, %c0_248] : memref<27x4x8xbf16, #tpu.memory_space<vmem>>, vector<1x4x8xbf16>
    %362 = vector.shape_cast %361 : vector<1x4x8xbf16> to vector<4x8xbf16>
    %363 = arith.truncf %360 : vector<8x512xf32> to vector<8x512xbf16>
    %cst_249 = arith.constant dense<0.000000e+00> : vector<4x512xf32>
    %364 = tpu.matmul %362, %363, %cst_249 {dimension_numbers = #tpu.dot_dimension_numbers<[1], [0], [0], [1], [0, 0, 1, 1], [], []>} : vector<4x8xbf16>, vector<8x512xbf16>, vector<4x512xf32> -> vector<4x512xf32>
    %365 = arith.addf %355, %364 : vector<4x512xf32>
    %c0_250 = arith.constant 0 : index
    %c63_251 = arith.constant 63 : index
    %366 = vector.load %arg9[%c0_250, %c63_251] : memref<8x768xf32, #tpu.memory_space<vmem>>, vector<8x512xf32>
    %c3_252 = arith.constant 3 : index
    %c0_253 = arith.constant 0 : index
    %c0_254 = arith.constant 0 : index
    %367 = vector.load %arg7[%c3_252, %c0_253, %c0_254] : memref<27x1x512xf32, #tpu.memory_space<vmem>>, vector<1x1x512xf32>
    %368 = vector.shape_cast %367 : vector<1x1x512xf32> to vector<1x512xf32>
    %369 = vector.broadcast %368 : vector<1x512xf32> to vector<8x512xf32>
    %370 = arith.mulf %366, %369 : vector<8x512xf32>
    %c3_255 = arith.constant 3 : index
    %c0_256 = arith.constant 0 : index
    %c0_257 = arith.constant 0 : index
    %371 = vector.load %arg5[%c3_255, %c0_256, %c0_257] : memref<27x4x8xbf16, #tpu.memory_space<vmem>>, vector<1x4x8xbf16>
    %372 = vector.shape_cast %371 : vector<1x4x8xbf16> to vector<4x8xbf16>
    %373 = arith.truncf %370 : vector<8x512xf32> to vector<8x512xbf16>
    %cst_258 = arith.constant dense<0.000000e+00> : vector<4x512xf32>
    %374 = tpu.matmul %372, %373, %cst_258 {dimension_numbers = #tpu.dot_dimension_numbers<[1], [0], [0], [1], [0, 0, 1, 1], [], []>} : vector<4x8xbf16>, vector<8x512xbf16>, vector<4x512xf32> -> vector<4x512xf32>
    %375 = arith.addf %365, %374 : vector<4x512xf32>
    %c0_259 = arith.constant 0 : index
    %c64_260 = arith.constant 64 : index
    %376 = vector.load %arg9[%c0_259, %c64_260] : memref<8x768xf32, #tpu.memory_space<vmem>>, vector<8x512xf32>
    %c4_261 = arith.constant 4 : index
    %c0_262 = arith.constant 0 : index
    %c0_263 = arith.constant 0 : index
    %377 = vector.load %arg7[%c4_261, %c0_262, %c0_263] : memref<27x1x512xf32, #tpu.memory_space<vmem>>, vector<1x1x512xf32>
    %378 = vector.shape_cast %377 : vector<1x1x512xf32> to vector<1x512xf32>
    %379 = vector.broadcast %378 : vector<1x512xf32> to vector<8x512xf32>
    %380 = arith.mulf %376, %379 : vector<8x512xf32>
    %c4_264 = arith.constant 4 : index
    %c0_265 = arith.constant 0 : index
    %c0_266 = arith.constant 0 : index
    %381 = vector.load %arg5[%c4_264, %c0_265, %c0_266] : memref<27x4x8xbf16, #tpu.memory_space<vmem>>, vector<1x4x8xbf16>
    %382 = vector.shape_cast %381 : vector<1x4x8xbf16> to vector<4x8xbf16>
    %383 = arith.truncf %380 : vector<8x512xf32> to vector<8x512xbf16>
    %cst_267 = arith.constant dense<0.000000e+00> : vector<4x512xf32>
    %384 = tpu.matmul %382, %383, %cst_267 {dimension_numbers = #tpu.dot_dimension_numbers<[1], [0], [0], [1], [0, 0, 1, 1], [], []>} : vector<4x8xbf16>, vector<8x512xbf16>, vector<4x512xf32> -> vector<4x512xf32>
    %385 = arith.addf %375, %384 : vector<4x512xf32>
    %c0_268 = arith.constant 0 : index
    %c65_269 = arith.constant 65 : index
    %386 = vector.load %arg9[%c0_268, %c65_269] : memref<8x768xf32, #tpu.memory_space<vmem>>, vector<8x512xf32>
    %c5_270 = arith.constant 5 : index
    %c0_271 = arith.constant 0 : index
    %c0_272 = arith.constant 0 : index
    %387 = vector.load %arg7[%c5_270, %c0_271, %c0_272] : memref<27x1x512xf32, #tpu.memory_space<vmem>>, vector<1x1x512xf32>
    %388 = vector.shape_cast %387 : vector<1x1x512xf32> to vector<1x512xf32>
    %389 = vector.broadcast %388 : vector<1x512xf32> to vector<8x512xf32>
    %390 = arith.mulf %386, %389 : vector<8x512xf32>
    %c5_273 = arith.constant 5 : index
    %c0_274 = arith.constant 0 : index
    %c0_275 = arith.constant 0 : index
    %391 = vector.load %arg5[%c5_273, %c0_274, %c0_275] : memref<27x4x8xbf16, #tpu.memory_space<vmem>>, vector<1x4x8xbf16>
    %392 = vector.shape_cast %391 : vector<1x4x8xbf16> to vector<4x8xbf16>
    %393 = arith.truncf %390 : vector<8x512xf32> to vector<8x512xbf16>
    %cst_276 = arith.constant dense<0.000000e+00> : vector<4x512xf32>
    %394 = tpu.matmul %392, %393, %cst_276 {dimension_numbers = #tpu.dot_dimension_numbers<[1], [0], [0], [1], [0, 0, 1, 1], [], []>} : vector<4x8xbf16>, vector<8x512xbf16>, vector<4x512xf32> -> vector<4x512xf32>
    %395 = arith.addf %385, %394 : vector<4x512xf32>
    %c0_277 = arith.constant 0 : index
    %c71_278 = arith.constant 71 : index
    %396 = vector.load %arg9[%c0_277, %c71_278] : memref<8x768xf32, #tpu.memory_space<vmem>>, vector<8x512xf32>
    %c6_279 = arith.constant 6 : index
    %c0_280 = arith.constant 0 : index
    %c0_281 = arith.constant 0 : index
    %397 = vector.load %arg7[%c6_279, %c0_280, %c0_281] : memref<27x1x512xf32, #tpu.memory_space<vmem>>, vector<1x1x512xf32>
    %398 = vector.shape_cast %397 : vector<1x1x512xf32> to vector<1x512xf32>
    %399 = vector.broadcast %398 : vector<1x512xf32> to vector<8x512xf32>
    %400 = arith.mulf %396, %399 : vector<8x512xf32>
    %c6_282 = arith.constant 6 : index
    %c0_283 = arith.constant 0 : index
    %c0_284 = arith.constant 0 : index
    %401 = vector.load %arg5[%c6_282, %c0_283, %c0_284] : memref<27x4x8xbf16, #tpu.memory_space<vmem>>, vector<1x4x8xbf16>
    %402 = vector.shape_cast %401 : vector<1x4x8xbf16> to vector<4x8xbf16>
    %403 = arith.truncf %400 : vector<8x512xf32> to vector<8x512xbf16>
    %cst_285 = arith.constant dense<0.000000e+00> : vector<4x512xf32>
    %404 = tpu.matmul %402, %403, %cst_285 {dimension_numbers = #tpu.dot_dimension_numbers<[1], [0], [0], [1], [0, 0, 1, 1], [], []>} : vector<4x8xbf16>, vector<8x512xbf16>, vector<4x512xf32> -> vector<4x512xf32>
    %405 = arith.addf %395, %404 : vector<4x512xf32>
    %c0_286 = arith.constant 0 : index
    %c72_287 = arith.constant 72 : index
    %406 = vector.load %arg9[%c0_286, %c72_287] : memref<8x768xf32, #tpu.memory_space<vmem>>, vector<8x512xf32>
    %c7_288 = arith.constant 7 : index
    %c0_289 = arith.constant 0 : index
    %c0_290 = arith.constant 0 : index
    %407 = vector.load %arg7[%c7_288, %c0_289, %c0_290] : memref<27x1x512xf32, #tpu.memory_space<vmem>>, vector<1x1x512xf32>
    %408 = vector.shape_cast %407 : vector<1x1x512xf32> to vector<1x512xf32>
    %409 = vector.broadcast %408 : vector<1x512xf32> to vector<8x512xf32>
    %410 = arith.mulf %406, %409 : vector<8x512xf32>
    %c7_291 = arith.constant 7 : index
    %c0_292 = arith.constant 0 : index
    %c0_293 = arith.constant 0 : index
    %411 = vector.load %arg5[%c7_291, %c0_292, %c0_293] : memref<27x4x8xbf16, #tpu.memory_space<vmem>>, vector<1x4x8xbf16>
    %412 = vector.shape_cast %411 : vector<1x4x8xbf16> to vector<4x8xbf16>
    %413 = arith.truncf %410 : vector<8x512xf32> to vector<8x512xbf16>
    %cst_294 = arith.constant dense<0.000000e+00> : vector<4x512xf32>
    %414 = tpu.matmul %412, %413, %cst_294 {dimension_numbers = #tpu.dot_dimension_numbers<[1], [0], [0], [1], [0, 0, 1, 1], [], []>} : vector<4x8xbf16>, vector<8x512xbf16>, vector<4x512xf32> -> vector<4x512xf32>
    %415 = arith.addf %405, %414 : vector<4x512xf32>
    %c0_295 = arith.constant 0 : index
    %c73_296 = arith.constant 73 : index
    %416 = vector.load %arg9[%c0_295, %c73_296] : memref<8x768xf32, #tpu.memory_space<vmem>>, vector<8x512xf32>
    %c8_297 = arith.constant 8 : index
    %c0_298 = arith.constant 0 : index
    %c0_299 = arith.constant 0 : index
    %417 = vector.load %arg7[%c8_297, %c0_298, %c0_299] : memref<27x1x512xf32, #tpu.memory_space<vmem>>, vector<1x1x512xf32>
    %418 = vector.shape_cast %417 : vector<1x1x512xf32> to vector<1x512xf32>
    %419 = vector.broadcast %418 : vector<1x512xf32> to vector<8x512xf32>
    %420 = arith.mulf %416, %419 : vector<8x512xf32>
    %c8_300 = arith.constant 8 : index
    %c0_301 = arith.constant 0 : index
    %c0_302 = arith.constant 0 : index
    %421 = vector.load %arg5[%c8_300, %c0_301, %c0_302] : memref<27x4x8xbf16, #tpu.memory_space<vmem>>, vector<1x4x8xbf16>
    %422 = vector.shape_cast %421 : vector<1x4x8xbf16> to vector<4x8xbf16>
    %423 = arith.truncf %420 : vector<8x512xf32> to vector<8x512xbf16>
    %cst_303 = arith.constant dense<0.000000e+00> : vector<4x512xf32>
    %424 = tpu.matmul %422, %423, %cst_303 {dimension_numbers = #tpu.dot_dimension_numbers<[1], [0], [0], [1], [0, 0, 1, 1], [], []>} : vector<4x8xbf16>, vector<8x512xbf16>, vector<4x512xf32> -> vector<4x512xf32>
    %425 = arith.addf %415, %424 : vector<4x512xf32>
    %c0_304 = arith.constant 0 : index
    %c119_305 = arith.constant 119 : index
    %426 = vector.load %arg9[%c0_304, %c119_305] : memref<8x768xf32, #tpu.memory_space<vmem>>, vector<8x512xf32>
    %c9_306 = arith.constant 9 : index
    %c0_307 = arith.constant 0 : index
    %c0_308 = arith.constant 0 : index
    %427 = vector.load %arg7[%c9_306, %c0_307, %c0_308] : memref<27x1x512xf32, #tpu.memory_space<vmem>>, vector<1x1x512xf32>
    %428 = vector.shape_cast %427 : vector<1x1x512xf32> to vector<1x512xf32>
    %429 = vector.broadcast %428 : vector<1x512xf32> to vector<8x512xf32>
    %430 = arith.mulf %426, %429 : vector<8x512xf32>
    %c9_309 = arith.constant 9 : index
    %c0_310 = arith.constant 0 : index
    %c0_311 = arith.constant 0 : index
    %431 = vector.load %arg5[%c9_309, %c0_310, %c0_311] : memref<27x4x8xbf16, #tpu.memory_space<vmem>>, vector<1x4x8xbf16>
    %432 = vector.shape_cast %431 : vector<1x4x8xbf16> to vector<4x8xbf16>
    %433 = arith.truncf %430 : vector<8x512xf32> to vector<8x512xbf16>
    %cst_312 = arith.constant dense<0.000000e+00> : vector<4x512xf32>
    %434 = tpu.matmul %432, %433, %cst_312 {dimension_numbers = #tpu.dot_dimension_numbers<[1], [0], [0], [1], [0, 0, 1, 1], [], []>} : vector<4x8xbf16>, vector<8x512xbf16>, vector<4x512xf32> -> vector<4x512xf32>
    %435 = arith.addf %425, %434 : vector<4x512xf32>
    %c0_313 = arith.constant 0 : index
    %c120_314 = arith.constant 120 : index
    %436 = vector.load %arg9[%c0_313, %c120_314] : memref<8x768xf32, #tpu.memory_space<vmem>>, vector<8x512xf32>
    %c10_315 = arith.constant 10 : index
    %c0_316 = arith.constant 0 : index
    %c0_317 = arith.constant 0 : index
    %437 = vector.load %arg7[%c10_315, %c0_316, %c0_317] : memref<27x1x512xf32, #tpu.memory_space<vmem>>, vector<1x1x512xf32>
    %438 = vector.shape_cast %437 : vector<1x1x512xf32> to vector<1x512xf32>
    %439 = vector.broadcast %438 : vector<1x512xf32> to vector<8x512xf32>
    %440 = arith.mulf %436, %439 : vector<8x512xf32>
    %c10_318 = arith.constant 10 : index
    %c0_319 = arith.constant 0 : index
    %c0_320 = arith.constant 0 : index
    %441 = vector.load %arg5[%c10_318, %c0_319, %c0_320] : memref<27x4x8xbf16, #tpu.memory_space<vmem>>, vector<1x4x8xbf16>
    %442 = vector.shape_cast %441 : vector<1x4x8xbf16> to vector<4x8xbf16>
    %443 = arith.truncf %440 : vector<8x512xf32> to vector<8x512xbf16>
    %cst_321 = arith.constant dense<0.000000e+00> : vector<4x512xf32>
    %444 = tpu.matmul %442, %443, %cst_321 {dimension_numbers = #tpu.dot_dimension_numbers<[1], [0], [0], [1], [0, 0, 1, 1], [], []>} : vector<4x8xbf16>, vector<8x512xbf16>, vector<4x512xf32> -> vector<4x512xf32>
    %445 = arith.addf %435, %444 : vector<4x512xf32>
    %c0_322 = arith.constant 0 : index
    %c121_323 = arith.constant 121 : index
    %446 = vector.load %arg9[%c0_322, %c121_323] : memref<8x768xf32, #tpu.memory_space<vmem>>, vector<8x512xf32>
    %c11_324 = arith.constant 11 : index
    %c0_325 = arith.constant 0 : index
    %c0_326 = arith.constant 0 : index
    %447 = vector.load %arg7[%c11_324, %c0_325, %c0_326] : memref<27x1x512xf32, #tpu.memory_space<vmem>>, vector<1x1x512xf32>
    %448 = vector.shape_cast %447 : vector<1x1x512xf32> to vector<1x512xf32>
    %449 = vector.broadcast %448 : vector<1x512xf32> to vector<8x512xf32>
    %450 = arith.mulf %446, %449 : vector<8x512xf32>
    %c11_327 = arith.constant 11 : index
    %c0_328 = arith.constant 0 : index
    %c0_329 = arith.constant 0 : index
    %451 = vector.load %arg5[%c11_327, %c0_328, %c0_329] : memref<27x4x8xbf16, #tpu.memory_space<vmem>>, vector<1x4x8xbf16>
    %452 = vector.shape_cast %451 : vector<1x4x8xbf16> to vector<4x8xbf16>
    %453 = arith.truncf %450 : vector<8x512xf32> to vector<8x512xbf16>
    %cst_330 = arith.constant dense<0.000000e+00> : vector<4x512xf32>
    %454 = tpu.matmul %452, %453, %cst_330 {dimension_numbers = #tpu.dot_dimension_numbers<[1], [0], [0], [1], [0, 0, 1, 1], [], []>} : vector<4x8xbf16>, vector<8x512xbf16>, vector<4x512xf32> -> vector<4x512xf32>
    %455 = arith.addf %445, %454 : vector<4x512xf32>
    %c0_331 = arith.constant 0 : index
    %c127_332 = arith.constant 127 : index
    %456 = vector.load %arg9[%c0_331, %c127_332] : memref<8x768xf32, #tpu.memory_space<vmem>>, vector<8x512xf32>
    %c12_333 = arith.constant 12 : index
    %c0_334 = arith.constant 0 : index
    %c0_335 = arith.constant 0 : index
    %457 = vector.load %arg7[%c12_333, %c0_334, %c0_335] : memref<27x1x512xf32, #tpu.memory_space<vmem>>, vector<1x1x512xf32>
    %458 = vector.shape_cast %457 : vector<1x1x512xf32> to vector<1x512xf32>
    %459 = vector.broadcast %458 : vector<1x512xf32> to vector<8x512xf32>
    %460 = arith.mulf %456, %459 : vector<8x512xf32>
    %c12_336 = arith.constant 12 : index
    %c0_337 = arith.constant 0 : index
    %c0_338 = arith.constant 0 : index
    %461 = vector.load %arg5[%c12_336, %c0_337, %c0_338] : memref<27x4x8xbf16, #tpu.memory_space<vmem>>, vector<1x4x8xbf16>
    %462 = vector.shape_cast %461 : vector<1x4x8xbf16> to vector<4x8xbf16>
    %463 = arith.truncf %460 : vector<8x512xf32> to vector<8x512xbf16>
    %cst_339 = arith.constant dense<0.000000e+00> : vector<4x512xf32>
    %464 = tpu.matmul %462, %463, %cst_339 {dimension_numbers = #tpu.dot_dimension_numbers<[1], [0], [0], [1], [0, 0, 1, 1], [], []>} : vector<4x8xbf16>, vector<8x512xbf16>, vector<4x512xf32> -> vector<4x512xf32>
    %465 = arith.addf %455, %464 : vector<4x512xf32>
    %c0_340 = arith.constant 0 : index
    %c128_341 = arith.constant 128 : index
    %466 = vector.load %arg9[%c0_340, %c128_341] : memref<8x768xf32, #tpu.memory_space<vmem>>, vector<8x512xf32>
    %c13_342 = arith.constant 13 : index
    %c0_343 = arith.constant 0 : index
    %c0_344 = arith.constant 0 : index
    %467 = vector.load %arg7[%c13_342, %c0_343, %c0_344] : memref<27x1x512xf32, #tpu.memory_space<vmem>>, vector<1x1x512xf32>
    %468 = vector.shape_cast %467 : vector<1x1x512xf32> to vector<1x512xf32>
    %469 = vector.broadcast %468 : vector<1x512xf32> to vector<8x512xf32>
    %470 = arith.mulf %466, %469 : vector<8x512xf32>
    %c13_345 = arith.constant 13 : index
    %c0_346 = arith.constant 0 : index
    %c0_347 = arith.constant 0 : index
    %471 = vector.load %arg5[%c13_345, %c0_346, %c0_347] : memref<27x4x8xbf16, #tpu.memory_space<vmem>>, vector<1x4x8xbf16>
    %472 = vector.shape_cast %471 : vector<1x4x8xbf16> to vector<4x8xbf16>
    %473 = arith.truncf %470 : vector<8x512xf32> to vector<8x512xbf16>
    %cst_348 = arith.constant dense<0.000000e+00> : vector<4x512xf32>
    %474 = tpu.matmul %472, %473, %cst_348 {dimension_numbers = #tpu.dot_dimension_numbers<[1], [0], [0], [1], [0, 0, 1, 1], [], []>} : vector<4x8xbf16>, vector<8x512xbf16>, vector<4x512xf32> -> vector<4x512xf32>
    %475 = arith.addf %465, %474 : vector<4x512xf32>
    %c0_349 = arith.constant 0 : index
    %c129_350 = arith.constant 129 : index
    %476 = vector.load %arg9[%c0_349, %c129_350] : memref<8x768xf32, #tpu.memory_space<vmem>>, vector<8x512xf32>
    %c14_351 = arith.constant 14 : index
    %c0_352 = arith.constant 0 : index
    %c0_353 = arith.constant 0 : index
    %477 = vector.load %arg7[%c14_351, %c0_352, %c0_353] : memref<27x1x512xf32, #tpu.memory_space<vmem>>, vector<1x1x512xf32>
    %478 = vector.shape_cast %477 : vector<1x1x512xf32> to vector<1x512xf32>
    %479 = vector.broadcast %478 : vector<1x512xf32> to vector<8x512xf32>
    %480 = arith.mulf %476, %479 : vector<8x512xf32>
    %c14_354 = arith.constant 14 : index
    %c0_355 = arith.constant 0 : index
    %c0_356 = arith.constant 0 : index
    %481 = vector.load %arg5[%c14_354, %c0_355, %c0_356] : memref<27x4x8xbf16, #tpu.memory_space<vmem>>, vector<1x4x8xbf16>
    %482 = vector.shape_cast %481 : vector<1x4x8xbf16> to vector<4x8xbf16>
    %483 = arith.truncf %480 : vector<8x512xf32> to vector<8x512xbf16>
    %cst_357 = arith.constant dense<0.000000e+00> : vector<4x512xf32>
    %484 = tpu.matmul %482, %483, %cst_357 {dimension_numbers = #tpu.dot_dimension_numbers<[1], [0], [0], [1], [0, 0, 1, 1], [], []>} : vector<4x8xbf16>, vector<8x512xbf16>, vector<4x512xf32> -> vector<4x512xf32>
    %485 = arith.addf %475, %484 : vector<4x512xf32>
    %c0_358 = arith.constant 0 : index
    %c135_359 = arith.constant 135 : index
    %486 = vector.load %arg9[%c0_358, %c135_359] : memref<8x768xf32, #tpu.memory_space<vmem>>, vector<8x512xf32>
    %c15_360 = arith.constant 15 : index
    %c0_361 = arith.constant 0 : index
    %c0_362 = arith.constant 0 : index
    %487 = vector.load %arg7[%c15_360, %c0_361, %c0_362] : memref<27x1x512xf32, #tpu.memory_space<vmem>>, vector<1x1x512xf32>
    %488 = vector.shape_cast %487 : vector<1x1x512xf32> to vector<1x512xf32>
    %489 = vector.broadcast %488 : vector<1x512xf32> to vector<8x512xf32>
    %490 = arith.mulf %486, %489 : vector<8x512xf32>
    %c15_363 = arith.constant 15 : index
    %c0_364 = arith.constant 0 : index
    %c0_365 = arith.constant 0 : index
    %491 = vector.load %arg5[%c15_363, %c0_364, %c0_365] : memref<27x4x8xbf16, #tpu.memory_space<vmem>>, vector<1x4x8xbf16>
    %492 = vector.shape_cast %491 : vector<1x4x8xbf16> to vector<4x8xbf16>
    %493 = arith.truncf %490 : vector<8x512xf32> to vector<8x512xbf16>
    %cst_366 = arith.constant dense<0.000000e+00> : vector<4x512xf32>
    %494 = tpu.matmul %492, %493, %cst_366 {dimension_numbers = #tpu.dot_dimension_numbers<[1], [0], [0], [1], [0, 0, 1, 1], [], []>} : vector<4x8xbf16>, vector<8x512xbf16>, vector<4x512xf32> -> vector<4x512xf32>
    %495 = arith.addf %485, %494 : vector<4x512xf32>
    %c0_367 = arith.constant 0 : index
    %c136_368 = arith.constant 136 : index
    %496 = vector.load %arg9[%c0_367, %c136_368] : memref<8x768xf32, #tpu.memory_space<vmem>>, vector<8x512xf32>
    %c16_369 = arith.constant 16 : index
    %c0_370 = arith.constant 0 : index
    %c0_371 = arith.constant 0 : index
    %497 = vector.load %arg7[%c16_369, %c0_370, %c0_371] : memref<27x1x512xf32, #tpu.memory_space<vmem>>, vector<1x1x512xf32>
    %498 = vector.shape_cast %497 : vector<1x1x512xf32> to vector<1x512xf32>
    %499 = vector.broadcast %498 : vector<1x512xf32> to vector<8x512xf32>
    %500 = arith.mulf %496, %499 : vector<8x512xf32>
    %c16_372 = arith.constant 16 : index
    %c0_373 = arith.constant 0 : index
    %c0_374 = arith.constant 0 : index
    %501 = vector.load %arg5[%c16_372, %c0_373, %c0_374] : memref<27x4x8xbf16, #tpu.memory_space<vmem>>, vector<1x4x8xbf16>
    %502 = vector.shape_cast %501 : vector<1x4x8xbf16> to vector<4x8xbf16>
    %503 = arith.truncf %500 : vector<8x512xf32> to vector<8x512xbf16>
    %cst_375 = arith.constant dense<0.000000e+00> : vector<4x512xf32>
    %504 = tpu.matmul %502, %503, %cst_375 {dimension_numbers = #tpu.dot_dimension_numbers<[1], [0], [0], [1], [0, 0, 1, 1], [], []>} : vector<4x8xbf16>, vector<8x512xbf16>, vector<4x512xf32> -> vector<4x512xf32>
    %505 = arith.addf %495, %504 : vector<4x512xf32>
    %c0_376 = arith.constant 0 : index
    %c137_377 = arith.constant 137 : index
    %506 = vector.load %arg9[%c0_376, %c137_377] : memref<8x768xf32, #tpu.memory_space<vmem>>, vector<8x512xf32>
    %c17_378 = arith.constant 17 : index
    %c0_379 = arith.constant 0 : index
    %c0_380 = arith.constant 0 : index
    %507 = vector.load %arg7[%c17_378, %c0_379, %c0_380] : memref<27x1x512xf32, #tpu.memory_space<vmem>>, vector<1x1x512xf32>
    %508 = vector.shape_cast %507 : vector<1x1x512xf32> to vector<1x512xf32>
    %509 = vector.broadcast %508 : vector<1x512xf32> to vector<8x512xf32>
    %510 = arith.mulf %506, %509 : vector<8x512xf32>
    %c17_381 = arith.constant 17 : index
    %c0_382 = arith.constant 0 : index
    %c0_383 = arith.constant 0 : index
    %511 = vector.load %arg5[%c17_381, %c0_382, %c0_383] : memref<27x4x8xbf16, #tpu.memory_space<vmem>>, vector<1x4x8xbf16>
    %512 = vector.shape_cast %511 : vector<1x4x8xbf16> to vector<4x8xbf16>
    %513 = arith.truncf %510 : vector<8x512xf32> to vector<8x512xbf16>
    %cst_384 = arith.constant dense<0.000000e+00> : vector<4x512xf32>
    %514 = tpu.matmul %512, %513, %cst_384 {dimension_numbers = #tpu.dot_dimension_numbers<[1], [0], [0], [1], [0, 0, 1, 1], [], []>} : vector<4x8xbf16>, vector<8x512xbf16>, vector<4x512xf32> -> vector<4x512xf32>
    %515 = arith.addf %505, %514 : vector<4x512xf32>
    %c0_385 = arith.constant 0 : index
    %c183_386 = arith.constant 183 : index
    %516 = vector.load %arg9[%c0_385, %c183_386] : memref<8x768xf32, #tpu.memory_space<vmem>>, vector<8x512xf32>
    %c18_387 = arith.constant 18 : index
    %c0_388 = arith.constant 0 : index
    %c0_389 = arith.constant 0 : index
    %517 = vector.load %arg7[%c18_387, %c0_388, %c0_389] : memref<27x1x512xf32, #tpu.memory_space<vmem>>, vector<1x1x512xf32>
    %518 = vector.shape_cast %517 : vector<1x1x512xf32> to vector<1x512xf32>
    %519 = vector.broadcast %518 : vector<1x512xf32> to vector<8x512xf32>
    %520 = arith.mulf %516, %519 : vector<8x512xf32>
    %c18_390 = arith.constant 18 : index
    %c0_391 = arith.constant 0 : index
    %c0_392 = arith.constant 0 : index
    %521 = vector.load %arg5[%c18_390, %c0_391, %c0_392] : memref<27x4x8xbf16, #tpu.memory_space<vmem>>, vector<1x4x8xbf16>
    %522 = vector.shape_cast %521 : vector<1x4x8xbf16> to vector<4x8xbf16>
    %523 = arith.truncf %520 : vector<8x512xf32> to vector<8x512xbf16>
    %cst_393 = arith.constant dense<0.000000e+00> : vector<4x512xf32>
    %524 = tpu.matmul %522, %523, %cst_393 {dimension_numbers = #tpu.dot_dimension_numbers<[1], [0], [0], [1], [0, 0, 1, 1], [], []>} : vector<4x8xbf16>, vector<8x512xbf16>, vector<4x512xf32> -> vector<4x512xf32>
    %525 = arith.addf %515, %524 : vector<4x512xf32>
    %c0_394 = arith.constant 0 : index
    %c184_395 = arith.constant 184 : index
    %526 = vector.load %arg9[%c0_394, %c184_395] : memref<8x768xf32, #tpu.memory_space<vmem>>, vector<8x512xf32>
    %c19_396 = arith.constant 19 : index
    %c0_397 = arith.constant 0 : index
    %c0_398 = arith.constant 0 : index
    %527 = vector.load %arg7[%c19_396, %c0_397, %c0_398] : memref<27x1x512xf32, #tpu.memory_space<vmem>>, vector<1x1x512xf32>
    %528 = vector.shape_cast %527 : vector<1x1x512xf32> to vector<1x512xf32>
    %529 = vector.broadcast %528 : vector<1x512xf32> to vector<8x512xf32>
    %530 = arith.mulf %526, %529 : vector<8x512xf32>
    %c19_399 = arith.constant 19 : index
    %c0_400 = arith.constant 0 : index
    %c0_401 = arith.constant 0 : index
    %531 = vector.load %arg5[%c19_399, %c0_400, %c0_401] : memref<27x4x8xbf16, #tpu.memory_space<vmem>>, vector<1x4x8xbf16>
    %532 = vector.shape_cast %531 : vector<1x4x8xbf16> to vector<4x8xbf16>
    %533 = arith.truncf %530 : vector<8x512xf32> to vector<8x512xbf16>
    %cst_402 = arith.constant dense<0.000000e+00> : vector<4x512xf32>
    %534 = tpu.matmul %532, %533, %cst_402 {dimension_numbers = #tpu.dot_dimension_numbers<[1], [0], [0], [1], [0, 0, 1, 1], [], []>} : vector<4x8xbf16>, vector<8x512xbf16>, vector<4x512xf32> -> vector<4x512xf32>
    %535 = arith.addf %525, %534 : vector<4x512xf32>
    %c0_403 = arith.constant 0 : index
    %c185_404 = arith.constant 185 : index
    %536 = vector.load %arg9[%c0_403, %c185_404] : memref<8x768xf32, #tpu.memory_space<vmem>>, vector<8x512xf32>
    %c20_405 = arith.constant 20 : index
    %c0_406 = arith.constant 0 : index
    %c0_407 = arith.constant 0 : index
    %537 = vector.load %arg7[%c20_405, %c0_406, %c0_407] : memref<27x1x512xf32, #tpu.memory_space<vmem>>, vector<1x1x512xf32>
    %538 = vector.shape_cast %537 : vector<1x1x512xf32> to vector<1x512xf32>
    %539 = vector.broadcast %538 : vector<1x512xf32> to vector<8x512xf32>
    %540 = arith.mulf %536, %539 : vector<8x512xf32>
    %c20_408 = arith.constant 20 : index
    %c0_409 = arith.constant 0 : index
    %c0_410 = arith.constant 0 : index
    %541 = vector.load %arg5[%c20_408, %c0_409, %c0_410] : memref<27x4x8xbf16, #tpu.memory_space<vmem>>, vector<1x4x8xbf16>
    %542 = vector.shape_cast %541 : vector<1x4x8xbf16> to vector<4x8xbf16>
    %543 = arith.truncf %540 : vector<8x512xf32> to vector<8x512xbf16>
    %cst_411 = arith.constant dense<0.000000e+00> : vector<4x512xf32>
    %544 = tpu.matmul %542, %543, %cst_411 {dimension_numbers = #tpu.dot_dimension_numbers<[1], [0], [0], [1], [0, 0, 1, 1], [], []>} : vector<4x8xbf16>, vector<8x512xbf16>, vector<4x512xf32> -> vector<4x512xf32>
    %545 = arith.addf %535, %544 : vector<4x512xf32>
    %c0_412 = arith.constant 0 : index
    %c191_413 = arith.constant 191 : index
    %546 = vector.load %arg9[%c0_412, %c191_413] : memref<8x768xf32, #tpu.memory_space<vmem>>, vector<8x512xf32>
    %c21_414 = arith.constant 21 : index
    %c0_415 = arith.constant 0 : index
    %c0_416 = arith.constant 0 : index
    %547 = vector.load %arg7[%c21_414, %c0_415, %c0_416] : memref<27x1x512xf32, #tpu.memory_space<vmem>>, vector<1x1x512xf32>
    %548 = vector.shape_cast %547 : vector<1x1x512xf32> to vector<1x512xf32>
    %549 = vector.broadcast %548 : vector<1x512xf32> to vector<8x512xf32>
    %550 = arith.mulf %546, %549 : vector<8x512xf32>
    %c21_417 = arith.constant 21 : index
    %c0_418 = arith.constant 0 : index
    %c0_419 = arith.constant 0 : index
    %551 = vector.load %arg5[%c21_417, %c0_418, %c0_419] : memref<27x4x8xbf16, #tpu.memory_space<vmem>>, vector<1x4x8xbf16>
    %552 = vector.shape_cast %551 : vector<1x4x8xbf16> to vector<4x8xbf16>
    %553 = arith.truncf %550 : vector<8x512xf32> to vector<8x512xbf16>
    %cst_420 = arith.constant dense<0.000000e+00> : vector<4x512xf32>
    %554 = tpu.matmul %552, %553, %cst_420 {dimension_numbers = #tpu.dot_dimension_numbers<[1], [0], [0], [1], [0, 0, 1, 1], [], []>} : vector<4x8xbf16>, vector<8x512xbf16>, vector<4x512xf32> -> vector<4x512xf32>
    %555 = arith.addf %545, %554 : vector<4x512xf32>
    %c0_421 = arith.constant 0 : index
    %c192_422 = arith.constant 192 : index
    %556 = vector.load %arg9[%c0_421, %c192_422] : memref<8x768xf32, #tpu.memory_space<vmem>>, vector<8x512xf32>
    %c22_423 = arith.constant 22 : index
    %c0_424 = arith.constant 0 : index
    %c0_425 = arith.constant 0 : index
    %557 = vector.load %arg7[%c22_423, %c0_424, %c0_425] : memref<27x1x512xf32, #tpu.memory_space<vmem>>, vector<1x1x512xf32>
    %558 = vector.shape_cast %557 : vector<1x1x512xf32> to vector<1x512xf32>
    %559 = vector.broadcast %558 : vector<1x512xf32> to vector<8x512xf32>
    %560 = arith.mulf %556, %559 : vector<8x512xf32>
    %c22_426 = arith.constant 22 : index
    %c0_427 = arith.constant 0 : index
    %c0_428 = arith.constant 0 : index
    %561 = vector.load %arg5[%c22_426, %c0_427, %c0_428] : memref<27x4x8xbf16, #tpu.memory_space<vmem>>, vector<1x4x8xbf16>
    %562 = vector.shape_cast %561 : vector<1x4x8xbf16> to vector<4x8xbf16>
    %563 = arith.truncf %560 : vector<8x512xf32> to vector<8x512xbf16>
    %cst_429 = arith.constant dense<0.000000e+00> : vector<4x512xf32>
    %564 = tpu.matmul %562, %563, %cst_429 {dimension_numbers = #tpu.dot_dimension_numbers<[1], [0], [0], [1], [0, 0, 1, 1], [], []>} : vector<4x8xbf16>, vector<8x512xbf16>, vector<4x512xf32> -> vector<4x512xf32>
    %565 = arith.addf %555, %564 : vector<4x512xf32>
    %c0_430 = arith.constant 0 : index
    %c193_431 = arith.constant 193 : index
    %566 = vector.load %arg9[%c0_430, %c193_431] : memref<8x768xf32, #tpu.memory_space<vmem>>, vector<8x512xf32>
    %c23_432 = arith.constant 23 : index
    %c0_433 = arith.constant 0 : index
    %c0_434 = arith.constant 0 : index
    %567 = vector.load %arg7[%c23_432, %c0_433, %c0_434] : memref<27x1x512xf32, #tpu.memory_space<vmem>>, vector<1x1x512xf32>
    %568 = vector.shape_cast %567 : vector<1x1x512xf32> to vector<1x512xf32>
    %569 = vector.broadcast %568 : vector<1x512xf32> to vector<8x512xf32>
    %570 = arith.mulf %566, %569 : vector<8x512xf32>
    %c23_435 = arith.constant 23 : index
    %c0_436 = arith.constant 0 : index
    %c0_437 = arith.constant 0 : index
    %571 = vector.load %arg5[%c23_435, %c0_436, %c0_437] : memref<27x4x8xbf16, #tpu.memory_space<vmem>>, vector<1x4x8xbf16>
    %572 = vector.shape_cast %571 : vector<1x4x8xbf16> to vector<4x8xbf16>
    %573 = arith.truncf %570 : vector<8x512xf32> to vector<8x512xbf16>
    %cst_438 = arith.constant dense<0.000000e+00> : vector<4x512xf32>
    %574 = tpu.matmul %572, %573, %cst_438 {dimension_numbers = #tpu.dot_dimension_numbers<[1], [0], [0], [1], [0, 0, 1, 1], [], []>} : vector<4x8xbf16>, vector<8x512xbf16>, vector<4x512xf32> -> vector<4x512xf32>
    %575 = arith.addf %565, %574 : vector<4x512xf32>
    %c0_439 = arith.constant 0 : index
    %c199_440 = arith.constant 199 : index
    %576 = vector.load %arg9[%c0_439, %c199_440] : memref<8x768xf32, #tpu.memory_space<vmem>>, vector<8x512xf32>
    %c24_441 = arith.constant 24 : index
    %c0_442 = arith.constant 0 : index
    %c0_443 = arith.constant 0 : index
    %577 = vector.load %arg7[%c24_441, %c0_442, %c0_443] : memref<27x1x512xf32, #tpu.memory_space<vmem>>, vector<1x1x512xf32>
    %578 = vector.shape_cast %577 : vector<1x1x512xf32> to vector<1x512xf32>
    %579 = vector.broadcast %578 : vector<1x512xf32> to vector<8x512xf32>
    %580 = arith.mulf %576, %579 : vector<8x512xf32>
    %c24_444 = arith.constant 24 : index
    %c0_445 = arith.constant 0 : index
    %c0_446 = arith.constant 0 : index
    %581 = vector.load %arg5[%c24_444, %c0_445, %c0_446] : memref<27x4x8xbf16, #tpu.memory_space<vmem>>, vector<1x4x8xbf16>
    %582 = vector.shape_cast %581 : vector<1x4x8xbf16> to vector<4x8xbf16>
    %583 = arith.truncf %580 : vector<8x512xf32> to vector<8x512xbf16>
    %cst_447 = arith.constant dense<0.000000e+00> : vector<4x512xf32>
    %584 = tpu.matmul %582, %583, %cst_447 {dimension_numbers = #tpu.dot_dimension_numbers<[1], [0], [0], [1], [0, 0, 1, 1], [], []>} : vector<4x8xbf16>, vector<8x512xbf16>, vector<4x512xf32> -> vector<4x512xf32>
    %585 = arith.addf %575, %584 : vector<4x512xf32>
    %c0_448 = arith.constant 0 : index
    %c200_449 = arith.constant 200 : index
    %586 = vector.load %arg9[%c0_448, %c200_449] : memref<8x768xf32, #tpu.memory_space<vmem>>, vector<8x512xf32>
    %c25_450 = arith.constant 25 : index
    %c0_451 = arith.constant 0 : index
    %c0_452 = arith.constant 0 : index
    %587 = vector.load %arg7[%c25_450, %c0_451, %c0_452] : memref<27x1x512xf32, #tpu.memory_space<vmem>>, vector<1x1x512xf32>
    %588 = vector.shape_cast %587 : vector<1x1x512xf32> to vector<1x512xf32>
    %589 = vector.broadcast %588 : vector<1x512xf32> to vector<8x512xf32>
    %590 = arith.mulf %586, %589 : vector<8x512xf32>
    %c25_453 = arith.constant 25 : index
    %c0_454 = arith.constant 0 : index
    %c0_455 = arith.constant 0 : index
    %591 = vector.load %arg5[%c25_453, %c0_454, %c0_455] : memref<27x4x8xbf16, #tpu.memory_space<vmem>>, vector<1x4x8xbf16>
    %592 = vector.shape_cast %591 : vector<1x4x8xbf16> to vector<4x8xbf16>
    %593 = arith.truncf %590 : vector<8x512xf32> to vector<8x512xbf16>
    %cst_456 = arith.constant dense<0.000000e+00> : vector<4x512xf32>
    %594 = tpu.matmul %592, %593, %cst_456 {dimension_numbers = #tpu.dot_dimension_numbers<[1], [0], [0], [1], [0, 0, 1, 1], [], []>} : vector<4x8xbf16>, vector<8x512xbf16>, vector<4x512xf32> -> vector<4x512xf32>
    %595 = arith.addf %585, %594 : vector<4x512xf32>
    %c0_457 = arith.constant 0 : index
    %c201_458 = arith.constant 201 : index
    %596 = vector.load %arg9[%c0_457, %c201_458] : memref<8x768xf32, #tpu.memory_space<vmem>>, vector<8x512xf32>
    %c26_459 = arith.constant 26 : index
    %c0_460 = arith.constant 0 : index
    %c0_461 = arith.constant 0 : index
    %597 = vector.load %arg7[%c26_459, %c0_460, %c0_461] : memref<27x1x512xf32, #tpu.memory_space<vmem>>, vector<1x1x512xf32>
    %598 = vector.shape_cast %597 : vector<1x1x512xf32> to vector<1x512xf32>
    %599 = vector.broadcast %598 : vector<1x512xf32> to vector<8x512xf32>
    %600 = arith.mulf %596, %599 : vector<8x512xf32>
    %c26_462 = arith.constant 26 : index
    %c0_463 = arith.constant 0 : index
    %c0_464 = arith.constant 0 : index
    %601 = vector.load %arg5[%c26_462, %c0_463, %c0_464] : memref<27x4x8xbf16, #tpu.memory_space<vmem>>, vector<1x4x8xbf16>
    %602 = vector.shape_cast %601 : vector<1x4x8xbf16> to vector<4x8xbf16>
    %603 = arith.truncf %600 : vector<8x512xf32> to vector<8x512xbf16>
    %cst_465 = arith.constant dense<0.000000e+00> : vector<4x512xf32>
    %604 = tpu.matmul %602, %603, %cst_465 {dimension_numbers = #tpu.dot_dimension_numbers<[1], [0], [0], [1], [0, 0, 1, 1], [], []>} : vector<4x8xbf16>, vector<8x512xbf16>, vector<4x512xf32> -> vector<4x512xf32>
    %605 = arith.addf %595, %604 : vector<4x512xf32>
    %c0_466 = arith.constant 0 : index
    %c0_467 = arith.constant 0 : index
    %606 = vector.load %arg6[%c0_466, %c0_467] : memref<4x1xf32, #tpu.memory_space<vmem>>, vector<4x1xf32>
    %607 = vector.broadcast %606 : vector<4x1xf32> to vector<4x512xf32>
    %608 = arith.addf %605, %607 : vector<4x512xf32>
    %609 = arith.addf %608, %3 : vector<4x512xf32>
    %cst_468 = arith.constant 0.000000e+00 : f32
    %610 = vector.broadcast %cst_468 : f32 to vector<4x512xf32>
    %611 = arith.maximumf %609, %610 : vector<4x512xf32>
    %c0_469 = arith.constant 0 : index
    %c0_470 = arith.constant 0 : index
    %c0_471 = arith.constant 0 : index
    %612 = vector.load %arg8[%c0_469, %c0_470, %c0_471] : memref<1x4x512xf32, #tpu.memory_space<vmem>>, vector<1x4x512xf32>
    %613 = vector.shape_cast %612 : vector<1x4x512xf32> to vector<4x512xf32>
    %614 = vector.shape_cast %611 : vector<4x512xf32> to vector<1x4x512xf32>
    tpu.vector_store %arg8[%c0_469, %c0_470, %c0_471], %614 {strides = array<i32>} : memref<1x4x512xf32, #tpu.memory_space<vmem>>, vector<1x4x512xf32>,
    return
  }
  func.func @transform_0(%arg0: i32) -> (i32, i32, i32) {
    %c0_i32 = arith.constant 0 : i32
    %c0_i32_0 = arith.constant 0 : i32
    %c0_i32_1 = arith.constant 0 : i32
    return %arg0, %c0_i32, %c0_i32_0 : i32, i32, i32
  }
  func.func @transform_1(%arg0: i32) -> (i32, i32) {
    %c0_i32 = arith.constant 0 : i32
    %c0_i32_0 = arith.constant 0 : i32
    %c0_i32_1 = arith.constant 0 : i32
    return %c0_i32, %c0_i32_0 : i32, i32
  }
  func.func @transform_2(%arg0: i32) -> (i32, i32, i32) {
    %c0_i32 = arith.constant 0 : i32
    %c0_i32_0 = arith.constant 0 : i32
    %c0_i32_1 = arith.constant 0 : i32
    %c0_i32_2 = arith.constant 0 : i32
    return %c0_i32, %c0_i32_0, %c0_i32_1 : i32, i32, i32
  }
  func.func @transform_3(%arg0: i32) -> (i32, i32) {
    %c0_i32 = arith.constant 0 : i32
    %c0_i32_0 = arith.constant 0 : i32
    %c0_i32_1 = arith.constant 0 : i32
    return %c0_i32, %c0_i32_0 : i32, i32
  }
  func.func @transform_4(%arg0: i32) -> (i32, i32, i32) {
    %c0_i32 = arith.constant 0 : i32
    %c0_i32_0 = arith.constant 0 : i32
    %c0_i32_1 = arith.constant 0 : i32
    %c0_i32_2 = arith.constant 0 : i32
    return %c0_i32, %c0_i32_0, %c0_i32_1 : i32, i32, i32
  }
  func.func @transform_5(%arg0: i32) -> (i32, i32) {
    %c0_i32 = arith.constant 0 : i32
    %c0_i32_0 = arith.constant 0 : i32
    %c0_i32_1 = arith.constant 0 : i32
    return %c0_i32, %c0_i32_0 : i32, i32
  }
  func.func @transform_6(%arg0: i32) -> (i32, i32, i32) {
    %c0_i32 = arith.constant 0 : i32
    %c0_i32_0 = arith.constant 0 : i32
    %c0_i32_1 = arith.constant 0 : i32
    %c0_i32_2 = arith.constant 0 : i32
    return %c0_i32, %c0_i32_0, %c0_i32_1 : i32, i32, i32
  }
  func.func @transform_7(%arg0: i32) -> (i32, i32, i32) {
    %c0_i32 = arith.constant 0 : i32
    %c0_i32_0 = arith.constant 0 : i32
    %c0_i32_1 = arith.constant 0 : i32
    return %arg0, %c0_i32, %c0_i32_0 : i32, i32, i32
  }
}

</mosaic_0001>

<bundles_post_ra>
// kernel: tpu_custom_call.1
= control target key start
LH: loop header
LB: loop body
LE: loop exit
PB: predicated region body
PF: predicated region fallthrough
CT: control target
= control target key end

     0   :  { %s13874_s0 = inlined_call_operand.hbm [shape: f32[2,4,512], index: 0, kind: input, shape index: {}]   ;;  %s13875_s1 = inlined_call_operand.vmem [shape: bf16[2,4], index: 1, kind: input, shape index: {}]   ;;  %s13876_s2 = inlined_call_operand.vmem [shape: bf16[27,2,2], index: 2, kind: input, shape index: {}]   ;;  %s13877_s3 = inlined_call_operand.vmem [shape: bf16[8,2], index: 3, kind: input, shape index: {}]   ;;  %s13878_s4 = inlined_call_operand.vmem [shape: bf16[27,4,8], index: 4, kind: input, shape index: {}]   ;;  %s13879_s5 = inlined_call_operand.vmem [shape: f32[4,1], index: 5, kind: input, shape index: {}]   ;;  %s13880_s6 = inlined_call_operand.vmem [shape: f32[27,1,512], index: 6, kind: input, shape index: {}]   ;;  %s13881_s7 = inlined_call_operand.hbm [shape: f32[2,4,512], index: 7, kind: output, shape index: {}]  }
   0x1   :  { %14018 = sst [smem:[#allocation71_spill]] %s13874_s0 }
   0x2   :  { %14019 = sst [smem:[#allocation72_spill]] %s13875_s1 }
   0x3   :  { %14020 = sst [smem:[#allocation73_spill]] %s13876_s2 }
   0x4   :  { %12 = vsyncpa [#allocation4], 0 }
   0x5   :  { %14 = vsyncpa [#allocation4 + $0x1], 0 }
   0x6   :  { %15 = vsyncpa [#allocation5], 0 }
   0x7   :  { %17 = vsyncpa [#allocation5 + $0x1], 0  ;;  %s10290_s24 = smov 0   ;;  %s10292_s25 = smov 0  }
   0x8   :  { %s10294_s26 = smov 0   ;;  %s10296_s27 = smov 0  }
   0x9 LB: > { %14021 = sst [smem:[#allocation9_spill]] %s10219_s25  ;;  %s10311_s28 = sadd.s32 4294967295, %s10227_s27   ;;  %s10227_s27 = sphi %s10296_s27, %s14401_s27   ;;  %s10223_s26 = sphi %s10294_s26, %s14404_s26   ;;  %s10219_s25 = sphi %s10292_s25, %s14403_s25   ;;  %s10215_s24 = sphi %s10290_s24, %s14402_s24  }
   0xa   : > { %14022 = sst [smem:[#allocation10_spill]] %s10223_s26  ;;  %s9703_s29 = sadd.s32 4294967294, %s10227_s27  }
   0xb   : > { %14023 = sst [smem:[#allocation11_spill]] %s10227_s27  ;;  %s10315_s30 = sadd.s32 1, %s10227_s27  }
   0xc   : > { %14024 = sst [smem:[#allocation12_spill]] %s10315_s30  ;;  %s30_s8 = sadd.s32 1, %s10223_s26 }
   0xd   : > { %s27_s9 = ssub.s32 %s10227_s27, %s10315_s30  ;;  %p37_p0 = scmp.ne.s32.totalorder %s10223_s26, %s10219_s25 }
   0xe   : > { %p28_p1 = scmp.eq.s32.totalorder %s27_s9, 0  ;;  %p38_p2 = scmp.eq.s32.totalorder %s10227_s27, 0 }
   0xf   : > { %p43_p3 = scmp.ne.s32.totalorder %s10219_s25, %s10215_s24  ;;  %p44_p4 = scmp.eq.s32.totalorder %s10311_s28, 0 }
  0x10   : > { %s10327_s10 = scalar_select %p28_p1, %s10223_s26, %s30_s8  }
  0x11   : > { %p10329_p5 = por %p38_p2, %p37_p0  ;;  %p10333_p6 = por %p44_p4, %p43_p3 }
  0x12   : > { %14025 = sst [smem:[#allocation13_spill]] %s10327_s10  ;;  %p193_p7 = scmp.eq.s32.totalorder %s10311_s28, 1 }
  0x13   : > { %s14027_s12 = scalar_select %p10333_p6, 1, 0 }
  0x14   : > { %p199_p8 = scmp.eq.s32.totalorder %s9703_s29, 1  ;;  %p10059_p10 = scmp.lt.s32.totalorder %s10227_s27, 2 }
  0x15   : > { %p10340_p11 = por %p193_p7, %p37_p0  ;;  %s237_s15 = sand.u32 1, %s10223_s26  }
  0x16   : > { %p10344_p12 = por %p199_p8, %p43_p3  ;;  %s10045_s16 = sshll.u32 %s10227_s27, 8 }
  0x17   : > { %s14028_s13 = scalar_select %p10340_p11, 1, 0 }
  0x18   : > { %s14029_s14 = scalar_select %p10344_p12, 1, 0 }
  0x19   : > { %s9706_s17 = sshll.u32 %s237_s15, 4  ;;  %s14031_s0 = sld [smem:[#allocation71_spill]] }
  0x1a   : > { %14030 = sst [smem:[#allocation14_spill]] %s14029_s14  ;;  %s241_s21 = scalar_lea.vmem [#allocation3], %s9706_s17 }
  0x1b   : > { %s249_s22 = sshll.u32 %s241_s21, 4  ;;  %p10357_p13 = pnand %p10059_p10, %p10329_p5  ;;  %s10361_s22 = int_to_ptr.vmem [resolvable:$true] %s249_s22 }
  0x1c   : > { %s238_s29 = scalar_lea.sflag [#allocation4], %s237_s15 }
  0x1d   : > { %p10137_p3 = pneg %p10357_p13 }
  0x1f   : > { %s10353_s20 = scalar_lea.hbm %s14031_s0, %s10045_s16  ;;  %s10140_s11 = scalar_lea.hbm %s14031_s0, 512 }
  0x20   : > { %s10135_s8 = scalar_lea.hbm %s10353_s20, 256  ;;  %p10141_p5 = scmp.lt.s32.totalorder %s10353_s20, %s14031_s0 }
  0x21   : > { %p10136_p2 = scmp.ne.s32.totalorder %s10353_s20, %s10135_s8  ;;  %p10142_p8 = scmp.lt.s32.totalorder %s10140_s11, %s10135_s8 }
  0x23   : > { %p10138_p4 = pnand %p10137_p3, %p10136_p2  ;;  %p10143_p10 = por %p10142_p8, %p10141_p5 }
  0x25   : > { %p10139_p7 = pneg %p10138_p4 }
  0x27   : > { %p10144_p9 = pnand %p10143_p10, %p10139_p7 }
  0x29   : > { %10147 = shalt.err (!%p10144_p9)
}
  0x2a   : > { %s10148_s15 = scalar_lea.vmem %s10361_s22, 256  ;;  %s10229_s19 = smov [#allocation3]  }
  0x2b   : > { %p10149_p0 = scmp.ne.s32.totalorder %s10361_s22, %s10148_s15  ;;  %s10153_s21 = sshll.u32 %s10229_s19, 4  ;;  %s10154_s21 = int_to_ptr.vmem [resolvable:$false] %s10153_s21 }
  0x2c   : > { %s10155_s9 = scalar_lea.vmem %s10154_s21, 512  ;;  %p10156_p4 = scmp.lt.s32.totalorder %s10361_s22, %s10154_s21 }
  0x2d   : > { %p10151_p1 = pnand %p10149_p0, %p10137_p3  ;;  %p10157_p12 = scmp.lt.s32.totalorder %s10155_s9, %s10148_s15 }
  0x2f   : > { %p10152_p2 = pneg %p10151_p1  ;;  %p10158_p11 = por %p10157_p12, %p10156_p4 }
  0x31   : > { %p10159_p6 = pnand %p10158_p11, %p10152_p2 }
  0x33   : > { %10162 = shalt.err (!%p10159_p6)
}
  0x34   : > { %10054 = dma.hbm_to_vmem [thread:$0]  (!%p10357_p13), %s10353_s20, 256, %s10361_s22, %s238_s29  }
  0x35   : > { %p14033_p9 = scmp.lt.s32.totalorder %s10227_s27, 3  ;;  %p14034_p7 = scmp.ge.s32.totalorder %s10227_s27, 1 }
  0x37   : > { %p255_p0 = pnand %p14034_p7, %p14033_p9 }
  0x39   : > { %258 = sbr.rel (%p255_p0) target bundleno = 2596 (0xa24), region = 48 }
  0x3e   : > { %s10388_s8 = sand.u32 1, %s10219_s25   ;;  %p14035_p6 = scmp.ne.s32.totalorder %s14027_s12, 0 }
  0x3f   : > { %s13884_s16 = sshll.u32 %s10388_s8, 4  ;;  %s261_s11 = scalar_lea.sflag [#allocation4], %s10388_s8 }
  0x40   : > { %s10394_s23 = scalar_lea.vmem [#allocation3], %s13884_s16 }
  0x41   : > { %10206 = dma.done.wait (%p14035_p6), %s261_s11, 256  }
  0x42   : > { %10208 = vsyncadd (%p14035_p6), %s261_s11, 4294967040  ;;  %v464_v0 = vlaneseq  ;;  %v13909_v1 = vmov 0   ;;  %v10231_v3 = vmov 0.0   ;;  %v9716_v7 = vld [vmem:[%s13880_s6 + $0x4] sm:$0xf]  ;;  %v303_v11 = vld [vmem:[%s10394_s23 + $0x8] sm:$0xff] }
  0x43   : > { %364 = vmatprep.mubr.bf16.mxu0 %v13909_v1  ;;  %405 = vmatprep.mubr.bf16.mxu1 %v13909_v1  ;;  %296 = vst [vmem:[#allocation2 + $0x28] sm:$0xff] %v10231_v3  ;;  %297 = vst [vmem:[#allocation2 + $0x10] sm:$0xff] %v10231_v3  ;;  %v302_v8 = vld [vmem:[%s10394_s23] sm:$0xff]  ;;  %v10420_v12 = vld [vmem:[%s13880_s6 + $0x8] sm:$0xf]  ;;  %vm13965_vm0 = vcmask 1041408   ;;  %v10429_v17 = vcombine.high %v303_v11, %v303_v11  ;;  %v312_v19 = vpack.c.bf16 %v303_v11, %v303_v11 }
  0x44   : > { %v465_v2 = vshrl.u32 %v464_v0, 7  ;;  %298 = vst [vmem:[#allocation2 + $0x8] sm:$0xff] %v10231_v3  ;;  %299 = vst [vmem:[#allocation2] sm:$0xff] %v10231_v3  ;;  %10112 = vset.pattern.permute.xlu1 %v13909_v1  ;;  %10113 = vset.pattern.permute.xlu0 %v13909_v1  ;;  %v10422_v13 = vcombine.high %v302_v8, %v302_v8  ;;  %s13887_s17 = smov 56   ;;  %v310_v16 = vpack.c.bf16 %v302_v8, %v302_v8  ;;  %s14042_s1 = sld [smem:[#allocation72_spill]]  ;;  %vm315_vm1 = vcmask 31744  }
  0x45   : > { %300 = vst [vmem:[#allocation2 + $0x18] sm:$0xff] %v10231_v3  ;;  %301 = vst [vmem:[#allocation2 + $0x20] sm:$0xff] %v10231_v3  ;;  %v313_v22 = vpack.c.bf16 %v10429_v17, %v10429_v17  ;;  %v327_v23 = vsel %vm13965_vm0, %v312_v19, 0  ;;  %v462_v26 = vld [vmem:[%s13880_s6] sm:$0xf]  ;;  %s13889_s9 = smov 57  }
  0x46   : > { %v10404_v4 = vsub.s32 0, %v465_v2  ;;  %v10406_v5 = vsub.s32 2, %v465_v2  ;;  %v10408_v6 = vsub.s32 1, %v465_v2  ;;  %14039 = vst [vmem:[#allocation18_spill] sm:$0xff] %v10422_v13  ;;  %v10427_v15 = vsub.s32 3, %v465_v2  ;;  %14041 = vst [vmem:[#allocation20_spill] sm:$0xff] %v10429_v17 }
  0x47   : > { %v311_v18 = vpack.c.bf16 %v10422_v13, %v10422_v13  ;;  %v321_v21 = vsel %vm13965_vm0, %v310_v16, 0  ;;  %9714 = vmatprep.subr.msk.bf16.mxu1 %vm13965_vm0, %v313_v22  ;;  %v9732_v28 = vld [vmem:[%s13880_s6 + $0xc] sm:$0xf]  ;;  %s13885_s20 = smov 55   ;;  %s13891_s22 = smov 63   ;;  %vm535_vm2 = vcmask 457728  }
  0x48   : > { %14036 = vst [vmem:[#allocation15_spill] sm:$0xff] %v10404_v4  ;;  %14037 = vst [vmem:[#allocation16_spill] sm:$0xff] %v10406_v5  ;;  %v514_v9 = vrot.slane %v9716_v7, %v10404_v4  ;;  %v522_v10 = vrot.slane %v9716_v7, %v10406_v5  ;;  %v518_v14 = vrot.slane %v9716_v7, %v10408_v6  ;;  %388 = vmatpush1.bf16.msra.mxu1 %v327_v23  ;;  %v9738_v33 = vld [vmem:[%s13880_s6 + $0x10] sm:$0xf]  ;;  %s13893_s15 = smov 64   ;;  %s13907_s11 = smov 65  }
  0x49   : > { %14038 = vst [vmem:[#allocation17_spill] sm:$0xff] %v10408_v6  ;;  %14040 = vst [vmem:[#allocation19_spill] sm:$0xff] %v10427_v15  ;;  %v802_v20 = vrot.slane %v10420_v12, %v10408_v6  ;;  %9712 = vmatprep.subr.msk.bf16.mxu0 %vm13965_vm0, %v311_v18  ;;  %v526_v24 = vrot.slane %v9716_v7, %v10427_v15  ;;  %v810_v27 = vrot.slane %v10420_v12, %v10427_v15  ;;  %v9744_v38 = vld [vmem:[%s13880_s6 + $0x14] sm:$0xf]  ;;  %v9750_v43 = vld [vmem:[%s13880_s6 + $0x18] sm:$0xf] }
  0x4a   : > { %527 = vrot.lane.b32.xlu1 %v514_v9, %s13887_s17  ;;  %531 = vrot.lane.b32.xlu0 %v522_v10, %s13887_s17  ;;  %v314_v25 = vld [vmem:[%s14042_s1] sm:$0x1]  ;;  %v467_v29 = vrot.slane %v462_v26, %v10404_v4  ;;  %v971_v30 = vrot.slane %v9732_v28, %v10408_v6  ;;  %v471_v31 = vrot.slane %v462_v26, %v10408_v6  ;;  %s13905_s18 = smov 71   ;;  %v9756_v48 = vld [vmem:[%s13880_s6 + $0x1c] sm:$0xf]  ;;  %s13901_s12 = smov 72  }
  0x4b   : > { %347 = vmatpush1.bf16.msra.mxu0 %v321_v21  ;;  %9715 = vmatmul.mubr.msk.bf16.vlgmr.msra.gmra.mxu1 %vm315_vm1, %v314_v25  ;;  %v979_v32 = vrot.slane %v9732_v28, %v10427_v15  ;;  %v475_v34 = vrot.slane %v462_v26, %v10406_v5  ;;  %v1140_v35 = vrot.slane %v9738_v33, %v10408_v6  ;;  %v9762_v53 = vld [vmem:[%s13880_s6 + $0x20] sm:$0xf]  ;;  %s13899_s21 = smov 73   ;;  %v9768_v59 = vld [vmem:[%s13880_s6 + $0x24] sm:$0xf]  ;;  %s13895_s16 = smov 119  }
  0x4c   : > { %666 = vmatprep.mubr.bf16.mxu1 %v13909_v1  ;;  %v479_v36 = vrot.slane %v462_v26, %v10427_v15  ;;  %v1148_v37 = vrot.slane %v9738_v33, %v10427_v15  ;;  %v798_v39 = vrot.slane %v10420_v12, %v10404_v4  ;;  %v1309_v40 = vrot.slane %v9744_v38, %v10408_v6  ;;  %v9774_v0 = vld [vmem:[%s13880_s6 + $0x28] sm:$0xf]  ;;  %s13903_s19 = smov 120   ;;  %v9780_v9 = vld [vmem:[%s13880_s6 + $0x2c] sm:$0xf]  ;;  %s13897_s29 = smov 121  }
  0x4d   : > { %v806_v41 = vrot.slane %v10420_v12, %v10406_v5  ;;  %v1317_v42 = vrot.slane %v9744_v38, %v10427_v15  ;;  %v967_v44 = vrot.slane %v9732_v28, %v10404_v4  ;;  %v1478_v45 = vrot.slane %v9750_v43, %v10408_v6  ;;  %v9786_v16 = vld [vmem:[%s13880_s6 + $0x30] sm:$0xf]  ;;  %v10569_v21 = vld [vmem:[%s13880_s6 + $0x38] sm:$0xf]  ;;  %s14113_s0 = smov 9   ;;  %s14119_s1 = smov 8  }
  0x4e   : > { %529 = vrot.lane.b32.xlu1 %v518_v14, %s13887_s17  ;;  %813 = vrot.lane.b32.xlu0 %v802_v20, %s13889_s9  ;;  %v975_v46 = vrot.slane %v9732_v28, %v10406_v5  ;;  %v1486_v47 = vrot.slane %v9750_v43, %v10427_v15  ;;  %v1136_v49 = vrot.slane %v9738_v33, %v10404_v4  ;;  %vm488_vm3 = vcmask 449536   ;;  %s14124_s10 = smov 7   ;;  %s14130_s26 = smov 1  }
  0x4f   : > { %9713 = vmatmul.mubr.msk.bf16.vlgmr.msra.gmra.mxu0 %vm315_vm1, %v314_v25  ;;  %v1647_v50 = vrot.slane %v9756_v48, %v10408_v6  ;;  %v1144_v51 = vrot.slane %v9738_v33, %v10406_v5  ;;  %v1655_v52 = vrot.slane %v9756_v48, %v10427_v15  ;;  %v1305_v54 = vrot.slane %v9744_v38, %v10404_v4  ;;  %s14138_s25 = smov 127   ;;  %s14143_s2 = sld [smem:[#allocation73_spill]] }
  0x50   : > { %625 = vmatprep.mubr.bf16.mxu0 %v13909_v1  ;;  %v1812_v55 = vrot.slane %v9762_v53, %v10404_v4  ;;  %v1313_v56 = vrot.slane %v9744_v38, %v10406_v5  ;;  %v1820_v57 = vrot.slane %v9762_v53, %v10406_v5  ;;  %v1474_v58 = vrot.slane %v9750_v43, %v10404_v4  ;;  %p14396_p12 = scmp.ne.s32.totalorder %s14028_s13, 0 }
  0x51   : > { %v1985_v60 = vrot.slane %v9768_v59, %v10408_v6  ;;  %v1482_v61 = vrot.slane %v9750_v43, %v10406_v5  ;;  %v1993_v62 = vrot.slane %v9768_v59, %v10427_v15  ;;  %v1643_v63 = vrot.slane %v9756_v48, %v10404_v4 }
  0x52   : > { %533 = vrot.lane.b32.xlu1 %v526_v24, %s13887_s17  ;;  %817 = vrot.lane.b32.xlu0 %v810_v27, %s13889_s9  ;;  %v2150_v2 = vrot.slane %v9774_v0, %v10404_v4  ;;  %v1651_v3 = vrot.slane %v9756_v48, %v10406_v5  ;;  %v2158_v7 = vrot.slane %v9774_v0, %v10406_v5  ;;  %s14046_s17 = smov 57   ;;  %vm819_vm4 = vcmask 465920  }
  0x53   : > { %v1816_v8 = vrot.slane %v9762_v53, %v10408_v6  ;;  %v2323_v10 = vrot.slane %v9780_v9, %v10408_v6  ;;  %v1824_v11 = vrot.slane %v9762_v53, %v10427_v15  ;;  %v2331_v12 = vrot.slane %v9780_v9, %v10427_v15 }
  0x54   : > { %v1981_v14 = vrot.slane %v9768_v59, %v10404_v4  ;;  %v2488_v18 = vrot.slane %v9786_v16, %v10404_v4  ;;  %v1989_v19 = vrot.slane %v9768_v59, %v10406_v5  ;;  %v2496_v20 = vrot.slane %v9786_v16, %v10406_v5 }
  0x55   : > { %v2154_v22 = vrot.slane %v9774_v0, %v10408_v6  ;;  %v2796_v23 = vrot.slane %v10569_v21, %v10404_v4  ;;  %v2162_v24 = vrot.slane %v9774_v0, %v10427_v15  ;;  %v2319_v25 = vrot.slane %v9780_v9, %v10404_v4 }
  0x56   : > { %480 = vrot.lane.b32.xlu1 %v467_v29, %s13885_s20  ;;  %982 = vrot.lane.b32.xlu0 %v971_v30, %s13891_s22  ;;  %v2327_v26 = vrot.slane %v9780_v9, %v10406_v5  ;;  %v2492_v27 = vrot.slane %v9786_v16, %v10408_v6  ;;  %v2500_v28 = vrot.slane %v9786_v16, %v10427_v15  ;;  %v10587_v29 = vld [vmem:[#allocation2 + $0x28] sm:$0x3]  ;;  %vm988_vm5 = vcmask 515072  }
  0x57   : > { %vm1157_vm6 = vcmask 523264   ;;  %vm1024_vm7 = vcmask 531456   ;;  %vm855_vm8 = vcmask 580608   ;;  %vm571_vm9 = vcmask 588800  }
  0x58   : > { %vm690_vm10 = vcmask 596992   ;;  %vm13966_vm11 = vcmask 973824   ;;  %vm13970_vm12 = vcmask 982016   ;;  %vm13971_vm13 = vcmask 990208  }
  0x59   : > { %vm2509_vm14 = vcmask 1039360   ;;  %vm13975_vm15 = vcmask 7168   ;;  %vm13974_vm1 = vcmask 56320  }
  0x5a   : > { %482 = vrot.lane.b32.xlu1 %v471_v31, %s13885_s20  ;;  %986 = vrot.lane.b32.xlu0 %v979_v32, %s13891_s22 }
  0x5e   : > { %484 = vrot.lane.b32.xlu1 %v475_v34, %s13885_s20  ;;  %1151 = vrot.lane.b32.xlu0 %v1140_v35, %s13893_s15 }
  0x62   : > { %486 = vrot.lane.b32.xlu1 %v479_v36, %s13885_s20  ;;  %1155 = vrot.lane.b32.xlu0 %v1148_v37, %s13893_s15  ;;  %s13937_s20 = smov 127  }
  0x66   : > { %811 = vrot.lane.b32.xlu1 %v798_v39, %s13889_s9  ;;  %1320 = vrot.lane.b32.xlu0 %v1309_v40, %s13907_s11 }
  0x6a   : > { %815 = vrot.lane.b32.xlu1 %v806_v41, %s13889_s9  ;;  %1324 = vrot.lane.b32.xlu0 %v1317_v42, %s13907_s11  ;;  %s13921_s9 = smov 1  }
  0x6e   : > { %980 = vrot.lane.b32.xlu1 %v967_v44, %s13891_s22  ;;  %1489 = vrot.lane.b32.xlu0 %v1478_v45, %s13905_s18 }
  0x72   : > { %984 = vrot.lane.b32.xlu1 %v975_v46, %s13891_s22  ;;  %1493 = vrot.lane.b32.xlu0 %v1486_v47, %s13905_s18  ;;  %s14043_s22 = smov 64  }
  0x76   : > { %1149 = vrot.lane.b32.xlu1 %v1136_v49, %s13893_s15  ;;  %1658 = vrot.lane.b32.xlu0 %v1647_v50, %s13901_s12 }
  0x7a   : > { %1153 = vrot.lane.b32.xlu1 %v1144_v51, %s13893_s15  ;;  %1662 = vrot.lane.b32.xlu0 %v1655_v52, %s13901_s12  ;;  %s14044_s15 = smov 63  }
  0x7e   : > { %1318 = vrot.lane.b32.xlu1 %v1305_v54, %s13907_s11  ;;  %1825 = vrot.lane.b32.xlu0 %v1812_v55, %s13899_s21 }
  0x82   : > { %1322 = vrot.lane.b32.xlu1 %v1313_v56, %s13907_s11  ;;  %1829 = vrot.lane.b32.xlu0 %v1820_v57, %s13899_s21 }
  0x86   : > { %1487 = vrot.lane.b32.xlu1 %v1474_v58, %s13905_s18  ;;  %1996 = vrot.lane.b32.xlu0 %v1985_v60, %s13895_s16 }
  0x8a   : > { %1491 = vrot.lane.b32.xlu1 %v1482_v61, %s13905_s18  ;;  %2000 = vrot.lane.b32.xlu0 %v1993_v62, %s13895_s16 }
  0x8e   : > { %1656 = vrot.lane.b32.xlu1 %v1643_v63, %s13901_s12  ;;  %2163 = vrot.lane.b32.xlu0 %v2150_v2, %s13903_s19 }
  0x92   : > { %1660 = vrot.lane.b32.xlu1 %v1651_v3, %s13901_s12  ;;  %2167 = vrot.lane.b32.xlu0 %v2158_v7, %s13903_s19 }
  0x96   : > { %1827 = vrot.lane.b32.xlu1 %v1816_v8, %s13899_s21  ;;  %2334 = vrot.lane.b32.xlu0 %v2323_v10, %s13897_s29  ;;  %v2804_v8 = vrot.slane %v10569_v21, %v10406_v5 }
  0x9a   : > { %1831 = vrot.lane.b32.xlu1 %v1824_v11, %s13899_s21  ;;  %2338 = vrot.lane.b32.xlu0 %v2331_v12, %s13897_s29 }
  0x9e   : > { %1994 = vrot.lane.b32.xlu1 %v1981_v14, %s13895_s16  ;;  %2501 = vrot.lane.b32.xlu0 %v2488_v18, %s13937_s20  ;;  %v2800_v18 = vrot.slane %v10569_v21, %v10408_v6 }
  0xa2   : > { %1998 = vrot.lane.b32.xlu1 %v1989_v19, %s13895_s16  ;;  %2505 = vrot.lane.b32.xlu0 %v2496_v20, %s13937_s20  ;;  %s14080_s16 = smov 71  }
  0xa6   : > { %2165 = vrot.lane.b32.xlu1 %v2154_v22, %s13903_s19  ;;  %2809 = vrot.lane.b32.xlu0 %v2796_v23, %s13921_s9  ;;  %v2808_v22 = vrot.slane %v10569_v21, %v10427_v15  ;;  %v9804_v23 = vld [vmem:[%s13880_s6 + $0x3c] sm:$0xf] }
  0xaa   : > { %2169 = vrot.lane.b32.xlu1 %v2162_v24, %s13903_s19  ;;  %s14051_s19 = smov 55  }
  0xae   : > { %2332 = vrot.lane.b32.xlu1 %v2319_v25, %s13897_s29 }
  0xb2   : > { %2336 = vrot.lane.b32.xlu1 %v2327_v26, %s13897_s29  ;;  %v2965_v26 = vrot.slane %v9804_v23, %v10404_v4  ;;  %s14085_s29 = smov 120  }
  0xb6   : > { %2503 = vrot.lane.b32.xlu1 %v2492_v27, %s13937_s20  ;;  %v2969_v27 = vrot.slane %v9804_v23, %v10408_v6 }
  0xba   : > { %2507 = vrot.lane.b32.xlu1 %v2500_v28, %s13937_s20 }
  0xbc   : > { %v10590_v30 = vpop.permute.xlu1 %527  ;;  %v10594_v32 = vpop.permute.xlu0 %531 }
  0xbd   : > { %v544_v31 = vmul.f32 %v10590_v30, %v10587_v29 }
  0xbf   : > { %v551_v33 = vpack.c.bf16 %v544_v31, %v544_v31  ;;  %v2973_v31 = vrot.slane %v9804_v23, %v10406_v5 }
  0xc0   : > { %v10596_v34 = vpop.permute.xlu1 %529  ;;  %v10599_v35 = vpop.permute.xlu0 %813 }
  0xc1   : > { %561 = vrot.lane.b32.xlu1 %v551_v33, %s13901_s12  ;;  %s13923_s12 = smov 7   ;;  %v2977_v33 = vrot.slane %v9804_v23, %v10427_v15 }
  0xc4   : > { %v10601_v36 = vpop.permute.xlu1 %533  ;;  %v10603_v37 = vpop.permute.xlu0 %817 }
  0xc8   : > { %v10605_v38 = vpop.permute.xlu1 %480  ;;  %v10609_v40 = vpop.permute.xlu0 %982 }
  0xc9   : > { %v497_v39 = vmul.f32 %v10605_v38, %v10587_v29 }
  0xcb   : > { %v503_v41 = vpack.c.bf16 %v497_v39, %v497_v39  ;;  %v9810_v39 = vld [vmem:[%s13880_s6 + $0x40] sm:$0xf] }
  0xcc   : > { %v10611_v42 = vpop.permute.xlu1 %482  ;;  %v10614_v43 = vpop.permute.xlu0 %986 }
  0xcd   : > { %680 = vrot.lane.b32.xlu0 %v503_v41, %s13899_s21  ;;  %s14048_s21 = smov 56  }
  0xd0   : > { %v10616_v44 = vpop.permute.xlu1 %484  ;;  %v10620_v46 = vpop.permute.xlu0 %1151 }
  0xd4   : > { %v10618_v45 = vpop.permute.xlu1 %486  ;;  %v10626_v49 = vpop.permute.xlu0 %1155 }
  0xd8   : > { %v10622_v47 = vpop.permute.xlu1 %811  ;;  %v10633_v53 = vpop.permute.xlu0 %1320 }
  0xd9   : > { %v828_v48 = vmul.f32 %v10622_v47, %v10587_v29 }
  0xdb   : > { %v835_v50 = vpack.c.bf16 %v828_v48, %v828_v48 }
  0xdc   : > { %v10628_v51 = vpop.permute.xlu1 %815  ;;  %v10640_v57 = vpop.permute.xlu0 %1324 }
  0xdd   : > { %845 = vrot.lane.b32.xlu1 %v835_v50, %s13905_s18  ;;  %v3134_v50 = vrot.slane %v9810_v39, %v10404_v4  ;;  %s13925_s18 = smov 8  }
  0xe0   : > { %v10631_v52 = vpop.permute.xlu1 %980  ;;  %v10648_v62 = vpop.permute.xlu0 %1489 }
  0xe1   : > { %v997_v54 = vmul.f32 %v10631_v52, %v10587_v29 }
  0xe3   : > { %v1004_v55 = vpack.c.bf16 %v997_v54, %v997_v54  ;;  %v3138_v54 = vrot.slane %v9810_v39, %v10408_v6 }
  0xe4   : > { %v10637_v56 = vpop.permute.xlu1 %984  ;;  %v10655_v2 = vpop.permute.xlu0 %1493 }
  0xe5   : > { %1014 = vrot.lane.b32.xlu0 %v1004_v55, %s13907_s11  ;;  %v3142_v55 = vrot.slane %v9810_v39, %v10406_v5  ;;  %s13941_s11 = smov 9  }
  0xe8   : > { %v10642_v58 = vpop.permute.xlu1 %1149  ;;  %v10664_v10 = vpop.permute.xlu0 %1658 }
  0xe9   : > { %v1166_v59 = vmul.f32 %v10642_v58, %v10587_v29 }
  0xeb   : > { %v1173_v60 = vpack.c.bf16 %v1166_v59, %v1166_v59 }
  0xec   : > { %v10646_v61 = vpop.permute.xlu1 %1153  ;;  %v10671_v16 = vpop.permute.xlu0 %1662 }
  0xed   : > { %1183 = vrot.lane.b32.xlu1 %v1173_v60, %s14043_s22  ;;  %14045 = vst [vmem:[#allocation21_spill] sm:$0xff] %v10671_v16 }
  0xf0   : > { %v10651_v63 = vpop.permute.xlu1 %1318  ;;  %v10686_v24 = vpop.permute.xlu0 %1825 }
  0xf1   : > { %v1335_v0 = vmul.f32 %v10651_v63, %v10587_v29  ;;  %14047 = vst [vmem:[#allocation22_spill] sm:$0xff] %v10686_v24  ;;  %v1842_v21 = vmul.f32 %v10686_v24, %v10587_v29 }
  0xf3   : > { %v1342_v3 = vpack.c.bf16 %v1335_v0, %v1335_v0  ;;  %v1849_v48 = vpack.c.bf16 %v1842_v21, %v1842_v21 }
  0xf4   : > { %v10657_v7 = vpop.permute.xlu1 %1322  ;;  %v10692_v28 = vpop.permute.xlu0 %1829 }
  0xf5   : > { %1352 = vrot.lane.b32.xlu0 %v1342_v3, %s14044_s15  ;;  %14049 = vst [vmem:[#allocation23_spill] sm:$0xff] %v10692_v28 }
  0xf8   : > { %v10662_v9 = vpop.permute.xlu1 %1487  ;;  %v10703_v41 = vpop.permute.xlu0 %1996 }
  0xf9   : > { %v1504_v11 = vmul.f32 %v10662_v9, %v10587_v29  ;;  %2813 = vrot.lane.b32.xlu0 %v2804_v8, %s13921_s9  ;;  %14050 = vst [vmem:[#allocation24_spill] sm:$0xff] %v10703_v41  ;;  %v3146_v8 = vrot.slane %v9810_v39, %v10427_v15 }
  0xfb   : > { %v1511_v12 = vpack.c.bf16 %v1504_v11, %v1504_v11 }
  0xfc   : > { %v10669_v14 = vpop.permute.xlu1 %1491  ;;  %v10714_v60 = vpop.permute.xlu0 %2000 }
  0xfd   : > { %1521 = vrot.lane.b32.xlu1 %v1511_v12, %s14046_s17  ;;  %14052 = vst [vmem:[#allocation25_spill] sm:$0xff] %v10714_v60 }
 0x100   : > { %v10676_v19 = vpop.permute.xlu1 %1656  ;;  %v10730_v23 = vpop.permute.xlu0 %2163 }
 0x101   : > { %v1673_v20 = vmul.f32 %v10676_v19, %v10587_v29  ;;  %2811 = vrot.lane.b32.xlu1 %v2800_v18, %s13921_s9  ;;  %v10728_v18 = vld [vmem:[%s13880_s6 + $0x44] sm:$0xf]  ;;  %14053 = vst [vmem:[#allocation26_spill] sm:$0xff] %v10730_v23 }
 0x102   : > { %v3311_v21 = vrot.slane %v10728_v18, %v10406_v5 }
 0x103   : > { %v1680_v25 = vpack.c.bf16 %v1673_v20, %v1673_v20 }
 0x105   : > { %2815 = vrot.lane.b32.xlu1 %v2808_v22, %s13921_s9  ;;  %1690 = vrot.lane.b32.xlu0 %v1680_v25, %s14048_s21 }
 0x109   : > { %2978 = vrot.lane.b32.xlu1 %v2965_v26, %s13923_s12  ;;  %2980 = vrot.lane.b32.xlu0 %v2969_v27, %s13923_s12  ;;  %v3303_v26 = vrot.slane %v10728_v18, %v10404_v4  ;;  %v2180_v27 = vmul.f32 %v10730_v23, %v10587_v29 }
 0x10b   : > { %v10718_v3 = vpop.f32.mrf.mxu1  ;;  %v2187_v39 = vpack.c.bf16 %v2180_v27, %v2180_v27 }
 0x10c   : > { %v417_v27 = vsel %vm13965_vm0, %v10718_v3, 0.0 }
 0x10d   : > { %2982 = vrot.lane.b32.xlu1 %v2973_v31, %s13923_s12  ;;  %2984 = vrot.lane.b32.xlu0 %v2977_v33, %s13923_s12  ;;  %v10723_v12 = vpop.f32.mrf.mxu1  ;;  %v10740_v31 = vpop.permute.xlu0 %2167 }
 0x10e   : > { %14054 = vst [vmem:[#allocation27_spill] sm:$0xff] %v10740_v31  ;;  %v10742_v33 = vpop.permute.xlu1 %1660  ;;  %v10825_v31 = vld [vmem:[%s13880_s6 + $0x58] sm:$0xf] }
 0x10f   : > { %v10712_v59 = vpop.f32.mrf.mxu0  ;;  %v411_v22 = vpop.f32.mrf.mxu1 }
 0x111   : > { %1859 = vrot.lane.b32.xlu1 %v1849_v48, %s14051_s19  ;;  %3147 = vrot.lane.b32.xlu0 %v3134_v50, %s13925_s18  ;;  %v10716_v0 = vpop.f32.mrf.mxu0  ;;  %v412_v25 = vpop.f32.mrf.mxu1  ;;  %v9822_v48 = vld [vmem:[%s13880_s6 + $0x48] sm:$0xf] }
 0x112   : > { %v10748_v50 = vpop.permute.xlu0 %2334 }
 0x113   : > { %v370_v11 = vpop.f32.mrf.mxu0  ;;  %14055 = vst [vmem:[#allocation28_spill] sm:$0xff] %v10748_v50  ;;  %v10809_v50 = vld [vmem:[%s13880_s6 + $0x54] sm:$0xf] }
 0x114   : > { %v415_v11 = vsel %vm13965_vm0, %v10716_v0, 0.0 }
 0x115   : > { %3149 = vrot.lane.b32.xlu1 %v3138_v54, %s13925_s18  ;;  %3151 = vrot.lane.b32.xlu0 %v3142_v55, %s13925_s18  ;;  %v371_v20 = vpop.f32.mrf.mxu0  ;;  %v3476_v54 = vrot.slane %v9822_v48, %v10408_v6  ;;  %v10752_v55 = vpop.permute.xlu1 %1827 }
 0x116   : > { %14056 = vst [vmem:[#allocation29_spill] sm:$0xff] %v10752_v55  ;;  %v3484_v20 = vrot.slane %v9822_v48, %v10427_v15  ;;  %v10760_v25 = vpop.permute.xlu0 %2338 }
 0x117   : > { %14057 = vst [vmem:[#allocation30_spill] sm:$0xff] %v10760_v25 }
 0x119   : > { %3153 = vrot.lane.b32.xlu1 %v3146_v8, %s13925_s18  ;;  %v414_v8 = vsel %vm13965_vm0, %v10712_v59, 0.0 }
 0x11a   : > { %v416_v22 = vadd.f32 %v415_v11, %v414_v8  ;;  %v10773_v8 = vpop.permute.xlu0 %2501 }
 0x11b   : > { %14059 = vst [vmem:[#allocation32_spill] sm:$0xff] %v10773_v8  ;;  %v2518_v11 = vmul.f32 %v10773_v8, %v10587_v29  ;;  %v10790_v8 = vld [vmem:[%s13880_s6 + $0x50] sm:$0xf] }
 0x11c   : > { %v418_v1 = vadd.f32 %v417_v27, %v416_v22 }
 0x11d   : > { %3316 = vrot.lane.b32.xlu1 %v3303_v26, %s13941_s11  ;;  %v9828_v26 = vld [vmem:[%s13880_s6 + $0x4c] sm:$0xf] }
 0x11e   : > { %v3647_v17 = vrot.slane %v9828_v26, %v10406_v5 }
 0x121   : > { %3320 = vrot.lane.b32.xlu1 %v3311_v21, %s13941_s11  ;;  %v10767_v21 = vpop.permute.xlu1 %1831 }
 0x122   : > { %14058 = vst [vmem:[#allocation31_spill] sm:$0xff] %v10767_v21 }
 0x125   : > { %2197 = vrot.lane.b32.xlu1 %v2187_v39, %s13925_s18  ;;  %v3639_v39 = vrot.slane %v9828_v26, %v10404_v4  ;;  %v10779_v25 = vpop.permute.xlu1 %1994  ;;  %s14100_s18 = smov 121  }
 0x126   : > { %14060 = vst [vmem:[#allocation33_spill] sm:$0xff] %v10779_v25 }
 0x129   : > { %3487 = vrot.lane.b32.xlu1 %v3476_v54, %s14051_s19  ;;  %v419_v54 = vsel %vm13965_vm0, %v10723_v12, 0.0  ;;  %v10782_v22 = vpop.permute.xlu1 %1998 }
 0x12a   : > { %v420_v13 = vadd.f32 %v419_v54, %v418_v1  ;;  %14061 = vst [vmem:[#allocation34_spill] sm:$0xff] %v10782_v22  ;;  %v3810_v1 = vrot.slane %v10790_v8, %v10408_v6  ;;  %v3307_v54 = vrot.slane %v10728_v18, %v10408_v6 }
 0x12d   : > { %3491 = vrot.lane.b32.xlu1 %v3484_v20, %s14051_s19  ;;  %v2525_v20 = vpack.c.bf16 %v2518_v11, %v2518_v11  ;;  %v10785_v27 = vpop.permute.xlu1 %2165  ;;  %v3818_v11 = vrot.slane %v10790_v8, %v10427_v15 }
 0x12e   : > { %14062 = vst [vmem:[#allocation35_spill] sm:$0xff] %v10785_v27 }
 0x131   : > { %3652 = vrot.lane.b32.xlu1 %v3639_v39, %s14048_s21 }
 0x134   : > { %421 = vadd.xlane.f32.xlu0 %v420_v13  ;;  %v2011_v13 = vmul.f32 %v10779_v25, %v10587_v29 }
 0x135   : > { %3656 = vrot.lane.b32.xlu1 %v3647_v17, %s14048_s21  ;;  %v10797_v17 = vpop.permute.xlu1 %2169 }
 0x136   : > { %14063 = vst [vmem:[#allocation36_spill] sm:$0xff] %v10797_v17  ;;  %v2018_v39 = vpack.c.bf16 %v2011_v13, %v2011_v13  ;;  %v3315_v13 = vrot.slane %v10728_v18, %v10427_v15  ;;  %v4140_v18 = vrot.slane %v10825_v31, %v10404_v4 }
 0x139   : > { %2535 = vrot.lane.b32.xlu1 %v2525_v20, %s13921_s9  ;;  %v10804_v20 = vpop.permute.xlu1 %2332  ;;  %s14076_s9 = smov 65  }
 0x13a   : > { %14064 = vst [vmem:[#allocation37_spill] sm:$0xff] %v10804_v20 }
 0x13d   : > { %3821 = vrot.lane.b32.xlu1 %v3810_v1, %s14046_s17  ;;  %v3977_v1 = vrot.slane %v10809_v50, %v10408_v6  ;;  %v10820_v17 = vpop.permute.xlu1 %2336 }
 0x13e   : > { %14065 = vst [vmem:[#allocation38_spill] sm:$0xff] %v10820_v17 }
 0x141   : > { %3825 = vrot.lane.b32.xlu1 %v3818_v11, %s14046_s17  ;;  %v3472_v11 = vrot.slane %v9822_v48, %v10404_v4  ;;  %v10836_v17 = vpop.permute.xlu1 %2503 }
 0x142   : > { %14066 = vst [vmem:[#allocation39_spill] sm:$0xff] %v10836_v17 }
 0x145   : > { %3988 = vrot.lane.b32.xlu1 %v3977_v1, %s14044_s15  ;;  %v3480_v1 = vrot.slane %v9822_v48, %v10406_v5  ;;  %v10843_v23 = vpop.permute.xlu1 %2507  ;;  %v3651_v48 = vrot.slane %v9828_v26, %v10427_v15 }
 0x146   : > { %14067 = vst [vmem:[#allocation40_spill] sm:$0xff] %v10843_v23  ;;  %v10860_v23 = vld [vmem:[#allocation2 + $0x20] sm:$0x3] }
 0x14a   : > { %2028 = vrot.lane.b32.xlu0 %v2018_v39, %s13941_s11  ;;  %v3985_v39 = vrot.slane %v10809_v50, %v10427_v15 }
 0x14c   : > { %3992 = vrot.lane.b32.xlu1 %v3985_v39, %s14044_s15 }
 0x14e   : > { %3318 = vrot.lane.b32.xlu0 %v3307_v54, %s13941_s11  ;;  %v2349_v54 = vmul.f32 %v10804_v20, %v10587_v29  ;;  %v3643_v29 = vrot.slane %v9828_v26, %v10408_v6  ;;  %v10869_v26 = vld [vmem:[%s13880_s6 + $0x5c] sm:$0xf] }
 0x150   : > { %4153 = vrot.lane.b32.xlu1 %v4140_v18, %s14043_s22  ;;  %v2356_v39 = vpack.c.bf16 %v2349_v54, %v2349_v54 }
 0x152   : > { %3322 = vrot.lane.b32.xlu0 %v3315_v13, %s13941_s11  ;;  %v4148_v13 = vrot.slane %v10825_v31, %v10406_v5  ;;  %s14093_s11 = smov 73  }
 0x154   : > { %4157 = vrot.lane.b32.xlu1 %v4148_v13, %s14043_s22 }
 0x156   : > { %3485 = vrot.lane.b32.xlu0 %v3472_v11, %s14051_s19  ;;  %v10849_v11 = vpop.permute.xlu1 %561 }
 0x157   : > { %14068 = vst [vmem:[#allocation41_spill] sm:$0xff] %v10849_v11  ;;  %v4319_v11 = vrot.slane %v10869_v26, %v10427_v15 }
 0x15a   : > { %3489 = vrot.lane.b32.xlu0 %v3480_v1, %s14051_s19  ;;  %v10852_v18 = vpop.permute.xlu1 %845 }
 0x15b   : > { %14069 = vst [vmem:[#allocation42_spill] sm:$0xff] %v10852_v18 }
 0x15e   : > { %2366 = vrot.lane.b32.xlu0 %v2356_v39, %s13923_s12  ;;  %s14102_s12 = smov 119  }
 0x15f   : > { %v10854_v1 = vpop.permute.xlu1 %1183 }
 0x160   : > { %14070 = vst [vmem:[#allocation43_spill] sm:$0xff] %v10854_v1 }
 0x162   : > { %3654 = vrot.lane.b32.xlu0 %v3643_v29, %s14048_s21 }
 0x166   : > { %3658 = vrot.lane.b32.xlu0 %v3651_v48, %s14048_s21 }
 0x16f   : > { %v10856_v54 = vpop.permute.xlu1 %1521 }
 0x170   : > { %14071 = vst [vmem:[#allocation44_spill] sm:$0xff] %v10856_v54  ;;  %v4311_v54 = vrot.slane %v10869_v26, %v10408_v6 }
 0x173   : > { %v10858_v13 = vpop.permute.xlu1 %2811 }
 0x174   : > { %14072 = vst [vmem:[#allocation45_spill] sm:$0xff] %v10858_v13 }
 0x177   : > { %v10862_v39 = vpop.permute.xlu1 %2815 }
 0x178   : > { %14073 = vst [vmem:[#allocation46_spill] sm:$0xff] %v10862_v39  ;;  %v2830_v29 = vmul.f32 %v10862_v39, %v10860_v23  ;;  %v10884_v39 = vld [vmem:[%s13880_s6 + $0x60] sm:$0xf] }
 0x17a   : > { %v2837_v48 = vpack.c.bf16 %v2830_v29, %v2830_v29  ;;  %v10886_v29 = vpop.permute.xlu0 %2505 }
 0x17b   : > { %v10871_v18 = vpop.permute.xlu1 %2978  ;;  %14077 = vst [vmem:[#allocation49_spill] sm:$0xff] %v10886_v29 }
 0x17c   : > { %14074 = vst [vmem:[#allocation47_spill] sm:$0xff] %v10871_v18  ;;  %2851 = vrot.lane.b32.xlu1 %v2837_v48, %s13937_s20  ;;  %v4474_v48 = vrot.slane %v10884_v39, %v10404_v4  ;;  %s14088_s20 = smov 72  }
 0x17e   : > { %v10898_v13 = vpop.permute.xlu0 %2809 }
 0x17f   : > { %v10876_v1 = vpop.permute.xlu1 %2982  ;;  %14081 = vst [vmem:[#allocation52_spill] sm:$0xff] %v10898_v13 }
 0x180   : > { %14075 = vst [vmem:[#allocation48_spill] sm:$0xff] %v10876_v1  ;;  %4322 = vrot.lane.b32.xlu1 %v4311_v54, %s14076_s9  ;;  %v4482_v54 = vrot.slane %v10884_v39, %v10406_v5 }
 0x183   : > { %v10888_v18 = vpop.permute.xlu1 %1859 }
 0x184   : > { %14078 = vst [vmem:[#allocation50_spill] sm:$0xff] %v10888_v18  ;;  %4326 = vrot.lane.b32.xlu1 %v4319_v11, %s14076_s9  ;;  %v10908_v11 = vld [vmem:[%s13880_s6 + $0x64] sm:$0xf] }
 0x185   : > { %v4645_v13 = vrot.slane %v10908_v11, %v10408_v6 }
 0x187   : > { %v10893_v1 = vpop.permute.xlu1 %3149 }
 0x188   : > { %14079 = vst [vmem:[#allocation51_spill] sm:$0xff] %v10893_v1  ;;  %4487 = vrot.lane.b32.xlu1 %v4474_v48, %s14080_s16  ;;  %v10910_v1 = vpop.permute.xlu0 %680 }
 0x189   : > { %14083 = vst [vmem:[#allocation54_spill] sm:$0xff] %v10910_v1 }
 0x18b   : > { %v10900_v17 = vpop.permute.xlu1 %3153 }
 0x18c   : > { %14082 = vst [vmem:[#allocation53_spill] sm:$0xff] %v10900_v17  ;;  %v3168_v29 = vmul.f32 %v10900_v17, %v10860_v23  ;;  %4491 = vrot.lane.b32.xlu1 %v4482_v54, %s14080_s16  ;;  %v10917_v20 = vpop.permute.xlu0 %1014  ;;  %v4653_v54 = vrot.slane %v10908_v11, %v10427_v15 }
 0x18d   : > { %14086 = vst [vmem:[#allocation56_spill] sm:$0xff] %v10917_v20 }
 0x18e   : > { %v3175_v18 = vpack.c.bf16 %v3168_v29, %v3168_v29  ;;  %v10927_v29 = vld [vmem:[%s13880_s6 + $0x68] sm:$0xf] }
 0x18f   : > { %v10912_v48 = vpop.permute.xlu1 %3316  ;;  %v4808_v20 = vrot.slane %v10927_v29, %v10404_v4  ;;  %v4816_v1 = vrot.slane %v10927_v29, %v10406_v5 }
 0x190   : > { %14084 = vst [vmem:[#allocation55_spill] sm:$0xff] %v10912_v48  ;;  %3189 = vrot.lane.b32.xlu1 %v3175_v18, %s14085_s29  ;;  %v10929_v48 = vpop.permute.xlu0 %1352 }
 0x191   : > { %14089 = vst [vmem:[#allocation58_spill] sm:$0xff] %v10929_v48 }
 0x193   : > { %v10919_v17 = vpop.permute.xlu1 %3320 }
 0x194   : > { %14087 = vst [vmem:[#allocation57_spill] sm:$0xff] %v10919_v17  ;;  %4656 = vrot.lane.b32.xlu1 %v4645_v13, %s14088_s20  ;;  %v10936_v17 = vpop.permute.xlu0 %2813 }
 0x195   : > { %14091 = vst [vmem:[#allocation60_spill] sm:$0xff] %v10936_v17 }
 0x197   : > { %v10931_v18 = vpop.permute.xlu1 %2197 }
 0x198   : > { %14090 = vst [vmem:[#allocation59_spill] sm:$0xff] %v10931_v18  ;;  %4660 = vrot.lane.b32.xlu1 %v4653_v54, %s14088_s20  ;;  %v10948_v54 = vpop.permute.xlu0 %1690 }
 0x199   : > { %14095 = vst [vmem:[#allocation63_spill] sm:$0xff] %v10948_v54 }
 0x19b   : > { %v10938_v13 = vpop.permute.xlu1 %3487 }
 0x19c   : > { %14092 = vst [vmem:[#allocation61_spill] sm:$0xff] %v10938_v13  ;;  %4821 = vrot.lane.b32.xlu1 %v4808_v20, %s14093_s11  ;;  %v10951_v17 = vpop.permute.xlu0 %2980 }
 0x19d   : > { %14096 = vst [vmem:[#allocation64_spill] sm:$0xff] %v10951_v17 }
 0x19f   : > { %v10943_v27 = vpop.permute.xlu1 %3491 }
 0x1a0   : > { %14094 = vst [vmem:[#allocation62_spill] sm:$0xff] %v10943_v27  ;;  %v3505_v48 = vmul.f32 %v10943_v27, %v10860_v23  ;;  %4825 = vrot.lane.b32.xlu1 %v4816_v1, %s14093_s11  ;;  %v10953_v13 = vpop.permute.xlu0 %2984 }
 0x1a2   : > { %v3512_v18 = vpack.c.bf16 %v3505_v48, %v3505_v48 }
 0x1a4   : > { %3526 = vrot.lane.b32.xlu1 %v3512_v18, %s14093_s11  ;;  %v10955_v20 = vpop.permute.xlu0 %3147 }
 0x1a5   : > { %14097 = vst [vmem:[#allocation65_spill] sm:$0xff] %v10955_v20 }
 0x1a8   : > { %v10957_v60 = vpop.permute.xlu0 %3151 }
 0x1a9   : > { %14098 = vst [vmem:[#allocation66_spill] sm:$0xff] %v10957_v60 }
 0x1bd   : > { %v422_v22 = vpop.xlane.xlu0 %421 }
 0x1be   : > { %v424_v25 = vmul.f32 0.001953125, %v422_v22 }
 0x1c0   : > { %v10960_v41 = vsub.f32 %v10712_v59, %v424_v25  ;;  %v10963_v1 = vsub.f32 %v10716_v0, %v424_v25  ;;  %v10966_v48 = vsub.f32 %v10718_v3, %v424_v25  ;;  %v10969_v18 = vsub.f32 %v10723_v12, %v424_v25 }
 0x1c1   : > { %v10971_v54 = vpop.permute.xlu0 %2028 }
 0x1c2   : > { %14099 = vst [vmem:[#allocation67_spill] sm:$0xff] %v10971_v54  ;;  %v429_v27 = vmul.f32 %v10960_v41, %v10960_v41  ;;  %v430_v22 = vmul.f32 %v10963_v1, %v10963_v1  ;;  %v431_v59 = vmul.f32 %v10966_v48, %v10966_v48  ;;  %v432_v0 = vmul.f32 %v10969_v18, %v10969_v18 }
 0x1c4   : > { %v433_v3 = vsel %vm13965_vm0, %v429_v27, 0.0  ;;  %v434_v60 = vsel %vm13965_vm0, %v430_v22, 0.0  ;;  %v436_v54 = vsel %vm13965_vm0, %v431_v59, 0.0  ;;  %v438_v17 = vsel %vm13965_vm0, %v432_v0, 0.0 }
 0x1c5   : > { %v435_v12 = vadd.f32 %v434_v60, %v433_v3  ;;  %v10983_v25 = vpop.permute.xlu0 %3318  ;;  %v3806_v60 = vrot.slane %v10790_v8, %v10404_v4  ;;  %v3981_v59 = vrot.slane %v10809_v50, %v10406_v5  ;;  %v4144_v0 = vrot.slane %v10825_v31, %v10408_v6 }
 0x1c6   : > { %v4307_v3 = vrot.slane %v10869_v26, %v10404_v4  ;;  %vm580_vm0 = vcmask 1040384  }
 0x1c7   : > { %v437_v20 = vadd.f32 %v436_v54, %v435_v12  ;;  %v2999_v12 = vmul.f32 %v10953_v13, %v10860_v23 }
 0x1c9   : > { %v439_v21 = vadd.f32 %v438_v17, %v437_v20  ;;  %v10987_v28 = vpop.permute.xlu0 %3322  ;;  %v3973_v20 = vrot.slane %v10809_v50, %v10404_v4  ;;  %v4315_v50 = vrot.slane %v10869_v26, %v10406_v5  ;;  %v4641_v26 = vrot.slane %v10908_v11, %v10404_v4 }
 0x1cb   : > { %440 = vadd.xlane.f32.xlu0 %v439_v21  ;;  %v3814_v21 = vrot.slane %v10790_v8, %v10406_v5  ;;  %v4152_v8 = vrot.slane %v10825_v31, %v10427_v15  ;;  %v4478_v31 = vrot.slane %v10884_v39, %v10408_v6 }
 0x1cd   : > { %v10989_v24 = vpop.permute.xlu0 %3485 }
 0x1d1   : > { %v10991_v55 = vpop.permute.xlu0 %3489 }
 0x1d5   : > { %v10993_v16 = vpop.permute.xlu0 %2366 }
 0x1d9   : > { %v10995_v27 = vpop.permute.xlu0 %3654 }
 0x1dd   : > { %v10999_v22 = vpop.permute.xlu0 %3658 }
 0x1de   : > { %v3672_v54 = vmul.f32 %v10999_v22, %v10860_v23 }
 0x1e0   : > { %v3679_v17 = vpack.c.bf16 %v3672_v54, %v3672_v54  ;;  %v11031_v54 = vpop.permute.xlu1 %3652 }
 0x1e1   : > { %3819 = vrot.lane.b32.xlu0 %v3806_v60, %s14046_s17  ;;  %v3006_v60 = vpack.c.bf16 %v2999_v12, %v2999_v12 }
 0x1e2   : > { %3693 = vrot.lane.b32.xlu1 %v3679_v17, %s14088_s20  ;;  %v4486_v17 = vrot.slane %v10884_v39, %v10427_v15 }
 0x1e5   : > { %3823 = vrot.lane.b32.xlu0 %v3814_v21, %s14046_s17  ;;  %v11036_v21 = vpop.permute.xlu1 %3656 }
 0x1e9   : > { %3986 = vrot.lane.b32.xlu0 %v3973_v20, %s14044_s15  ;;  %v4649_v20 = vrot.slane %v10908_v11, %v10406_v5  ;;  %v4820_v11 = vrot.slane %v10927_v29, %v10427_v15 }
 0x1ed   : > { %3990 = vrot.lane.b32.xlu0 %v3981_v59, %s14044_s15  ;;  %v11044_v59 = vpop.permute.xlu1 %2535 }
 0x1ee   : > { %14101 = vst [vmem:[#allocation68_spill] sm:$0xff] %v11044_v59 }
 0x1f1   : > { %4155 = vrot.lane.b32.xlu0 %v4144_v0, %s14043_s22  ;;  %v3337_v0 = vmul.f32 %v10987_v28, %v10860_v23  ;;  %v11049_v39 = vpop.permute.xlu1 %3821 }
 0x1f5   : > { %4159 = vrot.lane.b32.xlu0 %v4152_v8, %s14043_s22  ;;  %v3344_v8 = vpack.c.bf16 %v3337_v0, %v3337_v0 }
 0x1f9   : > { %4320 = vrot.lane.b32.xlu0 %v4307_v3, %s14076_s9  ;;  %v4812_v3 = vrot.slane %v10927_v29, %v10408_v6 }
 0x1fd   : > { %4324 = vrot.lane.b32.xlu0 %v4315_v50, %s14076_s9  ;;  %v11054_v50 = vpop.permute.xlu1 %3825 }
 0x1fe   : > { %v3839_v12 = vmul.f32 %v11054_v50, %v10860_v23 }
 0x201   : > { %3020 = vrot.lane.b32.xlu0 %v3006_v60, %s14100_s18  ;;  %v3846_v60 = vpack.c.bf16 %v3839_v12, %v3839_v12 }
 0x205   : > { %4489 = vrot.lane.b32.xlu0 %v4478_v31, %s14080_s16 }
 0x209   : > { %4493 = vrot.lane.b32.xlu0 %v4486_v17, %s14080_s16 }
 0x20d   : > { %4654 = vrot.lane.b32.xlu0 %v4641_v26, %s14088_s20 }
 0x211   : > { %4658 = vrot.lane.b32.xlu0 %v4649_v20, %s14088_s20 }
 0x215   : > { %3358 = vrot.lane.b32.xlu0 %v3344_v8, %s14102_s12 }
 0x219   : > { %4823 = vrot.lane.b32.xlu0 %v4812_v3, %s14093_s11 }
 0x21d   : > { %4827 = vrot.lane.b32.xlu0 %v4820_v11, %s14093_s11 }
 0x221   : > { %3860 = vrot.lane.b32.xlu0 %v3846_v60, %s14080_s16 }
 0x254   : > { %v441_v31 = vpop.xlane.xlu0 %440 }
 0x255   : > { %v442_v17 = vmul.f32 0.001953125, %v441_v31 }
 0x257   : > { %v443_v26 = vadd.f32 1e-05, %v442_v17 }
 0x259   : > { %10116 = vrsqrt.f32 %v443_v26  ;;  %v489_v26 = vsel %vm488_vm3, %v10605_v38, %v10611_v42 }
 0x266   : > { %v10117_v20 = vpop.eup %10116 }
 0x267   : > { %v445_v0 = vmul.f32 %v10117_v20, %v10960_v41  ;;  %v446_v8 = vmul.f32 %v10117_v20, %v10963_v1  ;;  %v447_v3 = vmul.f32 %v10117_v20, %v10966_v48  ;;  %v448_v29 = vmul.f32 %v10117_v20, %v10969_v18 }
 0x268   : > { %v536_v41 = vsel %vm535_vm2, %v10590_v30, %v10596_v34  ;;  %v537_v1 = vsel %vm535_vm2, %v10596_v34, %v10594_v32 }
 0x269   : > { %v449_v5 = vmax.f32 %v445_v0, 0.0  ;;  %v450_v15 = vmax.f32 %v446_v8, 0.0  ;;  %v451_v59 = vmax.f32 %v447_v3, 0.0  ;;  %v452_v11 = vmax.f32 %v448_v29, 0.0 }
 0x26b   : > { %453 = vst [vmem:[#allocation2 + $0x10] sm:$0x3] %v449_v5  ;;  %454 = vst [vmem:[#allocation2 + $0x8] sm:$0x3] %v450_v15 }
 0x26c   : > { %455 = vst [vmem:[#allocation2] sm:$0x3] %v451_v59  ;;  %456 = vst [vmem:[#allocation2 + $0x18] sm:$0x3] %v452_v11  ;;  %v538_v59 = vsel %vm535_vm2, %v10594_v32, %v10601_v36  ;;  %v490_v32 = vsel %vm488_vm3, %v10611_v42, %v10616_v44 }
 0x272   : > { %v11067_v12 = vld [vmem:[#allocation2 + $0x8] sm:$0x3]  ;;  %v11069_v60 = vld [vmem:[#allocation2 + $0x10] sm:$0x3] }
 0x273   : > { %v11077_v48 = vld [vmem:[#allocation2] sm:$0x3]  ;;  %v11079_v18 = vld [vmem:[#allocation2 + $0x18] sm:$0x3]  ;;  %v546_v5 = vmul.f32 %v537_v1, %v11067_v12  ;;  %v545_v15 = vmul.f32 %v536_v41, %v11069_v60  ;;  %v499_v8 = vmul.f32 %v490_v32, %v11067_v12  ;;  %v498_v3 = vmul.f32 %v489_v26, %v11069_v60 }
 0x274   : > { %v547_v30 = vmul.f32 %v538_v59, %v11077_v48  ;;  %v548_v34 = vmul.f32 %v10601_v36, %v11079_v18  ;;  %v491_v36 = vsel %vm488_vm3, %v10616_v44, %v10618_v45  ;;  %v501_v42 = vmul.f32 %v10618_v45, %v11079_v18 }
 0x275   : > { %v553_v31 = vpack.c.bf16 %v546_v5, %v546_v5  ;;  %v552_v17 = vpack.c.bf16 %v545_v15, %v545_v15  ;;  %v505_v38 = vpack.c.bf16 %v499_v8, %v499_v8  ;;  %v504_v29 = vpack.c.bf16 %v498_v3, %v498_v3  ;;  %v11144_v8 = vpop.permute.xlu1 %3988 }
 0x276   : > { %v554_v20 = vpack.c.bf16 %v547_v30, %v547_v30  ;;  %v555_v0 = vpack.c.bf16 %v548_v34, %v548_v34  ;;  %v500_v11 = vmul.f32 %v491_v36, %v11077_v48  ;;  %v820_v41 = vsel %vm819_vm4, %v10622_v47, %v10599_v35  ;;  %v11122_v47 = vpop.permute.xlu0 %3819 }
 0x277   : > { %565 = vrot.lane.b32.xlu1 %v553_v31, %s14088_s20  ;;  %563 = vrot.lane.b32.xlu0 %v552_v17, %s14088_s20  ;;  %v821_v44 = vsel %vm819_vm4, %v10599_v35, %v10628_v51  ;;  %v507_v5 = vpack.c.bf16 %v501_v42, %v501_v42  ;;  %v829_v15 = vmul.f32 %v820_v41, %v11069_v60 }
 0x278   : > { %v506_v1 = vpack.c.bf16 %v500_v11, %v500_v11  ;;  %v830_v59 = vmul.f32 %v821_v44, %v11067_v12  ;;  %v822_v45 = vsel %vm819_vm4, %v10628_v51, %v10603_v37  ;;  %v832_v35 = vmul.f32 %v10603_v37, %v11079_v18 }
 0x279   : > { %v836_v31 = vpack.c.bf16 %v829_v15, %v829_v15  ;;  %v831_v30 = vmul.f32 %v822_v45, %v11077_v48  ;;  %v989_v34 = vsel %vm988_vm5, %v10631_v52, %v10609_v40  ;;  %v990_v51 = vsel %vm988_vm5, %v10609_v40, %v10637_v56 }
 0x27a   : > { %v837_v17 = vpack.c.bf16 %v830_v59, %v830_v59  ;;  %v839_v26 = vpack.c.bf16 %v832_v35, %v832_v35  ;;  %v998_v37 = vmul.f32 %v989_v34, %v11069_v60  ;;  %v991_v52 = vsel %vm988_vm5, %v10637_v56, %v10614_v43 }
 0x27b   : > { %567 = vrot.lane.b32.xlu1 %v554_v20, %s14088_s20  ;;  %569 = vrot.lane.b32.xlu0 %v555_v0, %s14088_s20  ;;  %v838_v32 = vpack.c.bf16 %v831_v30, %v831_v30  ;;  %v999_v20 = vmul.f32 %v990_v51, %v11067_v12  ;;  %v11137_v0 = vpop.permute.xlu0 %3823  ;;  %v1000_v36 = vmul.f32 %v991_v52, %v11077_v48 }
 0x27c   : > { %v1005_v3 = vpack.c.bf16 %v998_v37, %v998_v37  ;;  %v1159_v56 = vsel %vm1157_vm6, %v10620_v46, %v10646_v61  ;;  %v1170_v15 = vmul.f32 %v10626_v49, %v11079_v18  ;;  %v1497_v52 = vsel %vm855_vm8, %v10648_v62, %v10669_v14 }
 0x27d   : > { %v1006_v40 = vpack.c.bf16 %v999_v20, %v999_v20  ;;  %v1007_v42 = vpack.c.bf16 %v1000_v36, %v1000_v36  ;;  %v1506_v36 = vmul.f32 %v1497_v52, %v11067_v12 }
 0x27e   : > { %v1177_v35 = vpack.c.bf16 %v1170_v15, %v1170_v15 }
 0x27f   : > { %684 = vrot.lane.b32.xlu0 %v505_v38, %s14093_s11  ;;  %682 = vrot.lane.b32.xlu1 %v504_v29, %s14093_s11  ;;  %v1001_v38 = vmul.f32 %v10614_v43, %v11079_v18  ;;  %v1158_v29 = vsel %vm1157_vm6, %v10642_v58, %v10620_v46  ;;  %v11157_v11 = vpop.permute.xlu0 %3986  ;;  %v1168_v43 = vmul.f32 %v1159_v56, %v11067_v12 }
 0x280   : > { %v1167_v44 = vmul.f32 %v1158_v29, %v11069_v60  ;;  %v1160_v58 = vsel %vm1157_vm6, %v10646_v61, %v10626_v49  ;;  %v1328_v61 = vsel %vm1024_vm7, %v10633_v53, %v10657_v7  ;;  %v1513_v56 = vpack.c.bf16 %v1506_v36, %v1506_v36 }
 0x281   : > { %v1008_v41 = vpack.c.bf16 %v1001_v38, %v1001_v38  ;;  %v1169_v59 = vmul.f32 %v1160_v58, %v11077_v48  ;;  %v1337_v30 = vmul.f32 %v1328_v61, %v11067_v12 }
 0x282   : > { %v1174_v46 = vpack.c.bf16 %v1167_v44, %v1167_v44  ;;  %v1665_v44 = vsel %vm571_vm9, %v10676_v19, %v10664_v10 }
 0x283   : > { %686 = vrot.lane.b32.xlu0 %v506_v1, %s14093_s11  ;;  %688 = vrot.lane.b32.xlu1 %v507_v5, %s14093_s11  ;;  %v11161_v1 = vpop.permute.xlu1 %3992  ;;  %v1175_v5 = vpack.c.bf16 %v1168_v43, %v1168_v43  ;;  %v11171_v45 = vpop.permute.xlu0 %3990  ;;  %v1176_v49 = vpack.c.bf16 %v1169_v59, %v1169_v59  ;;  %v14103_v59 = vld [vmem:[#allocation21_spill] sm:$0xff] }
 0x284   : > { %v1667_v19 = vsel %vm571_vm9, %v10742_v33, %v14103_v59 }
 0x285   : > { %v1676_v61 = vmul.f32 %v1667_v19, %v11077_v48 }
 0x287   : > { %847 = vrot.lane.b32.xlu0 %v836_v31, %s14080_s16  ;;  %849 = vrot.lane.b32.xlu1 %v837_v17, %s14080_s16  ;;  %v1327_v31 = vsel %vm1024_vm7, %v10651_v63, %v10633_v53  ;;  %v11181_v17 = vpop.permute.xlu1 %4153  ;;  %v1329_v63 = vsel %vm1024_vm7, %v10657_v7, %v10640_v57  ;;  %v11190_v51 = vpop.permute.xlu0 %4155  ;;  %v1344_v53 = vpack.c.bf16 %v1337_v30, %v1337_v30  ;;  %v14104_v30 = vld [vmem:[#allocation29_spill] sm:$0xff] }
 0x288   : > { %v1336_v34 = vmul.f32 %v1327_v31, %v11069_v60  ;;  %v1338_v20 = vmul.f32 %v1329_v63, %v11077_v48  ;;  %v1496_v7 = vsel %vm855_vm8, %v10662_v9, %v10648_v62  ;;  %v1498_v9 = vsel %vm855_vm8, %v10669_v14, %v10655_v2 }
 0x289   : > { %v1666_v14 = vsel %vm571_vm9, %v10664_v10, %v10742_v33 }
 0x28b   : > { %853 = vrot.lane.b32.xlu0 %v839_v26, %s14080_s16  ;;  %851 = vrot.lane.b32.xlu1 %v838_v32, %s14080_s16  ;;  %v1343_v26 = vpack.c.bf16 %v1336_v34, %v1336_v34  ;;  %v1339_v32 = vmul.f32 %v10640_v57, %v11079_v18  ;;  %v11195_v37 = vpop.permute.xlu1 %4157  ;;  %v1505_v57 = vmul.f32 %v1496_v7, %v11069_v60  ;;  %v11207_v38 = vpop.permute.xlu0 %4159  ;;  %v14105_v34 = vld [vmem:[#allocation22_spill] sm:$0xff] }
 0x28c   : > { %v1834_v63 = vsel %vm690_vm10, %v14105_v34, %v14104_v30 }
 0x28d   : > { %v1512_v62 = vpack.c.bf16 %v1505_v57, %v1505_v57  ;;  %v1843_v7 = vmul.f32 %v1834_v63, %v11069_v60 }
 0x28f   : > { %1018 = vrot.lane.b32.xlu0 %v1006_v40, %s14076_s9  ;;  %1016 = vrot.lane.b32.xlu1 %v1005_v3, %s14076_s9  ;;  %v1346_v40 = vpack.c.bf16 %v1339_v32, %v1339_v32  ;;  %v1345_v3 = vpack.c.bf16 %v1338_v20, %v1338_v20  ;;  %v11214_v29 = vpop.permute.xlu1 %2851  ;;  %v11227_v43 = vpop.permute.xlu0 %4320  ;;  %v1683_v32 = vpack.c.bf16 %v1676_v61, %v1676_v61 }
 0x290   : > { %v1850_v36 = vpack.c.bf16 %v1843_v7, %v1843_v7  ;;  %v14116_v7 = vld [vmem:[#allocation27_spill] sm:$0xff] }
 0x293   : > { %1020 = vrot.lane.b32.xlu0 %v1007_v42, %s14076_s9  ;;  %1022 = vrot.lane.b32.xlu1 %v1008_v41, %s14076_s9  ;;  %v1508_v42 = vmul.f32 %v10655_v2, %v11079_v18  ;;  %v1507_v41 = vmul.f32 %v1498_v9, %v11077_v48  ;;  %v1675_v2 = vmul.f32 %v1666_v14, %v11067_v12  ;;  %v11231_v15 = vpop.permute.xlu1 %4322 }
 0x295   : > { %v1515_v58 = vpack.c.bf16 %v1508_v42, %v1508_v42  ;;  %v1682_v10 = vpack.c.bf16 %v1675_v2, %v1675_v2 }
 0x297   : > { %1185 = vrot.lane.b32.xlu0 %v1174_v46, %s14043_s22  ;;  %1187 = vrot.lane.b32.xlu1 %v1175_v5, %s14043_s22  ;;  %v1514_v46 = vpack.c.bf16 %v1507_v41, %v1507_v41  ;;  %v1674_v5 = vmul.f32 %v1665_v44, %v11069_v60  ;;  %v14109_v41 = vld [vmem:[#allocation24_spill] sm:$0xff]  ;;  %v14110_v44 = vld [vmem:[#allocation33_spill] sm:$0xff] }
 0x298   : > { %v2003_v14 = vsel %vm13966_vm11, %v14110_v44, %v14109_v41 }
 0x299   : > { %v1681_v31 = vpack.c.bf16 %v1674_v5, %v1674_v5  ;;  %v2012_v19 = vmul.f32 %v2003_v14, %v11069_v60 }
 0x29b   : > { %1191 = vrot.lane.b32.xlu0 %v1177_v35, %s14043_s22  ;;  %1189 = vrot.lane.b32.xlu1 %v1176_v49, %s14043_s22  ;;  %v1677_v35 = vmul.f32 %v14103_v59, %v11079_v18  ;;  %v11241_v49 = vpop.permute.xlu0 %4324  ;;  %v2019_v34 = vpack.c.bf16 %v2012_v19, %v2012_v19  ;;  %v14121_v19 = vld [vmem:[#allocation37_spill] sm:$0xff] }
 0x29d   : > { %v1684_v20 = vpack.c.bf16 %v1677_v35, %v1677_v35 }
 0x29f   : > { %1356 = vrot.lane.b32.xlu0 %v1344_v53, %s14044_s15  ;;  %1354 = vrot.lane.b32.xlu1 %v1343_v26, %s14044_s15  ;;  %v14106_v53 = vld [vmem:[#allocation23_spill] sm:$0xff]  ;;  %v11251_v26 = vpop.permute.xlu1 %4326  ;;  %v11260_v57 = vpop.permute.xlu0 %3020 }
 0x2a0   : > { %v1835_v33 = vsel %vm690_vm10, %v14104_v30, %v14106_v53  ;;  %14108 = vst [vmem:[#allocation21_spill] sm:$0xff] %v11260_v57 }
 0x2a1   : > { %v1844_v52 = vmul.f32 %v1835_v33, %v11067_v12  ;;  %v14114_v33 = vld [vmem:[#allocation35_spill] sm:$0xff] }
 0x2a3   : > { %1360 = vrot.lane.b32.xlu0 %v1346_v40, %s14044_s15  ;;  %1358 = vrot.lane.b32.xlu1 %v1345_v3, %s14044_s15  ;;  %v14107_v40 = vld [vmem:[#allocation31_spill] sm:$0xff]  ;;  %v1851_v9 = vpack.c.bf16 %v1844_v52, %v1844_v52  ;;  %v11265_v42 = vpop.permute.xlu1 %4487  ;;  %v2173_v52 = vsel %vm13970_vm12, %v14114_v33, %v14116_v7 }
 0x2a4   : > { %v1836_v3 = vsel %vm690_vm10, %v14106_v53, %v14107_v40 }
 0x2a7   : > { %1523 = vrot.lane.b32.xlu0 %v1512_v62, %s14046_s17  ;;  %1525 = vrot.lane.b32.xlu1 %v1513_v56, %s14046_s17  ;;  %v1846_v62 = vmul.f32 %v14107_v40, %v11079_v18  ;;  %v1845_v56 = vmul.f32 %v1836_v3, %v11077_v48  ;;  %v11284_v35 = vpop.permute.xlu1 %4491 }
 0x2a9   : > { %v1853_v2 = vpack.c.bf16 %v1846_v62, %v1846_v62  ;;  %v1852_v5 = vpack.c.bf16 %v1845_v56, %v1845_v56  ;;  %v2182_v62 = vmul.f32 %v2173_v52, %v11067_v12 }
 0x2ab   : > { %1529 = vrot.lane.b32.xlu0 %v1515_v58, %s14046_s17  ;;  %1527 = vrot.lane.b32.xlu1 %v1514_v46, %s14046_s17  ;;  %v14111_v58 = vld [vmem:[#allocation34_spill] sm:$0xff]  ;;  %v11301_v56 = vpop.permute.xlu1 %3189 }
 0x2ac   : > { %v2004_v46 = vsel %vm13966_vm11, %v14109_v41, %v14111_v58  ;;  %14117 = vst [vmem:[#allocation29_spill] sm:$0xff] %v11301_v56  ;;  %v14118_v41 = vld [vmem:[#allocation36_spill] sm:$0xff]  ;;  %v14142_v56 = vld [vmem:[#allocation41_spill] sm:$0xff] }
 0x2ad   : > { %v2013_v59 = vmul.f32 %v2004_v46, %v11067_v12  ;;  %v2174_v44 = vsel %vm13970_vm12, %v14116_v7, %v14118_v41  ;;  %v2184_v46 = vmul.f32 %v14118_v41, %v11079_v18 }
 0x2af   : > { %1694 = vrot.lane.b32.xlu0 %v1682_v10, %s14048_s21  ;;  %1692 = vrot.lane.b32.xlu1 %v1681_v31, %s14048_s21  ;;  %v11277_v10 = vpop.permute.xlu0 %4489  ;;  %v14112_v31 = vld [vmem:[#allocation25_spill] sm:$0xff]  ;;  %v2020_v30 = vpack.c.bf16 %v2013_v59, %v2013_v59  ;;  %v14120_v59 = vld [vmem:[#allocation28_spill] sm:$0xff] }
 0x2b0   : > { %v2005_v61 = vsel %vm13966_vm11, %v14111_v58, %v14112_v31  ;;  %v2015_v53 = vmul.f32 %v14112_v31, %v11079_v18  ;;  %v2189_v58 = vpack.c.bf16 %v2182_v62, %v2182_v62  ;;  %v2341_v31 = vsel %vm13971_vm13, %v14121_v19, %v14120_v59 }
 0x2b1   : > { %v2014_v63 = vmul.f32 %v2005_v61, %v11077_v48  ;;  %v14122_v61 = vld [vmem:[#allocation38_spill] sm:$0xff]  ;;  %vm13973_vm11 = vcmask 64512  }
 0x2b3   : > { %1696 = vrot.lane.b32.xlu0 %v1683_v32, %s14048_s21  ;;  %1698 = vrot.lane.b32.xlu1 %v1684_v20, %s14048_s21  ;;  %v14115_v32 = vld [vmem:[#allocation26_spill] sm:$0xff]  ;;  %v11297_v40 = vpop.permute.xlu0 %4493  ;;  %v2021_v3 = vpack.c.bf16 %v2014_v63, %v2014_v63  ;;  %v2191_v63 = vpack.c.bf16 %v2184_v46, %v2184_v46  ;;  %v14127_v46 = vld [vmem:[#allocation49_spill] sm:$0xff] }
 0x2b4   : > { %v2172_v20 = vsel %vm13970_vm12, %v14115_v32, %v14114_v33  ;;  %v2350_v32 = vmul.f32 %v2341_v31, %v11069_v60  ;;  %vm576_vm12 = vcmask 15360  }
 0x2b7   : > { %1861 = vrot.lane.b32.xlu0 %v1850_v36, %s14051_s19  ;;  %1863 = vrot.lane.b32.xlu1 %v1851_v9, %s14051_s19  ;;  %v2022_v36 = vpack.c.bf16 %v2015_v53, %v2015_v53  ;;  %v2181_v9 = vmul.f32 %v2172_v20, %v11069_v60  ;;  %v14123_v20 = vld [vmem:[#allocation30_spill] sm:$0xff] }
 0x2b8   : > { %v2343_v7 = vsel %vm13971_vm13, %v14122_v61, %v14123_v20  ;;  %v2353_v62 = vmul.f32 %v14123_v20, %v11079_v18 }
 0x2b9   : > { %v2188_v14 = vpack.c.bf16 %v2181_v9, %v2181_v9  ;;  %v2352_v9 = vmul.f32 %v2343_v7, %v11077_v48 }
 0x2ba   : > { %v2360_v19 = vpack.c.bf16 %v2353_v62, %v2353_v62 }
 0x2bb   : > { %1867 = vrot.lane.b32.xlu0 %v1853_v2, %s14051_s19  ;;  %1865 = vrot.lane.b32.xlu1 %v1852_v5, %s14051_s19  ;;  %v2183_v2 = vmul.f32 %v2174_v44, %v11077_v48  ;;  %v11311_v5 = vpop.permute.xlu0 %4654  ;;  %v14125_v44 = vld [vmem:[#allocation39_spill] sm:$0xff] }
 0x2bd   : > { %v2190_v53 = vpack.c.bf16 %v2183_v2, %v2183_v2  ;;  %v2511_v2 = vsel %vm2509_vm14, %v14125_v44, %v14127_v46 }
 0x2bf   : > { %2032 = vrot.lane.b32.xlu0 %v2020_v30, %s14113_s0  ;;  %2030 = vrot.lane.b32.xlu1 %v2019_v34, %s14113_s0  ;;  %v2342_v30 = vsel %vm13971_vm13, %v14120_v59, %v14122_v61  ;;  %v11321_v34 = vpop.permute.xlu1 %4656  ;;  %v11330_v52 = vpop.permute.xlu0 %4658  ;;  %v2359_v59 = vpack.c.bf16 %v2352_v9, %v2352_v9  ;;  %v2520_v61 = vmul.f32 %v2511_v2, %v11067_v12  ;;  %v11375_v2 = vld [vmem:[#allocation2 + $0x10] sm:$0x3]  ;;  %vm13972_vm13 = vcmask 72704  }
 0x2c0   : > { %v2351_v33 = vmul.f32 %v2342_v30, %v11067_v12  ;;  %v4006_v12 = vmul.f32 %v11161_v1, %v10860_v23 }
 0x2c1   : > { %v2527_v7 = vpack.c.bf16 %v2520_v61, %v2520_v61  ;;  %v14132_v61 = vld [vmem:[#allocation45_spill] sm:$0xff] }
 0x2c3   : > { %2034 = vrot.lane.b32.xlu0 %v2021_v3, %s14113_s0  ;;  %2036 = vrot.lane.b32.xlu1 %v2022_v36, %s14113_s0  ;;  %v2358_v3 = vpack.c.bf16 %v2351_v33, %v2351_v33  ;;  %v2357_v36 = vpack.c.bf16 %v2350_v32, %v2350_v32  ;;  %v11335_v41 = vpop.permute.xlu1 %4660  ;;  %v11347_v30 = vpop.permute.xlu0 %3358  ;;  %v4173_v33 = vmul.f32 %v11207_v38, %v10860_v23 }
 0x2c4   : > { %14128 = vst [vmem:[#allocation22_spill] sm:$0xff] %v11347_v30 }
 0x2c7   : > { %2199 = vrot.lane.b32.xlu0 %v2188_v14, %s14119_s1  ;;  %2201 = vrot.lane.b32.xlu1 %v2189_v58, %s14119_s1  ;;  %v14126_v14 = vld [vmem:[#allocation32_spill] sm:$0xff]  ;;  %v11356_v32 = vpop.permute.xlu1 %4821  ;;  %v11367_v62 = vpop.permute.xlu0 %4823 }
 0x2c8   : > { %v2510_v58 = vsel %vm2509_vm14, %v14126_v14, %v14125_v44  ;;  %v4340_v14 = vmul.f32 %v11251_v26, %v10860_v23 }
 0x2c9   : > { %v2519_v31 = vmul.f32 %v2510_v58, %v11069_v60 }
 0x2cb   : > { %2205 = vrot.lane.b32.xlu0 %v2191_v63, %s14119_s1  ;;  %2203 = vrot.lane.b32.xlu1 %v2190_v53, %s14119_s1  ;;  %v14129_v63 = vld [vmem:[#allocation40_spill] sm:$0xff]  ;;  %v2526_v20 = vpack.c.bf16 %v2519_v31, %v2519_v31  ;;  %v11365_v9 = vpop.permute.xlu1 %4825  ;;  %v11381_v31 = vpop.permute.xlu0 %4827 }
 0x2cc   : > { %v2512_v53 = vsel %vm2509_vm14, %v14127_v46, %v14129_v63  ;;  %v2522_v46 = vmul.f32 %v14129_v63, %v11079_v18 }
 0x2cd   : > { %v2521_v60 = vmul.f32 %v2512_v53, %v11077_v48  ;;  %v4013_v48 = vpack.c.bf16 %v4006_v12, %v4006_v12  ;;  %v14133_v53 = vld [vmem:[#allocation52_spill] sm:$0xff] }
 0x2ce   : > { %v2826_v63 = vmul.f32 %v14133_v53, %v11375_v2  ;;  %v14135_v12 = vld [vmem:[#allocation60_spill] sm:$0xff] }
 0x2cf   : > { %2370 = vrot.lane.b32.xlu0 %v2358_v3, %s14124_s10  ;;  %2368 = vrot.lane.b32.xlu1 %v2357_v36, %s14124_s10  ;;  %v4180_v3 = vpack.c.bf16 %v4173_v33, %v4173_v33  ;;  %v4507_v36 = vmul.f32 %v11297_v40, %v10860_v23  ;;  %v2528_v44 = vpack.c.bf16 %v2521_v60, %v2521_v60  ;;  %v11395_v60 = vpop.permute.xlu0 %3860 }
 0x2d0   : > { %v2818_v23 = vsel %vm13975_vm15, %v14133_v53, %v14132_v61  ;;  %v4347_v33 = vpack.c.bf16 %v4340_v14, %v4340_v14  ;;  %14134 = vst [vmem:[#allocation31_spill] sm:$0xff] %v11395_v60  ;;  %v14137_v14 = vld [vmem:[#allocation47_spill] sm:$0xff]  ;;  %v11405_v53 = vld [vmem:[#allocation2 + $0x18] sm:$0x3] }
 0x2d1   : > { %v4514_v58 = vpack.c.bf16 %v4507_v36, %v4507_v36 }
 0x2d3   : > { %2372 = vrot.lane.b32.xlu0 %v2359_v59, %s14124_s10  ;;  %2374 = vrot.lane.b32.xlu1 %v2360_v19, %s14124_s10  ;;  %v11377_v59 = vld [vmem:[#allocation2 + $0x8] sm:$0x3]  ;;  %v11379_v19 = vpop.permute.xlu1 %3526 }
 0x2d4   : > { %14131 = vst [vmem:[#allocation23_spill] sm:$0xff] %v11379_v19  ;;  %v2827_v18 = vmul.f32 %v2818_v23, %v11377_v59  ;;  %v14139_v23 = vld [vmem:[#allocation46_spill] sm:$0xff] }
 0x2d7   : > { %2537 = vrot.lane.b32.xlu0 %v2526_v20, %s14130_s26  ;;  %2539 = vrot.lane.b32.xlu1 %v2527_v7, %s14130_s26  ;;  %v2529_v20 = vpack.c.bf16 %v2522_v46, %v2522_v46  ;;  %v11391_v7 = vld [vmem:[#allocation2] sm:$0x3]  ;;  %v11400_v36 = vpop.permute.xlu1 %3693 }
 0x2d8   : > { %14136 = vst [vmem:[#allocation24_spill] sm:$0xff] %v11400_v36 }
 0x2db   : > { %2541 = vrot.lane.b32.xlu1 %v2528_v44, %s14130_s26  ;;  %4194 = vrot.lane.b32.xlu0 %v4180_v3, %s14043_s22  ;;  %v2819_v3 = vsel %vm13975_vm15, %v14132_v61, %v14135_v12  ;;  %v2834_v44 = vpack.c.bf16 %v2827_v18, %v2827_v18  ;;  %v2820_v61 = vsel %vm13975_vm15, %v14135_v12, %v14139_v23 }
 0x2dc   : > { %v2828_v46 = vmul.f32 %v2819_v3, %v11391_v7  ;;  %v2829_v30 = vmul.f32 %v2820_v61, %v11405_v53 }
 0x2de   : > { %v2835_v19 = vpack.c.bf16 %v2828_v46, %v2828_v46 }
 0x2df   : > { %4027 = vrot.lane.b32.xlu1 %v4013_v48, %s14076_s9  ;;  %4528 = vrot.lane.b32.xlu0 %v4514_v58, %s14046_s17  ;;  %v2833_v48 = vpack.c.bf16 %v2826_v63, %v2826_v63  ;;  %v2995_v58 = vmul.f32 %v14137_v14, %v11375_v2 }
 0x2e1   : > { %v3002_v36 = vpack.c.bf16 %v2995_v58, %v2995_v58 }
 0x2e3   : > { %4361 = vrot.lane.b32.xlu1 %v4347_v33, %s14044_s15  ;;  %2543 = vrot.lane.b32.xlu0 %v2529_v20, %s14130_s26  ;;  %v14140_v33 = vld [vmem:[#allocation48_spill] sm:$0xff] }
 0x2e4   : > { %v14141_v20 = vld [vmem:[#allocation64_spill] sm:$0xff]  ;;  %v2989_v12 = vsel %vm13974_vm1, %v14140_v33, %v10953_v13  ;;  %v2836_v13 = vpack.c.bf16 %v2829_v30, %v2829_v30 }
 0x2e5   : > { %v2988_v18 = vsel %vm13974_vm1, %v14141_v20, %v14140_v33  ;;  %v2987_v46 = vsel %vm13974_vm1, %v14137_v14, %v14141_v20 }
 0x2e6   : > { %v2997_v3 = vmul.f32 %v2988_v18, %v11391_v7  ;;  %v14144_v18 = vld [vmem:[#allocation51_spill] sm:$0xff] }
 0x2e7   : > { %2845 = vrot.lane.b32.xlu1 %v2834_v44, %s14138_s25  ;;  %2843 = vrot.lane.b32.xlu0 %v2833_v48, %s14138_s25 }
 0x2e8   : > { %v3004_v61 = vpack.c.bf16 %v2997_v3, %v2997_v3  ;;  %v14145_v3 = vld [vmem:[#allocation65_spill] sm:$0xff] }
 0x2e9   : > { %v566_v63 = vpop.permute.xlu1 %565  ;;  %v564_v60 = vpop.permute.xlu0 %563  ;;  %v3156_v30 = vsel %vm13973_vm11, %v14145_v3, %v14144_v18 }
 0x2ea   : > { %v572_v44 = vsel %vm571_vm9, %v14142_v56, %v564_v60  ;;  %v573_v48 = vsel %vm571_vm9, %v564_v60, %v566_v63  ;;  %v2998_v56 = vmul.f32 %v2989_v12, %v11405_v53 }
 0x2eb   : > { %3012 = vrot.lane.b32.xlu1 %v3002_v36, %s14100_s18  ;;  %2847 = vrot.lane.b32.xlu0 %v2835_v19, %s14138_s25  ;;  %v582_v58 = vsel %vm580_vm0, %v572_v44, 0  ;;  %v9717_v19 = vld [vmem:[%s14143_s2 + $0x1] sm:$0x1]  ;;  %v2996_v36 = vmul.f32 %v2987_v46, %v11377_v59  ;;  %v3165_v46 = vmul.f32 %v3156_v30, %v11377_v59 }
 0x2ec   : > { %9718 = vmatprep.subr.msk.bf16.mxu0 %vm580_vm0, %v573_v48  ;;  %v3005_v44 = vpack.c.bf16 %v2998_v56, %v2998_v56 }
 0x2ed   : > { %608 = vmatpush1.bf16.msra.mxu0 %v582_v58  ;;  %v568_v60 = vpop.permute.xlu1 %567  ;;  %v570_v23 = vpop.permute.xlu0 %569  ;;  %v3003_v12 = vpack.c.bf16 %v2996_v36, %v2996_v36  ;;  %v14146_v58 = vmov 0  }
 0x2ee   : > { %v574_v33 = vsel %vm571_vm9, %v566_v63, %v568_v60  ;;  %v575_v14 = vsel %vm571_vm9, %v568_v60, %v570_v23  ;;  %v3164_v60 = vmul.f32 %v14145_v3, %v11375_v2  ;;  %v14147_v23 = vld [vmem:[#allocation54_spill] sm:$0xff] }
 0x2ef   : > { %3016 = vrot.lane.b32.xlu1 %v3004_v61, %s14100_s18  ;;  %2849 = vrot.lane.b32.xlu0 %v2836_v13, %s14138_s25  ;;  %v588_v20 = vsel %vm580_vm0, %v574_v33, 0  ;;  %v14148_v33 = vld [vmem:[#allocation66_spill] sm:$0xff] }
 0x2f0   : > { %9719 = vmatmul.mubr.msk.bf16.vlgmr.msra.gmra.mxu0 %vm576_vm12, %v9717_v19  ;;  %9720 = vmatprep.subr.msk.bf16.mxu1 %vm580_vm0, %v575_v14  ;;  %v3157_v36 = vsel %vm13973_vm11, %v14144_v18, %v14148_v33  ;;  %v14149_v14 = vld [vmem:[#allocation55_spill] sm:$0xff] }
 0x2f1   : > { %649 = vmatpush1.bf16.msra.mxu1 %v588_v20  ;;  %v683_v48 = vpop.permute.xlu1 %682  ;;  %v685_v63 = vpop.permute.xlu0 %684  ;;  %742 = vmatprep.mubr.bf16.mxu0 %v14146_v58  ;;  %v3333_v20 = vmul.f32 %v14149_v14, %v11375_v2  ;;  %v3166_v18 = vmul.f32 %v3157_v36, %v11391_v7 }
 0x2f2   : > { %v691_v61 = vsel %vm690_vm10, %v14147_v23, %v683_v48  ;;  %v692_v13 = vsel %vm690_vm10, %v683_v48, %v685_v63  ;;  %v3171_v48 = vpack.c.bf16 %v3164_v60, %v3164_v60  ;;  %v14151_v60 = vld [vmem:[#allocation53_spill] sm:$0xff] }
 0x2f3   : > { %3018 = vrot.lane.b32.xlu1 %v3005_v44, %s14100_s18  ;;  %3014 = vrot.lane.b32.xlu0 %v3003_v12, %s14100_s18  ;;  %v699_v56 = vsel %vm580_vm0, %v691_v61, 0  ;;  %v3172_v44 = vpack.c.bf16 %v3165_v46, %v3165_v46  ;;  %v502_v12 = vld [vmem:[%s14143_s2] sm:$0x1]  ;;  %v3173_v57 = vpack.c.bf16 %v3166_v18, %v3166_v18  ;;  %v3325_v18 = vsel %vm13972_vm13, %v14149_v14, %v10983_v25 }
 0x2f4   : > { %9721 = vmatmul.mubr.msk.bf16.vlgmr.msra.gmra.mxu1 %vm576_vm12, %v9717_v19  ;;  %9722 = vmatprep.subr.msk.bf16.mxu0 %vm580_vm0, %v692_v13  ;;  %v14150_v61 = vld [vmem:[#allocation57_spill] sm:$0xff] }
 0x2f5   : > { %725 = vmatpush1.bf16.msra.mxu0 %v699_v56  ;;  %v689_v3 = vpop.permute.xlu1 %688  ;;  %v687_v30 = vpop.permute.xlu0 %686  ;;  %783 = vmatprep.mubr.bf16.mxu1 %v14146_v58  ;;  %v3326_v13 = vsel %vm13972_vm13, %v10983_v25, %v14150_v61  ;;  %v3158_v56 = vsel %vm13973_vm11, %v14148_v33, %v14151_v60 }
 0x2f6   : > { %v693_v19 = vsel %vm690_vm10, %v685_v63, %v687_v30  ;;  %v694_v23 = vsel %vm690_vm10, %v687_v30, %v689_v3  ;;  %v3335_v63 = vmul.f32 %v3326_v13, %v11391_v7  ;;  %v3340_v30 = vpack.c.bf16 %v3333_v20, %v3333_v20 }
 0x2f7   : > { %3183 = vrot.lane.b32.xlu1 %v3172_v44, %s14085_s29  ;;  %3181 = vrot.lane.b32.xlu0 %v3171_v48, %s14085_s29  ;;  %v705_v46 = vsel %vm580_vm0, %v693_v19, 0  ;;  %v3167_v44 = vmul.f32 %v3158_v56, %v11405_v53  ;;  %v14152_v48 = vld [vmem:[#allocation42_spill] sm:$0xff]  ;;  %v3334_v56 = vmul.f32 %v3325_v18, %v11377_v59 }
 0x2f8   : > { %9723 = vmatmul.mubr.msk.bf16.vlgmr.msra.gmra.mxu0 %vm576_vm12, %v502_v12  ;;  %9724 = vmatprep.subr.msk.bf16.mxu1 %vm580_vm0, %v694_v23  ;;  %v3327_v23 = vsel %vm13972_vm13, %v14150_v61, %v10987_v28  ;;  %v3342_v28 = vpack.c.bf16 %v3335_v63, %v3335_v63  ;;  %v14153_v63 = vld [vmem:[#allocation61_spill] sm:$0xff] }
 0x2f9   : > { %766 = vmatpush1.bf16.msra.mxu1 %v705_v46  ;;  %v850_v36 = vpop.permute.xlu1 %849  ;;  %v848_v3 = vpop.permute.xlu0 %847  ;;  %907 = vmatprep.mubr.bf16.mxu0 %v14146_v58  ;;  %v3336_v13 = vmul.f32 %v3327_v23, %v11405_v53  ;;  %v3174_v61 = vpack.c.bf16 %v3167_v44, %v3167_v44  ;;  %v14154_v23 = vld [vmem:[#allocation56_spill] sm:$0xff] }
 0x2fa   : > { %v856_v19 = vsel %vm855_vm8, %v14152_v48, %v848_v3  ;;  %v857_v33 = vsel %vm855_vm8, %v848_v3, %v850_v36  ;;  %v3493_v3 = vsel %vm488_vm3, %v10989_v24, %v14153_v63  ;;  %v3341_v48 = vpack.c.bf16 %v3334_v56, %v3334_v56 }
 0x2fb   : > { %3350 = vrot.lane.b32.xlu1 %v3340_v30, %s14102_s12  ;;  %3185 = vrot.lane.b32.xlu0 %v3173_v57, %s14085_s29  ;;  %v864_v20 = vsel %vm580_vm0, %v856_v19, 0  ;;  %v9727_v57 = vld [vmem:[%s14143_s2 + $0x2] sm:$0x1]  ;;  %v3343_v30 = vpack.c.bf16 %v3336_v13, %v3336_v13  ;;  %v3502_v19 = vmul.f32 %v3493_v3, %v11377_v59 }
 0x2fc   : > { %9725 = vmatmul.mubr.msk.bf16.vlgmr.msra.gmra.mxu1 %vm576_vm12, %v502_v12  ;;  %9728 = vmatprep.subr.msk.bf16.mxu0 %vm580_vm0, %v857_v33  ;;  %v3501_v33 = vmul.f32 %v10989_v24, %v11375_v2  ;;  %v3668_v24 = vmul.f32 %v11031_v54, %v11375_v2 }
 0x2fd   : > { %890 = vmatpush1.bf16.msra.mxu0 %v864_v20  ;;  %v852_v46 = vpop.permute.xlu1 %851  ;;  %v854_v60 = vpop.permute.xlu0 %853  ;;  %948 = vmatprep.mubr.bf16.mxu1 %v14146_v58 }
 0x2fe   : > { %v858_v25 = vsel %vm855_vm8, %v850_v36, %v852_v46  ;;  %v859_v14 = vsel %vm855_vm8, %v852_v46, %v854_v60  ;;  %v3494_v46 = vsel %vm488_vm3, %v14153_v63, %v10991_v55  ;;  %v3508_v56 = vpack.c.bf16 %v3501_v33, %v3501_v33 }
 0x2ff   : > { %3354 = vrot.lane.b32.xlu1 %v3342_v28, %s14102_s12  ;;  %3187 = vrot.lane.b32.xlu0 %v3174_v61, %s14085_s29  ;;  %v870_v12 = vsel %vm580_vm0, %v858_v25, 0  ;;  %v3509_v61 = vpack.c.bf16 %v3502_v19, %v3502_v19  ;;  %v9733_v25 = vld [vmem:[%s14143_s2 + $0x3] sm:$0x1]  ;;  %v3661_v63 = vsel %vm535_vm2, %v10995_v27, %v11036_v21  ;;  %v3675_v33 = vpack.c.bf16 %v3668_v24, %v3668_v24 }
 0x300   : > { %9729 = vmatmul.mubr.msk.bf16.vlgmr.msra.gmra.mxu0 %vm576_vm12, %v9727_v57  ;;  %9730 = vmatprep.subr.msk.bf16.mxu1 %vm580_vm0, %v859_v14  ;;  %v3503_v14 = vmul.f32 %v3494_v46, %v11391_v7  ;;  %v3827_v46 = vsel %vm819_vm4, %v11122_v47, %v11049_v39 }
 0x301   : > { %931 = vmatpush1.bf16.msra.mxu1 %v870_v12  ;;  %v1017_v44 = vpop.permute.xlu1 %1016  ;;  %v1019_v36 = vpop.permute.xlu0 %1018  ;;  %1076 = vmatprep.mubr.bf16.mxu0 %v14146_v58 }
 0x302   : > { %v1025_v20 = vsel %vm1024_vm7, %v14154_v23, %v1017_v44  ;;  %v1026_v18 = vsel %vm1024_vm7, %v1017_v44, %v1019_v36  ;;  %v3510_v23 = vpack.c.bf16 %v3503_v14, %v3503_v14 }
 0x303   : > { %3356 = vrot.lane.b32.xlu1 %v3343_v30, %s14102_s12  ;;  %3352 = vrot.lane.b32.xlu0 %v3341_v48, %s14102_s12  ;;  %v1033_v13 = vsel %vm580_vm0, %v1025_v20, 0  ;;  %v14155_v30 = vld [vmem:[#allocation62_spill] sm:$0xff] }
 0x304   : > { %9731 = vmatmul.mubr.msk.bf16.vlgmr.msra.gmra.mxu1 %vm576_vm12, %v9727_v57  ;;  %9734 = vmatprep.subr.msk.bf16.mxu0 %vm580_vm0, %v1026_v18  ;;  %v3495_v44 = vsel %vm488_vm3, %v10991_v55, %v14155_v30  ;;  %v14156_v18 = vld [vmem:[#allocation43_spill] sm:$0xff]  ;;  %v3662_v30 = vsel %vm535_vm2, %v11036_v21, %v10999_v22 }
 0x305   : > { %1059 = vmatpush1.bf16.msra.mxu0 %v1033_v13  ;;  %v1023_v60 = vpop.permute.xlu1 %1022  ;;  %v1021_v28 = vpop.permute.xlu0 %1020  ;;  %1117 = vmatprep.mubr.bf16.mxu1 %v14146_v58  ;;  %v3504_v20 = vmul.f32 %v3495_v44, %v11405_v53 }
 0x306   : > { %v1027_v57 = vsel %vm1024_vm7, %v1019_v36, %v1021_v28  ;;  %v1028_v12 = vsel %vm1024_vm7, %v1021_v28, %v1023_v60  ;;  %v3670_v36 = vmul.f32 %v3661_v63, %v11391_v7  ;;  %v3660_v60 = vsel %vm535_vm2, %v11031_v54, %v10995_v27 }
 0x307   : > { %3520 = vrot.lane.b32.xlu1 %v3509_v61, %s14093_s11  ;;  %3518 = vrot.lane.b32.xlu0 %v3508_v56, %s14093_s11  ;;  %v1039_v3 = vsel %vm580_vm0, %v1027_v57, 0  ;;  %v3836_v28 = vmul.f32 %v3827_v46, %v11377_v59  ;;  %v3511_v57 = vpack.c.bf16 %v3504_v20, %v3504_v20  ;;  %v3669_v63 = vmul.f32 %v3660_v60, %v11377_v59 }
 0x308   : > { %9735 = vmatmul.mubr.msk.bf16.vlgmr.msra.gmra.mxu0 %vm576_vm12, %v9733_v25  ;;  %9736 = vmatprep.subr.msk.bf16.mxu1 %vm580_vm0, %v1028_v12  ;;  %v3677_v14 = vpack.c.bf16 %v3670_v36, %v3670_v36  ;;  %v9739_v12 = vld [vmem:[%s14143_s2 + $0x4] sm:$0x1] }
 0x309   : > { %1100 = vmatpush1.bf16.msra.mxu1 %v1039_v3  ;;  %v1188_v48 = vpop.permute.xlu1 %1187  ;;  %v1186_v19 = vpop.permute.xlu0 %1185  ;;  %1245 = vmatprep.mubr.bf16.mxu0 %v14146_v58  ;;  %v3843_v36 = vpack.c.bf16 %v3836_v28, %v3836_v28  ;;  %v9745_v28 = vld [vmem:[%s14143_s2 + $0x5] sm:$0x1] }
 0x30a   : > { %v1194_v13 = vsel %vm1157_vm6, %v14156_v18, %v1186_v19  ;;  %v1195_v55 = vsel %vm1157_vm6, %v1186_v19, %v1188_v48  ;;  %v3676_v19 = vpack.c.bf16 %v3669_v63, %v3669_v63  ;;  %v3835_v18 = vmul.f32 %v11122_v47, %v11375_v2 }
 0x30b   : > { %3685 = vrot.lane.b32.xlu1 %v3675_v33, %s14088_s20  ;;  %3522 = vrot.lane.b32.xlu0 %v3510_v23, %s14093_s11  ;;  %v1202_v24 = vsel %vm580_vm0, %v1194_v13, 0  ;;  %v3671_v33 = vmul.f32 %v3662_v30, %v11405_v53  ;;  %v14157_v23 = vld [vmem:[#allocation58_spill] sm:$0xff]  ;;  %v3995_v47 = vsel %vm988_vm5, %v11144_v8, %v11171_v45  ;;  %v3994_v63 = vsel %vm988_vm5, %v11157_v11, %v11144_v8  ;;  %v14158_v30 = vld [vmem:[#allocation44_spill] sm:$0xff] }
 0x30c   : > { %9737 = vmatmul.mubr.msk.bf16.vlgmr.msra.gmra.mxu1 %vm576_vm12, %v9733_v25  ;;  %9740 = vmatprep.subr.msk.bf16.mxu0 %vm580_vm0, %v1195_v55  ;;  %v3829_v25 = vsel %vm819_vm4, %v11137_v0, %v11054_v50  ;;  %v4002_v55 = vmul.f32 %v11157_v11, %v11375_v2 }
 0x30d   : > { %1228 = vmatpush1.bf16.msra.mxu0 %v1202_v24  ;;  %v1190_v61 = vpop.permute.xlu1 %1189  ;;  %v1192_v56 = vpop.permute.xlu0 %1191  ;;  %1286 = vmatprep.mubr.bf16.mxu1 %v14146_v58  ;;  %v3838_v44 = vmul.f32 %v3829_v25, %v11405_v53  ;;  %v3678_v60 = vpack.c.bf16 %v3671_v33, %v3671_v33 }
 0x30e   : > { %v1196_v27 = vsel %vm1157_vm6, %v1188_v48, %v1190_v61  ;;  %v1197_v54 = vsel %vm1157_vm6, %v1190_v61, %v1192_v56 }
 0x30f   : > { %3689 = vrot.lane.b32.xlu1 %v3677_v14, %s14088_s20  ;;  %3524 = vrot.lane.b32.xlu0 %v3511_v57, %s14093_s11  ;;  %v1208_v3 = vsel %vm580_vm0, %v1196_v27, 0  ;;  %v3845_v13 = vpack.c.bf16 %v3838_v44, %v3838_v44  ;;  %v3828_v14 = vsel %vm819_vm4, %v11049_v39, %v11137_v0  ;;  %v3842_v27 = vpack.c.bf16 %v3835_v18, %v3835_v18 }
 0x310   : > { %9741 = vmatmul.mubr.msk.bf16.vlgmr.msra.gmra.mxu0 %vm576_vm12, %v9739_v12  ;;  %9742 = vmatprep.subr.msk.bf16.mxu1 %vm580_vm0, %v1197_v54  ;;  %v4009_v54 = vpack.c.bf16 %v4002_v55, %v4002_v55  ;;  %v4004_v39 = vmul.f32 %v3995_v47, %v11391_v7 }
 0x311   : > { %1269 = vmatpush1.bf16.msra.mxu1 %v1208_v3  ;;  %v1355_v48 = vpop.permute.xlu1 %1354  ;;  %v1357_v50 = vpop.permute.xlu0 %1356  ;;  %1414 = vmatprep.mubr.bf16.mxu0 %v14146_v58  ;;  %v4161_v3 = vsel %vm1157_vm6, %v11181_v17, %v11190_v51 }
 0x312   : > { %v1363_v20 = vsel %vm988_vm5, %v14157_v23, %v1355_v48  ;;  %v1364_v22 = vsel %vm988_vm5, %v1355_v48, %v1357_v50  ;;  %v3996_v48 = vsel %vm988_vm5, %v11171_v45, %v11161_v1  ;;  %v4170_v33 = vmul.f32 %v4161_v3, %v11377_v59 }
 0x313   : > { %3854 = vrot.lane.b32.xlu1 %v3843_v36, %s14080_s16  ;;  %3687 = vrot.lane.b32.xlu0 %v3676_v19, %s14088_s20  ;;  %v1371_v21 = vsel %vm580_vm0, %v1363_v20, 0  ;;  %v4003_v36 = vmul.f32 %v3994_v63, %v11377_v59  ;;  %v4011_v19 = vpack.c.bf16 %v4004_v39, %v4004_v39  ;;  %v4163_v1 = vsel %vm1157_vm6, %v11195_v37, %v11207_v38  ;;  %v9757_v39 = vld [vmem:[%s14143_s2 + $0x7] sm:$0x1] }
 0x314   : > { %9743 = vmatmul.mubr.msk.bf16.vlgmr.msra.gmra.mxu1 %vm576_vm12, %v9739_v12  ;;  %9746 = vmatprep.subr.msk.bf16.mxu0 %vm580_vm0, %v1364_v22  ;;  %v3837_v12 = vmul.f32 %v3828_v14, %v11391_v7  ;;  %v9751_v22 = vld [vmem:[%s14143_s2 + $0x6] sm:$0x1]  ;;  %v4172_v38 = vmul.f32 %v4163_v1, %v11405_v53  ;;  %v4336_v63 = vmul.f32 %v11227_v43, %v11375_v2 }
 0x315   : > { %1397 = vmatpush1.bf16.msra.mxu0 %v1371_v21  ;;  %v1359_v46 = vpop.permute.xlu1 %1358  ;;  %v1361_v24 = vpop.permute.xlu0 %1360  ;;  %1455 = vmatprep.mubr.bf16.mxu1 %v14146_v58  ;;  %v4010_v55 = vpack.c.bf16 %v4003_v36, %v4003_v36 }
 0x316   : > { %v1365_v61 = vsel %vm988_vm5, %v1357_v50, %v1359_v46  ;;  %v1366_v56 = vsel %vm988_vm5, %v1359_v46, %v1361_v24  ;;  %v3844_v50 = vpack.c.bf16 %v3837_v12, %v3837_v12  ;;  %v4177_v46 = vpack.c.bf16 %v4170_v33, %v4170_v33 }
 0x317   : > { %3858 = vrot.lane.b32.xlu1 %v3845_v13, %s14080_s16  ;;  %3691 = vrot.lane.b32.xlu0 %v3678_v60, %s14088_s20  ;;  %v1377_v57 = vsel %vm580_vm0, %v1365_v61, 0  ;;  %v4005_v13 = vmul.f32 %v3996_v48, %v11405_v53  ;;  %v4179_v12 = vpack.c.bf16 %v4172_v38, %v4172_v38 }
 0x318   : > { %9747 = vmatmul.mubr.msk.bf16.vlgmr.msra.gmra.mxu0 %vm576_vm12, %v9745_v28  ;;  %9748 = vmatprep.subr.msk.bf16.mxu1 %vm580_vm0, %v1366_v56 }
 0x319   : > { %1438 = vmatpush1.bf16.msra.mxu1 %v1377_v57  ;;  %v1526_v0 = vpop.permute.xlu1 %1525  ;;  %v1524_v25 = vpop.permute.xlu0 %1523  ;;  %1583 = vmatprep.mubr.bf16.mxu0 %v14146_v58  ;;  %v4012_v14 = vpack.c.bf16 %v4005_v13, %v4005_v13  ;;  %v4162_v57 = vsel %vm1157_vm6, %v11190_v51, %v11195_v37  ;;  %v4169_v51 = vmul.f32 %v11181_v17, %v11375_v2 }
 0x31a   : > { %v1532_v8 = vsel %vm819_vm4, %v14158_v30, %v1524_v25  ;;  %v1533_v11 = vsel %vm819_vm4, %v1524_v25, %v1526_v0  ;;  %v4329_v37 = vsel %vm1024_vm7, %v11231_v15, %v11241_v49  ;;  %v4171_v30 = vmul.f32 %v4162_v57, %v11391_v7 }
 0x31b   : > { %4019 = vrot.lane.b32.xlu1 %v4009_v54, %s14076_s9  ;;  %3852 = vrot.lane.b32.xlu0 %v3842_v27, %s14080_s16  ;;  %v1540_v44 = vsel %vm580_vm0, %v1532_v8, 0  ;;  %v4328_v17 = vsel %vm1024_vm7, %v11227_v43, %v11231_v15  ;;  %v4343_v8 = vpack.c.bf16 %v4336_v63, %v4336_v63  ;;  %v4176_v48 = vpack.c.bf16 %v4169_v51, %v4169_v51 }
 0x31c   : > { %9749 = vmatmul.mubr.msk.bf16.vlgmr.msra.gmra.mxu1 %vm576_vm12, %v9745_v28  ;;  %9752 = vmatprep.subr.msk.bf16.mxu0 %vm580_vm0, %v1533_v11  ;;  %v14159_v28 = vld [vmem:[#allocation63_spill] sm:$0xff]  ;;  %v4338_v11 = vmul.f32 %v4329_v37, %v11391_v7  ;;  %v4330_v13 = vsel %vm1024_vm7, %v11241_v49, %v11251_v26  ;;  %v9769_v37 = vld [vmem:[%s14143_s2 + $0x9] sm:$0x1] }
 0x31d   : > { %1566 = vmatpush1.bf16.msra.mxu0 %v1540_v44  ;;  %v1528_v23 = vpop.permute.xlu1 %1527  ;;  %v1530_v20 = vpop.permute.xlu0 %1529  ;;  %1624 = vmatprep.mubr.bf16.mxu1 %v14146_v58  ;;  %v4339_v49 = vmul.f32 %v4330_v13, %v11405_v53 }
 0x31e   : > { %v1534_v45 = vsel %vm819_vm4, %v1526_v0, %v1528_v23  ;;  %v1535_v21 = vsel %vm819_vm4, %v1528_v23, %v1530_v20  ;;  %v4337_v23 = vmul.f32 %v4328_v17, %v11377_v59  ;;  %v4178_v20 = vpack.c.bf16 %v4171_v30, %v4171_v30 }
 0x31f   : > { %4023 = vrot.lane.b32.xlu1 %v4011_v19, %s14076_s9  ;;  %3856 = vrot.lane.b32.xlu0 %v3844_v50, %s14080_s16  ;;  %v1546_v18 = vsel %vm580_vm0, %v1534_v45, 0  ;;  %v4495_v50 = vsel %vm855_vm8, %v11265_v42, %v11277_v10  ;;  %v14160_v19 = vld [vmem:[#allocation50_spill] sm:$0xff]  ;;  %v4346_v63 = vpack.c.bf16 %v4339_v49, %v4339_v49  ;;  %v11794_v49 = vld [vmem:[%s13880_s6 + $0x34] sm:$0xf] }
 0x320   : > { %9753 = vmatmul.mubr.msk.bf16.vlgmr.msra.gmra.mxu0 %vm576_vm12, %v9751_v22  ;;  %9754 = vmatprep.subr.msk.bf16.mxu1 %vm580_vm0, %v1535_v21  ;;  %v4504_v1 = vmul.f32 %v4495_v50, %v11377_v59 }
 0x321   : > { %1607 = vmatpush1.bf16.msra.mxu1 %v1546_v18  ;;  %v1693_v24 = vpop.permute.xlu1 %1692  ;;  %v1695_v60 = vpop.permute.xlu0 %1694  ;;  %1752 = vmatprep.mubr.bf16.mxu0 %v14146_v58  ;;  %v9763_v18 = vld [vmem:[%s14143_s2 + $0x8] sm:$0x1] }
 0x322   : > { %v1701_v47 = vsel %vm535_vm2, %v14159_v28, %v1693_v24  ;;  %v1702_v61 = vsel %vm535_vm2, %v1693_v24, %v1695_v60  ;;  %v4511_v26 = vpack.c.bf16 %v4504_v1, %v4504_v1  ;;  %v9775_v1 = vld [vmem:[%s14143_s2 + $0xa] sm:$0x1] }
 0x323   : > { %4188 = vrot.lane.b32.xlu1 %v4177_v46, %s14043_s22  ;;  %4021 = vrot.lane.b32.xlu0 %v4010_v55, %s14076_s9  ;;  %v1709_v56 = vsel %vm580_vm0, %v1701_v47, 0  ;;  %v4497_v55 = vsel %vm855_vm8, %v11284_v35, %v11297_v40 }
 0x324   : > { %9755 = vmatmul.mubr.msk.bf16.vlgmr.msra.gmra.mxu1 %vm576_vm12, %v9751_v22  ;;  %9758 = vmatprep.subr.msk.bf16.mxu0 %vm580_vm0, %v1702_v61  ;;  %v4345_v22 = vpack.c.bf16 %v4338_v11, %v4338_v11  ;;  %v4506_v40 = vmul.f32 %v4497_v55, %v11405_v53  ;;  %v14161_v61 = vld [vmem:[#allocation67_spill] sm:$0xff] }
 0x325   : > { %1735 = vmatpush1.bf16.msra.mxu0 %v1709_v56  ;;  %v1699_v27 = vpop.permute.xlu1 %1698  ;;  %v1697_v54 = vpop.permute.xlu0 %1696  ;;  %1793 = vmatprep.mubr.bf16.mxu1 %v14146_v58 }
 0x326   : > { %v1703_v0 = vsel %vm535_vm2, %v1695_v60, %v1697_v54  ;;  %v1704_v25 = vsel %vm535_vm2, %v1697_v54, %v1699_v27  ;;  %v4344_v60 = vpack.c.bf16 %v4337_v23, %v4337_v23  ;;  %v4513_v27 = vpack.c.bf16 %v4506_v40, %v4506_v40 }
 0x327   : > { %4192 = vrot.lane.b32.xlu1 %v4179_v12, %s14043_s22  ;;  %4025 = vrot.lane.b32.xlu0 %v4012_v14, %s14076_s9  ;;  %v1715_v3 = vsel %vm580_vm0, %v1703_v0, 0  ;;  %v4503_v12 = vmul.f32 %v11265_v42, %v11375_v2  ;;  %v4670_v54 = vmul.f32 %v11311_v5, %v11375_v2  ;;  %v4496_v42 = vsel %vm855_vm8, %v11277_v10, %v11284_v35 }
 0x328   : > { %9759 = vmatmul.mubr.msk.bf16.vlgmr.msra.gmra.mxu0 %vm576_vm12, %v9757_v39  ;;  %9760 = vmatprep.subr.msk.bf16.mxu1 %vm580_vm0, %v1704_v25  ;;  %v4663_v0 = vsel %vm571_vm9, %v11321_v34, %v11330_v52  ;;  %v4505_v10 = vmul.f32 %v4496_v42, %v11391_v7 }
 0x329   : > { %1776 = vmatpush1.bf16.msra.mxu1 %v1715_v3  ;;  %v1864_v44 = vpop.permute.xlu1 %1863  ;;  %v1862_v36 = vpop.permute.xlu0 %1861  ;;  %1921 = vmatprep.mubr.bf16.mxu0 %v14146_v58  ;;  %v4510_v17 = vpack.c.bf16 %v4503_v12, %v4503_v12  ;;  %v4677_v35 = vpack.c.bf16 %v4670_v54, %v4670_v54 }
 0x32a   : > { %v1870_v43 = vsel %vm488_vm3, %v14160_v19, %v1862_v36  ;;  %v1871_v15 = vsel %vm488_vm3, %v1862_v36, %v1864_v44  ;;  %v4662_v36 = vsel %vm571_vm9, %v11311_v5, %v11321_v34  ;;  %v4512_v5 = vpack.c.bf16 %v4505_v10, %v4505_v10 }
 0x32b   : > { %4353 = vrot.lane.b32.xlu1 %v4343_v8, %s14044_s15  ;;  %4186 = vrot.lane.b32.xlu0 %v4176_v48, %s14043_s22  ;;  %v1878_v33 = vsel %vm580_vm0, %v1870_v43, 0  ;;  %v4672_v8 = vmul.f32 %v4663_v0, %v11391_v7  ;;  %v14162_v48 = vld [vmem:[#allocation59_spill] sm:$0xff]  ;;  %v4671_v34 = vmul.f32 %v4662_v36, %v11377_v59 }
 0x32c   : > { %9761 = vmatmul.mubr.msk.bf16.vlgmr.msra.gmra.mxu1 %vm576_vm12, %v9757_v39  ;;  %9764 = vmatprep.subr.msk.bf16.mxu0 %vm580_vm0, %v1871_v15  ;;  %v11764_v15 = vld [vmem:[#allocation2 + $0x20] sm:$0x3] }
 0x32d   : > { %1904 = vmatpush1.bf16.msra.mxu0 %v1878_v33  ;;  %v1866_v45 = vpop.permute.xlu1 %1865  ;;  %v1868_v21 = vpop.permute.xlu0 %1867  ;;  %1962 = vmatprep.mubr.bf16.mxu1 %v14146_v58  ;;  %v4674_v33 = vmul.f32 %v11764_v15, %v11335_v41  ;;  %v4679_v23 = vpack.c.bf16 %v4672_v8, %v4672_v8 }
 0x32e   : > { %v1872_v46 = vsel %vm488_vm3, %v1864_v44, %v1866_v45  ;;  %v1873_v38 = vsel %vm488_vm3, %v1866_v45, %v1868_v21  ;;  %v4664_v45 = vsel %vm571_vm9, %v11330_v52, %v11335_v41  ;;  %v4829_v21 = vsel %vm690_vm10, %v11356_v32, %v11367_v62 }
 0x32f   : > { %4357 = vrot.lane.b32.xlu1 %v4345_v22, %s14044_s15  ;;  %4190 = vrot.lane.b32.xlu0 %v4178_v20, %s14043_s22  ;;  %v1884_v24 = vsel %vm580_vm0, %v1872_v46, 0  ;;  %v4681_v46 = vpack.c.bf16 %v4674_v33, %v4674_v33  ;;  %v4678_v52 = vpack.c.bf16 %v4671_v34, %v4671_v34  ;;  %v4673_v41 = vmul.f32 %v4664_v45, %v11405_v53  ;;  %v14165_v33 = vld [vmem:[#allocation16_spill] sm:$0xff] }
 0x330   : > { %9765 = vmatmul.mubr.msk.bf16.vlgmr.msra.gmra.mxu0 %vm576_vm12, %v9763_v18  ;;  %9766 = vmatprep.subr.msk.bf16.mxu1 %vm580_vm0, %v1873_v38  ;;  %v4838_v38 = vmul.f32 %v4829_v21, %v11377_v59 }
 0x331   : > { %1945 = vmatpush1.bf16.msra.mxu1 %v1884_v24  ;;  %v2031_v28 = vpop.permute.xlu1 %2030  ;;  %v2033_v47 = vpop.permute.xlu0 %2032  ;;  %2090 = vmatprep.mubr.bf16.mxu0 %v14146_v58 }
 0x332   : > { %v2039_v56 = vsel %vm13972_vm13, %v14161_v61, %v2031_v28  ;;  %v2040_v14 = vsel %vm13972_vm13, %v2031_v28, %v2033_v47  ;;  %v2661_v61 = vrot.slane %v11794_v49, %v10408_v6 }
 0x333   : > { %4522 = vrot.lane.b32.xlu1 %v4511_v26, %s14046_s17  ;;  %4355 = vrot.lane.b32.xlu0 %v4344_v60, %s14044_s15  ;;  %v2047_v57 = vsel %vm580_vm0, %v2039_v56, 0  ;;  %v4831_v26 = vsel %vm690_vm10, %v11365_v9, %v11381_v31  ;;  %v4680_v56 = vpack.c.bf16 %v4673_v41, %v4673_v41 }
 0x334   : > { %9767 = vmatmul.mubr.msk.bf16.vlgmr.msra.gmra.mxu1 %vm576_vm12, %v9763_v18  ;;  %9770 = vmatprep.subr.msk.bf16.mxu0 %vm580_vm0, %v2040_v14  ;;  %v4845_v14 = vpack.c.bf16 %v4838_v38, %v4838_v38 }
 0x335   : > { %2073 = vmatpush1.bf16.msra.mxu0 %v2047_v57  ;;  %v2037_v39 = vpop.permute.xlu1 %2036  ;;  %v2035_v51 = vpop.permute.xlu0 %2034  ;;  %2131 = vmatprep.mubr.bf16.mxu1 %v14146_v58  ;;  %v4840_v57 = vmul.f32 %v4831_v26, %v11405_v53 }
 0x336   : > { %v2041_v25 = vsel %vm13972_vm13, %v2033_v47, %v2035_v51  ;;  %v2042_v3 = vsel %vm13972_vm13, %v2035_v51, %v2037_v39  ;;  %v4837_v47 = vmul.f32 %v11356_v32, %v11375_v2  ;;  %v9781_v32 = vld [vmem:[%s14143_s2 + $0xb] sm:$0x1]  ;;  %v4830_v2 = vsel %vm690_vm10, %v11367_v62, %v11365_v9  ;;  %v10123_v39 = vld [vmem:[#allocation2 + $0x8] sm:$0x3] }
 0x337   : > { %4526 = vrot.lane.b32.xlu1 %v4513_v27, %s14046_s17  ;;  %4359 = vrot.lane.b32.xlu0 %v4346_v63, %s14044_s15  ;;  %v2053_v30 = vsel %vm580_vm0, %v2041_v25, 0  ;;  %v2675_v51 = vmul.f32 %v10123_v39, %v2661_v61  ;;  %v4839_v9 = vmul.f32 %v4830_v2, %v11391_v7  ;;  %v4847_v62 = vpack.c.bf16 %v4840_v57, %v4840_v57  ;;  %v9799_v61 = vld [vmem:[%s14143_s2 + $0xe] sm:$0x1] }
 0x338   : > { %9771 = vmatmul.mubr.msk.bf16.vlgmr.msra.gmra.mxu0 %vm576_vm12, %v9769_v37  ;;  %9772 = vmatprep.subr.msk.bf16.mxu1 %vm580_vm0, %v2042_v3  ;;  %v4844_v0 = vpack.c.bf16 %v4837_v47, %v4837_v47  ;;  %vm14166_vm13 = vcmask 990208  }
 0x339   : > { %2114 = vmatpush1.bf16.msra.mxu1 %v2053_v30  ;;  %v2202_v11 = vpop.permute.xlu1 %2201  ;;  %v2200_v44 = vpop.permute.xlu0 %2199  ;;  %2259 = vmatprep.mubr.bf16.mxu0 %v14146_v58  ;;  %v14163_v30 = vld [vmem:[#allocation68_spill] sm:$0xff]  ;;  %v2681_v7 = vpack.c.bf16 %v2675_v51, %v2675_v51  ;;  %v9805_v51 = vld [vmem:[%s14143_s2 + $0xf] sm:$0x1] }
 0x33a   : > { %v2208_v50 = vsel %vm13973_vm11, %v14162_v48, %v2200_v44  ;;  %v2209_v19 = vsel %vm13973_vm11, %v2200_v44, %v2202_v11  ;;  %v4841_v44 = vmul.f32 %v11764_v15, %v11381_v31  ;;  %v2665_v31 = vrot.slane %v11794_v49, %v14165_v33 }
 0x33b   : > { %4687 = vrot.lane.b32.xlu1 %v4677_v35, %s14048_s21  ;;  %4520 = vrot.lane.b32.xlu0 %v4510_v17, %s14046_s17  ;;  %v2216_v43 = vsel %vm580_vm0, %v2208_v50, 0  ;;  %v9787_v50 = vld [vmem:[%s14143_s2 + $0xc] sm:$0x1] }
 0x33c   : > { %9773 = vmatmul.mubr.msk.bf16.vlgmr.msra.gmra.mxu1 %vm576_vm12, %v9769_v37  ;;  %9776 = vmatprep.subr.msk.bf16.mxu0 %vm580_vm0, %v2209_v19  ;;  %v10124_v37 = vld [vmem:[#allocation2 + $0x10] sm:$0x3] }
 0x33d   : > { %2242 = vmatpush1.bf16.msra.mxu0 %v2216_v43  ;;  %v2204_v20 = vpop.permute.xlu1 %2203  ;;  %v2206_v22 = vpop.permute.xlu0 %2205  ;;  %2300 = vmatprep.mubr.bf16.mxu1 %v14146_v58  ;;  %v14164_v19 = vld [vmem:[#allocation19_spill] sm:$0xff] }
 0x33e   : > { %v2210_v18 = vsel %vm13973_vm11, %v2202_v11, %v2204_v20  ;;  %v2211_v13 = vsel %vm13973_vm11, %v2204_v20, %v2206_v22  ;;  %v4846_v11 = vpack.c.bf16 %v4839_v9, %v4839_v9  ;;  %v2669_v43 = vrot.slane %v11794_v49, %v14164_v19  ;;  %v10125_v20 = vld [vmem:[#allocation2 + $0x18] sm:$0x3]  ;;  %vm14167_vm11 = vmmov %vm14166_vm13 }
 0x33f   : > { %4691 = vrot.lane.b32.xlu1 %v4679_v23, %s14048_s21  ;;  %4524 = vrot.lane.b32.xlu0 %v4512_v5, %s14046_s17  ;;  %v2222_v55 = vsel %vm580_vm0, %v2210_v18, 0  ;;  %v4848_v5 = vpack.c.bf16 %v4841_v44, %v4841_v44 }
 0x340   : > { %9777 = vmatmul.mubr.msk.bf16.vlgmr.msra.gmra.mxu0 %vm576_vm12, %v9775_v1  ;;  %9778 = vmatprep.subr.msk.bf16.mxu1 %vm580_vm0, %v2211_v13  ;;  %v2677_v22 = vmul.f32 %v10125_v20, %v2669_v43 }
 0x341   : > { %2283 = vmatpush1.bf16.msra.mxu1 %v2222_v55  ;;  %v2369_v24 = vpop.permute.xlu1 %2368  ;;  %v2371_v60 = vpop.permute.xlu0 %2370  ;;  %2428 = vmatprep.mubr.bf16.mxu0 %v14146_v58  ;;  %v9793_v55 = vld [vmem:[%s14143_s2 + $0xd] sm:$0x1] }
 0x342   : > { %v2377_v40 = vsel %vm13974_vm1, %v10993_v16, %v2369_v24  ;;  %v2378_v28 = vsel %vm13974_vm1, %v2369_v24, %v2371_v60  ;;  %v2657_v16 = vrot.slane %v11794_v49, %v10404_v4  ;;  %v2683_v41 = vpack.c.bf16 %v2677_v22, %v2677_v22 }
 0x343   : > { %4695 = vrot.lane.b32.xlu1 %v4681_v46, %s14048_s21  ;;  %4689 = vrot.lane.b32.xlu0 %v4678_v52, %s14048_s21  ;;  %v2385_v59 = vsel %vm580_vm0, %v2377_v40, 0 }
 0x344   : > { %9779 = vmatmul.mubr.msk.bf16.vlgmr.msra.gmra.mxu1 %vm576_vm12, %v9775_v1  ;;  %9782 = vmatprep.subr.msk.bf16.mxu0 %vm580_vm0, %v2378_v28  ;;  %v2674_v42 = vmul.f32 %v10124_v37, %v2657_v16  ;;  %v10126_v1 = vld [vmem:[#allocation2] sm:$0x3] }
 0x345   : > { %2411 = vmatpush1.bf16.msra.mxu0 %v2385_v59  ;;  %v2375_v12 = vpop.permute.xlu1 %2374  ;;  %v2373_v63 = vpop.permute.xlu0 %2372  ;;  %2469 = vmatprep.mubr.bf16.mxu1 %v14146_v58  ;;  %v2676_v45 = vmul.f32 %v10126_v1, %v2665_v31  ;;  %v9817_v1 = vld [vmem:[%s14143_s2 + $0x11] sm:$0x1] }
 0x346   : > { %v2379_v27 = vsel %vm13974_vm1, %v2371_v60, %v2373_v63  ;;  %v2380_v54 = vsel %vm13974_vm1, %v2373_v63, %v2375_v12  ;;  %v2680_v8 = vpack.c.bf16 %v2674_v42, %v2674_v42  ;;  %vm14169_vm1 = vmmov %vm14167_vm11 }
 0x347   : > { %4856 = vrot.lane.b32.xlu1 %v4845_v14, %s14051_s19  ;;  %4693 = vrot.lane.b32.xlu0 %v4680_v56, %s14048_s21  ;;  %v2391_v53 = vsel %vm580_vm0, %v2379_v27, 0  ;;  %v2682_v38 = vpack.c.bf16 %v2676_v45, %v2676_v45 }
 0x348   : > { %9783 = vmatmul.mubr.msk.bf16.vlgmr.msra.gmra.mxu0 %vm576_vm12, %v9781_v32  ;;  %9784 = vmatprep.subr.msk.bf16.mxu1 %vm580_vm0, %v2380_v54  ;;  %v2688_v15 = vsel %vm580_vm0, %v2680_v8, 0  ;;  %v14174_v8 = vld [vmem:[#allocation29_spill] sm:$0xff] }
 0x349   : > { %2452 = vmatpush1.bf16.msra.mxu1 %v2391_v53  ;;  %v2540_v25 = vpop.permute.xlu1 %2539  ;;  %v2538_v3 = vpop.permute.xlu0 %2537  ;;  %2597 = vmatprep.mubr.bf16.mxu0 %v14146_v58  ;;  %v2694_v49 = vsel %vm580_vm0, %v2682_v38, 0 }
 0x34a   : > { %v2546_v17 = vsel %vm13975_vm15, %v14163_v30, %v2538_v3  ;;  %v2547_v10 = vsel %vm13975_vm15, %v2538_v3, %v2540_v25 }
 0x34b   : > { %4860 = vrot.lane.b32.xlu1 %v4847_v62, %s14051_s19  ;;  %4854 = vrot.lane.b32.xlu0 %v4844_v0, %s14051_s19  ;;  %v2554_v35 = vsel %vm580_vm0, %v2546_v17, 0  ;;  %v9811_v17 = vld [vmem:[%s14143_s2 + $0x10] sm:$0x1] }
 0x34c   : > { %9785 = vmatmul.mubr.msk.bf16.vlgmr.msra.gmra.mxu1 %vm576_vm12, %v9781_v32  ;;  %9788 = vmatprep.subr.msk.bf16.mxu0 %vm580_vm0, %v2547_v10 }
 0x34d   : > { %2580 = vmatpush1.bf16.msra.mxu0 %v2554_v35  ;;  %v2542_v36 = vpop.permute.xlu1 %2541  ;;  %v11840_v48 = vpop.permute.xlu0 %4194  ;;  %2638 = vmatprep.mubr.bf16.mxu1 %v14146_v58 }
 0x34e   : > { %9794 = vmatprep.subr.msk.bf16.mxu0 %vm580_vm0, %v2681_v7  ;;  %v2548_v21 = vsel %vm13975_vm15, %v2540_v25, %v2542_v36 }
 0x34f   : > { %4858 = vrot.lane.b32.xlu0 %v4846_v11, %s14051_s19  ;;  %v2560_v52 = vsel %vm580_vm0, %v2548_v21, 0 }
 0x350   : > { %9789 = vmatmul.mubr.msk.bf16.vlgmr.msra.gmra.mxu0 %vm576_vm12, %v9787_v50 }
 0x351   : > { %2714 = vmatpush1.bf16.msra.mxu0 %v2688_v15  ;;  %v11854_v34 = vpop.permute.xlu1 %4027  ;;  %v11856_v23 = vpop.permute.xlu0 %4528  ;;  %2731 = vmatprep.mubr.bf16.mxu0 %v14146_v58  ;;  %v14178_v15 = vld [vmem:[#allocation22_spill] sm:$0xff] }
 0x353   : > { %4862 = vrot.lane.b32.xlu0 %v4848_v5, %s14051_s19 }
 0x355   : > { %v11861_v18 = vpop.permute.xlu1 %4361  ;;  %v2544_v13 = vpop.permute.xlu0 %2543 }
 0x356   : > { %v2549_v46 = vsel %vm13975_vm15, %v2542_v36, %v2544_v13  ;;  %vm14170_vm15 = vmmov %vm14169_vm1 }
 0x357   : > { %9790 = vmatprep.subr.msk.bf16.mxu1 %vm580_vm0, %v2549_v46 }
 0x358   : > { %9795 = vmatmul.mubr.msk.bf16.vlgmr.msra.gmra.mxu0 %vm576_vm12, %v9793_v55  ;;  %2621 = vmatpush1.bf16.msra.mxu1 %v2560_v52 }
 0x359   : > { %v2846_v24 = vpop.permute.xlu1 %2845  ;;  %9796 = vmatprep.subr.msk.bf16.mxu1 %vm580_vm0, %v2683_v41  ;;  %v2844_v60 = vpop.permute.xlu0 %2843  ;;  %2905 = vmatprep.mubr.bf16.mxu0 %v14146_v58 }
 0x35a   : > { %v2854_v26 = vsel %vm2509_vm14, %v2844_v60, %v2846_v24 }
 0x35b   : > { %9791 = vmatmul.mubr.msk.bf16.vlgmr.msra.gmra.mxu1 %vm576_vm12, %v9787_v50  ;;  %v2862_v47 = vsel %vm580_vm0, %v2854_v26, 0 }
 0x35c   : > { %2755 = vmatpush1.bf16.msra.mxu1 %v2694_v49  ;;  %2772 = vmatprep.mubr.bf16.mxu1 %v14146_v58 }
 0x35d   : > { %v3013_v40 = vpop.permute.xlu1 %3012  ;;  %v2848_v28 = vpop.permute.xlu0 %2847 }
 0x35e   : > { %v2855_v59 = vsel %vm2509_vm14, %v2846_v24, %v2848_v28  ;;  %v9823_v24 = vld [vmem:[%s14143_s2 + $0x12] sm:$0x1] }
 0x35f   : > { %9800 = vmatprep.subr.msk.bf16.mxu0 %vm580_vm0, %v2855_v59 }
 0x360   : > { %2888 = vmatpush1.bf16.msra.mxu0 %v2862_v47 }
 0x361   : > { %v3017_v16 = vpop.permute.xlu1 %3016  ;;  %v2850_v56 = vpop.permute.xlu0 %2849 }
 0x362   : > { %v2856_v14 = vsel %vm2509_vm14, %v2848_v28, %v2850_v56  ;;  %v2857_v57 = vsel %vm2509_vm14, %v2850_v56, %v11214_v29  ;;  %v14168_v29 = vld [vmem:[#allocation21_spill] sm:$0xff] }
 0x363   : > { %9797 = vmatmul.mubr.msk.bf16.vlgmr.msra.gmra.mxu1 %vm576_vm12, %v9793_v55  ;;  %9801 = vmatmul.mubr.msk.bf16.vlgmr.msra.gmra.mxu0 %vm576_vm12, %v9799_v61  ;;  %v2868_v12 = vsel %vm580_vm0, %v2856_v14, 0 }
 0x364   : > { %9802 = vmatprep.subr.msk.bf16.mxu1 %vm580_vm0, %v2857_v57  ;;  %2946 = vmatprep.mubr.bf16.mxu1 %v14146_v58  ;;  %v9829_v57 = vld [vmem:[%s14143_s2 + $0x13] sm:$0x1] }
 0x365   : > { %2929 = vmatpush1.bf16.msra.mxu1 %v2868_v12  ;;  %v3019_v63 = vpop.permute.xlu1 %3018  ;;  %v3015_v32 = vpop.permute.xlu0 %3014  ;;  %3074 = vmatprep.mubr.bf16.mxu0 %v14146_v58 }
 0x366   : > { %v3023_v2 = vsel %vm14166_vm13, %v3013_v40, %v3015_v32  ;;  %v3024_v27 = vsel %vm14167_vm11, %v3015_v32, %v3017_v16  ;;  %v3026_v54 = vsel %vm14169_vm1, %v3019_v63, %v14168_v29  ;;  %v3025_v39 = vsel %vm14170_vm15, %v3017_v16, %v3019_v63  ;;  %v14181_v40 = vld [vmem:[#allocation23_spill] sm:$0xff] }
 0x367   : > { %9806 = vmatprep.subr.msk.bf16.mxu0 %vm580_vm0, %v3024_v27  ;;  %9808 = vmatprep.subr.msk.bf16.mxu1 %vm580_vm0, %v3026_v54  ;;  %v3031_v53 = vsel %vm580_vm0, %v3023_v2, 0  ;;  %v3037_v0 = vsel %vm580_vm0, %v3025_v39, 0  ;;  %vm14171_vm11 = vcmask 982016   ;;  %v14182_v2 = vld [vmem:[#allocation24_spill] sm:$0xff] }
 0x368   : > { %3057 = vmatpush1.bf16.msra.mxu0 %v3031_v53  ;;  %vm14172_vm13 = vmmov %vm14171_vm11  ;;  %v14183_v53 = vld [vmem:[#allocation31_spill] sm:$0xff] }
 0x369   : > { %v3184_v37 = vpop.permute.xlu1 %3183  ;;  %v3182_v42 = vpop.permute.xlu0 %3181  ;;  %vm14173_vm15 = vmmov %vm14171_vm11 }
 0x36a   : > { %v3192_v9 = vsel %vm14171_vm11, %v3182_v42, %v3184_v37  ;;  %vm14175_vm1 = vmmov %vm14171_vm11  ;;  %vm14176_vm11 = vcmask 973824  }
 0x36b   : > { %9803 = vmatmul.mubr.msk.bf16.vlgmr.msra.gmra.mxu1 %vm576_vm12, %v9799_v61  ;;  %9807 = vmatmul.mubr.msk.bf16.vlgmr.msra.gmra.mxu0 %vm576_vm12, %v9805_v51  ;;  %v3200_v30 = vsel %vm580_vm0, %v3192_v9, 0 }
 0x36c   : > { %3098 = vmatpush1.bf16.msra.mxu1 %v3037_v0  ;;  %3115 = vmatprep.mubr.bf16.mxu1 %v14146_v58 }
 0x36d   : > { %v3351_v62 = vpop.permute.xlu1 %3350  ;;  %v3186_v25 = vpop.permute.xlu0 %3185  ;;  %3243 = vmatprep.mubr.bf16.mxu0 %v14146_v58 }
 0x36e   : > { %v3193_v3 = vsel %vm14172_vm13, %v3184_v37, %v3186_v25  ;;  %vm14177_vm13 = vmmov %vm14176_vm11 }
 0x36f   : > { %9812 = vmatprep.subr.msk.bf16.mxu0 %vm580_vm0, %v3193_v3 }
 0x370   : > { %3226 = vmatpush1.bf16.msra.mxu0 %v3200_v30  ;;  %v9835_v30 = vld [vmem:[%s14143_s2 + $0x14] sm:$0x1] }
 0x371   : > { %v3355_v10 = vpop.permute.xlu1 %3354  ;;  %v3188_v35 = vpop.permute.xlu0 %3187 }
 0x372   : > { %v3194_v7 = vsel %vm14173_vm15, %v3186_v25, %v3188_v35  ;;  %v3195_v11 = vsel %vm14175_vm1, %v3188_v35, %v14174_v8  ;;  %vm14179_vm15 = vmmov %vm14176_vm11 }
 0x373   : > { %9809 = vmatmul.mubr.msk.bf16.vlgmr.msra.gmra.mxu1 %vm576_vm12, %v9805_v51  ;;  %9813 = vmatmul.mubr.msk.bf16.vlgmr.msra.gmra.mxu0 %vm576_vm12, %v9811_v17  ;;  %v3206_v44 = vsel %vm580_vm0, %v3194_v7, 0  ;;  %vm14180_vm1 = vmmov %vm14176_vm11 }
 0x374   : > { %9814 = vmatprep.subr.msk.bf16.mxu1 %vm580_vm0, %v3195_v11  ;;  %3284 = vmatprep.mubr.bf16.mxu1 %v14146_v58 }
 0x375   : > { %3267 = vmatpush1.bf16.msra.mxu1 %v3206_v44  ;;  %v3357_v36 = vpop.permute.xlu1 %3356  ;;  %v3353_v50 = vpop.permute.xlu0 %3352  ;;  %3412 = vmatprep.mubr.bf16.mxu0 %v14146_v58 }
 0x376   : > { %v3361_v43 = vsel %vm14176_vm11, %v3351_v62, %v3353_v50  ;;  %v3362_v31 = vsel %vm14177_vm13, %v3353_v50, %v3355_v10  ;;  %v3364_v5 = vsel %vm14179_vm15, %v3357_v36, %v14178_v15  ;;  %v3363_v22 = vsel %vm14180_vm1, %v3355_v10, %v3357_v36  ;;  %v9841_v15 = vld [vmem:[%s14143_s2 + $0x15] sm:$0x1] }
 0x377   : > { %9818 = vmatprep.subr.msk.bf16.mxu0 %vm580_vm0, %v3362_v31  ;;  %9820 = vmatprep.subr.msk.bf16.mxu1 %vm580_vm0, %v3364_v5  ;;  %v3369_v20 = vsel %vm580_vm0, %v3361_v43, 0  ;;  %v3375_v13 = vsel %vm580_vm0, %v3363_v22, 0  ;;  %vm14184_vm11 = vcmask 1041408  }
 0x378   : > { %3395 = vmatpush1.bf16.msra.mxu0 %v3369_v20  ;;  %vm14185_vm13 = vmmov %vm14184_vm11 }
 0x379   : > { %v3521_v45 = vpop.permute.xlu1 %3520  ;;  %v3519_v21 = vpop.permute.xlu0 %3518  ;;  %vm14186_vm15 = vmmov %vm14184_vm11 }
 0x37a   : > { %v3528_v55 = vsel %vm690_vm10, %v3519_v21, %v3521_v45  ;;  %vm14187_vm1 = vmmov %vm14184_vm11 }
 0x37b   : > { %9815 = vmatmul.mubr.msk.bf16.vlgmr.msra.gmra.mxu1 %vm576_vm12, %v9811_v17  ;;  %9819 = vmatmul.mubr.msk.bf16.vlgmr.msra.gmra.mxu0 %vm576_vm12, %v9817_v1  ;;  %v3536_v38 = vsel %vm580_vm0, %v3528_v55, 0  ;;  %v9847_v55 = vld [vmem:[%s14143_s2 + $0x16] sm:$0x1] }
 0x37c   : > { %3436 = vmatpush1.bf16.msra.mxu1 %v3375_v13  ;;  %3453 = vmatprep.mubr.bf16.mxu1 %v14146_v58 }
 0x37d   : > { %v3686_v46 = vpop.permute.xlu1 %3685  ;;  %v3523_v52 = vpop.permute.xlu0 %3522  ;;  %3579 = vmatprep.mubr.bf16.mxu0 %v14146_v58 }
 0x37e   : > { %v3529_v41 = vsel %vm690_vm10, %v3521_v45, %v3523_v52 }
 0x37f   : > { %9824 = vmatprep.subr.msk.bf16.mxu0 %vm580_vm0, %v3529_v41 }
 0x380   : > { %3562 = vmatpush1.bf16.msra.mxu0 %v3536_v38 }
 0x381   : > { %v3690_v60 = vpop.permute.xlu1 %3689  ;;  %v3525_v49 = vpop.permute.xlu0 %3524 }
 0x382   : > { %v3530_v26 = vsel %vm690_vm10, %v3523_v52, %v3525_v49  ;;  %v3531_v28 = vsel %vm690_vm10, %v3525_v49, %v14181_v40 }
 0x383   : > { %9821 = vmatmul.mubr.msk.bf16.vlgmr.msra.gmra.mxu1 %vm576_vm12, %v9817_v1  ;;  %9825 = vmatmul.mubr.msk.bf16.vlgmr.msra.gmra.mxu0 %vm576_vm12, %v9823_v24  ;;  %v3542_v59 = vsel %vm580_vm0, %v3530_v26, 0 }
 0x384   : > { %9826 = vmatprep.subr.msk.bf16.mxu1 %vm580_vm0, %v3531_v28  ;;  %3620 = vmatprep.mubr.bf16.mxu1 %v14146_v58 }
 0x385   : > { %3603 = vmatpush1.bf16.msra.mxu1 %v3542_v59  ;;  %v3855_v47 = vpop.permute.xlu1 %3854  ;;  %v3688_v61 = vpop.permute.xlu0 %3687  ;;  %3746 = vmatprep.mubr.bf16.mxu0 %v14146_v58 }
 0x386   : > { %v3695_v16 = vsel %vm571_vm9, %v3686_v46, %v3688_v61  ;;  %v3696_v56 = vsel %vm571_vm9, %v3688_v61, %v3690_v60 }
 0x387   : > { %9830 = vmatprep.subr.msk.bf16.mxu0 %vm580_vm0, %v3696_v56  ;;  %v3703_v14 = vsel %vm580_vm0, %v3695_v16, 0 }
 0x388   : > { %3729 = vmatpush1.bf16.msra.mxu0 %v3703_v14 }
 0x389   : > { %v3859_v12 = vpop.permute.xlu1 %3858  ;;  %v3692_v63 = vpop.permute.xlu0 %3691 }
 0x38a   : > { %v3697_v32 = vsel %vm571_vm9, %v3690_v60, %v3692_v63  ;;  %v3698_v27 = vsel %vm571_vm9, %v3692_v63, %v14182_v2  ;;  %v3865_v39 = vsel %vm855_vm8, %v3859_v12, %v14183_v53 }
 0x38b   : > { %9827 = vmatmul.mubr.msk.bf16.vlgmr.msra.gmra.mxu1 %vm576_vm12, %v9823_v24  ;;  %9831 = vmatmul.mubr.msk.bf16.vlgmr.msra.gmra.mxu0 %vm576_vm12, %v9829_v57  ;;  %v3709_v29 = vsel %vm580_vm0, %v3697_v32, 0 }
 0x38c   : > { %9832 = vmatprep.subr.msk.bf16.mxu1 %vm580_vm0, %v3698_v27  ;;  %3787 = vmatprep.mubr.bf16.mxu1 %v14146_v58 }
 0x38d   : > { %3770 = vmatpush1.bf16.msra.mxu1 %v3709_v29  ;;  %v4020_v54 = vpop.permute.xlu1 %4019  ;;  %v3853_v51 = vpop.permute.xlu0 %3852  ;;  %3913 = vmatprep.mubr.bf16.mxu0 %v14146_v58 }
 0x38e   : > { %9838 = vmatprep.subr.msk.bf16.mxu1 %vm580_vm0, %v3865_v39  ;;  %v3862_v37 = vsel %vm855_vm8, %v3853_v51, %v3855_v47 }
 0x38f   : > { %v3870_v25 = vsel %vm580_vm0, %v3862_v37, 0 }
 0x391   : > { %v4024_v42 = vpop.permute.xlu1 %4023  ;;  %v3857_v0 = vpop.permute.xlu0 %3856 }
 0x392   : > { %v3864_v9 = vsel %vm855_vm8, %v3857_v0, %v3859_v12  ;;  %v3863_v62 = vsel %vm855_vm8, %v3855_v47, %v3857_v0  ;;  %v9853_v47 = vld [vmem:[%s14143_s2 + $0x17] sm:$0x1] }
 0x393   : > { %9833 = vmatmul.mubr.msk.bf16.vlgmr.msra.gmra.mxu1 %vm576_vm12, %v9829_v57  ;;  %9836 = vmatprep.subr.msk.bf16.mxu0 %vm580_vm0, %v3863_v62  ;;  %v3876_v3 = vsel %vm580_vm0, %v3864_v9, 0 }
 0x394   : > { %3896 = vmatpush1.bf16.msra.mxu0 %v3870_v25  ;;  %3937 = vmatpush1.bf16.msra.mxu1 %v3876_v3 }
 0x395   : > { %v4189_v17 = vpop.permute.xlu1 %4188  ;;  %v4022_v10 = vpop.permute.xlu0 %4021  ;;  %3954 = vmatprep.mubr.bf16.mxu1 %v14146_v58 }
 0x396   : > { %v4029_v35 = vsel %vm1024_vm7, %v4020_v54, %v4022_v10  ;;  %v4030_v7 = vsel %vm1024_vm7, %v4022_v10, %v4024_v42  ;;  %v9859_v54 = vld [vmem:[%s14143_s2 + $0x18] sm:$0x1] }
 0x397   : > { %9837 = vmatmul.mubr.msk.bf16.vlgmr.msra.gmra.mxu0 %vm576_vm12, %v9835_v30  ;;  %9842 = vmatprep.subr.msk.bf16.mxu0 %vm580_vm0, %v4030_v7  ;;  %v4037_v8 = vsel %vm580_vm0, %v4029_v35, 0 }
 0x398   : > { %4063 = vmatpush1.bf16.msra.mxu0 %v4037_v8  ;;  %4080 = vmatprep.mubr.bf16.mxu0 %v14146_v58 }
 0x399   : > { %v4193_v11 = vpop.permute.xlu1 %4192  ;;  %v4026_v44 = vpop.permute.xlu0 %4025 }
 0x39a   : > { %v4031_v36 = vsel %vm1024_vm7, %v4024_v42, %v4026_v44  ;;  %v4032_v50 = vsel %vm1024_vm7, %v4026_v44, %v11854_v34  ;;  %v4199_v31 = vsel %vm1157_vm6, %v4193_v11, %v11840_v48 }
 0x39b   : > { %9839 = vmatmul.mubr.msk.bf16.vlgmr.msra.gmra.mxu1 %vm576_vm12, %v9835_v30  ;;  %9844 = vmatprep.subr.msk.bf16.mxu1 %vm580_vm0, %v4032_v50  ;;  %v4043_v43 = vsel %vm580_vm0, %v4031_v36, 0  ;;  %v9865_v50 = vld [vmem:[%s14143_s2 + $0x19] sm:$0x1] }
 0x39c   : > { %4104 = vmatpush1.bf16.msra.mxu1 %v4043_v43  ;;  %4121 = vmatprep.mubr.bf16.mxu1 %v14146_v58 }
 0x39d   : > { %v4354_v5 = vpop.permute.xlu1 %4353  ;;  %9850 = vmatprep.subr.msk.bf16.mxu1 %vm580_vm0, %v4199_v31  ;;  %v4187_v34 = vpop.permute.xlu0 %4186 }
 0x39e   : > { %v4196_v20 = vsel %vm1157_vm6, %v4187_v34, %v4189_v17 }
 0x39f   : > { %9843 = vmatmul.mubr.msk.bf16.vlgmr.msra.gmra.mxu0 %vm576_vm12, %v9841_v15  ;;  %v4204_v21 = vsel %vm580_vm0, %v4196_v20, 0 }
 0x3a0   : > { %4247 = vmatprep.mubr.bf16.mxu0 %v14146_v58 }
 0x3a1   : > { %v4358_v22 = vpop.permute.xlu1 %4357  ;;  %v4191_v1 = vpop.permute.xlu0 %4190 }
 0x3a2   : > { %v4198_v48 = vsel %vm1157_vm6, %v4191_v1, %v4193_v11  ;;  %v4197_v45 = vsel %vm1157_vm6, %v4189_v17, %v4191_v1 }
 0x3a3   : > { %9845 = vmatmul.mubr.msk.bf16.vlgmr.msra.gmra.mxu1 %vm576_vm12, %v9841_v15  ;;  %9848 = vmatprep.subr.msk.bf16.mxu0 %vm580_vm0, %v4197_v45  ;;  %v4210_v13 = vsel %vm580_vm0, %v4198_v48, 0 }
 0x3a4   : > { %4230 = vmatpush1.bf16.msra.mxu0 %v4204_v21  ;;  %4271 = vmatpush1.bf16.msra.mxu1 %v4210_v13 }
 0x3a5   : > { %v4523_v46 = vpop.permute.xlu1 %4522  ;;  %v4356_v52 = vpop.permute.xlu0 %4355  ;;  %4288 = vmatprep.mubr.bf16.mxu1 %v14146_v58 }
 0x3a6   : > { %v4363_v41 = vsel %vm988_vm5, %v4354_v5, %v4356_v52  ;;  %v4364_v38 = vsel %vm988_vm5, %v4356_v52, %v4358_v22 }
 0x3a7   : > { %9849 = vmatmul.mubr.msk.bf16.vlgmr.msra.gmra.mxu0 %vm576_vm12, %v9847_v55  ;;  %9854 = vmatprep.subr.msk.bf16.mxu0 %vm580_vm0, %v4364_v38  ;;  %v4371_v24 = vsel %vm580_vm0, %v4363_v41, 0 }
 0x3a8   : > { %4397 = vmatpush1.bf16.msra.mxu0 %v4371_v24  ;;  %4414 = vmatprep.mubr.bf16.mxu0 %v14146_v58 }
 0x3a9   : > { %v4527_v60 = vpop.permute.xlu1 %4526  ;;  %v4360_v49 = vpop.permute.xlu0 %4359 }
 0x3aa   : > { %v4365_v26 = vsel %vm988_vm5, %v4358_v22, %v4360_v49  ;;  %v4366_v40 = vsel %vm988_vm5, %v4360_v49, %v11861_v18  ;;  %v4533_v59 = vsel %vm819_vm4, %v4527_v60, %v11856_v23 }
 0x3ab   : > { %9851 = vmatmul.mubr.msk.bf16.vlgmr.msra.gmra.mxu1 %vm576_vm12, %v9847_v55  ;;  %9856 = vmatprep.subr.msk.bf16.mxu1 %vm580_vm0, %v4366_v40  ;;  %v4377_v28 = vsel %vm580_vm0, %v4365_v26, 0  ;;  %v9871_v26 = vld [vmem:[%s14143_s2 + $0x1a] sm:$0x1] }
 0x3ac   : > { %4438 = vmatpush1.bf16.msra.mxu1 %v4377_v28  ;;  %4455 = vmatprep.mubr.bf16.mxu1 %v14146_v58 }
 0x3ad   : > { %v4688_v61 = vpop.permute.xlu1 %4687  ;;  %9862 = vmatprep.subr.msk.bf16.mxu1 %vm580_vm0, %v4533_v59  ;;  %v4521_v18 = vpop.permute.xlu0 %4520 }
 0x3ae   : > { %v4530_v16 = vsel %vm819_vm4, %v4521_v18, %v4523_v46 }
 0x3af   : > { %9855 = vmatmul.mubr.msk.bf16.vlgmr.msra.gmra.mxu0 %vm576_vm12, %v9853_v47  ;;  %v4538_v32 = vsel %vm580_vm0, %v4530_v16, 0 }
 0x3b0   : > { %v627_v56 = vpop.f32.mrf.mxu0  ;;  %4581 = vmatprep.mubr.bf16.mxu0 %v14146_v58 }
 0x3b1   : > { %v4692_v14 = vpop.permute.xlu1 %4691  ;;  %v4525_v57 = vpop.permute.xlu0 %4524 }
 0x3b2   : > { %v629_v23 = vpop.f32.mrf.mxu0  ;;  %v4532_v12 = vsel %vm819_vm4, %v4525_v57, %v4527_v60  ;;  %v4531_v63 = vsel %vm819_vm4, %v4523_v46, %v4525_v57 }
 0x3b3   : > { %9857 = vmatmul.mubr.msk.bf16.vlgmr.msra.gmra.mxu1 %vm576_vm12, %v9853_v47  ;;  %9860 = vmatprep.subr.msk.bf16.mxu0 %vm580_vm0, %v4531_v63  ;;  %v4544_v2 = vsel %vm580_vm0, %v4532_v12, 0 }
 0x3b4   : > { %v631_v27 = vpop.f32.mrf.mxu0  ;;  %v668_v29 = vpop.f32.mrf.mxu1  ;;  %4564 = vmatpush1.bf16.msra.mxu0 %v4538_v32  ;;  %4605 = vmatpush1.bf16.msra.mxu1 %v4544_v2 }
 0x3b5   : > { %v4690_v53 = vpop.permute.xlu0 %4689  ;;  %4622 = vmatprep.mubr.bf16.mxu1 %v14146_v58  ;;  %v4696_v0 = vpop.permute.xlu1 %4695 }
 0x3b6   : > { %v632_v39 = vpop.f32.mrf.mxu0  ;;  %v670_v51 = vpop.f32.mrf.mxu1  ;;  %v4697_v37 = vsel %vm535_vm2, %v4688_v61, %v4690_v53  ;;  %v4698_v42 = vsel %vm535_vm2, %v4690_v53, %v4692_v14 }
 0x3b7   : > { %9861 = vmatmul.mubr.msk.bf16.vlgmr.msra.gmra.mxu0 %vm576_vm12, %v9859_v54  ;;  %9866 = vmatprep.subr.msk.bf16.mxu0 %vm580_vm0, %v4698_v42  ;;  %v4705_v9 = vsel %vm580_vm0, %v4697_v37, 0 }
 0x3b8   : > { %v672_v62 = vpop.f32.mrf.mxu1  ;;  %v744_v25 = vpop.f32.mrf.mxu0  ;;  %4731 = vmatpush1.bf16.msra.mxu0 %v4705_v9  ;;  %4748 = vmatprep.mubr.bf16.mxu0 %v14146_v58 }
 0x3b9   : > { %v745_v3 = vadd.f32 %v744_v25, %v627_v56  ;;  %v4694_v30 = vpop.permute.xlu0 %4693  ;;  %v4857_v43 = vpop.permute.xlu1 %4856 }
 0x3ba   : > { %v673_v17 = vpop.f32.mrf.mxu1  ;;  %v746_v10 = vpop.f32.mrf.mxu0  ;;  %v4699_v35 = vsel %vm535_vm2, %v4692_v14, %v4694_v30  ;;  %v4700_v7 = vsel %vm535_vm2, %v4694_v30, %v4696_v0 }
 0x3bb   : > { %v747_v8 = vadd.f32 %v746_v10, %v629_v23  ;;  %9863 = vmatmul.mubr.msk.bf16.vlgmr.msra.gmra.mxu1 %vm576_vm12, %v9859_v54  ;;  %9868 = vmatprep.subr.msk.bf16.mxu1 %vm580_vm0, %v4700_v7  ;;  %v4711_v11 = vsel %vm580_vm0, %v4699_v35, 0 }
 0x3bc   : > { %v748_v44 = vpop.f32.mrf.mxu0  ;;  %v785_v36 = vpop.f32.mrf.mxu1  ;;  %4772 = vmatpush1.bf16.msra.mxu1 %v4711_v11  ;;  %4789 = vmatprep.mubr.bf16.mxu1 %v14146_v58 }
 0x3bd   : > { %v786_v31 = vadd.f32 %v785_v36, %v668_v29  ;;  %v4855_v15 = vpop.permute.xlu0 %4854  ;;  %v4861_v52 = vpop.permute.xlu1 %4860 }
 0x3be   : > { %v749_v5 = vpop.f32.mrf.mxu0  ;;  %v787_v34 = vpop.f32.mrf.mxu1  ;;  %v4864_v22 = vsel %vm488_vm3, %v4855_v15, %v4857_v43 }
 0x3bf   : > { %v788_v20 = vadd.f32 %v787_v34, %v670_v51  ;;  %9867 = vmatmul.mubr.msk.bf16.vlgmr.msra.gmra.mxu0 %vm576_vm12, %v9865_v50  ;;  %v4872_v41 = vsel %vm580_vm0, %v4864_v22, 0 }
 0x3c0   : > { %v789_v1 = vpop.f32.mrf.mxu1  ;;  %v909_v48 = vpop.f32.mrf.mxu0  ;;  %4915 = vmatprep.mubr.bf16.mxu0 %v14146_v58 }
 0x3c1   : > { %v957_v45 = vadd.f32 %v909_v48, %v745_v3  ;;  %v4859_v21 = vpop.permute.xlu0 %4858 }
 0x3c2   : > { %v790_v13 = vpop.f32.mrf.mxu1  ;;  %v911_v55 = vpop.f32.mrf.mxu0  ;;  %v4865_v46 = vsel %vm488_vm3, %v4857_v43, %v4859_v21  ;;  %v4866_v24 = vsel %vm488_vm3, %v4859_v21, %v4861_v52 }
 0x3c3   : > { %v958_v38 = vadd.f32 %v911_v55, %v747_v8  ;;  %9869 = vmatmul.mubr.msk.bf16.vlgmr.msra.gmra.mxu1 %vm576_vm12, %v9865_v50  ;;  %9872 = vmatprep.subr.msk.bf16.mxu0 %vm580_vm0, %v4865_v46  ;;  %v4878_v16 = vsel %vm580_vm0, %v4866_v24, 0 }
 0x3c4   : > { %v913_v60 = vpop.f32.mrf.mxu0  ;;  %v950_v49 = vpop.f32.mrf.mxu1  ;;  %4898 = vmatpush1.bf16.msra.mxu0 %v4872_v41  ;;  %4956 = vmatprep.mubr.bf16.mxu1 %v14146_v58 }
 0x3c5   : > { %v959_v40 = vadd.f32 %v950_v49, %v786_v31  ;;  %v4863_v28 = vpop.permute.xlu0 %4862 }
 0x3c6   : > { %v914_v59 = vpop.f32.mrf.mxu0  ;;  %v952_v47 = vpop.f32.mrf.mxu1  ;;  %v4867_v61 = vsel %vm488_vm3, %v4861_v52, %v4863_v28 }
 0x3c7   : > { %v960_v18 = vadd.f32 %v952_v47, %v788_v20  ;;  %9873 = vmatmul.mubr.msk.bf16.vlgmr.msra.gmra.mxu0 %vm576_vm12, %v9871_v26  ;;  %9874 = vmatprep.subr.msk.bf16.mxu1 %vm580_vm0, %v4867_v61 }
 0x3c8   : > { %v954_v56 = vpop.f32.mrf.mxu1  ;;  %v1078_v14 = vpop.f32.mrf.mxu0  ;;  %4939 = vmatpush1.bf16.msra.mxu1 %v4878_v16  ;;  %5059 = vmatprep.mubr.bf16.mxu0 %v14146_v58 }
 0x3c9   : > { %v1126_v57 = vadd.f32 %v1078_v14, %v957_v45 }
 0x3ca   : > { %v955_v23 = vpop.f32.mrf.mxu1  ;;  %v1080_v12 = vpop.f32.mrf.mxu0 }
 0x3cb   : > { %v1127_v63 = vadd.f32 %v1080_v12, %v958_v38  ;;  %9875 = vmatmul.mubr.msk.bf16.vlgmr.msra.gmra.mxu1 %vm576_vm12, %v9871_v26 }
 0x3cc   : > { %v1082_v32 = vpop.f32.mrf.mxu0  ;;  %v1119_v2 = vpop.f32.mrf.mxu1  ;;  %5100 = vmatprep.mubr.bf16.mxu1 %v14146_v58 }
 0x3cd   : > { %v1128_v27 = vadd.f32 %v1119_v2, %v959_v40 }
 0x3ce   : > { %v1083_v29 = vpop.f32.mrf.mxu0  ;;  %v1121_v54 = vpop.f32.mrf.mxu1 }
 0x3cf   : > { %v1129_v53 = vadd.f32 %v1121_v54, %v960_v18 }
 0x3d0   : > { %v1123_v39 = vpop.f32.mrf.mxu1  ;;  %v1247_v51 = vpop.f32.mrf.mxu0 }
 0x3d1   : > { %v1295_v37 = vadd.f32 %v1247_v51, %v1126_v57 }
 0x3d2   : > { %v1124_v42 = vpop.f32.mrf.mxu1  ;;  %v1249_v0 = vpop.f32.mrf.mxu0 }
 0x3d3   : > { %v1296_v9 = vadd.f32 %v1249_v0, %v1127_v63 }
 0x3d4   : > { %v1251_v62 = vpop.f32.mrf.mxu0  ;;  %v1288_v25 = vpop.f32.mrf.mxu1 }
 0x3d5   : > { %v1297_v3 = vadd.f32 %v1288_v25, %v1128_v27 }
 0x3d6   : > { %v1252_v30 = vpop.f32.mrf.mxu0  ;;  %v1290_v17 = vpop.f32.mrf.mxu1 }
 0x3d7   : > { %v1298_v10 = vadd.f32 %v1290_v17, %v1129_v53 }
 0x3d8   : > { %v1292_v35 = vpop.f32.mrf.mxu1  ;;  %v1416_v7 = vpop.f32.mrf.mxu0 }
 0x3d9   : > { %v1464_v8 = vadd.f32 %v1416_v7, %v1295_v37 }
 0x3da   : > { %v1293_v11 = vpop.f32.mrf.mxu1  ;;  %v1418_v44 = vpop.f32.mrf.mxu0 }
 0x3db   : > { %v1465_v36 = vadd.f32 %v1418_v44, %v1296_v9 }
 0x3dc   : > { %v1420_v50 = vpop.f32.mrf.mxu0  ;;  %v1457_v43 = vpop.f32.mrf.mxu1 }
 0x3dd   : > { %v1466_v31 = vadd.f32 %v1457_v43, %v1297_v3 }
 0x3de   : > { %v1421_v15 = vpop.f32.mrf.mxu0  ;;  %v1459_v5 = vpop.f32.mrf.mxu1 }
 0x3df   : > { %v1467_v34 = vadd.f32 %v1459_v5, %v1298_v10 }
 0x3e0   : > { %v1461_v20 = vpop.f32.mrf.mxu1  ;;  %v1585_v22 = vpop.f32.mrf.mxu0 }
 0x3e1   : > { %v1633_v1 = vadd.f32 %v1585_v22, %v1464_v8 }
 0x3e2   : > { %v1462_v48 = vpop.f32.mrf.mxu1  ;;  %v1587_v45 = vpop.f32.mrf.mxu0 }
 0x3e3   : > { %v1634_v21 = vadd.f32 %v1587_v45, %v1465_v36 }
 0x3e4   : > { %v1589_v13 = vpop.f32.mrf.mxu0  ;;  %v1626_v55 = vpop.f32.mrf.mxu1 }
 0x3e5   : > { %v1635_v46 = vadd.f32 %v1626_v55, %v1466_v31 }
 0x3e6   : > { %v1590_v52 = vpop.f32.mrf.mxu0  ;;  %v1628_v41 = vpop.f32.mrf.mxu1 }
 0x3e7   : > { %v1636_v38 = vadd.f32 %v1628_v41, %v1467_v34 }
 0x3e8   : > { %v1630_v24 = vpop.f32.mrf.mxu1  ;;  %v1754_v60 = vpop.f32.mrf.mxu0 }
 0x3e9   : > { %v1802_v49 = vadd.f32 %v1754_v60, %v1633_v1 }
 0x3ea   : > { %v1631_v26 = vpop.f32.mrf.mxu1  ;;  %v1756_v40 = vpop.f32.mrf.mxu0 }
 0x3eb   : > { %v1803_v28 = vadd.f32 %v1756_v40, %v1634_v21 }
 0x3ec   : > { %v1758_v59 = vpop.f32.mrf.mxu0  ;;  %v1795_v47 = vpop.f32.mrf.mxu1 }
 0x3ed   : > { %v1804_v61 = vadd.f32 %v1795_v47, %v1635_v46 }
 0x3ee   : > { %v1759_v18 = vpop.f32.mrf.mxu0  ;;  %v1797_v16 = vpop.f32.mrf.mxu1 }
 0x3ef   : > { %v1805_v56 = vadd.f32 %v1797_v16, %v1636_v38 }
 0x3f0   : > { %v1799_v14 = vpop.f32.mrf.mxu1  ;;  %v1923_v57 = vpop.f32.mrf.mxu0 }
 0x3f1   : > { %v1971_v23 = vadd.f32 %v1923_v57, %v1802_v49 }
 0x3f2   : > { %v1800_v12 = vpop.f32.mrf.mxu1  ;;  %v1925_v63 = vpop.f32.mrf.mxu0 }
 0x3f3   : > { %v1972_v32 = vadd.f32 %v1925_v63, %v1803_v28 }
 0x3f4   : > { %v1927_v2 = vpop.f32.mrf.mxu0  ;;  %v1964_v27 = vpop.f32.mrf.mxu1 }
 0x3f5   : > { %v1973_v29 = vadd.f32 %v1964_v27, %v1804_v61 }
 0x3f6   : > { %v1928_v54 = vpop.f32.mrf.mxu0  ;;  %v1966_v53 = vpop.f32.mrf.mxu1 }
 0x3f7   : > { %v1974_v39 = vadd.f32 %v1966_v53, %v1805_v56 }
 0x3f8   : > { %v1968_v51 = vpop.f32.mrf.mxu1  ;;  %v2092_v37 = vpop.f32.mrf.mxu0 }
 0x3f9   : > { %v2140_v42 = vadd.f32 %v2092_v37, %v1971_v23 }
 0x3fa   : > { %v1969_v0 = vpop.f32.mrf.mxu1  ;;  %v2094_v9 = vpop.f32.mrf.mxu0 }
 0x3fb   : > { %v2141_v62 = vadd.f32 %v2094_v9, %v1972_v32 }
 0x3fc   : > { %v2096_v25 = vpop.f32.mrf.mxu0  ;;  %v2133_v3 = vpop.f32.mrf.mxu1 }
 0x3fd   : > { %v2142_v30 = vadd.f32 %v2133_v3, %v1973_v29 }
 0x3fe   : > { %v2097_v17 = vpop.f32.mrf.mxu0  ;;  %v2135_v10 = vpop.f32.mrf.mxu1 }
 0x3ff   : > { %v2143_v35 = vadd.f32 %v2135_v10, %v1974_v39 }
 0x400   : > { %v2137_v7 = vpop.f32.mrf.mxu1  ;;  %v2261_v8 = vpop.f32.mrf.mxu0 }
 0x401   : > { %v2309_v11 = vadd.f32 %v2261_v8, %v2140_v42 }
 0x402   : > { %v2138_v44 = vpop.f32.mrf.mxu1  ;;  %v2263_v36 = vpop.f32.mrf.mxu0 }
 0x403   : > { %v2310_v50 = vadd.f32 %v2263_v36, %v2141_v62 }
 0x404   : > { %v2265_v43 = vpop.f32.mrf.mxu0  ;;  %v2302_v31 = vpop.f32.mrf.mxu1 }
 0x405   : > { %v2311_v15 = vadd.f32 %v2302_v31, %v2142_v30 }
 0x406   : > { %v2266_v5 = vpop.f32.mrf.mxu0  ;;  %v2304_v34 = vpop.f32.mrf.mxu1 }
 0x407   : > { %v2312_v20 = vadd.f32 %v2304_v34, %v2143_v35 }
 0x408   : > { %v2306_v22 = vpop.f32.mrf.mxu1  ;;  %v2430_v1 = vpop.f32.mrf.mxu0 }
 0x409   : > { %v2478_v48 = vadd.f32 %v2430_v1, %v2309_v11 }
 0x40a   : > { %v2307_v45 = vpop.f32.mrf.mxu1  ;;  %v2432_v21 = vpop.f32.mrf.mxu0 }
 0x40b   : > { %v2479_v13 = vadd.f32 %v2432_v21, %v2310_v50 }
 0x40c   : > { %v2434_v55 = vpop.f32.mrf.mxu0  ;;  %v2471_v46 = vpop.f32.mrf.mxu1 }
 0x40d   : > { %v2480_v52 = vadd.f32 %v2471_v46, %v2311_v15 }
 0x40e   : > { %v2435_v41 = vpop.f32.mrf.mxu0  ;;  %v2473_v38 = vpop.f32.mrf.mxu1 }
 0x40f   : > { %v2481_v24 = vadd.f32 %v2473_v38, %v2312_v20 }
 0x410   : > { %v2599_v60 = vpop.f32.mrf.mxu0  ;;  %v2475_v49 = vpop.f32.mrf.mxu1 }
 0x411   : > { %v2647_v26 = vadd.f32 %v2599_v60, %v2478_v48 }
 0x412   : > { %v2601_v40 = vpop.f32.mrf.mxu0  ;;  %v2476_v28 = vpop.f32.mrf.mxu1 }
 0x413   : > { %v2648_v59 = vadd.f32 %v2601_v40, %v2479_v13 }
 0x414   : > { %v2603_v47 = vpop.f32.mrf.mxu0 }
 0x416   : > { %v2604_v61 = vpop.f32.mrf.mxu0 }
 0x418   : > { %v2733_v18 = vpop.f32.mrf.mxu0 }
 0x419   : > { %v2781_v16 = vadd.f32 %v2733_v18, %v2647_v26 }
 0x41a   : > { %v2735_v56 = vpop.f32.mrf.mxu0 }
 0x41b   : > { %v2782_v14 = vadd.f32 %v2735_v56, %v2648_v59  ;;  %v2640_v57 = vpop.f32.mrf.mxu1 }
 0x41c   : > { %v2649_v23 = vadd.f32 %v2640_v57, %v2480_v52  ;;  %v2737_v12 = vpop.f32.mrf.mxu0 }
 0x41d   : > { %v2642_v63 = vpop.f32.mrf.mxu1 }
 0x41e   : > { %v2650_v32 = vadd.f32 %v2642_v63, %v2481_v24  ;;  %v2738_v2 = vpop.f32.mrf.mxu0 }
 0x41f   : > { %v2644_v27 = vpop.f32.mrf.mxu1 }
 0x421   : > { %v2645_v29 = vpop.f32.mrf.mxu1 }
 0x423   : > { %v2774_v54 = vpop.f32.mrf.mxu1  ;;  %v2907_v53 = vpop.f32.mrf.mxu0 }
 0x424   : > { %v2783_v39 = vadd.f32 %v2774_v54, %v2649_v23  ;;  %v2955_v51 = vadd.f32 %v2907_v53, %v2781_v16 }
 0x425   : > { %v2776_v37 = vpop.f32.mrf.mxu1  ;;  %v2909_v42 = vpop.f32.mrf.mxu0 }
 0x426   : > { %v2784_v0 = vadd.f32 %v2776_v37, %v2650_v32  ;;  %v2956_v9 = vadd.f32 %v2909_v42, %v2782_v14 }
 0x427   : > { %v2778_v62 = vpop.f32.mrf.mxu1  ;;  %v2911_v25 = vpop.f32.mrf.mxu0 }
 0x429   : > { %v2779_v3 = vpop.f32.mrf.mxu1  ;;  %v2912_v30 = vpop.f32.mrf.mxu0 }
 0x42b   : > { %v2948_v17 = vpop.f32.mrf.mxu1  ;;  %v3076_v10 = vpop.f32.mrf.mxu0 }
 0x42c   : > { %v2957_v35 = vadd.f32 %v2948_v17, %v2783_v39  ;;  %v3124_v7 = vadd.f32 %v3076_v10, %v2955_v51 }
 0x42d   : > { %v2950_v8 = vpop.f32.mrf.mxu1  ;;  %v3078_v11 = vpop.f32.mrf.mxu0 }
 0x42e   : > { %v2958_v44 = vadd.f32 %v2950_v8, %v2784_v0  ;;  %v3125_v36 = vadd.f32 %v3078_v11, %v2956_v9 }
 0x42f   : > { %v2952_v50 = vpop.f32.mrf.mxu1  ;;  %v3080_v43 = vpop.f32.mrf.mxu0 }
 0x431   : > { %v2953_v31 = vpop.f32.mrf.mxu1  ;;  %v3081_v15 = vpop.f32.mrf.mxu0 }
 0x433   : > { %v3117_v5 = vpop.f32.mrf.mxu1  ;;  %v3245_v34 = vpop.f32.mrf.mxu0 }
 0x434   : > { %v12083_v20 = vadd.f32 %v3117_v5, %v2957_v35  ;;  %v12085_v22 = vadd.f32 %v3245_v34, %v3124_v7 }
 0x435   : > { %v3119_v1 = vpop.f32.mrf.mxu1  ;;  %v3247_v48 = vpop.f32.mrf.mxu0 }
 0x436   : > { %v12087_v45 = vadd.f32 %v3119_v1, %v2958_v44  ;;  %v12089_v21 = vadd.f32 %v3247_v48, %v3125_v36 }
 0x437   : > { %v3121_v13 = vpop.f32.mrf.mxu1  ;;  %v3249_v55 = vpop.f32.mrf.mxu0 }
 0x439   : > { %v3122_v46 = vpop.f32.mrf.mxu1  ;;  %v3250_v52 = vpop.f32.mrf.mxu0 }
 0x43b   : > { %v3286_v41 = vpop.f32.mrf.mxu1  ;;  %v3414_v38 = vpop.f32.mrf.mxu0 }
 0x43d   : > { %v12091_v24 = vpop.f32.mrf.mxu1  ;;  %v3416_v60 = vpop.f32.mrf.mxu0 }
 0x43f   : > { %v3290_v49 = vpop.f32.mrf.mxu1  ;;  %v3418_v26 = vpop.f32.mrf.mxu0 }
 0x441   : > { %v3291_v40 = vpop.f32.mrf.mxu1  ;;  %v3419_v28 = vpop.f32.mrf.mxu0 }
 0x442   : > { %v3462_v28 = vadd.f32 %v3414_v38, %v12085_v22 }
 0x443   : > { %v3455_v59 = vpop.f32.mrf.mxu1  ;;  %v3581_v47 = vpop.f32.mrf.mxu0 }
 0x445   : > { %v3457_v61 = vpop.f32.mrf.mxu1  ;;  %v3583_v18 = vpop.f32.mrf.mxu0 }
 0x447   : > { %v3459_v16 = vpop.f32.mrf.mxu1  ;;  %v3585_v56 = vpop.f32.mrf.mxu0 }
 0x449   : > { %v3460_v14 = vpop.f32.mrf.mxu1  ;;  %v3586_v57 = vpop.f32.mrf.mxu0 }
 0x44a   : > { %v3295_v14 = vadd.f32 %v3286_v41, %v12083_v20  ;;  %v3463_v57 = vadd.f32 %v3416_v60, %v12089_v21 }
 0x44b   : > { %v3622_v23 = vpop.f32.mrf.mxu1  ;;  %v3748_v12 = vpop.f32.mrf.mxu0 }
 0x44d   : > { %v3624_v63 = vpop.f32.mrf.mxu1  ;;  %v3750_v32 = vpop.f32.mrf.mxu0 }
 0x44f   : > { %v3626_v2 = vpop.f32.mrf.mxu1  ;;  %v3752_v27 = vpop.f32.mrf.mxu0 }
 0x450   : > { %v3629_v2 = vadd.f32 %v3581_v47, %v3462_v28 }
 0x451   : > { %v3627_v29 = vpop.f32.mrf.mxu1  ;;  %v3753_v54 = vpop.f32.mrf.mxu0 }
 0x452   : > { %v3296_v54 = vadd.f32 %v12091_v24, %v12087_v45 }
 0x453   : > { %v3789_v53 = vpop.f32.mrf.mxu1 }
 0x455   : > { %v3791_v39 = vpop.f32.mrf.mxu1 }
 0x457   : > { %v3793_v51 = vpop.f32.mrf.mxu1  ;;  %v3915_v37 = vpop.f32.mrf.mxu0 }
 0x458   : > { %v3464_v51 = vadd.f32 %v3455_v59, %v3295_v14 }
 0x459   : > { %v3794_v42 = vpop.f32.mrf.mxu1  ;;  %v3917_v0 = vpop.f32.mrf.mxu0 }
 0x45a   : > { %v3630_v42 = vadd.f32 %v3583_v18, %v3463_v57 }
 0x45b   : > { %v3919_v9 = vpop.f32.mrf.mxu0  ;;  %v3956_v62 = vpop.f32.mrf.mxu1 }
 0x45c   : > { %v3796_v9 = vadd.f32 %v3748_v12, %v3629_v2  ;;  %v3797_v22 = vadd.f32 %v3750_v32, %v3630_v42 }
 0x45d   : > { %v3920_v25 = vpop.f32.mrf.mxu0  ;;  %v3958_v3 = vpop.f32.mrf.mxu1 }
 0x45e   : > { %v3963_v38 = vadd.f32 %v3915_v37, %v3796_v9  ;;  %v3964_v21 = vadd.f32 %v3917_v0, %v3797_v22 }
 0x45f   : > { %v3960_v30 = vpop.f32.mrf.mxu1  ;;  %v4082_v17 = vpop.f32.mrf.mxu0 }
 0x460   : > { %v4130_v60 = vadd.f32 %v4082_v17, %v3963_v38 }
 0x461   : > { %v3961_v10 = vpop.f32.mrf.mxu1  ;;  %v4084_v35 = vpop.f32.mrf.mxu0 }
 0x462   : > { %v3465_v10 = vadd.f32 %v3457_v61, %v3296_v54  ;;  %v4131_v45 = vadd.f32 %v4084_v35, %v3964_v21 }
 0x463   : > { %v4086_v7 = vpop.f32.mrf.mxu0  ;;  %v4123_v8 = vpop.f32.mrf.mxu1 }
 0x464   : > { %v3631_v7 = vadd.f32 %v3622_v23, %v3464_v51  ;;  %v3632_v20 = vadd.f32 %v3624_v63, %v3465_v10 }
 0x465   : > { %v4087_v11 = vpop.f32.mrf.mxu0  ;;  %v4125_v44 = vpop.f32.mrf.mxu1 }
 0x466   : > { %v3798_v41 = vadd.f32 %v3789_v53, %v3631_v7 }
 0x467   : > { %v4127_v36 = vpop.f32.mrf.mxu1  ;;  %v4249_v50 = vpop.f32.mrf.mxu0 }
 0x468   : > { %v4297_v24 = vadd.f32 %v4249_v50, %v4130_v60 }
 0x469   : > { %v4128_v43 = vpop.f32.mrf.mxu1  ;;  %v4251_v31 = vpop.f32.mrf.mxu0 }
 0x46a   : > { %v4298_v61 = vadd.f32 %v4251_v31, %v4131_v45 }
 0x46b   : > { %v4253_v15 = vpop.f32.mrf.mxu0  ;;  %v4290_v5 = vpop.f32.mrf.mxu1 }
 0x46c   : > { %v3799_v15 = vadd.f32 %v3791_v39, %v3632_v20 }
 0x46d   : > { %v4254_v34 = vpop.f32.mrf.mxu0  ;;  %v4292_v1 = vpop.f32.mrf.mxu1 }
 0x46e   : > { %v3965_v34 = vadd.f32 %v3956_v62, %v3798_v41  ;;  %v3966_v12 = vadd.f32 %v3958_v3, %v3799_v15 }
 0x46f   : > { %v4294_v48 = vpop.f32.mrf.mxu1  ;;  %v4416_v13 = vpop.f32.mrf.mxu0 }
 0x470   : > { %v4132_v48 = vadd.f32 %v4123_v8, %v3965_v34  ;;  %v4464_v23 = vadd.f32 %v4416_v13, %v4297_v24 }
 0x471   : > { %v4295_v55 = vpop.f32.mrf.mxu1  ;;  %v4418_v46 = vpop.f32.mrf.mxu0 }
 0x472   : > { %v4133_v55 = vadd.f32 %v4125_v44, %v3966_v12  ;;  %v4465_v63 = vadd.f32 %v4418_v46, %v4298_v61 }
 0x473   : > { %v4420_v52 = vpop.f32.mrf.mxu0  ;;  %v4457_v49 = vpop.f32.mrf.mxu1 }
 0x474   : > { %v4299_v52 = vadd.f32 %v4290_v5, %v4132_v48  ;;  %v9880_v48 = vld [vmem:[%s13880_s6 + $0x4] sm:$0xf] }
 0x475   : > { %v4421_v26 = vpop.f32.mrf.mxu0  ;;  %v4459_v40 = vpop.f32.mrf.mxu1  ;;  %v5198_v61 = vrot.slane %v9880_v48, %v10408_v6 }
 0x476   : > { %v4300_v26 = vadd.f32 %v4292_v1, %v4133_v55  ;;  %v4466_v28 = vadd.f32 %v4457_v49, %v4299_v52  ;;  %v5144_v55 = vld [vmem:[%s13880_s6] sm:$0xf] }
 0x477   : > { %v4461_v16 = vpop.f32.mrf.mxu1  ;;  %v4583_v56 = vpop.f32.mrf.mxu0  ;;  %v5149_v52 = vrot.slane %v5144_v55, %v10404_v4 }
 0x478   : > { %v4631_v53 = vadd.f32 %v4583_v56, %v4464_v23  ;;  %v4467_v16 = vadd.f32 %v4459_v40, %v4300_v26  ;;  %v5194_v23 = vrot.slane %v9880_v48, %v10404_v4 }
 0x479   : > { %v4462_v27 = vpop.f32.mrf.mxu1  ;;  %v4585_v29 = vpop.f32.mrf.mxu0 }
 0x47a   : > { %v4632_v39 = vadd.f32 %v4585_v29, %v4465_v63  ;;  %v5153_v63 = vrot.slane %v5144_v55, %v10408_v6 }
 0x47b   : > { %v4587_v25 = vpop.f32.mrf.mxu0  ;;  %v4624_v30 = vpop.f32.mrf.mxu1 }
 0x47c   : > { %v4633_v14 = vadd.f32 %v4624_v30, %v4466_v28 }
 0x47d   : > { %v4588_v11 = vpop.f32.mrf.mxu0  ;;  %v4626_v36 = vpop.f32.mrf.mxu1 }
 0x47e   : > { %v4634_v57 = vadd.f32 %v4626_v36, %v4467_v16 }
 0x47f   : > { %v4628_v47 = vpop.f32.mrf.mxu1  ;;  %v4750_v43 = vpop.f32.mrf.mxu0 }
 0x480   : > { %v4798_v62 = vadd.f32 %v4750_v43, %v4631_v53  ;;  %v5157_v53 = vrot.slane %v5144_v55, %v14165_v33 }
 0x481   : > { %v4629_v59 = vpop.f32.mrf.mxu1  ;;  %v4752_v18 = vpop.f32.mrf.mxu0 }
 0x482   : > { %v4799_v3 = vadd.f32 %v4752_v18, %v4632_v39 }
 0x483   : > { %v4754_v32 = vpop.f32.mrf.mxu0  ;;  %v4791_v37 = vpop.f32.mrf.mxu1 }
 0x484   : > { %v4800_v2 = vadd.f32 %v4791_v37, %v4633_v14  ;;  %v5202_v32 = vrot.slane %v9880_v48, %v14165_v33  ;;  %v5206_v37 = vrot.slane %v9880_v48, %v14164_v19 }
 0x485   : > { %v4755_v0 = vpop.f32.mrf.mxu0  ;;  %v4793_v17 = vpop.f32.mrf.mxu1 }
 0x486   : > { %v4801_v56 = vadd.f32 %v4793_v17, %v4634_v57  ;;  %v5161_v0 = vrot.slane %v5144_v55, %v14164_v19  ;;  %v9890_v17 = vld [vmem:[%s13880_s6 + $0x8] sm:$0xf] }
 0x487   : > { %v4795_v35 = vpop.f32.mrf.mxu1  ;;  %v4917_v50 = vpop.f32.mrf.mxu0  ;;  %v5473_v26 = vrot.slane %v9890_v17, %v10404_v4  ;;  %v5477_v28 = vrot.slane %v9890_v17, %v10408_v6  ;;  %v5481_v39 = vrot.slane %v9890_v17, %v14165_v33 }
 0x488   : > { %v4965_v8 = vadd.f32 %v4917_v50, %v4798_v62  ;;  %v5485_v62 = vrot.slane %v9890_v17, %v14164_v19  ;;  %v9896_v35 = vld [vmem:[%s13880_s6 + $0xc] sm:$0xf] }
 0x489   : > { %v4796_v31 = vpop.f32.mrf.mxu1  ;;  %v4919_v13 = vpop.f32.mrf.mxu0  ;;  %v5639_v50 = vrot.slane %v9896_v35, %v10404_v4  ;;  %v5643_v16 = vrot.slane %v9896_v35, %v10408_v6  ;;  %v5647_v14 = vrot.slane %v9896_v35, %v14165_v33 }
 0x48a   : > { %v4966_v44 = vadd.f32 %v4919_v13, %v4799_v3  ;;  %v4969_v27 = vsel %vm14184_vm11, %v4965_v8, 0.0  ;;  %vm14188_vm11 = vmmov %vm14187_vm1  ;;  %v5651_v3 = vrot.slane %v9896_v35, %v14164_v19 }
 0x48b   : > { %v4921_v5 = vpop.f32.mrf.mxu0  ;;  %v4958_v46 = vpop.f32.mrf.mxu1 }
 0x48c   : > { %v4970_v1 = vsel %vm14185_vm13, %v4966_v44, 0.0  ;;  %v4967_v49 = vadd.f32 %v4958_v46, %v4800_v2  ;;  %vm14189_vm13 = vmmov %vm14187_vm1 }
 0x48d   : > { %v4971_v29 = vadd.f32 %v4970_v1, %v4969_v27  ;;  %v4922_v54 = vpop.f32.mrf.mxu0  ;;  %v4960_v51 = vpop.f32.mrf.mxu1  ;;  %v9914_v1 = vld [vmem:[%s13880_s6 + $0x18] sm:$0xf] }
 0x48e   : > { %v4972_v40 = vsel %vm14186_vm15, %v4967_v49, 0.0  ;;  %v4968_v42 = vadd.f32 %v4960_v51, %v4801_v56  ;;  %vm14190_vm15 = vmmov %vm14187_vm1  ;;  %v6145_v54 = vrot.slane %v9914_v1, %v14165_v33  ;;  %v6149_v51 = vrot.slane %v9914_v1, %v14164_v19 }
 0x48f   : > { %v4973_v9 = vadd.f32 %v4972_v40, %v4971_v29  ;;  %v4962_v25 = vpop.f32.mrf.mxu1  ;;  %v6141_v29 = vrot.slane %v9914_v1, %v10408_v6  ;;  %v9920_v40 = vld [vmem:[%s13880_s6 + $0x1c] sm:$0xf] }
 0x490   : > { %v4974_v30 = vsel %vm14187_vm1, %v4968_v42, 0.0  ;;  %v6311_v25 = vrot.slane %v9920_v40, %v14165_v33 }
 0x491   : > { %v4975_v10 = vadd.f32 %v4974_v30, %v4973_v9  ;;  %v4963_v7 = vpop.f32.mrf.mxu1  ;;  %v6307_v9 = vrot.slane %v9920_v40, %v10408_v6  ;;  %v6315_v30 = vrot.slane %v9920_v40, %v14164_v19 }
 0x493   : > { %4976 = vadd.xlane.f32.xlu1 %v4975_v10  ;;  %v9926_v10 = vld [vmem:[%s13880_s6 + $0x20] sm:$0xf] }
 0x494   : > { %v6469_v7 = vrot.slane %v9926_v10, %v10404_v4 }
 0x4a4   : > { %5209 = vrot.lane.b32.xlu1 %v5198_v61, %s14048_s21 }
 0x4a8   : > { %5211 = vrot.lane.b32.xlu1 %v5202_v32, %s14048_s21 }
 0x4ac   : > { %5162 = vrot.lane.b32.xlu1 %v5149_v52, %s14051_s19 }
 0x4b0   : > { %5166 = vrot.lane.b32.xlu1 %v5157_v53, %s14051_s19 }
 0x4b4   : > { %5486 = vrot.lane.b32.xlu1 %v5473_v26, %s14046_s17 }
 0x4b8   : > { %5490 = vrot.lane.b32.xlu1 %v5481_v39, %s14046_s17 }
 0x4bc   : > { %5652 = vrot.lane.b32.xlu1 %v5639_v50, %s14044_s15 }
 0x4c0   : > { %5656 = vrot.lane.b32.xlu1 %v5647_v14, %s14044_s15 }
 0x51c   : > { %v4977_v22 = vpop.xlane.xlu1 %4976 }
 0x51d   : > { %v4978_v38 = vmul.f32 0.001953125, %v4977_v22  ;;  %v6477_v22 = vrot.slane %v9926_v10, %v14165_v33 }
 0x51f   : > { %v12102_v11 = vsub.f32 %v4965_v8, %v4978_v38  ;;  %v12104_v36 = vsub.f32 %v4966_v44, %v4978_v38  ;;  %v12106_v20 = vsub.f32 %v4967_v49, %v4978_v38  ;;  %v12108_v41 = vsub.f32 %v4968_v42, %v4978_v38  ;;  %v9902_v8 = vld [vmem:[%s13880_s6 + $0x10] sm:$0xf]  ;;  %v9908_v44 = vld [vmem:[%s13880_s6 + $0x14] sm:$0xf] }
 0x520   : > { %v5805_v31 = vrot.slane %v9902_v8, %v10404_v4  ;;  %v5809_v13 = vrot.slane %v9902_v8, %v10408_v6  ;;  %v5813_v57 = vrot.slane %v9902_v8, %v14165_v33  ;;  %v5817_v2 = vrot.slane %v9902_v8, %v14164_v19 }
 0x521   : > { %v4983_v21 = vmul.f32 %v12102_v11, %v12102_v11  ;;  %v4984_v60 = vmul.f32 %v12104_v36, %v12104_v36  ;;  %v4985_v47 = vmul.f32 %v12106_v20, %v12106_v20  ;;  %v4986_v43 = vmul.f32 %v12108_v41, %v12108_v41 }
 0x522   : > { %5818 = vrot.lane.b32.xlu1 %v5805_v31, %s14043_s22  ;;  %v5971_v5 = vrot.slane %v9908_v44, %v10404_v4  ;;  %v5975_v46 = vrot.slane %v9908_v44, %v10408_v6  ;;  %v5979_v56 = vrot.slane %v9908_v44, %v14165_v33  ;;  %v5983_v27 = vrot.slane %v9908_v44, %v14164_v19 }
 0x523   : > { %v4987_v15 = vsel %vm14188_vm11, %v4983_v21, 0.0  ;;  %v4988_v34 = vsel %vm14189_vm13, %v4984_v60, 0.0  ;;  %v4990_v24 = vsel %vm14190_vm15, %v4985_v47, 0.0  ;;  %v4992_v18 = vsel %vm14187_vm1, %v4986_v43, 0.0 }
 0x524   : > { %v4989_v45 = vadd.f32 %v4988_v34, %v4987_v15  ;;  %v6137_v49 = vrot.slane %v9914_v1, %v10404_v4  ;;  %v6303_v42 = vrot.slane %v9920_v40, %v10404_v4  ;;  %v12219_v15 = vpop.permute.xlu1 %5209  ;;  %vm14251_vm13 = vcmask 982016  }
 0x525   : > { %vm14253_vm15 = vmmov %vm14251_vm13 }
 0x526   : > { %v4991_v59 = vadd.f32 %v4990_v24, %v4989_v45  ;;  %5822 = vrot.lane.b32.xlu1 %v5813_v57, %s14043_s22  ;;  %vm14255_vm1 = vmmov %vm14251_vm13 }
 0x528   : > { %v4993_v12 = vadd.f32 %v4992_v18, %v4991_v59  ;;  %v12225_v18 = vld [vmem:[#allocation2 + $0x28] sm:$0xff]  ;;  %v12229_v55 = vpop.permute.xlu1 %5211 }
 0x52a   : > { %4994 = vadd.xlane.f32.xlu0 %v4993_v12  ;;  %5984 = vrot.lane.b32.xlu1 %v5971_v5, %s14076_s9 }
 0x52c   : > { %v12240_v17 = vpop.permute.xlu1 %5162 }
 0x52d   : > { %v5178_v26 = vmul.f32 %v12225_v18, %v12240_v17 }
 0x52e   : > { %5988 = vrot.lane.b32.xlu1 %v5979_v56, %s14076_s9 }
 0x52f   : > { %v5184_v39 = vpack.c.bf16 %v5178_v26, %v5178_v26 }
 0x530   : > { %v12251_v35 = vpop.permute.xlu1 %5166 }
 0x532   : > { %6150 = vrot.lane.b32.xlu1 %v6137_v49, %s14080_s16 }
 0x534   : > { %v12259_v14 = vpop.permute.xlu1 %5486 }
 0x535   : > { %v5502_v8 = vmul.f32 %v12225_v18, %v12259_v14 }
 0x536   : > { %6154 = vrot.lane.b32.xlu1 %v6145_v54, %s14080_s16 }
 0x537   : > { %v5509_v44 = vpack.c.bf16 %v5502_v8, %v5502_v8 }
 0x538   : > { %v12270_v57 = vpop.permute.xlu1 %5490 }
 0x53a   : > { %6316 = vrot.lane.b32.xlu1 %v6303_v42, %s14088_s20 }
 0x53c   : > { %v12275_v5 = vpop.permute.xlu1 %5652 }
 0x53e   : > { %6320 = vrot.lane.b32.xlu1 %v6311_v25, %s14088_s20 }
 0x540   : > { %5207 = vrot.lane.b32.xlu0 %v5194_v23, %s14048_s21 }
 0x544   : > { %5213 = vrot.lane.b32.xlu0 %v5206_v37, %s14048_s21 }
 0x548   : > { %5164 = vrot.lane.b32.xlu0 %v5153_v63, %s14051_s19 }
 0x54c   : > { %5168 = vrot.lane.b32.xlu0 %v5161_v0, %s14051_s19  ;;  %v5007_v0 = vld [vmem:[%s13877_s3] sm:$0xf] }
 0x550   : > { %5488 = vrot.lane.b32.xlu0 %v5477_v28, %s14046_s17  ;;  %v6481_v28 = vrot.slane %v9926_v10, %v14164_v19 }
 0x554   : > { %5492 = vrot.lane.b32.xlu0 %v5485_v62, %s14046_s17  ;;  %v9932_v62 = vld [vmem:[%s13880_s6 + $0x24] sm:$0xf] }
 0x555   : > { %v6639_v50 = vrot.slane %v9932_v62, %v10408_v6  ;;  %v6643_v31 = vrot.slane %v9932_v62, %v14165_v33 }
 0x558   : > { %5654 = vrot.lane.b32.xlu0 %v5643_v16, %s14044_s15  ;;  %v6635_v16 = vrot.slane %v9932_v62, %v10404_v4 }
 0x55c   : > { %5658 = vrot.lane.b32.xlu0 %v5651_v3, %s14044_s15  ;;  %v6647_v3 = vrot.slane %v9932_v62, %v14164_v19 }
 0x560   : > { %5820 = vrot.lane.b32.xlu0 %v5809_v13, %s14043_s22  ;;  %v9938_v13 = vld [vmem:[%s13880_s6 + $0x28] sm:$0xf] }
 0x561   : > { %v6809_v56 = vrot.slane %v9938_v13, %v14165_v33  ;;  %v6813_v49 = vrot.slane %v9938_v13, %v14164_v19 }
 0x564   : > { %5824 = vrot.lane.b32.xlu0 %v5817_v2, %s14043_s22  ;;  %v6801_v2 = vrot.slane %v9938_v13, %v10404_v4 }
 0x568   : > { %5986 = vrot.lane.b32.xlu0 %v5975_v46, %s14076_s9  ;;  %v5668_v46 = vmul.f32 %v12225_v18, %v12275_v5 }
 0x56a   : > { %v5675_v1 = vpack.c.bf16 %v5668_v46, %v5668_v46 }
 0x56c   : > { %5990 = vrot.lane.b32.xlu0 %v5983_v27, %s14076_s9  ;;  %v6805_v27 = vrot.slane %v9938_v13, %v10408_v6 }
 0x570   : > { %6152 = vrot.lane.b32.xlu0 %v6141_v29, %s14080_s16  ;;  %v12289_v29 = vld [vmem:[%s13880_s6 + $0x2c] sm:$0xf] }
 0x571   : > { %v6971_v54 = vrot.slane %v12289_v29, %v10408_v6  ;;  %v6975_v40 = vrot.slane %v12289_v29, %v14165_v33 }
 0x574   : > { %6156 = vrot.lane.b32.xlu0 %v6149_v51, %s14080_s16  ;;  %v6967_v51 = vrot.slane %v12289_v29, %v10404_v4 }
 0x578   : > { %6318 = vrot.lane.b32.xlu0 %v6307_v9, %s14088_s20 }
 0x57c   : > { %6322 = vrot.lane.b32.xlu0 %v6315_v30, %s14088_s20 }
 0x580   : > { %6482 = vrot.lane.b32.xlu0 %v6469_v7, %s14093_s11 }
 0x584   : > { %6486 = vrot.lane.b32.xlu0 %v6477_v22, %s14093_s11  ;;  %v12314_v22 = vpop.permute.xlu1 %5656 }
 0x588   : > { %5357 = vrot.lane.b32.xlu0 %v5184_v39, %s14093_s11  ;;  %v12374_v39 = vld [vmem:[%s13880_s6 + $0x3c] sm:$0xf] }
 0x589   : > { %v7603_v62 = vrot.slane %v12374_v39, %v10404_v4 }
 0x58c   : > { %6650 = vrot.lane.b32.xlu0 %v6639_v50, %s14102_s12 }
 0x590   : > { %6654 = vrot.lane.b32.xlu0 %v6647_v3, %s14102_s12  ;;  %v7611_v3 = vrot.slane %v12374_v39, %v14165_v33 }
 0x594   : > { %6814 = vrot.lane.b32.xlu0 %v6801_v2, %s14085_s29  ;;  %v12394_v2 = vld [vmem:[%s13880_s6 + $0x40] sm:$0xf] }
 0x598   : > { %6818 = vrot.lane.b32.xlu0 %v6809_v56, %s14085_s29  ;;  %v7781_v56 = vrot.slane %v12394_v2, %v14164_v19 }
 0x59c   : > { %5685 = vrot.lane.b32.xlu0 %v5675_v1, %s14076_s9  ;;  %v12409_v1 = vld [vmem:[%s13880_s6 + $0x44] sm:$0xf] }
 0x5a0   : > { %6982 = vrot.lane.b32.xlu0 %v6971_v54, %s14100_s18 }
 0x5b3   : > { %v4995_v38 = vpop.xlane.xlu0 %4994 }
 0x5b4   : > { %v4996_v21 = vmul.f32 0.001953125, %v4995_v38 }
 0x5b6   : > { %v4997_v60 = vadd.f32 1e-05, %v4996_v21  ;;  %v12318_v21 = vpop.permute.xlu1 %5818 }
 0x5b7   : > { %v12217_v43 = vpop.permute.xlu0 %5207 }
 0x5b8   : > { %10118 = vrsqrt.f32 %v4997_v60  ;;  %v5223_v12 = vmul.f32 %v12225_v18, %v12217_v43 }
 0x5ba   : > { %v5230_v37 = vpack.c.bf16 %v5223_v12, %v5223_v12 }
 0x5bb   : > { %v12302_v42 = vpop.permute.xlu0 %5213 }
 0x5bc   : > { %5240 = vrot.lane.b32.xlu1 %v5230_v37, %s14088_s20 }
 0x5bf   : > { %v12304_v9 = vpop.permute.xlu0 %5164 }
 0x5c3   : > { %v12306_v25 = vpop.permute.xlu0 %5168 }
 0x5c5   : > { %v10119_v47 = vpop.eup %10118 }
 0x5c6   : > { %v5000_v34 = vmul.f32 %v10119_v47, %v12104_v36  ;;  %v5002_v45 = vmul.f32 %v10119_v47, %v12108_v41  ;;  %v4999_v24 = vmul.f32 %v10119_v47, %v12102_v11  ;;  %v5001_v59 = vmul.f32 %v10119_v47, %v12106_v20 }
 0x5c7   : > { %v6473_v11 = vrot.slane %v9926_v10, %v10408_v6  ;;  %v12308_v30 = vpop.permute.xlu0 %5488  ;;  %v5834_v47 = vmul.f32 %v12225_v18, %v12318_v21 }
 0x5c8   : > { %v5004_v48 = vmax.f32 %v5000_v34, 0.0  ;;  %v5006_v61 = vmax.f32 %v5002_v45, 0.0  ;;  %v5003_v23 = vmax.f32 %v4999_v24, 0.0  ;;  %v5005_v32 = vmax.f32 %v5001_v59, 0.0  ;;  %v12324_v45 = vpop.permute.xlu1 %5822 }
 0x5c9   : > { %6484 = vrot.lane.b32.xlu1 %v6473_v11, %s14093_s11  ;;  %v5841_v34 = vpack.c.bf16 %v5834_v47, %v5834_v47 }
 0x5ca   : > { %v5009_v52 = vpack.c.bf16 %v5004_v48, %v5004_v48  ;;  %v5011_v36 = vpack.c.bf16 %v5006_v61, %v5006_v61  ;;  %v5008_v63 = vpack.c.bf16 %v5003_v23, %v5003_v23  ;;  %v5010_v41 = vpack.c.bf16 %v5005_v32, %v5005_v32  ;;  %v12338_v61 = vld [vmem:[%s13880_s6 + $0x30] sm:$0xf] }
 0x5cb   : > { %v12310_v10 = vpop.permute.xlu0 %5492  ;;  %v7137_v37 = vrot.slane %v12338_v61, %v10408_v6 }
 0x5cc   : > { %9876 = vmatprep.subr.msk.bf16.mxu0 %vm580_vm0, %v5009_v52  ;;  %9878 = vmatprep.subr.msk.bf16.mxu1 %vm580_vm0, %v5011_v36  ;;  %v5016_v20 = vsel %vm580_vm0, %v5008_v63, 0  ;;  %v5022_v53 = vsel %vm580_vm0, %v5010_v41, 0  ;;  %v12329_v59 = vpop.permute.xlu1 %5984  ;;  %v7145_v36 = vrot.slane %v12338_v61, %v14164_v19  ;;  %vm14244_vm0 = vcmask 973824  }
 0x5cd   : > { %5042 = vmatpush1.bf16.msra.mxu0 %v5016_v20  ;;  %5083 = vmatpush1.bf16.msra.mxu1 %v5022_v53  ;;  %v12359_v20 = vld [vmem:[%s13880_s6 + $0x38] sm:$0xf]  ;;  %vm14248_vm11 = vmmov %vm14244_vm0 }
 0x5ce   : > { %6488 = vrot.lane.b32.xlu1 %v6481_v28, %s14093_s11  ;;  %v7441_v53 = vrot.slane %v12359_v20, %v10408_v6  ;;  %v7449_v26 = vrot.slane %v12359_v20, %v14164_v19 }
 0x5cf   : > { %v12312_v7 = vpop.permute.xlu0 %5654 }
 0x5d0   : > { %9877 = vmatmul.mubr.msk.bf16.vlgmr.msra.gmra.mxu0 %vm576_vm12, %v5007_v0  ;;  %9879 = vmatmul.mubr.msk.bf16.vlgmr.msra.gmra.mxu1 %vm576_vm12, %v5007_v0  ;;  %v12333_v48 = vpop.permute.xlu1 %5988  ;;  %vm14246_vm12 = vmmov %vm14244_vm0 }
 0x5d1   : > { %5302 = vmatprep.mubr.bf16.mxu0 %v14146_v58  ;;  %5343 = vmatprep.mubr.bf16.mxu1 %v14146_v58 }
 0x5d2   : > { %6648 = vrot.lane.b32.xlu1 %v6635_v16, %s14102_s12 }
 0x5d3   : > { %v12316_v38 = vpop.permute.xlu0 %5658 }
 0x5d4   : > { %v12342_v32 = vpop.permute.xlu1 %6150 }
 0x5d5   : > { %v6166_v52 = vmul.f32 %v12225_v18, %v12342_v32 }
 0x5d6   : > { %6652 = vrot.lane.b32.xlu1 %v6643_v31, %s14102_s12 }
 0x5d7   : > { %v12320_v60 = vpop.permute.xlu0 %5820  ;;  %v6173_v41 = vpack.c.bf16 %v6166_v52, %v6166_v52 }
 0x5d8   : > { %v12431_v52 = vpop.permute.xlu1 %6154 }
 0x5da   : > { %5519 = vrot.lane.b32.xlu1 %v5509_v44, %s14080_s16  ;;  %v7773_v44 = vrot.slane %v12394_v2, %v10408_v6 }
 0x5db   : > { %v12327_v24 = vpop.permute.xlu0 %5824 }
 0x5de   : > { %6816 = vrot.lane.b32.xlu1 %v6805_v27, %s14085_s29 }
 0x5df   : > { %v12331_v12 = vpop.permute.xlu0 %5986 }
 0x5e2   : > { %6820 = vrot.lane.b32.xlu1 %v6813_v49, %s14085_s29  ;;  %v7935_v49 = vrot.slane %v12409_v1, %v10404_v4 }
 0x5e3   : > { %v12340_v23 = vpop.permute.xlu0 %5990 }
 0x5e6   : > { %6980 = vrot.lane.b32.xlu1 %v6967_v51, %s14100_s18 }
 0x5e7   : > { %v12351_v63 = vpop.permute.xlu0 %6152 }
 0x5ea   : > { %6984 = vrot.lane.b32.xlu1 %v6975_v40, %s14100_s18  ;;  %v7943_v40 = vrot.slane %v12409_v1, %v14165_v33 }
 0x5eb   : > { %v12354_v11 = vpop.permute.xlu0 %6156 }
 0x5ee   : > { %5851 = vrot.lane.b32.xlu1 %v5841_v34, %s14043_s22  ;;  %v12426_v34 = vld [vmem:[%s13880_s6 + $0x48] sm:$0xf] }
 0x5ef   : > { %v12364_v0 = vpop.permute.xlu0 %6318  ;;  %v8113_v58 = vrot.slane %v12426_v34, %v14164_v19 }
 0x5f2   : > { %7148 = vrot.lane.b32.xlu1 %v7137_v37, %s14138_s25  ;;  %v8105_v37 = vrot.slane %v12426_v34, %v10408_v6 }
 0x5f3   : > { %v12369_v28 = vpop.permute.xlu0 %6322 }
 0x5f6   : > { %7152 = vrot.lane.b32.xlu1 %v7145_v36, %s14138_s25  ;;  %v12433_v36 = vpop.permute.xlu1 %6316 }
 0x5f7   : > { %v12379_v50 = vpop.permute.xlu0 %6482 }
 0x5f8   : > { %v6498_v16 = vmul.f32 %v12225_v18, %v12379_v50 }
 0x5fa   : > { %6183 = vrot.lane.b32.xlu1 %v6173_v41, %s14046_s17  ;;  %v6505_v31 = vpack.c.bf16 %v6498_v16, %v6498_v16  ;;  %v12435_v41 = vpop.permute.xlu1 %6320 }
 0x5fb   : > { %v12386_v8 = vpop.permute.xlu0 %6486 }
 0x5fe   : > { %7452 = vrot.lane.b32.xlu1 %v7441_v53, %s14130_s26 }
 0x5ff   : > { %v12389_v13 = vpop.permute.xlu0 %5357 }
 0x600   : > { %14191 = vst [vmem:[#allocation33_spill] sm:$0xff] %v12389_v13 }
 0x602   : > { %7456 = vrot.lane.b32.xlu1 %v7449_v26, %s14130_s26 }
 0x603   : > { %v12399_v46 = vpop.permute.xlu0 %6650 }
 0x604   : > { %14192 = vst [vmem:[#allocation34_spill] sm:$0xff] %v12399_v46 }
 0x606   : > { %7616 = vrot.lane.b32.xlu1 %v7603_v62, %s14124_s10 }
 0x607   : > { %v12404_v27 = vpop.permute.xlu0 %6654 }
 0x608   : > { %14193 = vst [vmem:[#allocation25_spill] sm:$0xff] %v12404_v27 }
 0x60a   : > { %7620 = vrot.lane.b32.xlu1 %v7611_v3, %s14124_s10 }
 0x60b   : > { %v12414_v54 = vpop.permute.xlu0 %6814 }
 0x60c   : > { %14194 = vst [vmem:[#allocation35_spill] sm:$0xff] %v12414_v54  ;;  %v6830_v51 = vmul.f32 %v12225_v18, %v12414_v54 }
 0x60e   : > { %6515 = vrot.lane.b32.xlu1 %v6505_v31, %s14051_s19  ;;  %v6837_v47 = vpack.c.bf16 %v6830_v51, %v6830_v51 }
 0x612   : > { %7784 = vrot.lane.b32.xlu1 %v7773_v44, %s14119_s1 }
 0x616   : > { %7788 = vrot.lane.b32.xlu1 %v7781_v56, %s14119_s1 }
 0x61a   : > { %7948 = vrot.lane.b32.xlu1 %v7935_v49, %s14113_s0 }
 0x61e   : > { %7952 = vrot.lane.b32.xlu1 %v7943_v40, %s14113_s0 }
 0x622   : > { %6847 = vrot.lane.b32.xlu1 %v6837_v47, %s14119_s1 }
 0x626   : > { %8116 = vrot.lane.b32.xlu1 %v8105_v37, %s14051_s19 }
 0x62a   : > { %8120 = vrot.lane.b32.xlu1 %v8113_v58, %s14051_s19  ;;  %v7133_v58 = vrot.slane %v12338_v61, %v10404_v4 }
 0x62e   : > { %v12448_v49 = vpop.permute.xlu1 %5240 }
 0x62f   : > { %14195 = vst [vmem:[#allocation26_spill] sm:$0xff] %v12448_v49 }
 0x63b   : > { %v12451_v37 = vpop.permute.xlu1 %6484 }
 0x640   : > { %v12453_v13 = vpop.permute.xlu1 %6488 }
 0x641   : > { %14196 = vst [vmem:[#allocation27_spill] sm:$0xff] %v12453_v13 }
 0x690   : > { %v12437_v53 = vpop.f32.mrf.mxu0  ;;  %v12439_v26 = vpop.f32.mrf.mxu1 }
 0x692   : > { %v12441_v62 = vpop.f32.mrf.mxu0  ;;  %v12443_v16 = vpop.f32.mrf.mxu1 }
 0x693   : > { %v5109_v3 = vadd.f32 %v12441_v62, %v12437_v53 }
 0x694   : > { %v5065_v31 = vpop.f32.mrf.mxu0  ;;  %v5106_v44 = vpop.f32.mrf.mxu1 }
 0x695   : > { %v5110_v56 = vadd.f32 %v5109_v3, %v12439_v26  ;;  %v9992_v3 = vld [vmem:[%s13880_s6 + $0x4c] sm:$0xf]  ;;  %v12461_v31 = vpop.permute.xlu1 %6648 }
 0x696   : > { %v5066_v51 = vpop.f32.mrf.mxu0  ;;  %v5107_v40 = vpop.f32.mrf.mxu1  ;;  %14197 = vst [vmem:[#allocation36_spill] sm:$0xff] %v12461_v31  ;;  %v8267_v44 = vrot.slane %v9992_v3, %v10404_v4 }
 0x697   : > { %v5111_v47 = vadd.f32 %v5110_v56, %v12443_v16  ;;  %v6979_v56 = vrot.slane %v12289_v29, %v14164_v19  ;;  %v8275_v51 = vrot.slane %v9992_v3, %v14165_v33  ;;  %v7141_v29 = vrot.slane %v12338_v61, %v14165_v33 }
 0x698   : > { %8280 = vrot.lane.b32.xlu1 %v8267_v44, %s14048_s21  ;;  %v7445_v61 = vrot.slane %v12359_v20, %v14165_v33 }
 0x699   : > { %5112 = vadd.xlane.f32.xlu0 %v5111_v47  ;;  %v12468_v40 = vpop.permute.xlu1 %6652  ;;  %v6000_v47 = vmul.f32 %v12225_v18, %v12329_v59 }
 0x69a   : > { %14198 = vst [vmem:[#allocation28_spill] sm:$0xff] %v12468_v40 }
 0x69b   : > { %v6007_v49 = vpack.c.bf16 %v6000_v47, %v6000_v47 }
 0x69c   : > { %8284 = vrot.lane.b32.xlu1 %v8275_v51, %s14048_s21  ;;  %v6332_v51 = vmul.f32 %v12225_v18, %v12433_v36 }
 0x69d   : > { %v12479_v44 = vpop.permute.xlu1 %5519 }
 0x69e   : > { %14199 = vst [vmem:[#allocation37_spill] sm:$0xff] %v12479_v44  ;;  %v6339_v47 = vpack.c.bf16 %v6332_v51, %v6332_v51 }
 0x6a1   : > { %v12482_v54 = vpop.permute.xlu1 %6816 }
 0x6a2   : > { %14200 = vst [vmem:[#allocation38_spill] sm:$0xff] %v12482_v54 }
 0x6af   : > { %6986 = vrot.lane.b32.xlu0 %v6979_v56, %s14100_s18  ;;  %v7437_v56 = vrot.slane %v12359_v20, %v10404_v4  ;;  %v7769_v20 = vrot.slane %v12394_v2, %v10404_v4 }
 0x6b3   : > { %7146 = vrot.lane.b32.xlu0 %v7133_v58, %s14138_s25  ;;  %v12492_v58 = vpop.permute.xlu1 %6820 }
 0x6b4   : > { %14201 = vst [vmem:[#allocation30_spill] sm:$0xff] %v12492_v58 }
 0x6b7   : > { %7150 = vrot.lane.b32.xlu0 %v7141_v29, %s14138_s25  ;;  %v12495_v29 = vpop.permute.xlu1 %6980 }
 0x6b8   : > { %14202 = vst [vmem:[#allocation39_spill] sm:$0xff] %v12495_v29 }
 0x6bb   : > { %6017 = vrot.lane.b32.xlu0 %v6007_v49, %s14044_s15  ;;  %v7607_v49 = vrot.slane %v12374_v39, %v10408_v6  ;;  %v12503_v44 = vpop.permute.xlu1 %6984 }
 0x6bc   : > { %14203 = vst [vmem:[#allocation32_spill] sm:$0xff] %v12503_v44 }
 0x6bf   : > { %7450 = vrot.lane.b32.xlu0 %v7437_v56, %s14130_s26  ;;  %v7615_v56 = vrot.slane %v12374_v39, %v14164_v19  ;;  %v12508_v51 = vpop.permute.xlu1 %5851 }
 0x6c0   : > { %14204 = vst [vmem:[#allocation49_spill] sm:$0xff] %v12508_v51 }
 0x6c3   : > { %7454 = vrot.lane.b32.xlu0 %v7445_v61, %s14130_s26  ;;  %v6664_v61 = vmul.f32 %v12225_v18, %v12461_v31 }
 0x6c5   : > { %v6671_v39 = vpack.c.bf16 %v6664_v61, %v6664_v61  ;;  %v6996_v61 = vmul.f32 %v12225_v18, %v12495_v29 }
 0x6c7   : > { %6349 = vrot.lane.b32.xlu0 %v6339_v47, %s14048_s21  ;;  %v7777_v47 = vrot.slane %v12394_v2, %v14165_v33  ;;  %v8101_v2 = vrot.slane %v12426_v34, %v10404_v4 }
 0x6cb   : > { %7618 = vrot.lane.b32.xlu0 %v7607_v49, %s14124_s10  ;;  %v12515_v49 = vpop.permute.xlu1 %7148 }
 0x6cc   : > { %14205 = vst [vmem:[#allocation40_spill] sm:$0xff] %v12515_v49 }
 0x6cf   : > { %7622 = vrot.lane.b32.xlu0 %v7615_v56, %s14124_s10  ;;  %v7939_v56 = vrot.slane %v12409_v1, %v10408_v6  ;;  %v12521_v44 = vpop.permute.xlu1 %7152 }
 0x6d0   : > { %14206 = vst [vmem:[#allocation45_spill] sm:$0xff] %v12521_v44 }
 0x6d3   : > { %7782 = vrot.lane.b32.xlu0 %v7769_v20, %s14119_s1  ;;  %v7947_v20 = vrot.slane %v12409_v1, %v14164_v19  ;;  %v12526_v51 = vpop.permute.xlu1 %6183 }
 0x6d4   : > { %14207 = vst [vmem:[#allocation52_spill] sm:$0xff] %v12526_v51  ;;  %v8279_v51 = vrot.slane %v9992_v3, %v14164_v19 }
 0x6d7   : > { %7786 = vrot.lane.b32.xlu0 %v7777_v47, %s14119_s1  ;;  %v8109_v47 = vrot.slane %v12426_v34, %v14165_v33 }
 0x6db   : > { %6681 = vrot.lane.b32.xlu0 %v6671_v39, %s14113_s0  ;;  %v12536_v39 = vpop.permute.xlu1 %7452 }
 0x6dc   : > { %14208 = vst [vmem:[#allocation60_spill] sm:$0xff] %v12536_v39 }
 0x6df   : > { %7950 = vrot.lane.b32.xlu0 %v7939_v56, %s14113_s0  ;;  %v7003_v56 = vpack.c.bf16 %v6996_v61, %v6996_v61  ;;  %v12539_v1 = vpop.permute.xlu1 %7456 }
 0x6e0   : > { %14209 = vst [vmem:[#allocation47_spill] sm:$0xff] %v12539_v1 }
 0x6e3   : > { %7954 = vrot.lane.b32.xlu0 %v7947_v20, %s14113_s0  ;;  %v8271_v20 = vrot.slane %v9992_v3, %v10408_v6  ;;  %v12550_v34 = vpop.permute.xlu1 %7616  ;;  %v12563_v3 = vld [vmem:[%s13880_s6 + $0x54] sm:$0xf] }
 0x6e4   : > { %14210 = vst [vmem:[#allocation46_spill] sm:$0xff] %v12550_v34 }
 0x6e7   : > { %8114 = vrot.lane.b32.xlu0 %v8101_v2, %s14051_s19  ;;  %v12548_v2 = vld [vmem:[%s13880_s6 + $0x50] sm:$0xf] }
 0x6e8   : > { %v8433_v61 = vrot.slane %v12548_v2, %v10404_v4  ;;  %v8437_v27 = vrot.slane %v12548_v2, %v10408_v6 }
 0x6eb   : > { %8118 = vrot.lane.b32.xlu0 %v8109_v47, %s14051_s19  ;;  %v12555_v47 = vpop.permute.xlu1 %7620 }
 0x6ec   : > { %14211 = vst [vmem:[#allocation48_spill] sm:$0xff] %v12555_v47  ;;  %v7470_v47 = vmul.f32 %v12225_v18, %v12539_v1 }
 0x6ee   : > { %v7477_v39 = vpack.c.bf16 %v7470_v47, %v7470_v47  ;;  %v12594_v47 = vld [vmem:[%s13880_s6 + $0x5c] sm:$0xf] }
 0x6ef   : > { %7013 = vrot.lane.b32.xlu0 %v7003_v56, %s14124_s10  ;;  %v8441_v56 = vrot.slane %v12548_v2, %v14165_v33  ;;  %v8939_v44 = vrot.slane %v12594_v47, %v14165_v33 }
 0x6f3   : > { %8282 = vrot.lane.b32.xlu0 %v8271_v20, %s14048_s21  ;;  %v12568_v20 = vpop.permute.xlu1 %6515 }
 0x6f4   : > { %14212 = vst [vmem:[#allocation64_spill] sm:$0xff] %v12568_v20 }
 0x6f7   : > { %8286 = vrot.lane.b32.xlu0 %v8279_v51, %s14048_s21  ;;  %v8599_v51 = vrot.slane %v12563_v3, %v10404_v4  ;;  %v12575_v34 = vpop.permute.xlu1 %7784 }
 0x6f8   : > { %14213 = vst [vmem:[#allocation41_spill] sm:$0xff] %v12575_v34 }
 0x6fb   : > { %8446 = vrot.lane.b32.xlu0 %v8433_v61, %s14046_s17  ;;  %v8607_v61 = vrot.slane %v12563_v3, %v14165_v33  ;;  %v12586_v1 = vpop.permute.xlu1 %7788 }
 0x6fc   : > { %14214 = vst [vmem:[#allocation51_spill] sm:$0xff] %v12586_v1 }
 0x6ff   : > { %8450 = vrot.lane.b32.xlu0 %v8441_v56, %s14046_s17  ;;  %v12581_v56 = vld [vmem:[%s13880_s6 + $0x58] sm:$0xf]  ;;  %v12598_v34 = vpop.permute.xlu1 %7948 }
 0x700   : > { %v8769_v20 = vrot.slane %v12581_v56, %v10408_v6  ;;  %14216 = vst [vmem:[#allocation54_spill] sm:$0xff] %v12598_v34 }
 0x703   : > { %8612 = vrot.lane.b32.xlu0 %v8599_v51, %s14044_s15  ;;  %v8777_v51 = vrot.slane %v12581_v56, %v14164_v19  ;;  %v12610_v29 = vpop.permute.xlu1 %7952 }
 0x704   : > { %14218 = vst [vmem:[#allocation55_spill] sm:$0xff] %v12610_v29 }
 0x707   : > { %8616 = vrot.lane.b32.xlu0 %v8607_v61, %s14044_s15  ;;  %v12596_v61 = vpop.permute.xlu0 %6818 }
 0x708   : > { %14215 = vst [vmem:[#allocation65_spill] sm:$0xff] %v12596_v61 }
 0x70b   : > { %7491 = vrot.lane.b32.xlu0 %v7477_v39, %s14138_s25  ;;  %v8931_v39 = vrot.slane %v12594_v47, %v10404_v4  ;;  %v12608_v49 = vpop.permute.xlu0 %5685 }
 0x70c   : > { %14217 = vst [vmem:[#allocation66_spill] sm:$0xff] %v12608_v49 }
 0x70f   : > { %8780 = vrot.lane.b32.xlu0 %v8769_v20, %s14043_s22  ;;  %v7802_v20 = vmul.f32 %v12225_v18, %v12586_v1  ;;  %v12618_v34 = vpop.permute.xlu0 %6982  ;;  %v12620_v1 = vpop.permute.xlu1 %6847 }
 0x710   : > { %14219 = vst [vmem:[#allocation57_spill] sm:$0xff] %v12618_v34  ;;  %14220 = vst [vmem:[#allocation53_spill] sm:$0xff] %v12620_v1 }
 0x711   : > { %v7809_v58 = vpack.c.bf16 %v7802_v20, %v7802_v20  ;;  %v12633_v20 = vld [vmem:[%s13880_s6 + $0x64] sm:$0xf] }
 0x713   : > { %8784 = vrot.lane.b32.xlu0 %v8777_v51, %s14043_s22  ;;  %v12616_v51 = vld [vmem:[%s13880_s6 + $0x60] sm:$0xf]  ;;  %v12625_v54 = vpop.permute.xlu1 %8116 }
 0x714   : > { %14221 = vst [vmem:[#allocation42_spill] sm:$0xff] %v12625_v54 }
 0x717   : > { %8944 = vrot.lane.b32.xlu0 %v8931_v39, %s14076_s9  ;;  %v9101_v39 = vrot.slane %v12616_v51, %v10408_v6  ;;  %v12640_v1 = vpop.permute.xlu1 %8120 }
 0x718   : > { %14223 = vst [vmem:[#allocation56_spill] sm:$0xff] %v12640_v1  ;;  %v8134_v34 = vmul.f32 %v12225_v18, %v12640_v1 }
 0x71a   : > { %v8141_v40 = vpack.c.bf16 %v8134_v34, %v8134_v34 }
 0x71b   : > { %8948 = vrot.lane.b32.xlu0 %v8939_v44, %s14076_s9  ;;  %v9109_v44 = vrot.slane %v12616_v51, %v14164_v19 }
 0x71f   : > { %7823 = vrot.lane.b32.xlu0 %v7809_v58, %s14085_s29  ;;  %v9263_v58 = vrot.slane %v12633_v20, %v10404_v4 }
 0x722   : > { %v5113_v49 = vpop.xlane.xlu0 %5112 }
 0x723   : > { %9112 = vrot.lane.b32.xlu0 %v9101_v39, %s14080_s16 }
 0x726   : > { %v12635_v29 = vpop.permute.xlu0 %6986 }
 0x727   : > { %14222 = vst [vmem:[#allocation61_spill] sm:$0xff] %v12635_v29  ;;  %9116 = vrot.lane.b32.xlu0 %v9109_v44, %s14080_s16  ;;  %v9271_v29 = vrot.slane %v12633_v20, %v14165_v33 }
 0x72a   : > { %v12642_v54 = vpop.permute.xlu0 %7146 }
 0x72b   : > { %14224 = vst [vmem:[#allocation62_spill] sm:$0xff] %v12642_v54  ;;  %v7162_v39 = vmul.f32 %v12225_v18, %v12642_v54  ;;  %9276 = vrot.lane.b32.xlu0 %v9263_v58, %s14088_s20  ;;  %v12660_v58 = vld [vmem:[%s13880_s6 + $0x68] sm:$0xf] }
 0x72d   : > { %v7169_v61 = vpack.c.bf16 %v7162_v39, %v7162_v39  ;;  %v8445_v39 = vrot.slane %v12548_v2, %v14164_v19 }
 0x72e   : > { %v12651_v44 = vpop.permute.xlu0 %7150 }
 0x72f   : > { %14225 = vst [vmem:[#allocation43_spill] sm:$0xff] %v12651_v44  ;;  %7179 = vrot.lane.b32.xlu1 %v7169_v61, %s14130_s26  ;;  %9280 = vrot.lane.b32.xlu0 %v9271_v29, %s14088_s20  ;;  %v9433_v61 = vrot.slane %v12660_v58, %v10408_v6  ;;  %v9441_v29 = vrot.slane %v12660_v58, %v14164_v19 }
 0x732   : > { %v12662_v1 = vpop.permute.xlu0 %6017 }
 0x733   : > { %14226 = vst [vmem:[#allocation58_spill] sm:$0xff] %v12662_v1  ;;  %8448 = vrot.lane.b32.xlu1 %v8437_v27, %s14046_s17  ;;  %8155 = vrot.lane.b32.xlu0 %v8141_v40, %s14093_s11  ;;  %v5114_v40 = vmul.f32 0.001953125, %v5113_v49 }
 0x736   : > { %v12670_v34 = vpop.permute.xlu0 %7450 }
 0x737   : > { %14227 = vst [vmem:[#allocation44_spill] sm:$0xff] %v12670_v34  ;;  %8452 = vrot.lane.b32.xlu1 %v8445_v39, %s14046_s17  ;;  %9444 = vrot.lane.b32.xlu0 %v9433_v61, %s14093_s11  ;;  %v12686_v34 = vsub.f32 %v12437_v53, %v5114_v40  ;;  %v12689_v39 = vsub.f32 %v12441_v62, %v5114_v40 }
 0x738   : > { %v12703_v53 = vsub.f32 %v12443_v16, %v5114_v40 }
 0x73a   : > { %v12676_v1 = vpop.permute.xlu0 %7454 }
 0x73b   : > { %14228 = vst [vmem:[#allocation63_spill] sm:$0xff] %v12676_v1  ;;  %9448 = vrot.lane.b32.xlu0 %v9441_v29, %s14093_s11  ;;  %v5119_v1 = vmul.f32 %v12686_v34, %v12686_v34  ;;  %v5120_v29 = vmul.f32 %v12689_v39, %v12689_v39 }
 0x73d   : > { %v5123_v49 = vadd.f32 %v5120_v29, %v5119_v1  ;;  %v8603_v1 = vrot.slane %v12563_v3, %v10408_v6 }
 0x73e   : > { %v12679_v27 = vpop.permute.xlu0 %6349 }
 0x73f   : > { %14229 = vst [vmem:[#allocation50_spill] sm:$0xff] %v12679_v27  ;;  %v12698_v27 = vsub.f32 %v12439_v26, %v5114_v40  ;;  %v8611_v40 = vrot.slane %v12563_v3, %v14164_v19 }
 0x741   : > { %v5121_v62 = vmul.f32 %v12698_v27, %v12698_v27 }
 0x742   : > { %v12681_v2 = vpop.permute.xlu0 %7618 }
 0x743   : > { %14230 = vst [vmem:[#allocation67_spill] sm:$0xff] %v12681_v2  ;;  %v5124_v44 = vadd.f32 %v5123_v49, %v5121_v62 }
 0x746   : > { %v12683_v54 = vpop.permute.xlu0 %7622 }
 0x74a   : > { %v12691_v61 = vpop.permute.xlu0 %7782 }
 0x74b   : > { %14231 = vst [vmem:[#allocation59_spill] sm:$0xff] %v12691_v61  ;;  %v5122_v61 = vmul.f32 %v12703_v53, %v12703_v53 }
 0x74d   : > { %v5125_v46 = vadd.f32 %v5124_v44, %v5122_v61  ;;  %v7636_v44 = vmul.f32 %v12225_v18, %v12683_v54  ;;  %v8773_v61 = vrot.slane %v12581_v56, %v14165_v33 }
 0x74e   : > { %v12700_v2 = vpop.permute.xlu0 %7786 }
 0x74f   : > { %v7643_v62 = vpack.c.bf16 %v7636_v44, %v7636_v44 }
 0x752   : > { %v12709_v31 = vpop.permute.xlu0 %6681 }
 0x753   : > { %14232 = vst [vmem:[#allocation68_spill] sm:$0xff] %v12709_v31  ;;  %v12766_v31 = vpop.permute.xlu1 %8280 }
 0x756   : > { %v12711_v13 = vpop.permute.xlu0 %7950 }
 0x75a   : > { %v12713_v26 = vpop.permute.xlu0 %7954 }
 0x75b   : > { %5126 = vadd.xlane.f32.xlu1 %v5125_v46  ;;  %v8765_v46 = vrot.slane %v12581_v56, %v10404_v4  ;;  %v9097_v56 = vrot.slane %v12616_v51, %v10404_v4 }
 0x75e   : > { %v12717_v16 = vpop.permute.xlu0 %8114 }
 0x762   : > { %v12722_v29 = vpop.permute.xlu0 %8118 }
 0x766   : > { %v12732_v49 = vpop.permute.xlu0 %7013 }
 0x767   : > { %14233 = vst [vmem:[#allocation21_spill] sm:$0xff] %v12732_v49 }
 0x76a   : > { %v12735_v3 = vpop.permute.xlu0 %8282 }
 0x76c   : > { %8614 = vrot.lane.b32.xlu1 %v8603_v1, %s14044_s15  ;;  %v8935_v1 = vrot.slane %v12594_v47, %v10408_v6 }
 0x770   : > { %8618 = vrot.lane.b32.xlu1 %v8611_v40, %s14044_s15  ;;  %v8943_v40 = vrot.slane %v12594_v47, %v14164_v19 }
 0x774   : > { %8778 = vrot.lane.b32.xlu1 %v8765_v46, %s14043_s22  ;;  %v12743_v46 = vpop.permute.xlu0 %8286 }
 0x778   : > { %8782 = vrot.lane.b32.xlu1 %v8773_v61, %s14043_s22  ;;  %v12748_v44 = vpop.permute.xlu0 %8446  ;;  %v7968_v61 = vmul.f32 %v12225_v18, %v12713_v26 }
 0x77c   : > { %7657 = vrot.lane.b32.xlu1 %v7643_v62, %s14100_s18  ;;  %v9105_v62 = vrot.slane %v12616_v51, %v14165_v33  ;;  %v12756_v47 = vpop.permute.xlu0 %8450 }
 0x77d   : > { %14234 = vst [vmem:[#allocation29_spill] sm:$0xff] %v12756_v47 }
 0x780   : > { %8946 = vrot.lane.b32.xlu1 %v8935_v1, %s14076_s9  ;;  %v7975_v1 = vpack.c.bf16 %v7968_v61, %v7968_v61  ;;  %v12761_v49 = vpop.permute.xlu0 %8612  ;;  %v9429_v61 = vrot.slane %v12660_v58, %v10404_v4 }
 0x781   : > { %14235 = vst [vmem:[#allocation22_spill] sm:$0xff] %v12761_v49 }
 0x784   : > { %8950 = vrot.lane.b32.xlu1 %v8943_v40, %s14076_s9  ;;  %v9267_v40 = vrot.slane %v12633_v20, %v10408_v6  ;;  %v12768_v51 = vpop.permute.xlu0 %8616 }
 0x785   : > { %14236 = vst [vmem:[#allocation23_spill] sm:$0xff] %v12768_v51 }
 0x788   : > { %9110 = vrot.lane.b32.xlu1 %v9097_v56, %s14080_s16  ;;  %v9275_v56 = vrot.slane %v12633_v20, %v14164_v19  ;;  %v12780_v20 = vpop.permute.xlu0 %7491 }
 0x789   : > { %14237 = vst [vmem:[#allocation24_spill] sm:$0xff] %v12780_v20 }
 0x78c   : > { %9114 = vrot.lane.b32.xlu1 %v9105_v62, %s14080_s16  ;;  %v12773_v62 = vpop.permute.xlu1 %8284 }
 0x790   : > { %7989 = vrot.lane.b32.xlu1 %v7975_v1, %s14102_s12  ;;  %v8300_v1 = vmul.f32 %v12225_v18, %v12743_v46 }
 0x792   : > { %v8307_v19 = vpack.c.bf16 %v8300_v1, %v8300_v1 }
 0x794   : > { %9278 = vrot.lane.b32.xlu1 %v9267_v40, %s14088_s20  ;;  %v9437_v40 = vrot.slane %v12660_v58, %v14165_v33 }
 0x798   : > { %9282 = vrot.lane.b32.xlu1 %v9275_v56, %s14088_s20  ;;  %v12785_v56 = vpop.permute.xlu0 %8780 }
 0x799   : > { %14239 = vst [vmem:[#allocation69_spill] sm:$0xff] %v12785_v56 }
 0x79c   : > { %9442 = vrot.lane.b32.xlu1 %v9429_v61, %s14093_s11  ;;  %v12792_v49 = vpop.permute.xlu0 %8784 }
 0x79d   : > { %v8798_v61 = vmul.f32 %v12225_v18, %v12792_v49 }
 0x7a0   : > { %9446 = vrot.lane.b32.xlu1 %v9437_v40, %s14093_s11  ;;  %v8805_v40 = vpack.c.bf16 %v8798_v61, %v8798_v61 }
 0x7a1   : > { %v12783_v6 = vpop.permute.xlu1 %7179 }
 0x7a2   : > { %14238 = vst [vmem:[#allocation31_spill] sm:$0xff] %v12783_v6 }
 0x7a4   : > { %8321 = vrot.lane.b32.xlu1 %v8307_v19, %s14088_s20 }
 0x7a5   : > { %v12788_v4 = vpop.permute.xlu1 %8448 }
 0x7a9   : > { %v12790_v51 = vpop.permute.xlu1 %8452 }
 0x7aa   : > { %14240 = vst [vmem:[#allocation70_spill] sm:$0xff] %v12790_v51  ;;  %v8466_v58 = vmul.f32 %v12225_v18, %v12790_v51 }
 0x7ac   : > { %v8473_v1 = vpack.c.bf16 %v8466_v58, %v8466_v58 }
 0x7ae   : > { %8487 = vrot.lane.b32.xlu0 %v8473_v1, %s14080_s16 }
 0x7b2   : > { %8819 = vrot.lane.b32.xlu0 %v8805_v40, %s14043_s22 }
 0x7e4   : > { %v5127_v20 = vpop.xlane.xlu1 %5126 }
 0x7e5   : > { %v5128_v19 = vmul.f32 0.001953125, %v5127_v20 }
 0x7e7   : > { %v5129_v6 = vadd.f32 1e-05, %v5128_v19 }
 0x7e8   : > { %v12800_v33 = vpop.permute.xlu1 %8614 }
 0x7e9   : > { %10120 = vrsqrt.f32 %v5129_v6 }
 0x7ec   : > { %v12802_v56 = vpop.permute.xlu1 %8618 }
 0x7ed   : > { %v8632_v51 = vmul.f32 %v12225_v18, %v12802_v56  ;;  %v5216_v18 = vsel %vm535_vm2, %v12219_v15, %v12229_v55 }
 0x7ef   : > { %v8639_v47 = vpack.c.bf16 %v8632_v51, %v8632_v51 }
 0x7f1   : > { %8653 = vrot.lane.b32.xlu1 %v8639_v47, %s14076_s9 }
 0x7f6   : > { %v10121_v58 = vpop.eup %10120 }
 0x7f7   : > { %v12808_v1 = vmul.f32 %v10121_v58, %v12686_v34  ;;  %v12811_v61 = vmul.f32 %v10121_v58, %v12689_v39  ;;  %v12814_v20 = vmul.f32 %v10121_v58, %v12698_v27  ;;  %v12817_v6 = vmul.f32 %v10121_v58, %v12703_v53 }
 0x7f8   : > { %v5215_v34 = vsel %vm535_vm2, %v12217_v43, %v12219_v15  ;;  %v5217_v53 = vsel %vm535_vm2, %v12229_v55, %v12302_v42  ;;  %v5170_v43 = vsel %vm488_vm3, %v12240_v17, %v12304_v9  ;;  %v5171_v15 = vsel %vm488_vm3, %v12304_v9, %v12251_v35 }
 0x7f9   : > { %5135 = vst [vmem:[#allocation2 + $0x10] sm:$0xff] %v12808_v1  ;;  %5136 = vst [vmem:[#allocation2 + $0x8] sm:$0xff] %v12811_v61  ;;  %v5225_v27 = vmul.f32 %v5216_v18, %v12811_v61  ;;  %v5224_v39 = vmul.f32 %v5215_v34, %v12808_v1  ;;  %v5227_v51 = vmul.f32 %v12302_v42, %v12817_v6 }
 0x7fa   : > { %5137 = vst [vmem:[#allocation2] sm:$0xff] %v12814_v20  ;;  %5138 = vst [vmem:[#allocation2 + $0x18] sm:$0xff] %v12817_v6  ;;  %v5226_v19 = vmul.f32 %v5217_v53, %v12814_v20  ;;  %v5179_v58 = vmul.f32 %v5170_v43, %v12808_v1  ;;  %v5180_v42 = vmul.f32 %v5171_v15, %v12811_v61 }
 0x7fb   : > { %v5232_v47 = vpack.c.bf16 %v5225_v27, %v5225_v27  ;;  %v5231_v40 = vpack.c.bf16 %v5224_v39, %v5224_v39  ;;  %v5234_v55 = vpack.c.bf16 %v5227_v51, %v5227_v51  ;;  %v5172_v34 = vsel %vm488_vm3, %v12251_v35, %v12306_v25 }
 0x7fc   : > { %v5233_v18 = vpack.c.bf16 %v5226_v19, %v5226_v19  ;;  %v5185_v17 = vpack.c.bf16 %v5179_v58, %v5179_v58  ;;  %v5181_v27 = vmul.f32 %v5172_v34, %v12814_v20  ;;  %v5186_v39 = vpack.c.bf16 %v5180_v42, %v5180_v42 }
 0x7fd   : > { %5244 = vrot.lane.b32.xlu1 %v5232_v47, %s14088_s20  ;;  %5242 = vrot.lane.b32.xlu0 %v5231_v40, %s14088_s20  ;;  %v5182_v9 = vmul.f32 %v12306_v25, %v12817_v6  ;;  %v5495_v53 = vsel %vm819_vm4, %v12308_v30, %v12270_v57  ;;  %v5494_v35 = vsel %vm819_vm4, %v12259_v14, %v12308_v30 }
 0x7fe   : > { %v5187_v47 = vpack.c.bf16 %v5181_v27, %v5181_v27  ;;  %v5504_v51 = vmul.f32 %v5495_v53, %v12811_v61  ;;  %v5503_v19 = vmul.f32 %v5494_v35, %v12808_v1  ;;  %v5496_v25 = vsel %vm819_vm4, %v12270_v57, %v12310_v10 }
 0x7ff   : > { %v5188_v40 = vpack.c.bf16 %v5182_v9, %v5182_v9  ;;  %v5506_v15 = vmul.f32 %v12310_v10, %v12817_v6  ;;  %v5505_v14 = vmul.f32 %v5496_v25, %v12814_v20  ;;  %v5660_v30 = vsel %vm988_vm5, %v12275_v5, %v12312_v7 }
 0x800   : > { %v5511_v43 = vpack.c.bf16 %v5504_v51, %v5504_v51  ;;  %v5661_v58 = vsel %vm988_vm5, %v12312_v7, %v12314_v22  ;;  %v5662_v34 = vsel %vm988_vm5, %v12314_v22, %v12316_v38  ;;  %v5672_v7 = vmul.f32 %v12316_v38, %v12817_v6 }
 0x801   : > { %5248 = vrot.lane.b32.xlu1 %v5234_v55, %s14088_s20  ;;  %5246 = vrot.lane.b32.xlu0 %v5233_v18, %s14088_s20  ;;  %v5510_v55 = vpack.c.bf16 %v5503_v19, %v5503_v19  ;;  %v5513_v57 = vpack.c.bf16 %v5506_v15, %v5506_v15  ;;  %v5669_v18 = vmul.f32 %v5660_v30, %v12808_v1 }
 0x802   : > { %v5512_v42 = vpack.c.bf16 %v5505_v14, %v5505_v14  ;;  %v5670_v10 = vmul.f32 %v5661_v58, %v12811_v61  ;;  %v5826_v22 = vsel %vm1157_vm6, %v12318_v21, %v12320_v60  ;;  %v5679_v35 = vpack.c.bf16 %v5672_v7, %v5672_v7 }
 0x803   : > { %v5676_v5 = vpack.c.bf16 %v5669_v18, %v5669_v18  ;;  %v5828_v38 = vsel %vm1157_vm6, %v12324_v45, %v12327_v24  ;;  %v5993_v25 = vsel %vm1024_vm7, %v12331_v12, %v12333_v48  ;;  %v6004_v58 = vmul.f32 %v12340_v23, %v12817_v6 }
 0x804   : > { %v5677_v27 = vpack.c.bf16 %v5670_v10, %v5670_v10  ;;  %v5837_v21 = vmul.f32 %v5828_v38, %v12814_v20  ;;  %v6159_v18 = vsel %vm855_vm8, %v12351_v63, %v12431_v52 }
 0x805   : > { %5359 = vrot.lane.b32.xlu1 %v5185_v17, %s14093_s11  ;;  %5361 = vrot.lane.b32.xlu0 %v5186_v39, %s14093_s11  ;;  %v5671_v17 = vmul.f32 %v5662_v34, %v12814_v20  ;;  %v5827_v39 = vsel %vm1157_vm6, %v12320_v60, %v12324_v45  ;;  %v5992_v60 = vsel %vm1024_vm7, %v12329_v59, %v12331_v12  ;;  %v12917_v45 = vpop.permute.xlu1 %8778 }
 0x806   : > { %v5836_v53 = vmul.f32 %v5827_v39, %v12811_v61  ;;  %v5844_v15 = vpack.c.bf16 %v5837_v21, %v5837_v21  ;;  %v5994_v59 = vsel %vm1024_vm7, %v12333_v48, %v12340_v23  ;;  %v6158_v48 = vsel %vm855_vm8, %v12342_v32, %v12351_v63 }
 0x807   : > { %v5678_v9 = vpack.c.bf16 %v5671_v17, %v5671_v17  ;;  %v6003_v30 = vmul.f32 %v5994_v59, %v12814_v20  ;;  %v6168_v10 = vmul.f32 %v6159_v18, %v12811_v61  ;;  %v6011_v34 = vpack.c.bf16 %v6004_v58, %v6004_v58  ;;  %v14242_v58 = vld [vmem:[#allocation34_spill] sm:$0xff]  ;;  %v14243_v18 = vld [vmem:[#allocation36_spill] sm:$0xff] }
 0x808   : > { %v5843_v51 = vpack.c.bf16 %v5836_v53, %v5836_v53  ;;  %v6167_v23 = vmul.f32 %v6158_v48, %v12808_v1  ;;  %v6170_v32 = vmul.f32 %v12354_v11, %v12817_v6  ;;  %v6324_v39 = vsel %vm571_vm9, %v12433_v36, %v12364_v0 }
 0x809   : > { %5363 = vrot.lane.b32.xlu1 %v5187_v47, %s14093_s11  ;;  %5365 = vrot.lane.b32.xlu0 %v5188_v40, %s14093_s11  ;;  %v5835_v47 = vmul.f32 %v5826_v22, %v12808_v1  ;;  %v5838_v40 = vmul.f32 %v12327_v24, %v12817_v6  ;;  %v6001_v24 = vmul.f32 %v5992_v60, %v12808_v1  ;;  %v12955_v22 = vpop.permute.xlu0 %8944 }
 0x80a   : > { %v6174_v63 = vpack.c.bf16 %v6167_v23, %v6167_v23  ;;  %v6326_v36 = vsel %vm571_vm9, %v12435_v41, %v12369_v28  ;;  %v6491_v21 = vsel %vm690_vm10, %v12451_v37, %v12386_v8  ;;  %v6656_v48 = vsel %vm14244_vm0, %v14243_v18, %v14242_v58 }
 0x80b   : > { %v5842_v19 = vpack.c.bf16 %v5835_v47, %v5835_v47  ;;  %v6008_v14 = vpack.c.bf16 %v6001_v24, %v6001_v24  ;;  %vm14258_vm0 = vcmask 990208  }
 0x80d   : > { %5523 = vrot.lane.b32.xlu1 %v5511_v43, %s14080_s16  ;;  %5521 = vrot.lane.b32.xlu0 %v5510_v55, %s14080_s16  ;;  %v5845_v43 = vpack.c.bf16 %v5838_v40, %v5838_v40  ;;  %v6002_v55 = vmul.f32 %v5993_v25, %v12811_v61 }
 0x80f   : > { %v6009_v12 = vpack.c.bf16 %v6002_v55, %v6002_v55  ;;  %v14241_v55 = vld [vmem:[#allocation27_spill] sm:$0xff] }
 0x810   : > { %v6492_v59 = vsel %vm690_vm10, %v12386_v8, %v14241_v55 }
 0x811   : > { %5527 = vrot.lane.b32.xlu1 %v5513_v57, %s14080_s16  ;;  %5525 = vrot.lane.b32.xlu0 %v5512_v42, %s14080_s16  ;;  %v12929_v57 = vpop.permute.xlu1 %8782  ;;  %v6010_v42 = vpack.c.bf16 %v6003_v30, %v6003_v30  ;;  %v6501_v30 = vmul.f32 %v6492_v59, %v12814_v20 }
 0x815   : > { %5687 = vrot.lane.b32.xlu1 %v5676_v5, %s14076_s9  ;;  %5689 = vrot.lane.b32.xlu0 %v5677_v27, %s14076_s9  ;;  %v6160_v5 = vsel %vm855_vm8, %v12431_v52, %v12354_v11  ;;  %v12946_v17 = vpop.permute.xlu1 %7657  ;;  %v6175_v27 = vpack.c.bf16 %v6168_v10, %v6168_v10  ;;  %v6325_v52 = vsel %vm571_vm9, %v12364_v0, %v12435_v41  ;;  %v12971_v0 = vpop.permute.xlu0 %8948 }
 0x816   : > { %v6169_v7 = vmul.f32 %v6160_v5, %v12814_v20  ;;  %v6333_v11 = vmul.f32 %v6324_v39, %v12808_v1  ;;  %v6490_v41 = vsel %vm690_vm10, %v12379_v50, %v12451_v37  ;;  %v6502_v50 = vmul.f32 %v14241_v55, %v12817_v6 }
 0x817   : > { %v6508_v5 = vpack.c.bf16 %v6501_v30, %v6501_v30  ;;  %v14256_v30 = vld [vmem:[#allocation57_spill] sm:$0xff] }
 0x818   : > { %v6176_v53 = vpack.c.bf16 %v6169_v7, %v6169_v7  ;;  %v6340_v38 = vpack.c.bf16 %v6333_v11, %v6333_v11  ;;  %v6509_v10 = vpack.c.bf16 %v6502_v50, %v6502_v50 }
 0x819   : > { %5691 = vrot.lane.b32.xlu1 %v5678_v9, %s14076_s9  ;;  %5693 = vrot.lane.b32.xlu0 %v5679_v35, %s14076_s9  ;;  %v6177_v9 = vpack.c.bf16 %v6170_v32, %v6170_v32  ;;  %v6334_v35 = vmul.f32 %v6325_v52, %v12811_v61  ;;  %v12963_v47 = vpop.permute.xlu1 %8946  ;;  %v14247_v32 = vld [vmem:[#allocation25_spill] sm:$0xff] }
 0x81a   : > { %v6668_v11 = vmul.f32 %v14247_v32, %v12817_v6 }
 0x81b   : > { %v6341_v40 = vpack.c.bf16 %v6334_v35, %v6334_v35  ;;  %v14250_v35 = vld [vmem:[#allocation38_spill] sm:$0xff] }
 0x81d   : > { %5855 = vrot.lane.b32.xlu1 %v5843_v51, %s14043_s22  ;;  %5853 = vrot.lane.b32.xlu0 %v5842_v19, %s14043_s22  ;;  %v6335_v51 = vmul.f32 %v6326_v36, %v12814_v20  ;;  %v6336_v19 = vmul.f32 %v12369_v28, %v12817_v6  ;;  %v12983_v60 = vpop.permute.xlu1 %8950  ;;  %v6499_v28 = vmul.f32 %v6490_v41, %v12808_v1 }
 0x81e   : > { %v6675_v41 = vpack.c.bf16 %v6668_v11, %v6668_v11 }
 0x81f   : > { %v6342_v25 = vpack.c.bf16 %v6335_v51, %v6335_v51  ;;  %v6343_v24 = vpack.c.bf16 %v6336_v19, %v6336_v19  ;;  %v6506_v37 = vpack.c.bf16 %v6499_v28, %v6499_v28  ;;  %v14252_v51 = vld [vmem:[#allocation35_spill] sm:$0xff] }
 0x821   : > { %5859 = vrot.lane.b32.xlu1 %v5845_v43, %s14043_s22  ;;  %5857 = vrot.lane.b32.xlu0 %v5844_v15, %s14043_s22  ;;  %v6500_v43 = vmul.f32 %v6491_v21, %v12811_v61  ;;  %v12988_v15 = vpop.permute.xlu0 %7823 }
 0x825   : > { %6019 = vrot.lane.b32.xlu1 %v6008_v14, %s14044_s15  ;;  %6021 = vrot.lane.b32.xlu0 %v6009_v12, %s14044_s15  ;;  %v6507_v14 = vpack.c.bf16 %v6500_v43, %v6500_v43  ;;  %v12997_v12 = vpop.permute.xlu1 %9110  ;;  %v13008_v23 = vpop.permute.xlu0 %9112 }
 0x829   : > { %6023 = vrot.lane.b32.xlu1 %v6010_v42, %s14044_s15  ;;  %6025 = vrot.lane.b32.xlu0 %v6011_v34, %s14044_s15  ;;  %v14245_v42 = vld [vmem:[#allocation28_spill] sm:$0xff]  ;;  %v6665_v34 = vmul.f32 %v6656_v48, %v12808_v1  ;;  %v13016_v7 = vpop.permute.xlu1 %9114 }
 0x82a   : > { %v6657_v8 = vsel %vm14246_vm12, %v14242_v58, %v14245_v42  ;;  %v14257_v58 = vld [vmem:[#allocation39_spill] sm:$0xff]  ;;  %v14259_v48 = vld [vmem:[#allocation32_spill] sm:$0xff]  ;;  %vm14260_vm12 = vmmov %vm14258_vm0 }
 0x82b   : > { %v6672_v39 = vpack.c.bf16 %v6665_v34, %v6665_v34  ;;  %v6988_v18 = vsel %vm14258_vm0, %v14257_v58, %v14256_v30 }
 0x82c   : > { %v6997_v34 = vmul.f32 %v6988_v18, %v12808_v1 }
 0x82d   : > { %6187 = vrot.lane.b32.xlu1 %v6175_v27, %s14046_s17  ;;  %6185 = vrot.lane.b32.xlu0 %v6174_v63, %s14046_s17  ;;  %v6666_v27 = vmul.f32 %v6657_v8, %v12811_v61  ;;  %v6658_v63 = vsel %vm14248_vm11, %v14245_v42, %v14247_v32  ;;  %v13033_v43 = vpop.permute.xlu1 %7989  ;;  %v6989_v42 = vsel %vm14260_vm12, %v14256_v30, %v14259_v48  ;;  %vm14262_vm11 = vmmov %vm14258_vm0  ;;  %vm14276_vm0 = vcmask 56320  }
 0x82e   : > { %v6667_v52 = vmul.f32 %v6658_v63, %v12814_v20  ;;  %v6998_v32 = vmul.f32 %v6989_v42, %v12811_v61  ;;  %v14261_v63 = vld [vmem:[#allocation61_spill] sm:$0xff]  ;;  %vm14278_vm12 = vmmov %vm14276_vm0 }
 0x830   : > { %v6674_v19 = vpack.c.bf16 %v6667_v52, %v6667_v52  ;;  %v7004_v52 = vpack.c.bf16 %v6997_v34, %v6997_v34  ;;  %v7005_v11 = vpack.c.bf16 %v6998_v32, %v6998_v32 }
 0x831   : > { %6191 = vrot.lane.b32.xlu1 %v6177_v9, %s14046_s17  ;;  %6189 = vrot.lane.b32.xlu0 %v6176_v53, %s14046_s17  ;;  %v6673_v9 = vpack.c.bf16 %v6666_v27, %v6666_v27  ;;  %v14249_v53 = vld [vmem:[#allocation65_spill] sm:$0xff]  ;;  %v13053_v8 = vpop.permute.xlu1 %9278 }
 0x832   : > { %v6823_v36 = vsel %vm14251_vm13, %v14250_v35, %v14249_v53  ;;  %vm14269_vm13 = vcmask 7168  }
 0x833   : > { %v6832_v21 = vmul.f32 %v6823_v36, %v12811_v61  ;;  %v14263_v36 = vld [vmem:[#allocation43_spill] sm:$0xff] }
 0x835   : > { %6351 = vrot.lane.b32.xlu1 %v6340_v38, %s14048_s21  ;;  %6353 = vrot.lane.b32.xlu0 %v6341_v40, %s14048_s21  ;;  %v13025_v38 = vpop.permute.xlu0 %9116  ;;  %v6822_v40 = vsel %vm14253_vm15, %v14252_v51, %v14250_v35  ;;  %v6839_v55 = vpack.c.bf16 %v6832_v21, %v6832_v21  ;;  %v13067_v35 = vpop.permute.xlu1 %9282  ;;  %v14264_v51 = vld [vmem:[#allocation40_spill] sm:$0xff]  ;;  %v14265_v21 = vld [vmem:[#allocation62_spill] sm:$0xff]  ;;  %vm14271_vm15 = vmmov %vm14269_vm13 }
 0x839   : > { %6355 = vrot.lane.b32.xlu1 %v6342_v25, %s14048_s21  ;;  %6357 = vrot.lane.b32.xlu0 %v6343_v24, %s14048_s21  ;;  %v6831_v25 = vmul.f32 %v6822_v40, %v12808_v1  ;;  %v14254_v24 = vld [vmem:[#allocation30_spill] sm:$0xff]  ;;  %v7155_v40 = vsel %vm2509_vm14, %v14264_v51, %v14263_v36  ;;  %v13088_v30 = vpop.permute.xlu1 %9442 }
 0x83a   : > { %v6824_v28 = vsel %vm14255_vm1, %v14249_v53, %v14254_v24  ;;  %v6834_v59 = vmul.f32 %v14254_v24, %v12817_v6  ;;  %v7000_v53 = vmul.f32 %v14261_v63, %v12817_v6  ;;  %v7164_v24 = vmul.f32 %v7155_v40, %v12811_v61  ;;  %vm14273_vm1 = vmmov %vm14269_vm13 }
 0x83b   : > { %v6838_v50 = vpack.c.bf16 %v6831_v25, %v6831_v25 }
 0x83c   : > { %v7171_v58 = vpack.c.bf16 %v7164_v24, %v7164_v24  ;;  %v14270_v24 = vld [vmem:[#allocation63_spill] sm:$0xff] }
 0x83d   : > { %6519 = vrot.lane.b32.xlu1 %v6507_v14, %s14051_s19  ;;  %6517 = vrot.lane.b32.xlu0 %v6506_v37, %s14051_s19  ;;  %v13042_v14 = vpop.permute.xlu0 %9276  ;;  %v6833_v37 = vmul.f32 %v6824_v28, %v12814_v20  ;;  %v7007_v28 = vpack.c.bf16 %v7000_v53, %v7000_v53 }
 0x83f   : > { %v6840_v27 = vpack.c.bf16 %v6833_v37, %v6833_v37 }
 0x841   : > { %6523 = vrot.lane.b32.xlu1 %v6509_v10, %s14051_s19  ;;  %6521 = vrot.lane.b32.xlu0 %v6508_v5, %s14051_s19  ;;  %v6841_v10 = vpack.c.bf16 %v6834_v59, %v6834_v59  ;;  %v13056_v5 = vpop.permute.xlu0 %9280 }
 0x845   : > { %6683 = vrot.lane.b32.xlu1 %v6672_v39, %s14113_s0  ;;  %6685 = vrot.lane.b32.xlu0 %v6673_v9, %s14113_s0  ;;  %v6990_v39 = vsel %vm14262_vm11, %v14259_v48, %v14261_v63  ;;  %vm5257_vm11 = vcmask 1043456  }
 0x846   : > { %v6999_v9 = vmul.f32 %v6990_v39, %v12814_v20 }
 0x848   : > { %v7006_v25 = vpack.c.bf16 %v6999_v9, %v6999_v9 }
 0x849   : > { %6687 = vrot.lane.b32.xlu1 %v6674_v19, %s14113_s0  ;;  %6689 = vrot.lane.b32.xlu0 %v6675_v41, %s14113_s0  ;;  %v13073_v19 = vpop.permute.xlu0 %8155  ;;  %v7154_v41 = vsel %vm2509_vm14, %v14265_v21, %v14264_v51  ;;  %v14268_v21 = vld [vmem:[#allocation60_spill] sm:$0xff] }
 0x84d   : > { %6851 = vrot.lane.b32.xlu1 %v6839_v55, %s14119_s1  ;;  %6849 = vrot.lane.b32.xlu0 %v6838_v50, %s14119_s1  ;;  %v7163_v55 = vmul.f32 %v7154_v41, %v12808_v1  ;;  %v13082_v59 = vpop.permute.xlu0 %9444  ;;  %v14266_v50 = vld [vmem:[#allocation45_spill] sm:$0xff] }
 0x84e   : > { %v7156_v37 = vsel %vm2509_vm14, %v14263_v36, %v14266_v50  ;;  %v7166_v18 = vmul.f32 %v14266_v50, %v12817_v6  ;;  %v14267_v36 = vld [vmem:[#allocation44_spill] sm:$0xff] }
 0x84f   : > { %v7170_v48 = vpack.c.bf16 %v7163_v55, %v7163_v55  ;;  %v7165_v42 = vmul.f32 %v7156_v37, %v12814_v20  ;;  %v7466_v51 = vmul.f32 %v14267_v36, %v12808_v1  ;;  %v7458_v41 = vsel %vm14269_vm13, %v14267_v36, %v14268_v21  ;;  %vm14280_vm13 = vmmov %vm14276_vm0 }
 0x850   : > { %v7467_v50 = vmul.f32 %v7458_v41, %v12811_v61 }
 0x851   : > { %6855 = vrot.lane.b32.xlu1 %v6841_v10, %s14119_s1  ;;  %6853 = vrot.lane.b32.xlu0 %v6840_v27, %s14119_s1  ;;  %v13095_v10 = vld [vmem:[#allocation2 + $0x28] sm:$0xff]  ;;  %v7173_v27 = vpack.c.bf16 %v7166_v18, %v7166_v18  ;;  %v13101_v63 = vpop.permute.xlu0 %9448  ;;  %v7172_v39 = vpack.c.bf16 %v7165_v42, %v7165_v42  ;;  %v7473_v37 = vpack.c.bf16 %v7466_v51, %v7466_v51  ;;  %v14277_v51 = vld [vmem:[#allocation48_spill] sm:$0xff]  ;;  %s14395_s1 = sshll.u32 %s10388_s8, 4 }
 0x852   : > { %v8964_v34 = vmul.f32 %v13095_v10, %v12983_v60  ;;  %v9130_v32 = vmul.f32 %v13095_v10, %v13025_v38 }
 0x854   : > { %v8971_v9 = vpack.c.bf16 %v8964_v34, %v8964_v34  ;;  %v9137_v53 = vpack.c.bf16 %v9130_v32, %v9130_v32  ;;  %v14275_v32 = vld [vmem:[#allocation46_spill] sm:$0xff] }
 0x855   : > { %7015 = vrot.lane.b32.xlu1 %v7004_v52, %s14124_s10  ;;  %7017 = vrot.lane.b32.xlu0 %v7005_v11, %s14124_s10  ;;  %v13103_v52 = vpop.permute.xlu1 %9446  ;;  %v9296_v11 = vmul.f32 %v13095_v10, %v13067_v35 }
 0x857   : > { %v9303_v55 = vpack.c.bf16 %v9296_v11, %v9296_v11 }
 0x859   : > { %7019 = vrot.lane.b32.xlu1 %v7006_v25, %s14124_s10  ;;  %7021 = vrot.lane.b32.xlu0 %v7007_v28, %s14124_s10  ;;  %v13111_v40 = vpop.permute.xlu1 %8321  ;;  %v13117_v25 = vpop.permute.xlu0 %8487  ;;  %v7459_v28 = vsel %vm14271_vm15, %v14268_v21, %v14270_v24  ;;  %v7626_v21 = vsel %vm14278_vm12, %v14277_v51, %v12683_v54  ;;  %vm14283_vm15 = vcmask 64512  }
 0x85d   : > { %7183 = vrot.lane.b32.xlu1 %v7171_v58, %s14130_s26  ;;  %7181 = vrot.lane.b32.xlu0 %v7170_v48, %s14130_s26  ;;  %v7468_v58 = vmul.f32 %v7459_v28, %v12814_v20  ;;  %v14272_v48 = vld [vmem:[#allocation47_spill] sm:$0xff]  ;;  %v13132_v34 = vpop.permute.xlu0 %8819  ;;  %v7632_v28 = vmul.f32 %v14275_v32, %v12808_v1 }
 0x85e   : > { %v7460_v42 = vsel %vm14273_vm1, %v14270_v24, %v14272_v48  ;;  %vm14284_vm1 = vmmov %vm14283_vm15 }
 0x85f   : > { %v7469_v11 = vmul.f32 %v7460_v42, %v12817_v6 }
 0x861   : > { %7187 = vrot.lane.b32.xlu1 %v7173_v27, %s14130_s26  ;;  %7185 = vrot.lane.b32.xlu0 %v7172_v39, %s14130_s26  ;;  %v14274_v27 = vld [vmem:[#allocation67_spill] sm:$0xff]  ;;  %v7476_v24 = vpack.c.bf16 %v7469_v11, %v7469_v11  ;;  %v9881_v11 = vld [vmem:[%s13878_s4 + $0x2] sm:$0x3] }
 0x862   : > { %v7624_v39 = vsel %vm14276_vm0, %v14275_v32, %v14274_v27  ;;  %v7625_v54 = vsel %vm14280_vm13, %v14274_v27, %v14277_v51  ;;  %vm14285_vm0 = vmmov %vm14284_vm1  ;;  %vm14291_vm13 = vcmask 72704  }
 0x863   : > { %v13126_v18 = vpop.permute.xlu1 %8653  ;;  %v7633_v36 = vmul.f32 %v7624_v39, %v12811_v61  ;;  %vm14289_vm12 = vmmov %vm14285_vm0 }
 0x865   : > { %8985 = vrot.lane.b32.xlu1 %v8971_v9, %s14044_s15  ;;  %9151 = vrot.lane.b32.xlu0 %v9137_v53, %s14046_s17  ;;  %v7474_v9 = vpack.c.bf16 %v7467_v50, %v7467_v50  ;;  %v7475_v53 = vpack.c.bf16 %v7468_v58, %v7468_v58  ;;  %v7640_v50 = vpack.c.bf16 %v7633_v36, %v7633_v36  ;;  %v14279_v58 = vld [vmem:[#allocation26_spill] sm:$0xff] }
 0x869   : > { %9317 = vrot.lane.b32.xlu1 %v9303_v55, %s14048_s21  ;;  %7483 = vrot.lane.b32.xlu0 %v7473_v37, %s14138_s25  ;;  %v7635_v37 = vmul.f32 %v7626_v21, %v12817_v6 }
 0x86b   : > { %v7642_v21 = vpack.c.bf16 %v7635_v37, %v7635_v37 }
 0x86d   : > { %7485 = vrot.lane.b32.xlu1 %v7474_v9, %s14138_s25  ;;  %7487 = vrot.lane.b32.xlu0 %v7475_v53, %s14138_s25  ;;  %v7639_v9 = vpack.c.bf16 %v7632_v28, %v7632_v28  ;;  %v7634_v53 = vmul.f32 %v7625_v54, %v12814_v20 }
 0x86f   : > { %v5245_v41 = vpop.permute.xlu1 %5244  ;;  %v5243_v55 = vpop.permute.xlu0 %5242 }
 0x870   : > { %v5250_v48 = vsel %vm571_vm9, %v14279_v58, %v5243_v55  ;;  %v5251_v42 = vsel %vm571_vm9, %v5243_v55, %v5245_v41 }
 0x871   : > { %7489 = vrot.lane.b32.xlu1 %v7476_v24, %s14138_s25  ;;  %7651 = vrot.lane.b32.xlu0 %v7640_v50, %s14100_s18  ;;  %v5259_v32 = vsel %vm5257_vm11, %v5250_v48, 0  ;;  %v14281_v24 = vld [vmem:[#allocation59_spill] sm:$0xff]  ;;  %v14282_v50 = vld [vmem:[#allocation41_spill] sm:$0xff]  ;;  %v7641_v48 = vpack.c.bf16 %v7634_v53, %v7634_v53 }
 0x872   : > { %9882 = vmatprep.subr.msk.bf16.mxu0 %vm5257_vm11, %v5251_v42  ;;  %v7798_v27 = vmul.f32 %v14281_v24, %v12808_v1  ;;  %v7790_v28 = vsel %vm14283_vm15, %v14281_v24, %v14282_v50  ;;  %v7791_v37 = vsel %vm14285_vm0, %v14282_v50, %v12700_v2  ;;  %v14286_v42 = vmov 0   ;;  %v14290_v50 = vld [vmem:[#allocation54_spill] sm:$0xff]  ;;  %vm14292_vm15 = vmmov %vm14285_vm0 }
 0x873   : > { %5285 = vmatpush1.bf16.msra.mxu0 %v5259_v32  ;;  %v5249_v39 = vpop.permute.xlu1 %5248  ;;  %v5247_v36 = vpop.permute.xlu0 %5246  ;;  %v7799_v54 = vmul.f32 %v7790_v28, %v12811_v61  ;;  %v14287_v32 = vld [vmem:[#allocation33_spill] sm:$0xff] }
 0x874   : > { %v5252_v51 = vsel %vm571_vm9, %v5245_v41, %v5247_v36  ;;  %v5253_v55 = vsel %vm571_vm9, %v5247_v36, %v5249_v39  ;;  %v7805_v36 = vpack.c.bf16 %v7798_v27, %v7798_v27  ;;  %v7956_v27 = vsel %vm14291_vm13, %v14290_v50, %v12711_v13 }
 0x875   : > { %7649 = vrot.lane.b32.xlu1 %v7639_v9, %s14100_s18  ;;  %7655 = vrot.lane.b32.xlu0 %v7642_v21, %s14100_s18  ;;  %v5265_v58 = vsel %vm5257_vm11, %v5252_v51, 0  ;;  %v7800_v21 = vmul.f32 %v7791_v37, %v12814_v20  ;;  %v5183_v37 = vld [vmem:[%s13878_s4] sm:$0x3] }
 0x876   : > { %9883 = vmatmul.mubr.msk.bf16.vlgmr.msra.gmra.mxu0 %vm14284_vm1, %v9881_v11  ;;  %9884 = vmatprep.subr.msk.bf16.mxu1 %vm5257_vm11, %v5253_v55  ;;  %v14288_v55 = vld [vmem:[#allocation51_spill] sm:$0xff]  ;;  %vm14293_vm1 = vmmov %vm14285_vm0 }
 0x877   : > { %v5360_v41 = vpop.permute.xlu1 %5359  ;;  %5418 = vmatprep.mubr.bf16.mxu0 %v14286_v42  ;;  %5326 = vmatpush1.bf16.msra.mxu1 %v5265_v58  ;;  %v5362_v9 = vpop.permute.xlu0 %5361  ;;  %v7792_v53 = vsel %vm14289_vm12, %v12700_v2, %v14288_v55  ;;  %v7806_v58 = vpack.c.bf16 %v7799_v54, %v7799_v54  ;;  %v14294_v54 = vld [vmem:[#allocation55_spill] sm:$0xff]  ;;  %vm14295_vm0 = vmmov %vm14291_vm13 }
 0x878   : > { %v5367_v39 = vsel %vm690_vm10, %v14287_v32, %v5360_v41  ;;  %v5368_v24 = vsel %vm690_vm10, %v5360_v41, %v5362_v9  ;;  %v7801_v41 = vmul.f32 %v7792_v53, %v12817_v6  ;;  %v7807_v32 = vpack.c.bf16 %v7800_v21, %v7800_v21  ;;  %vm14297_vm12 = vmmov %vm14295_vm0 }
 0x879   : > { %7653 = vrot.lane.b32.xlu1 %v7641_v48, %s14100_s18  ;;  %v5375_v51 = vsel %vm5257_vm11, %v5367_v39, 0  ;;  %7815 = vrot.lane.b32.xlu0 %v7805_v36, %s14085_s29  ;;  %v7965_v39 = vmul.f32 %v7956_v27, %v12811_v61  ;;  %vm14298_vm13 = vmmov %vm14293_vm1 }
 0x87a   : > { %9886 = vmatprep.subr.msk.bf16.mxu0 %vm5257_vm11, %v5368_v24  ;;  %9885 = vmatmul.mubr.msk.bf16.vlgmr.msra.gmra.mxu1 %vm14292_vm15, %v9881_v11  ;;  %v7808_v24 = vpack.c.bf16 %v7801_v41, %v7801_v41  ;;  %v7957_v41 = vsel %vm14297_vm12, %v12711_v13, %v14294_v54  ;;  %v8130_v13 = vmul.f32 %v12717_v16, %v12808_v1  ;;  %vm14300_vm15 = vmmov %vm14293_vm1 }
 0x87b   : > { %5401 = vmatpush1.bf16.msra.mxu0 %v5375_v51  ;;  %v5364_v28 = vpop.permute.xlu1 %5363  ;;  %v5366_v48 = vpop.permute.xlu0 %5365  ;;  %5459 = vmatprep.mubr.bf16.mxu1 %v14286_v42  ;;  %v7964_v51 = vmul.f32 %v14290_v50, %v12808_v1  ;;  %v7972_v53 = vpack.c.bf16 %v7965_v39, %v7965_v39  ;;  %v7966_v39 = vmul.f32 %v7957_v41, %v12814_v20 }
 0x87c   : > { %v5369_v2 = vsel %vm690_vm10, %v5362_v9, %v5364_v28  ;;  %v5370_v36 = vsel %vm690_vm10, %v5364_v28, %v5366_v48  ;;  %v7958_v9 = vsel %vm14295_vm0, %v14294_v54, %v12713_v26  ;;  %v14296_v28 = vld [vmem:[#allocation37_spill] sm:$0xff]  ;;  %vm14303_vm0 = vmmov %vm14293_vm1 }
 0x87d   : > { %7817 = vrot.lane.b32.xlu1 %v7806_v58, %s14085_s29  ;;  %v5381_v11 = vsel %vm5257_vm11, %v5369_v2, 0  ;;  %7819 = vrot.lane.b32.xlu0 %v7807_v32, %s14085_s29  ;;  %v7967_v27 = vmul.f32 %v7958_v9, %v12817_v6  ;;  %v7971_v48 = vpack.c.bf16 %v7964_v51, %v7964_v51  ;;  %v9891_v32 = vld [vmem:[%s13878_s4 + $0x4] sm:$0x3]  ;;  %v14299_v9 = vld [vmem:[#allocation42_spill] sm:$0xff]  ;;  %vm14305_vm12 = vmmov %vm14303_vm0 }
 0x87e   : > { %9887 = vmatmul.mubr.msk.bf16.vlgmr.msra.gmra.mxu0 %vm14293_vm1, %v5183_v37  ;;  %9888 = vmatprep.subr.msk.bf16.mxu1 %vm5257_vm11, %v5370_v36 }
 0x87f   : > { %v5524_v21 = vpop.permute.xlu1 %5523  ;;  %5580 = vmatprep.mubr.bf16.mxu0 %v14286_v42  ;;  %5442 = vmatpush1.bf16.msra.mxu1 %v5381_v11  ;;  %v5522_v55 = vpop.permute.xlu0 %5521  ;;  %v7974_v11 = vpack.c.bf16 %v7967_v27, %v7967_v27 }
 0x880   : > { %v5529_v58 = vsel %vm855_vm8, %v14296_v28, %v5522_v55  ;;  %v5530_v26 = vsel %vm855_vm8, %v5522_v55, %v5524_v21  ;;  %v8123_v55 = vsel %vm488_vm3, %v14299_v9, %v12722_v29 }
 0x881   : > { %7821 = vrot.lane.b32.xlu1 %v7808_v24, %s14085_s29  ;;  %7983 = vrot.lane.b32.xlu0 %v7972_v53, %s14102_s12  ;;  %v5537_v50 = vsel %vm5257_vm11, %v5529_v58, 0  ;;  %v8122_v24 = vsel %vm488_vm3, %v12717_v16, %v14299_v9  ;;  %v7973_v53 = vpack.c.bf16 %v7966_v39, %v7966_v39  ;;  %v14301_v16 = vld [vmem:[#allocation66_spill] sm:$0xff]  ;;  %v8132_v41 = vmul.f32 %v8123_v55, %v12814_v20 }
 0x882   : > { %9892 = vmatprep.subr.msk.bf16.mxu0 %vm5257_vm11, %v5530_v26  ;;  %9889 = vmatmul.mubr.msk.bf16.vlgmr.msra.gmra.mxu1 %vm14298_vm13, %v5183_v37  ;;  %v8131_v27 = vmul.f32 %v8122_v24, %v12811_v61  ;;  %v8137_v26 = vpack.c.bf16 %v8130_v13, %v8130_v13  ;;  %vm14306_vm13 = vmmov %vm14303_vm0 }
 0x883   : > { %5563 = vmatpush1.bf16.msra.mxu0 %v5537_v50  ;;  %v5528_v2 = vpop.permute.xlu1 %5527  ;;  %v5526_v36 = vpop.permute.xlu0 %5525  ;;  %5621 = vmatprep.mubr.bf16.mxu1 %v14286_v42  ;;  %v8139_v24 = vpack.c.bf16 %v8132_v41, %v8132_v41  ;;  %v14304_v41 = vld [vmem:[#allocation49_spill] sm:$0xff] }
 0x884   : > { %v5531_v54 = vsel %vm855_vm8, %v5524_v21, %v5526_v36  ;;  %v5532_v37 = vsel %vm855_vm8, %v5526_v36, %v5528_v2  ;;  %v8288_v36 = vsel %vm535_vm2, %v12766_v31, %v12735_v3  ;;  %v8138_v13 = vpack.c.bf16 %v8131_v27, %v8131_v27 }
 0x885   : > { %7981 = vrot.lane.b32.xlu1 %v7971_v48, %s14102_s12  ;;  %v5543_v51 = vsel %vm5257_vm11, %v5531_v54, 0  ;;  %7987 = vrot.lane.b32.xlu0 %v7974_v11, %s14102_s12  ;;  %v14302_v48 = vld [vmem:[#allocation56_spill] sm:$0xff]  ;;  %v9897_v54 = vld [vmem:[%s13878_s4 + $0x6] sm:$0x3] }
 0x886   : > { %9893 = vmatmul.mubr.msk.bf16.vlgmr.msra.gmra.mxu0 %vm14300_vm15, %v9891_v32  ;;  %9894 = vmatprep.subr.msk.bf16.mxu1 %vm5257_vm11, %v5532_v37  ;;  %v8124_v39 = vsel %vm488_vm3, %v12722_v29, %v14302_v48  ;;  %vm14311_vm15 = vmmov %vm14303_vm0 }
 0x887   : > { %v5688_v21 = vpop.permute.xlu1 %5687  ;;  %5746 = vmatprep.mubr.bf16.mxu0 %v14286_v42  ;;  %5604 = vmatpush1.bf16.msra.mxu1 %v5543_v51  ;;  %v5690_v58 = vpop.permute.xlu0 %5689  ;;  %v8133_v37 = vmul.f32 %v8124_v39, %v12817_v6  ;;  %v8297_v51 = vmul.f32 %v8288_v36, %v12811_v61  ;;  %v9903_v36 = vld [vmem:[%s13878_s4 + $0x8] sm:$0x3] }
 0x888   : > { %v5695_v28 = vsel %vm1024_vm7, %v14301_v16, %v5688_v21  ;;  %v5696_v2 = vsel %vm1024_vm7, %v5688_v21, %v5690_v58  ;;  %v8290_v21 = vsel %vm535_vm2, %v12773_v62, %v12743_v46  ;;  %v8296_v16 = vmul.f32 %v12766_v31, %v12808_v1 }
 0x889   : > { %v5703_v50 = vsel %vm5257_vm11, %v5695_v28, 0  ;;  %7985 = vrot.lane.b32.xlu1 %v7973_v53, %s14102_s12  ;;  %8147 = vrot.lane.b32.xlu0 %v8137_v26, %s14093_s11  ;;  %v8140_v27 = vpack.c.bf16 %v8133_v37, %v8133_v37  ;;  %v8299_v26 = vmul.f32 %v8290_v21, %v12817_v6  ;;  %v8289_v46 = vsel %vm535_vm2, %v12735_v3, %v12773_v62 }
 0x88a   : > { %9898 = vmatprep.subr.msk.bf16.mxu0 %vm5257_vm11, %v5696_v2  ;;  %9895 = vmatmul.mubr.msk.bf16.vlgmr.msra.gmra.mxu1 %vm14293_vm1, %v9891_v32  ;;  %v8303_v39 = vpack.c.bf16 %v8296_v16, %v8296_v16  ;;  %v8462_v3 = vmul.f32 %v12748_v44, %v12808_v1  ;;  %vm14312_vm1 = vmmov %vm14303_vm0 }
 0x88b   : > { %5729 = vmatpush1.bf16.msra.mxu0 %v5703_v50  ;;  %v5692_v11 = vpop.permute.xlu1 %5691  ;;  %v5694_v9 = vpop.permute.xlu0 %5693  ;;  %5787 = vmatprep.mubr.bf16.mxu1 %v14286_v42  ;;  %v8306_v37 = vpack.c.bf16 %v8299_v26, %v8299_v26  ;;  %v14309_v26 = vld [vmem:[#allocation70_spill] sm:$0xff] }
 0x88c   : > { %v5697_v29 = vsel %vm1024_vm7, %v5690_v58, %v5692_v11  ;;  %v5698_v32 = vsel %vm1024_vm7, %v5692_v11, %v5694_v9  ;;  %v8304_v58 = vpack.c.bf16 %v8297_v51, %v8297_v51  ;;  %v8298_v11 = vmul.f32 %v8289_v46, %v12814_v20 }
 0x88d   : > { %v5709_v55 = vsel %vm5257_vm11, %v5697_v29, 0  ;;  %8149 = vrot.lane.b32.xlu1 %v8138_v13, %s14093_s11  ;;  %8151 = vrot.lane.b32.xlu0 %v8139_v24, %s14093_s11  ;;  %v8454_v29 = vsel %vm819_vm4, %v12748_v44, %v12788_v4  ;;  %v14307_v24 = vld [vmem:[#allocation29_spill] sm:$0xff]  ;;  %v14308_v44 = vld [vmem:[#allocation58_spill] sm:$0xff]  ;;  %v8469_v16 = vpack.c.bf16 %v8462_v3, %v8462_v3 }
 0x88e   : > { %9899 = vmatmul.mubr.msk.bf16.vlgmr.msra.gmra.mxu0 %vm14303_vm0, %v9897_v54  ;;  %9900 = vmatprep.subr.msk.bf16.mxu1 %vm5257_vm11, %v5698_v32  ;;  %v8455_v51 = vsel %vm819_vm4, %v12788_v4, %v14307_v24  ;;  %v8305_v32 = vpack.c.bf16 %v8298_v11, %v8298_v11  ;;  %v8463_v21 = vmul.f32 %v8454_v29, %v12811_v61 }
 0x88f   : > { %v5856_v53 = vpop.permute.xlu1 %5855  ;;  %5912 = vmatprep.mubr.bf16.mxu0 %v14286_v42  ;;  %5770 = vmatpush1.bf16.msra.mxu1 %v5709_v55  ;;  %v5854_v28 = vpop.permute.xlu0 %5853 }
 0x890   : > { %v5861_v50 = vsel %vm1157_vm6, %v14304_v41, %v5854_v28  ;;  %v5862_v2 = vsel %vm1157_vm6, %v5854_v28, %v5856_v53  ;;  %v8464_v28 = vmul.f32 %v8455_v51, %v12814_v20  ;;  %v8456_v41 = vsel %vm819_vm4, %v14307_v24, %v14309_v26  ;;  %v9915_v26 = vld [vmem:[%s13878_s4 + $0xc] sm:$0x3] }
 0x891   : > { %8153 = vrot.lane.b32.xlu1 %v8140_v27, %s14093_s11  ;;  %v5869_v48 = vsel %vm5257_vm11, %v5861_v50, 0  ;;  %8315 = vrot.lane.b32.xlu0 %v8304_v58, %s14088_s20  ;;  %v14310_v50 = vld [vmem:[#allocation22_spill] sm:$0xff] }
 0x892   : > { %9904 = vmatprep.subr.msk.bf16.mxu0 %vm5257_vm11, %v5862_v2  ;;  %9901 = vmatmul.mubr.msk.bf16.vlgmr.msra.gmra.mxu1 %vm14305_vm12, %v9897_v54  ;;  %v8620_v2 = vsel %vm988_vm5, %v14310_v50, %v12800_v33  ;;  %v8471_v3 = vpack.c.bf16 %v8464_v28, %v8464_v28  ;;  %v8628_v51 = vmul.f32 %v14310_v50, %v12808_v1  ;;  %vm14316_vm12 = vmmov %vm14303_vm0 }
 0x893   : > { %5895 = vmatpush1.bf16.msra.mxu0 %v5869_v48  ;;  %v5860_v31 = vpop.permute.xlu1 %5859  ;;  %v5858_v13 = vpop.permute.xlu0 %5857  ;;  %5953 = vmatprep.mubr.bf16.mxu1 %v14286_v42  ;;  %v8470_v48 = vpack.c.bf16 %v8463_v21, %v8463_v21  ;;  %v8629_v11 = vmul.f32 %v8620_v2, %v12811_v61 }
 0x894   : > { %v5863_v62 = vsel %vm1157_vm6, %v5856_v53, %v5858_v13  ;;  %v5864_v54 = vsel %vm1157_vm6, %v5858_v13, %v5860_v31  ;;  %v9909_v31 = vld [vmem:[%s13878_s4 + $0xa] sm:$0x3] }
 0x895   : > { %8313 = vrot.lane.b32.xlu1 %v8303_v39, %s14088_s20  ;;  %v5875_v9 = vsel %vm5257_vm11, %v5863_v62, 0  ;;  %8319 = vrot.lane.b32.xlu0 %v8306_v37, %s14088_s20  ;;  %v8465_v39 = vmul.f32 %v8456_v41, %v12817_v6 }
 0x896   : > { %9905 = vmatmul.mubr.msk.bf16.vlgmr.msra.gmra.mxu0 %vm14306_vm13, %v9903_v36  ;;  %9906 = vmatprep.subr.msk.bf16.mxu1 %vm5257_vm11, %v5864_v54  ;;  %v14313_v54 = vld [vmem:[#allocation23_spill] sm:$0xff]  ;;  %vm14318_vm13 = vmmov %vm14303_vm0 }
 0x897   : > { %v6020_v55 = vpop.permute.xlu1 %6019  ;;  %6078 = vmatprep.mubr.bf16.mxu0 %v14286_v42  ;;  %5936 = vmatpush1.bf16.msra.mxu1 %v5875_v9  ;;  %v6022_v27 = vpop.permute.xlu0 %6021  ;;  %v8622_v29 = vsel %vm988_vm5, %v14313_v54, %v12802_v56  ;;  %v8472_v24 = vpack.c.bf16 %v8465_v39, %v8465_v39  ;;  %v8621_v56 = vsel %vm988_vm5, %v12800_v33, %v14313_v54 }
 0x898   : > { %v6027_v53 = vsel %vm988_vm5, %v14308_v44, %v6020_v55  ;;  %v6028_v4 = vsel %vm988_vm5, %v6020_v55, %v6022_v27  ;;  %v8636_v55 = vpack.c.bf16 %v8629_v11, %v8629_v11  ;;  %v14314_v44 = vld [vmem:[#allocation52_spill] sm:$0xff]  ;;  %v8630_v28 = vmul.f32 %v8621_v56, %v12814_v20 }
 0x899   : > { %v6035_v58 = vsel %vm5257_vm11, %v6027_v53, 0  ;;  %8317 = vrot.lane.b32.xlu1 %v8305_v32, %s14088_s20  ;;  %8479 = vrot.lane.b32.xlu0 %v8469_v16, %s14080_s16  ;;  %v8631_v32 = vmul.f32 %v8622_v29, %v12817_v6  ;;  %v8794_v33 = vmul.f32 %v12917_v45, %v12808_v1  ;;  %v8952_v29 = vsel %vm1024_vm7, %v12955_v22, %v12963_v47 }
 0x89a   : > { %9910 = vmatprep.subr.msk.bf16.mxu0 %vm5257_vm11, %v6028_v4  ;;  %9907 = vmatmul.mubr.msk.bf16.vlgmr.msra.gmra.mxu1 %vm14311_vm15, %v9903_v36  ;;  %v8635_v4 = vpack.c.bf16 %v8628_v51, %v8628_v51  ;;  %v8637_v1 = vpack.c.bf16 %v8630_v28, %v8630_v28  ;;  %v8788_v51 = vsel %vm1157_vm6, %v12929_v57, %v12792_v49  ;;  %vm14319_vm15 = vmmov %vm14303_vm0 }
 0x89b   : > { %6061 = vmatpush1.bf16.msra.mxu0 %v6035_v58  ;;  %v6024_v46 = vpop.permute.xlu1 %6023  ;;  %v6026_v37 = vpop.permute.xlu0 %6025  ;;  %6119 = vmatprep.mubr.bf16.mxu1 %v14286_v42  ;;  %v8638_v41 = vpack.c.bf16 %v8631_v32, %v8631_v32 }
 0x89c   : > { %v6029_v13 = vsel %vm988_vm5, %v6022_v27, %v6024_v46  ;;  %v6030_v36 = vsel %vm988_vm5, %v6024_v46, %v6026_v37 }
 0x89d   : > { %v6041_v62 = vsel %vm5257_vm11, %v6029_v13, 0  ;;  %8481 = vrot.lane.b32.xlu1 %v8470_v48, %s14080_s16  ;;  %8483 = vrot.lane.b32.xlu0 %v8471_v3, %s14080_s16  ;;  %v14315_v48 = vld [vmem:[#allocation69_spill] sm:$0xff]  ;;  %v8801_v3 = vpack.c.bf16 %v8794_v33, %v8794_v33 }
 0x89e   : > { %9911 = vmatmul.mubr.msk.bf16.vlgmr.msra.gmra.mxu0 %vm14312_vm1, %v9909_v31  ;;  %9912 = vmatprep.subr.msk.bf16.mxu1 %vm5257_vm11, %v6030_v36  ;;  %v8787_v13 = vsel %vm1157_vm6, %v14315_v48, %v12929_v57  ;;  %vm14321_vm1 = vmmov %vm14303_vm0 }
 0x89f   : > { %v6188_v9 = vpop.permute.xlu1 %6187  ;;  %6244 = vmatprep.mubr.bf16.mxu0 %v14286_v42  ;;  %6102 = vmatpush1.bf16.msra.mxu1 %v6041_v62  ;;  %v6186_v21 = vpop.permute.xlu0 %6185  ;;  %v14317_v62 = vld [vmem:[#allocation50_spill] sm:$0xff] }
 0x8a0   : > { %v6193_v53 = vsel %vm819_vm4, %v14314_v44, %v6186_v21  ;;  %v6194_v27 = vsel %vm819_vm4, %v6186_v21, %v6188_v9  ;;  %v9921_v21 = vld [vmem:[%s13878_s4 + $0xe] sm:$0x3] }
 0x8a1   : > { %8485 = vrot.lane.b32.xlu1 %v8472_v24, %s14080_s16  ;;  %v6201_v16 = vsel %vm5257_vm11, %v6193_v53, 0  ;;  %8647 = vrot.lane.b32.xlu0 %v8636_v55, %s14076_s9  ;;  %v8797_v55 = vmul.f32 %v8788_v51, %v12817_v6  ;;  %v8961_v53 = vmul.f32 %v8952_v29, %v12811_v61  ;;  %v8954_v6 = vsel %vm1024_vm7, %v12971_v0, %v12983_v60 }
 0x8a2   : > { %9916 = vmatprep.subr.msk.bf16.mxu0 %vm5257_vm11, %v6194_v27  ;;  %9913 = vmatmul.mubr.msk.bf16.vlgmr.msra.gmra.mxu1 %vm14303_vm0, %v9909_v31  ;;  %v8786_v31 = vsel %vm1157_vm6, %v12917_v45, %v14315_v48  ;;  %v8796_v45 = vmul.f32 %v8787_v13, %v12814_v20  ;;  %v8953_v60 = vsel %vm1024_vm7, %v12963_v47, %v12971_v0  ;;  %v13431_v0 = vld [vmem:[#allocation2] sm:$0xff] }
 0x8a3   : > { %6227 = vmatpush1.bf16.msra.mxu0 %v6201_v16  ;;  %v6192_v58 = vpop.permute.xlu1 %6191  ;;  %v6190_v50 = vpop.permute.xlu0 %6189  ;;  %6285 = vmatprep.mubr.bf16.mxu1 %v14286_v42  ;;  %v8795_v11 = vmul.f32 %v8786_v31, %v12811_v61  ;;  %v13412_v61 = vld [vmem:[#allocation2 + $0x10] sm:$0xff]  ;;  %v8804_v28 = vpack.c.bf16 %v8797_v55, %v8797_v55  ;;  %v8962_v48 = vmul.f32 %v13431_v0, %v8953_v60 }
 0x8a4   : > { %v6195_v2 = vsel %vm819_vm4, %v6188_v9, %v6190_v50  ;;  %v6196_v46 = vsel %vm819_vm4, %v6190_v50, %v6192_v58  ;;  %v8803_v44 = vpack.c.bf16 %v8796_v45, %v8796_v45  ;;  %v8960_v16 = vmul.f32 %v13412_v61, %v12955_v22  ;;  %v14320_v50 = vld [vmem:[#allocation64_spill] sm:$0xff] }
 0x8a5   : > { %8645 = vrot.lane.b32.xlu1 %v8635_v4, %s14076_s9  ;;  %v6207_v39 = vsel %vm5257_vm11, %v6195_v2, 0  ;;  %8651 = vrot.lane.b32.xlu0 %v8638_v41, %s14076_s9  ;;  %v8802_v20 = vpack.c.bf16 %v8795_v11, %v8795_v11  ;;  %v8968_v4 = vpack.c.bf16 %v8961_v53, %v8961_v53  ;;  %v9118_v11 = vsel %vm855_vm8, %v12997_v12, %v13008_v23 }
 0x8a6   : > { %9917 = vmatmul.mubr.msk.bf16.vlgmr.msra.gmra.mxu0 %vm14316_vm12, %v9915_v26  ;;  %9918 = vmatprep.subr.msk.bf16.mxu1 %vm5257_vm11, %v6196_v46  ;;  %v8967_v47 = vpack.c.bf16 %v8960_v16, %v8960_v16  ;;  %v9126_v13 = vmul.f32 %v13412_v61, %v12997_v12  ;;  %v8969_v12 = vpack.c.bf16 %v8962_v48, %v8962_v48  ;;  %vm14323_vm12 = vcmask 72704  }
 0x8a7   : > { %v6352_v37 = vpop.permute.xlu1 %6351  ;;  %6410 = vmatprep.mubr.bf16.mxu0 %v14286_v42  ;;  %6268 = vmatpush1.bf16.msra.mxu1 %v6207_v39  ;;  %v6354_v54 = vpop.permute.xlu0 %6353  ;;  %v9927_v39 = vld [vmem:[%s13878_s4 + $0x10] sm:$0x3] }
 0x8a8   : > { %v6359_v36 = vsel %vm535_vm2, %v14317_v62, %v6352_v37  ;;  %v6360_v24 = vsel %vm535_vm2, %v6352_v37, %v6354_v54 }
 0x8a9   : > { %v6367_v9 = vsel %vm5257_vm11, %v6359_v36, 0  ;;  %8649 = vrot.lane.b32.xlu1 %v8637_v1, %s14076_s9  ;;  %8811 = vrot.lane.b32.xlu0 %v8801_v3, %s14043_s22  ;;  %v9119_v3 = vsel %vm855_vm8, %v13008_v23, %v13016_v7  ;;  %s10046_s9 = sshll.u32 %s10311_s28, 8  ;;  %s10249_s28 = smov [#allocation6]  }
 0x8aa   : > { %9922 = vmatprep.subr.msk.bf16.mxu0 %vm5257_vm11, %v6360_v24  ;;  %9919 = vmatmul.mubr.msk.bf16.vlgmr.msra.gmra.mxu1 %vm14318_vm13, %v9915_v26  ;;  %v13421_v26 = vld [vmem:[#allocation2 + $0x18] sm:$0xff]  ;;  %v9120_v24 = vsel %vm855_vm8, %v13016_v7, %v13025_v38  ;;  %v9128_v51 = vmul.f32 %v13431_v0, %v9119_v3  ;;  %vm14324_vm13 = vmmov %vm14323_vm12  ;;  %v9451_v3 = vsel %vm690_vm10, %v13082_v59, %v13103_v52  ;;  %s9631_s26 = scalar_lea.hbm %s13881_s7, %s10046_s9  ;;  %s10167_s18 = sshll.u32 %s10249_s28, 4  ;;  %s10168_s18 = int_to_ptr.vmem [resolvable:$false] %s10167_s18 }
 0x8ab   : > { %6393 = vmatpush1.bf16.msra.mxu0 %v6367_v9  ;;  %v6356_v32 = vpop.permute.xlu1 %6355  ;;  %v6358_v57 = vpop.permute.xlu0 %6357  ;;  %6451 = vmatprep.mubr.bf16.mxu1 %v14286_v42  ;;  %v8963_v41 = vmul.f32 %v13421_v26, %v8954_v6  ;;  %v9133_v9 = vpack.c.bf16 %v9126_v13, %v9126_v13  ;;  %v9129_v38 = vmul.f32 %v13421_v26, %v9120_v24  ;;  %s10169_s29 = scalar_lea.vmem %s10168_s18, 512 }
 0x8ac   : > { %v6361_v49 = vsel %vm535_vm2, %v6354_v54, %v6356_v32  ;;  %v6362_v56 = vsel %vm535_vm2, %v6356_v32, %v6358_v57  ;;  %v13453_v54 = vld [vmem:[#allocation2 + $0x8] sm:$0xff]  ;;  %v9933_v57 = vld [vmem:[%s13878_s4 + $0x12] sm:$0x3]  ;;  %v9135_v6 = vpack.c.bf16 %v9128_v51, %v9128_v51  ;;  %v9450_v13 = vsel %vm690_vm10, %v13088_v30, %v13082_v59  ;;  %v9956_v59 = vld [vmem:[%s13880_s6 + $0x34] sm:$0xf] }
 0x8ad   : > { %v6373_v27 = vsel %vm5257_vm11, %v6361_v49, 0  ;;  %8813 = vrot.lane.b32.xlu1 %v8802_v20, %s14043_s22  ;;  %8815 = vrot.lane.b32.xlu0 %v8803_v44, %s14043_s22  ;;  %v8970_v1 = vpack.c.bf16 %v8963_v41, %v8963_v41  ;;  %v9127_v29 = vmul.f32 %v13453_v54, %v9118_v11  ;;  %v14322_v20 = vld [vmem:[#allocation68_spill] sm:$0xff]  ;;  %v9136_v41 = vpack.c.bf16 %v9129_v38, %v9129_v38  ;;  %v14336_v51 = vld [vmem:[#allocation21_spill] sm:$0xff] }
 0x8ae   : > { %9923 = vmatmul.mubr.msk.bf16.vlgmr.msra.gmra.mxu0 %vm14319_vm15, %v9921_v21  ;;  %9924 = vmatprep.subr.msk.bf16.mxu1 %vm5257_vm11, %v6362_v56  ;;  %vm14325_vm15 = vmmov %vm14303_vm0  ;;  %v9458_v11 = vmul.f32 %v13412_v61, %v13088_v30  ;;  %v9452_v24 = vsel %vm690_vm10, %v13103_v52, %v13101_v63 }
 0x8af   : > { %v6520_v58 = vpop.permute.xlu1 %6519  ;;  %6576 = vmatprep.mubr.bf16.mxu0 %v14286_v42  ;;  %6434 = vmatpush1.bf16.msra.mxu1 %v6373_v27  ;;  %v6518_v33 = vpop.permute.xlu0 %6517  ;;  %v9134_v7 = vpack.c.bf16 %v9127_v29, %v9127_v29 }
 0x8b0   : > { %v6525_v22 = vsel %vm488_vm3, %v14320_v50, %v6518_v33  ;;  %v6526_v2 = vsel %vm488_vm3, %v6518_v33, %v6520_v58 }
 0x8b1   : > { %8817 = vrot.lane.b32.xlu1 %v8804_v28, %s14043_s22  ;;  %v6533_v46 = vsel %vm5257_vm11, %v6525_v22, 0  ;;  %8979 = vrot.lane.b32.xlu0 %v8968_v4, %s14044_s15  ;;  %v9286_v28 = vsel %vm571_vm9, %v13056_v5, %v13067_v35  ;;  %v9292_v4 = vmul.f32 %v13412_v61, %v13042_v14  ;;  %v9285_v35 = vsel %vm571_vm9, %v13053_v8, %v13056_v5  ;;  %s294_s22 = scalar_lea.vmem [#allocation6], %s14395_s1 }
 0x8b2   : > { %9928 = vmatprep.subr.msk.bf16.mxu0 %vm5257_vm11, %v6526_v2  ;;  %9925 = vmatmul.mubr.msk.bf16.vlgmr.msra.gmra.mxu1 %vm14321_vm1, %v9921_v21  ;;  %v9284_v21 = vsel %vm571_vm9, %v13042_v14, %v13053_v8  ;;  %vm14326_vm1 = vmmov %vm14323_vm12  ;;  %v9295_v22 = vmul.f32 %v13421_v26, %v9286_v28  ;;  %v9294_v8 = vmul.f32 %v13431_v0, %v9285_v35  ;;  %s9633_s25 = sshll.u32 %s294_s22, 4  ;;  %s9634_s25 = int_to_ptr.vmem [resolvable:$true] %s9633_s25 }
 0x8b3   : > { %6559 = vmatpush1.bf16.msra.mxu0 %v6533_v46  ;;  %v6524_v31 = vpop.permute.xlu1 %6523  ;;  %v6522_v37 = vpop.permute.xlu0 %6521  ;;  %6617 = vmatprep.mubr.bf16.mxu1 %v14286_v42  ;;  %v9293_v27 = vmul.f32 %v13453_v54, %v9284_v21  ;;  %v14329_v46 = vld [vmem:[#allocation53_spill] sm:$0xff]  ;;  %s10163_s10 = scalar_lea.vmem %s9634_s25, 256  ;;  %p10170_p3 = scmp.lt.s32.totalorder %s9634_s25, %s10168_s18 }
 0x8b4   : > { %v6527_v45 = vsel %vm488_vm3, %v6520_v58, %v6522_v37  ;;  %v6528_v62 = vsel %vm488_vm3, %v6522_v37, %v6524_v31  ;;  %v9299_v31 = vpack.c.bf16 %v9292_v4, %v9292_v4  ;;  %v9301_v30 = vpack.c.bf16 %v9294_v8, %v9294_v8  ;;  %p10164_p11 = scmp.ne.s32.totalorder %s9634_s25, %s10163_s10  ;;  %p10171_p5 = scmp.lt.s32.totalorder %s10169_s29, %s10163_s10 }
 0x8b5   : > { %8977 = vrot.lane.b32.xlu1 %v8967_v47, %s14044_s15  ;;  %v6539_v36 = vsel %vm5257_vm11, %v6527_v45, 0  ;;  %8983 = vrot.lane.b32.xlu0 %v8970_v1, %s14044_s15  ;;  %v9300_v50 = vpack.c.bf16 %v9293_v27, %v9293_v27  ;;  %v9302_v1 = vpack.c.bf16 %v9295_v22, %v9295_v22 }
 0x8b6   : > { %9929 = vmatmul.mubr.msk.bf16.vlgmr.msra.gmra.mxu0 %vm14303_vm0, %v9927_v39  ;;  %9930 = vmatprep.subr.msk.bf16.mxu1 %vm5257_vm11, %v6528_v62  ;;  %vm14327_vm0 = vmmov %vm14326_vm1  ;;  %p10165_p13 = pnand %p10164_p11, %p14396_p12  ;;  %p10172_p8 = por %p10171_p5, %p10170_p3 }
 0x8b7   : > { %v6684_v23 = vpop.permute.xlu1 %6683  ;;  %6742 = vmatprep.mubr.bf16.mxu0 %v14286_v42  ;;  %6600 = vmatpush1.bf16.msra.mxu1 %v6539_v36  ;;  %v6686_v32 = vpop.permute.xlu0 %6685 }
 0x8b8   : > { %v6691_v55 = vsel %vm14323_vm12, %v14322_v20, %v6684_v23  ;;  %v6692_v53 = vsel %vm14324_vm13, %v6684_v23, %v6686_v32  ;;  %vm14328_vm12 = vmmov %vm14325_vm15  ;;  %v9465_v23 = vpack.c.bf16 %v9458_v11, %v9458_v11  ;;  %p10166_p1 = pneg %p10165_p13 }
 0x8b9   : > { %v6699_v44 = vsel %vm5257_vm11, %v6691_v55, 0  ;;  %8981 = vrot.lane.b32.xlu1 %v8969_v12, %s14044_s15  ;;  %9143 = vrot.lane.b32.xlu0 %v9133_v9, %s14046_s17  ;;  %vm14330_vm13 = vmmov %vm14328_vm12  ;;  %v9459_v12 = vmul.f32 %v13453_v54, %v9450_v13  ;;  %v9460_v9 = vmul.f32 %v13431_v0, %v9451_v3 }
 0x8ba   : > { %9934 = vmatprep.subr.msk.bf16.mxu0 %vm5257_vm11, %v6692_v53  ;;  %9931 = vmatmul.mubr.msk.bf16.vlgmr.msra.gmra.mxu1 %vm14325_vm15, %v9927_v39  ;;  %vm14331_vm15 = vmmov %vm14328_vm12  ;;  %v9939_v39 = vld [vmem:[%s13878_s4 + $0x14] sm:$0x3]  ;;  %p10173_p10 = pnand %p10172_p8, %p10166_p1 }
 0x8bb   : > { %6725 = vmatpush1.bf16.msra.mxu0 %v6699_v44  ;;  %v6688_v49 = vpop.permute.xlu1 %6687  ;;  %v6690_v16 = vpop.permute.xlu0 %6689  ;;  %6783 = vmatprep.mubr.bf16.mxu1 %v14286_v42  ;;  %v14339_v44 = vld [vmem:[#allocation17_spill] sm:$0xff]  ;;  %v9466_v52 = vpack.c.bf16 %v9459_v12, %v9459_v12  ;;  %v9467_v27 = vpack.c.bf16 %v9460_v9, %v9460_v9 }
 0x8bc   : > { %v6693_v56 = vsel %vm14326_vm1, %v6686_v32, %v6688_v49  ;;  %v6694_v60 = vsel %vm14327_vm0, %v6688_v49, %v6690_v16  ;;  %vm14332_vm1 = vmmov %vm14328_vm12  ;;  %v7303_v53 = vrot.slane %v9956_v59, %v14339_v44  ;;  %v9461_v49 = vmul.f32 %v13421_v26, %v9452_v24  ;;  %v14356_v44 = vld [vmem:[#allocation24_spill] sm:$0xff] }
 0x8bd   : > { %v6705_v58 = vsel %vm5257_vm11, %v6693_v56, 0  ;;  %9145 = vrot.lane.b32.xlu1 %v9134_v7, %s14046_s17  ;;  %9147 = vrot.lane.b32.xlu0 %v9135_v6, %s14046_s17  ;;  %vm14333_vm0 = vmmov %vm14332_vm1  ;;  %v14340_v7 = vld [vmem:[#allocation15_spill] sm:$0xff]  ;;  %v9462_v56 = vmul.f32 %v13095_v10, %v13101_v63 }
 0x8be   : > { %9935 = vmatmul.mubr.msk.bf16.vlgmr.msra.gmra.mxu0 %vm14328_vm12, %v9933_v57  ;;  %9936 = vmatprep.subr.msk.bf16.mxu1 %vm5257_vm11, %v6694_v60  ;;  %vm14334_vm12 = vmmov %vm14333_vm0  ;;  %v7299_v38 = vrot.slane %v9956_v59, %v14340_v7  ;;  %v9945_v6 = vld [vmem:[%s13878_s4 + $0x16] sm:$0x3]  ;;  %v7317_v4 = vmul.f32 %v13453_v54, %v7303_v53 }
 0x8bf   : > { %v6852_v33 = vpop.permute.xlu1 %6851  ;;  %6908 = vmatprep.mubr.bf16.mxu0 %v14286_v42  ;;  %6766 = vmatpush1.bf16.msra.mxu1 %v6705_v58  ;;  %v6850_v2 = vpop.permute.xlu0 %6849  ;;  %v14344_v10 = vld [vmem:[#allocation19_spill] sm:$0xff] }
 0x8c0   : > { %v6857_v47 = vsel %vm14330_vm13, %v14329_v46, %v6850_v2  ;;  %v6858_v14 = vsel %vm14331_vm15, %v6850_v2, %v6852_v33  ;;  %vm14335_vm13 = vmmov %vm14333_vm0  ;;  %vm14337_vm15 = vcmask 56320   ;;  %v7311_v63 = vrot.slane %v9956_v59, %v14344_v10 }
 0x8c1   : > { %9149 = vrot.lane.b32.xlu1 %v9136_v41, %s14046_s17  ;;  %v6865_v48 = vsel %vm5257_vm11, %v6857_v47, 0  ;;  %9311 = vrot.lane.b32.xlu0 %v9300_v50, %s14048_s21  ;;  %v7316_v41 = vmul.f32 %v13412_v61, %v7299_v38  ;;  %v14345_v50 = vld [vmem:[#allocation16_spill] sm:$0xff]  ;;  %v9469_v2 = vpack.c.bf16 %v9462_v56, %v9462_v56  ;;  %v14346_v47 = vld [vmem:[#allocation31_spill] sm:$0xff]  ;;  %s9619_s17 = scalar_lea.sflag [#allocation5], %s10388_s8 }
 0x8c2   : > { %9940 = vmatprep.subr.msk.bf16.mxu0 %vm5257_vm11, %v6858_v14  ;;  %9937 = vmatmul.mubr.msk.bf16.vlgmr.msra.gmra.mxu1 %vm14332_vm1, %v9933_v57  ;;  %vm14338_vm1 = vmmov %vm14337_vm15  ;;  %v7307_v22 = vrot.slane %v9956_v59, %v14345_v50  ;;  %v7319_v8 = vmul.f32 %v13421_v26, %v7311_v63 }
 0x8c3   : > { %6891 = vmatpush1.bf16.msra.mxu0 %v6865_v48  ;;  %v6856_v5 = vpop.permute.xlu1 %6855  ;;  %v6854_v37 = vpop.permute.xlu0 %6853  ;;  %6949 = vmatprep.mubr.bf16.mxu1 %v14286_v42  ;;  %v7323_v48 = vpack.c.bf16 %v7317_v4, %v7317_v4 }
 0x8c4   : > { %v6859_v45 = vsel %vm14333_vm0, %v6852_v33, %v6854_v37  ;;  %v6860_v62 = vsel %vm14334_vm12, %v6854_v37, %v6856_v5  ;;  %vm14341_vm12 = vmmov %vm14338_vm1  ;;  %v9468_v33 = vpack.c.bf16 %v9461_v49, %v9461_v49 }
 0x8c5   : > { %9309 = vrot.lane.b32.xlu1 %v9299_v31, %s14048_s21  ;;  %v6871_v36 = vsel %vm5257_vm11, %v6859_v45, 0  ;;  %9315 = vrot.lane.b32.xlu0 %v9302_v1, %s14048_s21  ;;  %v7322_v31 = vpack.c.bf16 %v7316_v41, %v7316_v41  ;;  %v7318_v1 = vmul.f32 %v13431_v0, %v7307_v22  ;;  %v7325_v45 = vpack.c.bf16 %v7319_v8, %v7319_v8 }
 0x8c6   : > { %9941 = vmatmul.mubr.msk.bf16.vlgmr.msra.gmra.mxu0 %vm14335_vm13, %v9939_v39  ;;  %9942 = vmatprep.subr.msk.bf16.mxu1 %vm5257_vm11, %v6860_v62  ;;  %vm14342_vm13 = vmmov %vm14338_vm1 }
 0x8c7   : > { %v7016_v29 = vpop.permute.xlu1 %7015  ;;  %7074 = vmatprep.mubr.bf16.mxu0 %v14286_v42  ;;  %6932 = vmatpush1.bf16.msra.mxu1 %v6871_v36  ;;  %v7018_v55 = vpop.permute.xlu0 %7017  ;;  %v7330_v3 = vsel %vm5257_vm11, %v7322_v31, 0  ;;  %v7324_v62 = vpack.c.bf16 %v7318_v1, %v7318_v1  ;;  %v9981_v1 = vld [vmem:[%s13878_s4 + $0x22] sm:$0x3] }
 0x8c8   : > { %v7023_v20 = vsel %vm14337_vm15, %v14336_v51, %v7016_v29  ;;  %v7024_v21 = vsel %vm14338_vm1, %v7016_v29, %v7018_v55  ;;  %vm14343_vm15 = vmmov %vm14333_vm0  ;;  %vm14347_vm1 = vcmask 7168   ;;  %v9957_v29 = vld [vmem:[%s13878_s4 + $0x1a] sm:$0x3] }
 0x8c9   : > { %v7031_v32 = vsel %vm5257_vm11, %v7023_v20, 0  ;;  %9313 = vrot.lane.b32.xlu1 %v9301_v30, %s14048_s21  ;;  %9475 = vrot.lane.b32.xlu0 %v9465_v23, %s14051_s19  ;;  %v7336_v30 = vsel %vm5257_vm11, %v7324_v62, 0 }
 0x8ca   : > { %9946 = vmatprep.subr.msk.bf16.mxu0 %vm5257_vm11, %v7024_v21  ;;  %9943 = vmatmul.mubr.msk.bf16.vlgmr.msra.gmra.mxu1 %vm14333_vm0, %v9939_v39  ;;  %vm14348_vm0 = vmmov %vm14347_vm1  ;;  %v9951_v39 = vld [vmem:[%s13878_s4 + $0x18] sm:$0x3] }
 0x8cb   : > { %7057 = vmatpush1.bf16.msra.mxu0 %v7031_v32  ;;  %v7020_v57 = vpop.permute.xlu1 %7019  ;;  %v7022_v28 = vpop.permute.xlu0 %7021  ;;  %7115 = vmatprep.mubr.bf16.mxu1 %v14286_v42  ;;  %v9963_v32 = vld [vmem:[%s13878_s4 + $0x1c] sm:$0x3] }
 0x8cc   : > { %v7025_v16 = vsel %vm14341_vm12, %v7018_v55, %v7020_v57  ;;  %v7026_v60 = vsel %vm14342_vm13, %v7020_v57, %v7022_v28  ;;  %vm14349_vm12 = vmmov %vm14343_vm15 }
 0x8cd   : > { %v7037_v58 = vsel %vm5257_vm11, %v7025_v16, 0  ;;  %9477 = vrot.lane.b32.xlu1 %v9466_v52, %s14051_s19  ;;  %9479 = vrot.lane.b32.xlu0 %v9467_v27, %s14051_s19  ;;  %vm14350_vm13 = vmmov %vm14348_vm0 }
 0x8ce   : > { %9947 = vmatmul.mubr.msk.bf16.vlgmr.msra.gmra.mxu0 %vm14343_vm15, %v9945_v6  ;;  %9948 = vmatprep.subr.msk.bf16.mxu1 %vm5257_vm11, %v7026_v60  ;;  %vm14351_vm15 = vmmov %vm14348_vm0 }
 0x8cf   : > { %v7184_v35 = vpop.permute.xlu1 %7183  ;;  %7240 = vmatprep.mubr.bf16.mxu0 %v14286_v42  ;;  %7098 = vmatpush1.bf16.msra.mxu1 %v7037_v58  ;;  %v7182_v46 = vpop.permute.xlu0 %7181 }
 0x8d0   : > { %v7189_v14 = vsel %vm14347_vm1, %v14346_v47, %v7182_v46  ;;  %v7190_v54 = vsel %vm14348_vm0, %v7182_v46, %v7184_v35  ;;  %vm14352_vm1 = vmmov %vm14349_vm12  ;;  %v9975_v47 = vld [vmem:[%s13878_s4 + $0x20] sm:$0x3] }
 0x8d1   : > { %9481 = vrot.lane.b32.xlu1 %v9468_v33, %s14051_s19  ;;  %v7197_v61 = vsel %vm5257_vm11, %v7189_v14, 0  ;;  %9483 = vrot.lane.b32.xlu0 %v9469_v2, %s14051_s19  ;;  %vm14353_vm0 = vmmov %vm14352_vm1 }
 0x8d2   : > { %9952 = vmatprep.subr.msk.bf16.mxu0 %vm5257_vm11, %v7190_v54  ;;  %9949 = vmatmul.mubr.msk.bf16.vlgmr.msra.gmra.mxu1 %vm14349_vm12, %v9945_v6  ;;  %vm14354_vm12 = vmmov %vm14353_vm0 }
 0x8d3   : > { %7223 = vmatpush1.bf16.msra.mxu0 %v7197_v61  ;;  %v7188_v5 = vpop.permute.xlu1 %7187  ;;  %v7186_v11 = vpop.permute.xlu0 %7185  ;;  %7281 = vmatprep.mubr.bf16.mxu1 %v14286_v42 }
 0x8d4   : > { %9958 = vmatprep.subr.msk.bf16.mxu0 %vm5257_vm11, %v7323_v48  ;;  %v7191_v13 = vsel %vm14350_vm13, %v7184_v35, %v7186_v11  ;;  %v7192_v37 = vsel %vm14351_vm15, %v7186_v11, %v7188_v5  ;;  %vm14355_vm13 = vmmov %vm14353_vm0 }
 0x8d5   : > { %v7203_v26 = vsel %vm5257_vm11, %v7191_v13, 0  ;;  %9954 = vmatprep.subr.msk.bf16.mxu1 %vm5257_vm11, %v7192_v37  ;;  %vm14357_vm15 = vmmov %vm14353_vm0 }
 0x8d6   : > { %9953 = vmatmul.mubr.msk.bf16.vlgmr.msra.gmra.mxu0 %vm14352_vm1, %v9951_v39  ;;  %7264 = vmatpush1.bf16.msra.mxu1 %v7203_v26  ;;  %vm14358_vm1 = vcmask 990208  }
 0x8d7   : > { %7356 = vmatpush1.bf16.msra.mxu0 %v7330_v3  ;;  %v13583_v0 = vpop.permute.xlu1 %8985  ;;  %9960 = vmatprep.subr.msk.bf16.mxu1 %vm5257_vm11, %v7325_v45  ;;  %v13586_v36 = vpop.permute.xlu0 %9151 }
 0x8d8   : > { %7373 = vmatprep.mubr.bf16.mxu0 %v14286_v42 }
 0x8da   : > { %9955 = vmatmul.mubr.msk.bf16.vlgmr.msra.gmra.mxu1 %vm14353_vm0, %v9951_v39  ;;  %vm14359_vm0 = vmmov %vm14358_vm1 }
 0x8db   : > { %v13591_v12 = vpop.permute.xlu1 %9317  ;;  %7397 = vmatpush1.bf16.msra.mxu1 %v7336_v30  ;;  %v7484_v59 = vpop.permute.xlu0 %7483  ;;  %7414 = vmatprep.mubr.bf16.mxu1 %v14286_v42 }
 0x8de   : > { %9959 = vmatmul.mubr.msk.bf16.vlgmr.msra.gmra.mxu0 %vm14354_vm12, %v9957_v29 }
 0x8df   : > { %v7486_v23 = vpop.permute.xlu1 %7485  ;;  %7544 = vmatprep.mubr.bf16.mxu0 %v14286_v42  ;;  %v7488_v24 = vpop.permute.xlu0 %7487 }
 0x8e0   : > { %v7493_v9 = vsel %vm2509_vm14, %v7484_v59, %v7486_v23  ;;  %v7494_v20 = vsel %vm2509_vm14, %v7486_v23, %v7488_v24  ;;  %v9987_v23 = vld [vmem:[%s13878_s4 + $0x24] sm:$0x3] }
 0x8e1   : > { %v7501_v51 = vsel %vm5257_vm11, %v7493_v9, 0  ;;  %9964 = vmatprep.subr.msk.bf16.mxu0 %vm5257_vm11, %v7494_v20 }
 0x8e2   : > { %9961 = vmatmul.mubr.msk.bf16.vlgmr.msra.gmra.mxu1 %vm14355_vm13, %v9957_v29  ;;  %7527 = vmatpush1.bf16.msra.mxu0 %v7501_v51  ;;  %vm14362_vm13 = vmmov %vm14359_vm0 }
 0x8e3   : > { %v7490_v55 = vpop.permute.xlu1 %7489  ;;  %v7652_v7 = vpop.permute.xlu0 %7651  ;;  %7585 = vmatprep.mubr.bf16.mxu1 %v14286_v42 }
 0x8e4   : > { %v7495_v21 = vsel %vm2509_vm14, %v7488_v24, %v7490_v55  ;;  %v7496_v53 = vsel %vm2509_vm14, %v7490_v55, %v14356_v44  ;;  %vm14360_vm14 = vmmov %vm14354_vm12 }
 0x8e5   : > { %v7507_v38 = vsel %vm5257_vm11, %v7495_v21, 0  ;;  %9966 = vmatprep.subr.msk.bf16.mxu1 %vm5257_vm11, %v7496_v53  ;;  %vm14361_vm12 = vmmov %vm14359_vm0  ;;  %v9993_v53 = vld [vmem:[%s13878_s4 + $0x26] sm:$0x3] }
 0x8e6   : > { %9965 = vmatmul.mubr.msk.bf16.vlgmr.msra.gmra.mxu0 %vm14357_vm15, %v9963_v32  ;;  %7568 = vmatpush1.bf16.msra.mxu1 %v7507_v38  ;;  %vm14363_vm15 = vcmask 982016  }
 0x8e7   : > { %v7650_v52 = vpop.permute.xlu1 %7649  ;;  %7710 = vmatprep.mubr.bf16.mxu0 %v14286_v42  ;;  %v7656_v49 = vpop.permute.xlu0 %7655 }
 0x8e8   : > { %v7662_v57 = vsel %vm14358_vm1, %v7656_v49, %v12946_v17  ;;  %v7659_v6 = vsel %vm14359_vm0, %v7650_v52, %v7652_v7  ;;  %v9969_v17 = vld [vmem:[%s13878_s4 + $0x1e] sm:$0x3]  ;;  %vm14364_vm1 = vmmov %vm14363_vm15 }
 0x8e9   : > { %9972 = vmatprep.subr.msk.bf16.mxu1 %vm5257_vm11, %v7662_v57  ;;  %v7667_v58 = vsel %vm5257_vm11, %v7659_v6, 0  ;;  %vm14365_vm0 = vmmov %vm14360_vm14  ;;  %v9590_v6 = vld [vmem:[%s13879_s5] sm:$0xf] }
 0x8ea   : > { %9967 = vmatmul.mubr.msk.bf16.vlgmr.msra.gmra.mxu1 %vm14360_vm14, %v9963_v32  ;;  %vm14366_vm14 = vmmov %vm14365_vm0  ;;  %9593 = vperm.xlu1 %10112, %v9590_v6  }
 0x8eb   : > { %v7654_v27 = vpop.permute.xlu1 %7653  ;;  %v7816_v28 = vpop.permute.xlu0 %7815  ;;  %7751 = vmatprep.mubr.bf16.mxu1 %v14286_v42 }
 0x8ec   : > { %v7660_v56 = vsel %vm14361_vm12, %v7652_v7, %v7654_v27  ;;  %v7661_v16 = vsel %vm14362_vm13, %v7654_v27, %v7656_v49  ;;  %vm14367_vm12 = vmmov %vm14364_vm1 }
 0x8ed   : > { %v7673_v60 = vsel %vm5257_vm11, %v7661_v16, 0  ;;  %9970 = vmatprep.subr.msk.bf16.mxu0 %vm5257_vm11, %v7660_v56  ;;  %vm14368_vm13 = vmmov %vm14364_vm1 }
 0x8ee   : > { %7693 = vmatpush1.bf16.msra.mxu0 %v7667_v58  ;;  %7734 = vmatpush1.bf16.msra.mxu1 %v7673_v60  ;;  %v9999_v60 = vld [vmem:[%s13878_s4 + $0x28] sm:$0x3] }
 0x8ef   : > { %v7818_v4 = vpop.permute.xlu1 %7817  ;;  %v7820_v10 = vpop.permute.xlu0 %7819 }
 0x8f0   : > { %v7825_v41 = vsel %vm14363_vm15, %v7816_v28, %v7818_v4  ;;  %v7826_v33 = vsel %vm14364_vm1, %v7818_v4, %v7820_v10  ;;  %vm14369_vm15 = vcmask 973824   ;;  %vm14370_vm1 = vmmov %vm14365_vm0 }
 0x8f1   : > { %v7833_v63 = vsel %vm5257_vm11, %v7825_v41, 0  ;;  %9971 = vmatmul.mubr.msk.bf16.vlgmr.msra.gmra.mxu0 %vm14365_vm0, %v9969_v17  ;;  %9976 = vmatprep.subr.msk.bf16.mxu0 %vm5257_vm11, %v7826_v33  ;;  %vm14371_vm0 = vmmov %vm14369_vm15 }
 0x8f2   : > { %7876 = vmatprep.mubr.bf16.mxu0 %v14286_v42  ;;  %9973 = vmatmul.mubr.msk.bf16.vlgmr.msra.gmra.mxu1 %vm14366_vm14, %v9969_v17  ;;  %vm14372_vm14 = vmmov %vm14370_vm1 }
 0x8f3   : > { %7859 = vmatpush1.bf16.msra.mxu0 %v7833_v63  ;;  %v7822_v35 = vpop.permute.xlu1 %7821  ;;  %v7984_v2 = vpop.permute.xlu0 %7983  ;;  %7917 = vmatprep.mubr.bf16.mxu1 %v14286_v42 }
 0x8f4   : > { %v7827_v50 = vsel %vm14367_vm12, %v7820_v10, %v7822_v35  ;;  %v7828_v22 = vsel %vm14368_vm13, %v7822_v35, %v12988_v15  ;;  %vm14373_vm12 = vmmov %vm14371_vm0 }
 0x8f5   : > { %v7839_v46 = vsel %vm5257_vm11, %v7827_v50, 0  ;;  %9978 = vmatprep.subr.msk.bf16.mxu1 %vm5257_vm11, %v7828_v22  ;;  %vm14374_vm13 = vmmov %vm14371_vm0  ;;  %v10005_v22 = vld [vmem:[%s13878_s4 + $0x2a] sm:$0x3] }
 0x8f6   : > { %7900 = vmatpush1.bf16.msra.mxu1 %v7839_v46 }
 0x8f7   : > { %v7982_v14 = vpop.permute.xlu1 %7981  ;;  %v7988_v54 = vpop.permute.xlu0 %7987 }
 0x8f8   : > { %v7994_v61 = vsel %vm14369_vm15, %v7988_v54, %v13033_v43  ;;  %v7991_v15 = vsel %vm14371_vm0, %v7982_v14, %v7984_v2  ;;  %vm14375_vm15 = vmmov %vm14370_vm1 }
 0x8f9   : > { %9977 = vmatmul.mubr.msk.bf16.vlgmr.msra.gmra.mxu0 %vm14370_vm1, %v9975_v47  ;;  %9984 = vmatprep.subr.msk.bf16.mxu1 %vm5257_vm11, %v7994_v61  ;;  %v7999_v43 = vsel %vm5257_vm11, %v7991_v15, 0  ;;  %vm14376_vm0 = vmmov %vm14370_vm1 }
 0x8fa   : > { %8042 = vmatprep.mubr.bf16.mxu0 %v14286_v42  ;;  %9979 = vmatmul.mubr.msk.bf16.vlgmr.msra.gmra.mxu1 %vm14372_vm14, %v9975_v47  ;;  %vm14379_vm14 = vmmov %vm14376_vm0 }
 0x8fb   : > { %v7986_v48 = vpop.permute.xlu1 %7985  ;;  %v8148_v5 = vpop.permute.xlu0 %8147  ;;  %8083 = vmatprep.mubr.bf16.mxu1 %v14286_v42 }
 0x8fc   : > { %v7992_v31 = vsel %vm14373_vm12, %v7984_v2, %v7986_v48  ;;  %v7993_v8 = vsel %vm14374_vm13, %v7986_v48, %v7988_v54  ;;  %vm14380_vm12 = vmmov %vm14376_vm0 }
 0x8fd   : > { %v8005_v39 = vsel %vm5257_vm11, %v7993_v8, 0  ;;  %9982 = vmatprep.subr.msk.bf16.mxu0 %vm5257_vm11, %v7992_v31  ;;  %vm14383_vm13 = vmmov %vm14376_vm0 }
 0x8fe   : > { %8025 = vmatpush1.bf16.msra.mxu0 %v7999_v43  ;;  %8066 = vmatpush1.bf16.msra.mxu1 %v8005_v39 }
 0x8ff   : > { %v8150_v11 = vpop.permute.xlu1 %8149  ;;  %v8152_v37 = vpop.permute.xlu0 %8151 }
 0x900   : > { %v8157_v13 = vsel %vm690_vm10, %v8148_v5, %v8150_v11  ;;  %v8158_v3 = vsel %vm690_vm10, %v8150_v11, %v8152_v37  ;;  %v10011_v5 = vld [vmem:[%s13878_s4 + $0x2c] sm:$0x3] }
 0x901   : > { %v8165_v26 = vsel %vm5257_vm11, %v8157_v13, 0  ;;  %9983 = vmatmul.mubr.msk.bf16.vlgmr.msra.gmra.mxu0 %vm14375_vm15, %v9981_v1  ;;  %9988 = vmatprep.subr.msk.bf16.mxu0 %vm5257_vm11, %v8158_v3  ;;  %vm14384_vm15 = vmmov %vm14376_vm0 }
 0x902   : > { %8208 = vmatprep.mubr.bf16.mxu0 %v14286_v42  ;;  %9985 = vmatmul.mubr.msk.bf16.vlgmr.msra.gmra.mxu1 %vm14370_vm1, %v9981_v1  ;;  %vm14387_vm1 = vmmov %vm14376_vm0 }
 0x903   : > { %8191 = vmatpush1.bf16.msra.mxu0 %v8165_v26  ;;  %v8154_v45 = vpop.permute.xlu1 %8153  ;;  %v8316_v29 = vpop.permute.xlu0 %8315  ;;  %8249 = vmatprep.mubr.bf16.mxu1 %v14286_v42 }
 0x904   : > { %v8159_v62 = vsel %vm690_vm10, %v8152_v37, %v8154_v45  ;;  %v8160_v30 = vsel %vm690_vm10, %v8154_v45, %v13073_v19  ;;  %vm14377_vm10 = vmmov %vm14376_vm0  ;;  %v10017_v45 = vld [vmem:[%s13878_s4 + $0x2e] sm:$0x3] }
 0x905   : > { %v8171_v59 = vsel %vm5257_vm11, %v8159_v62, 0  ;;  %9990 = vmatprep.subr.msk.bf16.mxu1 %vm5257_vm11, %v8160_v30 }
 0x906   : > { %8232 = vmatpush1.bf16.msra.mxu1 %v8171_v59 }
 0x907   : > { %v8314_v9 = vpop.permute.xlu1 %8313  ;;  %v8320_v24 = vpop.permute.xlu0 %8319 }
 0x908   : > { %v8326_v51 = vsel %vm571_vm9, %v8320_v24, %v13111_v40  ;;  %v8323_v19 = vsel %vm571_vm9, %v8314_v9, %v8316_v29 }
 0x909   : > { %9989 = vmatmul.mubr.msk.bf16.vlgmr.msra.gmra.mxu0 %vm14376_vm0, %v9987_v23  ;;  %9996 = vmatprep.subr.msk.bf16.mxu1 %vm5257_vm11, %v8326_v51  ;;  %v8331_v40 = vsel %vm5257_vm11, %v8323_v19, 0 }
 0x90a   : > { %8374 = vmatprep.mubr.bf16.mxu0 %v14286_v42  ;;  %9991 = vmatmul.mubr.msk.bf16.vlgmr.msra.gmra.mxu1 %vm14377_vm10, %v9987_v23  ;;  %vm14390_vm10 = vmmov %vm14376_vm0 }
 0x90b   : > { %v8318_v20 = vpop.permute.xlu1 %8317  ;;  %v8480_v21 = vpop.permute.xlu0 %8479  ;;  %8415 = vmatprep.mubr.bf16.mxu1 %v14286_v42 }
 0x90c   : > { %v8324_v55 = vsel %vm571_vm9, %v8316_v29, %v8318_v20  ;;  %v8325_v32 = vsel %vm571_vm9, %v8318_v20, %v8320_v24  ;;  %vm14378_vm9 = vmmov %vm14376_vm0 }
 0x90d   : > { %v8337_v44 = vsel %vm5257_vm11, %v8325_v32, 0  ;;  %9994 = vmatprep.subr.msk.bf16.mxu0 %vm5257_vm11, %v8324_v55  ;;  %v10023_v32 = vld [vmem:[%s13878_s4 + $0x30] sm:$0x3] }
 0x90e   : > { %8357 = vmatpush1.bf16.msra.mxu0 %v8331_v40  ;;  %8398 = vmatpush1.bf16.msra.mxu1 %v8337_v44 }
 0x90f   : > { %v8482_v7 = vpop.permute.xlu1 %8481  ;;  %v8484_v52 = vpop.permute.xlu0 %8483 }
 0x910   : > { %v8489_v38 = vsel %vm855_vm8, %v8480_v21, %v8482_v7  ;;  %v8490_v57 = vsel %vm855_vm8, %v8482_v7, %v8484_v52 }
 0x911   : > { %v8497_v49 = vsel %vm5257_vm11, %v8489_v38, 0  ;;  %9995 = vmatmul.mubr.msk.bf16.vlgmr.msra.gmra.mxu0 %vm14378_vm9, %v9993_v53  ;;  %10000 = vmatprep.subr.msk.bf16.mxu0 %vm5257_vm11, %v8490_v57  ;;  %vm14391_vm9 = vmmov %vm14376_vm0 }
 0x912   : > { %8540 = vmatprep.mubr.bf16.mxu0 %v14286_v42  ;;  %9997 = vmatmul.mubr.msk.bf16.vlgmr.msra.gmra.mxu1 %vm14379_vm14, %v9993_v53 }
 0x913   : > { %8523 = vmatpush1.bf16.msra.mxu0 %v8497_v49  ;;  %v8486_v27 = vpop.permute.xlu1 %8485  ;;  %v8648_v28 = vpop.permute.xlu0 %8647  ;;  %8581 = vmatprep.mubr.bf16.mxu1 %v14286_v42 }
 0x914   : > { %v8491_v56 = vsel %vm855_vm8, %v8484_v52, %v8486_v27  ;;  %v8492_v16 = vsel %vm855_vm8, %v8486_v27, %v13117_v25  ;;  %vm14381_vm8 = vmmov %vm14376_vm0 }
 0x915   : > { %v8503_v58 = vsel %vm5257_vm11, %v8491_v56, 0  ;;  %10002 = vmatprep.subr.msk.bf16.mxu1 %vm5257_vm11, %v8492_v16 }
 0x916   : > { %8564 = vmatpush1.bf16.msra.mxu1 %v8503_v58  ;;  %v10029_v58 = vld [vmem:[%s13878_s4 + $0x32] sm:$0x3] }
 0x917   : > { %v8646_v17 = vpop.permute.xlu1 %8645  ;;  %v8652_v4 = vpop.permute.xlu0 %8651 }
 0x918   : > { %v8658_v41 = vsel %vm1024_vm7, %v8652_v4, %v13126_v18  ;;  %v8655_v25 = vsel %vm1024_vm7, %v8646_v17, %v8648_v28 }
 0x919   : > { %10001 = vmatmul.mubr.msk.bf16.vlgmr.msra.gmra.mxu0 %vm14380_vm12, %v9999_v60  ;;  %10008 = vmatprep.subr.msk.bf16.mxu1 %vm5257_vm11, %v8658_v41  ;;  %v8663_v18 = vsel %vm5257_vm11, %v8655_v25, 0 }
 0x91a   : > { %8706 = vmatprep.mubr.bf16.mxu0 %v14286_v42  ;;  %10003 = vmatmul.mubr.msk.bf16.vlgmr.msra.gmra.mxu1 %vm14381_vm8, %v9999_v60 }
 0x91b   : > { %v8650_v10 = vpop.permute.xlu1 %8649  ;;  %v8812_v35 = vpop.permute.xlu0 %8811  ;;  %8747 = vmatprep.mubr.bf16.mxu1 %v14286_v42 }
 0x91c   : > { %v8656_v63 = vsel %vm1024_vm7, %v8648_v28, %v8650_v10  ;;  %v8657_v33 = vsel %vm1024_vm7, %v8650_v10, %v8652_v4  ;;  %vm14382_vm7 = vmmov %vm14376_vm0 }
 0x91d   : > { %v8669_v50 = vsel %vm5257_vm11, %v8657_v33, 0  ;;  %10006 = vmatprep.subr.msk.bf16.mxu0 %vm5257_vm11, %v8656_v63 }
 0x91e   : > { %8689 = vmatpush1.bf16.msra.mxu0 %v8663_v18  ;;  %8730 = vmatpush1.bf16.msra.mxu1 %v8669_v50 }
 0x91f   : > { %v8814_v2 = vpop.permute.xlu1 %8813  ;;  %v8816_v47 = vpop.permute.xlu0 %8815 }
 0x920   : > { %v8821_v46 = vsel %vm1157_vm6, %v8812_v35, %v8814_v2  ;;  %v8822_v54 = vsel %vm1157_vm6, %v8814_v2, %v8816_v47 }
 0x921   : > { %v8829_v14 = vsel %vm5257_vm11, %v8821_v46, 0  ;;  %10007 = vmatmul.mubr.msk.bf16.vlgmr.msra.gmra.mxu0 %vm14382_vm7, %v10005_v22  ;;  %10012 = vmatprep.subr.msk.bf16.mxu0 %vm5257_vm11, %v8822_v54 }
 0x922   : > { %8872 = vmatprep.mubr.bf16.mxu0 %v14286_v42  ;;  %10009 = vmatmul.mubr.msk.bf16.vlgmr.msra.gmra.mxu1 %vm14383_vm13, %v10005_v22 }
 0x923   : > { %8855 = vmatpush1.bf16.msra.mxu0 %v8829_v14  ;;  %v8818_v61 = vpop.permute.xlu1 %8817  ;;  %v8980_v31 = vpop.permute.xlu0 %8979  ;;  %8913 = vmatprep.mubr.bf16.mxu1 %v14286_v42 }
 0x924   : > { %v8823_v15 = vsel %vm1157_vm6, %v8816_v47, %v8818_v61  ;;  %v8824_v48 = vsel %vm1157_vm6, %v8818_v61, %v13132_v34  ;;  %vm14385_vm6 = vmmov %vm14376_vm0 }
 0x925   : > { %v8835_v8 = vsel %vm5257_vm11, %v8823_v15, 0  ;;  %10014 = vmatprep.subr.msk.bf16.mxu1 %vm5257_vm11, %v8824_v48 }
 0x926   : > { %8896 = vmatpush1.bf16.msra.mxu1 %v8835_v8 }
 0x927   : > { %v8978_v43 = vpop.permute.xlu1 %8977  ;;  %v8984_v39 = vpop.permute.xlu0 %8983 }
 0x928   : > { %v8990_v1 = vsel %vm988_vm5, %v8984_v39, %v13583_v0  ;;  %v8987_v34 = vsel %vm988_vm5, %v8978_v43, %v8980_v31 }
 0x929   : > { %10013 = vmatmul.mubr.msk.bf16.vlgmr.msra.gmra.mxu0 %vm14384_vm15, %v10011_v5  ;;  %10020 = vmatprep.subr.msk.bf16.mxu1 %vm5257_vm11, %v8990_v1  ;;  %v8995_v0 = vsel %vm5257_vm11, %v8987_v34, 0 }
 0x92a   : > { %9038 = vmatprep.mubr.bf16.mxu0 %v14286_v42  ;;  %10015 = vmatmul.mubr.msk.bf16.vlgmr.msra.gmra.mxu1 %vm14385_vm6, %v10011_v5  ;;  %v10035_v5 = vld [vmem:[%s13878_s4 + $0x34] sm:$0x3] }
 0x92b   : > { %v8982_v11 = vpop.permute.xlu1 %8981  ;;  %v9144_v26 = vpop.permute.xlu0 %9143  ;;  %9079 = vmatprep.mubr.bf16.mxu1 %v14286_v42 }
 0x92c   : > { %v8988_v13 = vsel %vm988_vm5, %v8980_v31, %v8982_v11  ;;  %v8989_v37 = vsel %vm988_vm5, %v8982_v11, %v8984_v39  ;;  %vm14386_vm5 = vmmov %vm14376_vm0 }
 0x92d   : > { %v9001_v3 = vsel %vm5257_vm11, %v8989_v37, 0  ;;  %10018 = vmatprep.subr.msk.bf16.mxu0 %vm5257_vm11, %v8988_v13 }
 0x92e   : > { %9021 = vmatpush1.bf16.msra.mxu0 %v8995_v0  ;;  %9062 = vmatpush1.bf16.msra.mxu1 %v9001_v3 }
 0x92f   : > { %v9146_v62 = vpop.permute.xlu1 %9145  ;;  %v9148_v29 = vpop.permute.xlu0 %9147 }
 0x930   : > { %v9153_v30 = vsel %vm819_vm4, %v9144_v26, %v9146_v62  ;;  %v9154_v23 = vsel %vm819_vm4, %v9146_v62, %v9148_v29 }
 0x931   : > { %v9161_v59 = vsel %vm5257_vm11, %v9153_v30, 0  ;;  %10019 = vmatmul.mubr.msk.bf16.vlgmr.msra.gmra.mxu0 %vm14386_vm5, %v10017_v45  ;;  %10024 = vmatprep.subr.msk.bf16.mxu0 %vm5257_vm11, %v9154_v23 }
 0x932   : > { %9204 = vmatprep.mubr.bf16.mxu0 %v14286_v42  ;;  %10021 = vmatmul.mubr.msk.bf16.vlgmr.msra.gmra.mxu1 %vm14387_vm1, %v10017_v45 }
 0x933   : > { %9187 = vmatpush1.bf16.msra.mxu0 %v9161_v59  ;;  %v9150_v9 = vpop.permute.xlu1 %9149  ;;  %v9312_v19 = vpop.permute.xlu0 %9311  ;;  %9245 = vmatprep.mubr.bf16.mxu1 %v14286_v42 }
 0x934   : > { %v9155_v24 = vsel %vm819_vm4, %v9148_v29, %v9150_v9  ;;  %v9156_v51 = vsel %vm819_vm4, %v9150_v9, %v13586_v36  ;;  %vm14388_vm4 = vmmov %vm14376_vm0 }
 0x935   : > { %v9167_v20 = vsel %vm5257_vm11, %v9155_v24, 0  ;;  %10026 = vmatprep.subr.msk.bf16.mxu1 %vm5257_vm11, %v9156_v51 }
 0x936   : > { %v5304_v55 = vpop.f32.mrf.mxu0  ;;  %9228 = vmatpush1.bf16.msra.mxu1 %v9167_v20 }
 0x937   : > { %v9310_v21 = vpop.permute.xlu1 %9309  ;;  %v9316_v44 = vpop.permute.xlu0 %9315 }
 0x938   : > { %v5306_v40 = vpop.f32.mrf.mxu0  ;;  %v9322_v53 = vsel %vm535_vm2, %v9316_v44, %v13591_v12  ;;  %v9319_v36 = vsel %vm535_vm2, %v9310_v21, %v9312_v19 }
 0x939   : > { %10025 = vmatmul.mubr.msk.bf16.vlgmr.msra.gmra.mxu0 %vm14388_vm4, %v10023_v32  ;;  %10032 = vmatprep.subr.msk.bf16.mxu1 %vm5257_vm11, %v9322_v53  ;;  %v9327_v12 = vsel %vm5257_vm11, %v9319_v36, 0 }
 0x93a   : > { %v5308_v7 = vpop.f32.mrf.mxu0  ;;  %9370 = vmatprep.mubr.bf16.mxu0 %v14286_v42  ;;  %v5345_v38 = vpop.f32.mrf.mxu1  ;;  %10027 = vmatmul.mubr.msk.bf16.vlgmr.msra.gmra.mxu1 %vm14376_vm0, %v10023_v32 }
 0x93b   : > { %v9314_v52 = vpop.permute.xlu1 %9313  ;;  %v9476_v27 = vpop.permute.xlu0 %9475  ;;  %9411 = vmatprep.mubr.bf16.mxu1 %v14286_v42 }
 0x93c   : > { %v9320_v49 = vsel %vm535_vm2, %v9312_v19, %v9314_v52  ;;  %v9321_v57 = vsel %vm535_vm2, %v9314_v52, %v9316_v44  ;;  %v5309_v6 = vpop.f32.mrf.mxu0  ;;  %v5347_v16 = vpop.f32.mrf.mxu1  ;;  %vm14389_vm2 = vmmov %vm14376_vm0 }
 0x93d   : > { %v9333_v56 = vsel %vm5257_vm11, %v9321_v57, 0  ;;  %10030 = vmatprep.subr.msk.bf16.mxu0 %vm5257_vm11, %v9320_v49 }
 0x93e   : > { %v5420_v28 = vpop.f32.mrf.mxu0  ;;  %9353 = vmatpush1.bf16.msra.mxu0 %v9327_v12  ;;  %9394 = vmatpush1.bf16.msra.mxu1 %v9333_v56  ;;  %v5349_v60 = vpop.f32.mrf.mxu1 }
 0x93f   : > { %v5421_v17 = vadd.f32 %v5420_v28, %v5304_v55  ;;  %v9478_v4 = vpop.permute.xlu1 %9477  ;;  %v9480_v10 = vpop.permute.xlu0 %9479 }
 0x940   : > { %v9485_v41 = vsel %vm488_vm3, %v9476_v27, %v9478_v4  ;;  %v5422_v25 = vpop.f32.mrf.mxu0  ;;  %v9486_v35 = vsel %vm488_vm3, %v9478_v4, %v9480_v10  ;;  %v5350_v18 = vpop.f32.mrf.mxu1 }
 0x941   : > { %v9493_v63 = vsel %vm5257_vm11, %v9485_v41, 0  ;;  %v5423_v33 = vadd.f32 %v5422_v25, %v5306_v40  ;;  %10031 = vmatmul.mubr.msk.bf16.vlgmr.msra.gmra.mxu0 %vm14389_vm2, %v10029_v58  ;;  %10036 = vmatprep.subr.msk.bf16.mxu0 %vm5257_vm11, %v9486_v35 }
 0x942   : > { %v5424_v50 = vpop.f32.mrf.mxu0  ;;  %9536 = vmatprep.mubr.bf16.mxu0 %v14286_v42  ;;  %v5461_v22 = vpop.f32.mrf.mxu1  ;;  %10033 = vmatmul.mubr.msk.bf16.vlgmr.msra.gmra.mxu1 %vm14390_vm10, %v10029_v58 }
 0x943   : > { %9519 = vmatpush1.bf16.msra.mxu0 %v9493_v63  ;;  %v9482_v2 = vpop.permute.xlu1 %9481  ;;  %v5462_v46 = vadd.f32 %v5461_v22, %v5345_v38  ;;  %v9484_v54 = vpop.permute.xlu0 %9483  ;;  %9577 = vmatprep.mubr.bf16.mxu1 %v14286_v42 }
 0x944   : > { %v9487_v47 = vsel %vm488_vm3, %v9480_v10, %v9482_v2  ;;  %v5425_v14 = vpop.f32.mrf.mxu0  ;;  %v9488_v15 = vsel %vm488_vm3, %v9482_v2, %v9484_v54  ;;  %v5463_v48 = vpop.f32.mrf.mxu1  ;;  %vm14392_vm3 = vmmov %vm14376_vm0 }
 0x945   : > { %v9499_v61 = vsel %vm5257_vm11, %v9487_v47, 0  ;;  %v5464_v31 = vadd.f32 %v5463_v48, %v5347_v16  ;;  %10038 = vmatprep.subr.msk.bf16.mxu1 %vm5257_vm11, %v9488_v15 }
 0x946   : > { %v5582_v8 = vpop.f32.mrf.mxu0  ;;  %v5465_v43 = vpop.f32.mrf.mxu1  ;;  %9560 = vmatpush1.bf16.msra.mxu1 %v9499_v61 }
 0x947   : > { %v5630_v39 = vadd.f32 %v5582_v8, %v5421_v17 }
 0x948   : > { %v5584_v1 = vpop.f32.mrf.mxu0  ;;  %v5466_v34 = vpop.f32.mrf.mxu1 }
 0x949   : > { %v5631_v11 = vadd.f32 %v5584_v1, %v5423_v33  ;;  %10037 = vmatmul.mubr.msk.bf16.vlgmr.msra.gmra.mxu0 %vm14391_vm9, %v10035_v5 }
 0x94a   : > { %v5586_v42 = vpop.f32.mrf.mxu0  ;;  %v5623_v13 = vpop.f32.mrf.mxu1  ;;  %10039 = vmatmul.mubr.msk.bf16.vlgmr.msra.gmra.mxu1 %vm14392_vm3, %v10035_v5 }
 0x94b   : > { %v5632_v37 = vadd.f32 %v5623_v13, %v5462_v46 }
 0x94c   : > { %v5587_v26 = vpop.f32.mrf.mxu0  ;;  %v5625_v0 = vpop.f32.mrf.mxu1 }
 0x94d   : > { %v5633_v3 = vadd.f32 %v5625_v0, %v5464_v31 }
 0x94e   : > { %v5748_v45 = vpop.f32.mrf.mxu0  ;;  %v5627_v62 = vpop.f32.mrf.mxu1 }
 0x94f   : > { %v5796_v30 = vadd.f32 %v5748_v45, %v5630_v39 }
 0x950   : > { %v5750_v29 = vpop.f32.mrf.mxu0  ;;  %v5628_v59 = vpop.f32.mrf.mxu1 }
 0x951   : > { %v5797_v23 = vadd.f32 %v5750_v29, %v5631_v11 }
 0x952   : > { %v5752_v9 = vpop.f32.mrf.mxu0  ;;  %v5789_v24 = vpop.f32.mrf.mxu1 }
 0x953   : > { %v5798_v51 = vadd.f32 %v5789_v24, %v5632_v37 }
 0x954   : > { %v5753_v19 = vpop.f32.mrf.mxu0  ;;  %v5791_v20 = vpop.f32.mrf.mxu1 }
 0x955   : > { %v5799_v55 = vadd.f32 %v5791_v20, %v5633_v3 }
 0x956   : > { %v5914_v32 = vpop.f32.mrf.mxu0  ;;  %v5793_v21 = vpop.f32.mrf.mxu1 }
 0x957   : > { %v5962_v40 = vadd.f32 %v5914_v32, %v5796_v30 }
 0x958   : > { %v5916_v44 = vpop.f32.mrf.mxu0  ;;  %v5794_v53 = vpop.f32.mrf.mxu1 }
 0x959   : > { %v5963_v36 = vadd.f32 %v5916_v44, %v5797_v23 }
 0x95a   : > { %v5918_v7 = vpop.f32.mrf.mxu0  ;;  %v5955_v38 = vpop.f32.mrf.mxu1 }
 0x95b   : > { %v5964_v52 = vadd.f32 %v5955_v38, %v5798_v51 }
 0x95c   : > { %v5919_v49 = vpop.f32.mrf.mxu0  ;;  %v5957_v57 = vpop.f32.mrf.mxu1 }
 0x95d   : > { %v5965_v6 = vadd.f32 %v5957_v57, %v5799_v55 }
 0x95e   : > { %v6080_v27 = vpop.f32.mrf.mxu0  ;;  %v5959_v12 = vpop.f32.mrf.mxu1 }
 0x95f   : > { %v6128_v56 = vadd.f32 %v6080_v27, %v5962_v40 }
 0x960   : > { %v6082_v16 = vpop.f32.mrf.mxu0  ;;  %v5960_v28 = vpop.f32.mrf.mxu1 }
 0x961   : > { %v6129_v58 = vadd.f32 %v6082_v16, %v5963_v36 }
 0x962   : > { %v6084_v60 = vpop.f32.mrf.mxu0  ;;  %v6121_v17 = vpop.f32.mrf.mxu1 }
 0x963   : > { %v6130_v4 = vadd.f32 %v6121_v17, %v5964_v52 }
 0x964   : > { %v6085_v41 = vpop.f32.mrf.mxu0  ;;  %v6123_v25 = vpop.f32.mrf.mxu1 }
 0x965   : > { %v6131_v10 = vadd.f32 %v6123_v25, %v5965_v6 }
 0x966   : > { %v6246_v63 = vpop.f32.mrf.mxu0  ;;  %v6125_v33 = vpop.f32.mrf.mxu1 }
 0x967   : > { %v6294_v35 = vadd.f32 %v6246_v63, %v6128_v56 }
 0x968   : > { %v6248_v18 = vpop.f32.mrf.mxu0  ;;  %v6126_v50 = vpop.f32.mrf.mxu1 }
 0x969   : > { %v6295_v22 = vadd.f32 %v6248_v18, %v6129_v58 }
 0x96a   : > { %v6250_v2 = vpop.f32.mrf.mxu0  ;;  %v6287_v46 = vpop.f32.mrf.mxu1 }
 0x96b   : > { %v6296_v47 = vadd.f32 %v6287_v46, %v6130_v4 }
 0x96c   : > { %v6251_v14 = vpop.f32.mrf.mxu0  ;;  %v6289_v54 = vpop.f32.mrf.mxu1 }
 0x96d   : > { %v6297_v61 = vadd.f32 %v6289_v54, %v6131_v10 }
 0x96e   : > { %v6412_v15 = vpop.f32.mrf.mxu0  ;;  %v6291_v48 = vpop.f32.mrf.mxu1 }
 0x96f   : > { %v6460_v31 = vadd.f32 %v6412_v15, %v6294_v35 }
 0x970   : > { %v6414_v8 = vpop.f32.mrf.mxu0  ;;  %v6292_v5 = vpop.f32.mrf.mxu1 }
 0x971   : > { %v6461_v43 = vadd.f32 %v6414_v8, %v6295_v22 }
 0x972   : > { %v6416_v39 = vpop.f32.mrf.mxu0  ;;  %v6453_v1 = vpop.f32.mrf.mxu1 }
 0x973   : > { %v6462_v34 = vadd.f32 %v6453_v1, %v6296_v47 }
 0x974   : > { %v6417_v11 = vpop.f32.mrf.mxu0  ;;  %v6455_v42 = vpop.f32.mrf.mxu1 }
 0x975   : > { %v6463_v13 = vadd.f32 %v6455_v42, %v6297_v61 }
 0x976   : > { %v6578_v37 = vpop.f32.mrf.mxu0  ;;  %v6457_v26 = vpop.f32.mrf.mxu1 }
 0x977   : > { %v6626_v0 = vadd.f32 %v6578_v37, %v6460_v31 }
 0x978   : > { %v6580_v3 = vpop.f32.mrf.mxu0  ;;  %v6458_v45 = vpop.f32.mrf.mxu1 }
 0x979   : > { %v6627_v62 = vadd.f32 %v6580_v3, %v6461_v43 }
 0x97a   : > { %v6582_v30 = vpop.f32.mrf.mxu0  ;;  %v6619_v29 = vpop.f32.mrf.mxu1 }
 0x97b   : > { %v6628_v59 = vadd.f32 %v6619_v29, %v6462_v34 }
 0x97c   : > { %v6583_v23 = vpop.f32.mrf.mxu0  ;;  %v6621_v9 = vpop.f32.mrf.mxu1 }
 0x97d   : > { %v6629_v24 = vadd.f32 %v6621_v9, %v6463_v13 }
 0x97e   : > { %v6744_v51 = vpop.f32.mrf.mxu0  ;;  %v6623_v19 = vpop.f32.mrf.mxu1 }
 0x97f   : > { %v6792_v20 = vadd.f32 %v6744_v51, %v6626_v0 }
 0x980   : > { %v6746_v55 = vpop.f32.mrf.mxu0  ;;  %v6624_v32 = vpop.f32.mrf.mxu1 }
 0x981   : > { %v6793_v21 = vadd.f32 %v6746_v55, %v6627_v62 }
 0x982   : > { %v6748_v40 = vpop.f32.mrf.mxu0  ;;  %v6785_v44 = vpop.f32.mrf.mxu1 }
 0x983   : > { %v6794_v53 = vadd.f32 %v6785_v44, %v6628_v59 }
 0x984   : > { %v6749_v36 = vpop.f32.mrf.mxu0  ;;  %v6787_v7 = vpop.f32.mrf.mxu1 }
 0x985   : > { %v6795_v38 = vadd.f32 %v6787_v7, %v6629_v24 }
 0x986   : > { %v6910_v52 = vpop.f32.mrf.mxu0  ;;  %v6789_v49 = vpop.f32.mrf.mxu1 }
 0x987   : > { %v6958_v57 = vadd.f32 %v6910_v52, %v6792_v20 }
 0x988   : > { %v6912_v6 = vpop.f32.mrf.mxu0  ;;  %v6790_v27 = vpop.f32.mrf.mxu1 }
 0x989   : > { %v6959_v12 = vadd.f32 %v6912_v6, %v6793_v21 }
 0x98a   : > { %v6914_v56 = vpop.f32.mrf.mxu0  ;;  %v6951_v16 = vpop.f32.mrf.mxu1 }
 0x98b   : > { %v6960_v28 = vadd.f32 %v6951_v16, %v6794_v53 }
 0x98c   : > { %v6915_v58 = vpop.f32.mrf.mxu0  ;;  %v6953_v60 = vpop.f32.mrf.mxu1 }
 0x98d   : > { %v6961_v17 = vadd.f32 %v6953_v60, %v6795_v38 }
 0x98e   : > { %v7076_v4 = vpop.f32.mrf.mxu0  ;;  %v6955_v41 = vpop.f32.mrf.mxu1 }
 0x98f   : > { %v7124_v25 = vadd.f32 %v7076_v4, %v6958_v57 }
 0x990   : > { %v7078_v10 = vpop.f32.mrf.mxu0  ;;  %v6956_v63 = vpop.f32.mrf.mxu1 }
 0x991   : > { %v7125_v33 = vadd.f32 %v7078_v10, %v6959_v12 }
 0x992   : > { %v7080_v35 = vpop.f32.mrf.mxu0  ;;  %v7117_v18 = vpop.f32.mrf.mxu1 }
 0x993   : > { %v7126_v50 = vadd.f32 %v7117_v18, %v6960_v28 }
 0x994   : > { %v7081_v22 = vpop.f32.mrf.mxu0  ;;  %v7119_v2 = vpop.f32.mrf.mxu1 }
 0x995   : > { %v7127_v46 = vadd.f32 %v7119_v2, %v6961_v17 }
 0x996   : > { %v7242_v47 = vpop.f32.mrf.mxu0  ;;  %v7121_v14 = vpop.f32.mrf.mxu1 }
 0x997   : > { %v7290_v54 = vadd.f32 %v7242_v47, %v7124_v25 }
 0x998   : > { %v7244_v61 = vpop.f32.mrf.mxu0  ;;  %v7122_v15 = vpop.f32.mrf.mxu1 }
 0x999   : > { %v7291_v48 = vadd.f32 %v7244_v61, %v7125_v33 }
 0x99a   : > { %v7246_v31 = vpop.f32.mrf.mxu0  ;;  %v7283_v8 = vpop.f32.mrf.mxu1 }
 0x99b   : > { %v7292_v5 = vadd.f32 %v7283_v8, %v7126_v50 }
 0x99c   : > { %v7247_v43 = vpop.f32.mrf.mxu0  ;;  %v7285_v39 = vpop.f32.mrf.mxu1 }
 0x99d   : > { %v7293_v1 = vadd.f32 %v7285_v39, %v7127_v46 }
 0x99e   : > { %v7375_v34 = vpop.f32.mrf.mxu0  ;;  %v7287_v11 = vpop.f32.mrf.mxu1 }
 0x99f   : > { %v7423_v42 = vadd.f32 %v7375_v34, %v7290_v54 }
 0x9a0   : > { %v7377_v13 = vpop.f32.mrf.mxu0  ;;  %v7288_v37 = vpop.f32.mrf.mxu1 }
 0x9a1   : > { %v7424_v26 = vadd.f32 %v7377_v13, %v7291_v48 }
 0x9a2   : > { %v7379_v0 = vpop.f32.mrf.mxu0  ;;  %v7416_v3 = vpop.f32.mrf.mxu1 }
 0x9a3   : > { %v7425_v45 = vadd.f32 %v7416_v3, %v7292_v5 }
 0x9a4   : > { %v7380_v62 = vpop.f32.mrf.mxu0  ;;  %v7418_v30 = vpop.f32.mrf.mxu1 }
 0x9a5   : > { %v7426_v29 = vadd.f32 %v7418_v30, %v7293_v1 }
 0x9a6   : > { %v7546_v59 = vpop.f32.mrf.mxu0  ;;  %v7420_v23 = vpop.f32.mrf.mxu1 }
 0x9a7   : > { %v7594_v9 = vadd.f32 %v7546_v59, %v7423_v42 }
 0x9a8   : > { %v7548_v24 = vpop.f32.mrf.mxu0  ;;  %v7421_v51 = vpop.f32.mrf.mxu1 }
 0x9a9   : > { %v7595_v19 = vadd.f32 %v7548_v24, %v7424_v26 }
 0x9aa   : > { %v7550_v20 = vpop.f32.mrf.mxu0  ;;  %v7587_v55 = vpop.f32.mrf.mxu1 }
 0x9ab   : > { %v7596_v32 = vadd.f32 %v7587_v55, %v7425_v45 }
 0x9ac   : > { %v7551_v21 = vpop.f32.mrf.mxu0  ;;  %v7589_v40 = vpop.f32.mrf.mxu1 }
 0x9ad   : > { %v7597_v44 = vadd.f32 %v7589_v40, %v7426_v29 }
 0x9ae   : > { %v7591_v53 = vpop.f32.mrf.mxu1 }
 0x9b0   : > { %v7592_v36 = vpop.f32.mrf.mxu1 }
 0x9b1   : > { %v7712_v7 = vpop.f32.mrf.mxu0 }
 0x9b2   : > { %v13809_v38 = vadd.f32 %v7712_v7, %v7594_v9  ;;  %v7753_v52 = vpop.f32.mrf.mxu1 }
 0x9b3   : > { %v7714_v49 = vpop.f32.mrf.mxu0  ;;  %v13811_v57 = vadd.f32 %v7753_v52, %v7596_v32 }
 0x9b4   : > { %v13813_v6 = vadd.f32 %v7714_v49, %v7595_v19  ;;  %v7755_v27 = vpop.f32.mrf.mxu1 }
 0x9b5   : > { %v7716_v12 = vpop.f32.mrf.mxu0  ;;  %v13815_v56 = vadd.f32 %v7755_v27, %v7597_v44 }
 0x9b6   : > { %v7757_v16 = vpop.f32.mrf.mxu1 }
 0x9b7   : > { %v7717_v28 = vpop.f32.mrf.mxu0 }
 0x9b8   : > { %v7758_v58 = vpop.f32.mrf.mxu1 }
 0x9b9   : > { %v7878_v60 = vpop.f32.mrf.mxu0 }
 0x9ba   : > { %v13817_v17 = vpop.f32.mrf.mxu1 }
 0x9bb   : > { %v13819_v4 = vpop.f32.mrf.mxu0 }
 0x9bc   : > { %v13821_v41 = vpop.f32.mrf.mxu1 }
 0x9bd   : > { %v7882_v25 = vpop.f32.mrf.mxu0 }
 0x9be   : > { %v7923_v10 = vpop.f32.mrf.mxu1 }
 0x9bf   : > { %v7883_v63 = vpop.f32.mrf.mxu0  ;;  %v7926_v10 = vadd.f32 %v7878_v60, %v13809_v38 }
 0x9c0   : > { %v7924_v33 = vpop.f32.mrf.mxu1 }
 0x9c1   : > { %v8044_v35 = vpop.f32.mrf.mxu0 }
 0x9c2   : > { %v8085_v18 = vpop.f32.mrf.mxu1 }
 0x9c3   : > { %v8046_v50 = vpop.f32.mrf.mxu0 }
 0x9c4   : > { %v13823_v22 = vpop.f32.mrf.mxu1 }
 0x9c5   : > { %v8048_v2 = vpop.f32.mrf.mxu0 }
 0x9c6   : > { %v8089_v46 = vpop.f32.mrf.mxu1  ;;  %v7928_v2 = vadd.f32 %v13817_v17, %v13811_v57 }
 0x9c7   : > { %v8049_v47 = vpop.f32.mrf.mxu0  ;;  %v7927_v46 = vadd.f32 %v13819_v4, %v13813_v6 }
 0x9c8   : > { %v8090_v14 = vpop.f32.mrf.mxu1  ;;  %v8092_v47 = vadd.f32 %v8044_v35, %v7926_v10 }
 0x9c9   : > { %v8210_v54 = vpop.f32.mrf.mxu0 }
 0x9ca   : > { %v8251_v61 = vpop.f32.mrf.mxu1 }
 0x9cb   : > { %v8212_v15 = vpop.f32.mrf.mxu0 }
 0x9cc   : > { %v8253_v48 = vpop.f32.mrf.mxu1 }
 0x9cd   : > { %v8214_v31 = vpop.f32.mrf.mxu0 }
 0x9ce   : > { %v8255_v8 = vpop.f32.mrf.mxu1 }
 0x9cf   : > { %v8215_v5 = vpop.f32.mrf.mxu0  ;;  %v7929_v8 = vadd.f32 %v13821_v41, %v13815_v56 }
 0x9d0   : > { %v8256_v43 = vpop.f32.mrf.mxu1  ;;  %v8094_v5 = vadd.f32 %v8085_v18, %v7928_v2 }
 0x9d1   : > { %v8376_v39 = vpop.f32.mrf.mxu0  ;;  %v8093_v43 = vadd.f32 %v8046_v50, %v7927_v46  ;;  %v8095_v38 = vadd.f32 %v13823_v22, %v7929_v8 }
 0x9d2   : > { %v8417_v1 = vpop.f32.mrf.mxu1  ;;  %v8260_v60 = vadd.f32 %v8251_v61, %v8094_v5 }
 0x9d3   : > { %v8378_v34 = vpop.f32.mrf.mxu0 }
 0x9d4   : > { %v8419_v11 = vpop.f32.mrf.mxu1  ;;  %v8426_v6 = vadd.f32 %v8417_v1, %v8260_v60 }
 0x9d5   : > { %v8380_v42 = vpop.f32.mrf.mxu0 }
 0x9d6   : > { %v8421_v13 = vpop.f32.mrf.mxu1  ;;  %v8258_v42 = vadd.f32 %v8210_v54, %v8092_v47 }
 0x9d7   : > { %v8381_v37 = vpop.f32.mrf.mxu0 }
 0x9d8   : > { %v8422_v26 = vpop.f32.mrf.mxu1 }
 0x9d9   : > { %v8542_v0 = vpop.f32.mrf.mxu0  ;;  %v8259_v26 = vadd.f32 %v8212_v15, %v8093_v43 }
 0x9da   : > { %v8583_v3 = vpop.f32.mrf.mxu1 }
 0x9db   : > { %v8544_v45 = vpop.f32.mrf.mxu0  ;;  %v8425_v4 = vadd.f32 %v8378_v34, %v8259_v26  ;;  %v8592_v56 = vadd.f32 %v8583_v3, %v8426_v6 }
 0x9dc   : > { %v8585_v62 = vpop.f32.mrf.mxu1 }
 0x9dd   : > { %v8546_v30 = vpop.f32.mrf.mxu0  ;;  %v8591_v41 = vadd.f32 %v8544_v45, %v8425_v4 }
 0x9de   : > { %v8587_v29 = vpop.f32.mrf.mxu1  ;;  %v8424_v30 = vadd.f32 %v8376_v39, %v8258_v42 }
 0x9df   : > { %v8547_v59 = vpop.f32.mrf.mxu0  ;;  %v8261_v29 = vadd.f32 %v8253_v48, %v8095_v38  ;;  %v14393_v38 = vld [vmem:[#allocation18_spill] sm:$0xff] }
 0x9e0   : > { %v8588_v23 = vpop.f32.mrf.mxu1  ;;  %v8590_v35 = vadd.f32 %v8542_v0, %v8424_v30 }
 0x9e1   : > { %v8708_v9 = vpop.f32.mrf.mxu0 }
 0x9e2   : > { %v8749_v24 = vpop.f32.mrf.mxu1  ;;  %v8756_v18 = vadd.f32 %v8708_v9, %v8590_v35 }
 0x9e3   : > { %v8710_v51 = vpop.f32.mrf.mxu0 }
 0x9e4   : > { %v8751_v19 = vpop.f32.mrf.mxu1  ;;  %v8757_v22 = vadd.f32 %v8710_v51, %v8591_v41  ;;  %v9594_v51 = vpop.permute.xlu1 %9593 }
 0x9e5   : > { %v8712_v20 = vpop.f32.mrf.mxu0 }
 0x9e6   : > { %v8753_v55 = vpop.f32.mrf.mxu1  ;;  %v8427_v20 = vadd.f32 %v8419_v11, %v8261_v29  ;;  %v14394_v29 = vld [vmem:[#allocation20_spill] sm:$0xff] }
 0x9e7   : > { %v8713_v32 = vpop.f32.mrf.mxu0 }
 0x9e8   : > { %v8754_v21 = vpop.f32.mrf.mxu1  ;;  %v8593_v55 = vadd.f32 %v8585_v62, %v8427_v20  ;;  %v8758_v32 = vadd.f32 %v8749_v24, %v8592_v56 }
 0x9e9   : > { %v8874_v40 = vpop.f32.mrf.mxu0 }
 0x9ea   : > { %v8915_v44 = vpop.f32.mrf.mxu1  ;;  %v8922_v61 = vadd.f32 %v8874_v40, %v8756_v18  ;;  %v8759_v21 = vadd.f32 %v8751_v19, %v8593_v55 }
 0x9eb   : > { %v8876_v53 = vpop.f32.mrf.mxu0 }
 0x9ec   : > { %v8917_v36 = vpop.f32.mrf.mxu1  ;;  %v8923_v48 = vadd.f32 %v8876_v53, %v8757_v22 }
 0x9ed   : > { %v8878_v7 = vpop.f32.mrf.mxu0 }
 0x9ee   : > { %v8919_v52 = vpop.f32.mrf.mxu1  ;;  %v8924_v7 = vadd.f32 %v8915_v44, %v8758_v32 }
 0x9ef   : > { %v8879_v49 = vpop.f32.mrf.mxu0  ;;  %v8925_v52 = vadd.f32 %v8917_v36, %v8759_v21 }
 0x9f0   : > { %v8920_v27 = vpop.f32.mrf.mxu1 }
 0x9f1   : > { %v9040_v12 = vpop.f32.mrf.mxu0 }
 0x9f2   : > { %v9081_v16 = vpop.f32.mrf.mxu1  ;;  %v9088_v1 = vadd.f32 %v9040_v12, %v8922_v61 }
 0x9f3   : > { %v9042_v28 = vpop.f32.mrf.mxu0  ;;  %v9090_v49 = vadd.f32 %v9081_v16, %v8924_v7 }
 0x9f4   : > { %v9083_v58 = vpop.f32.mrf.mxu1  ;;  %v9089_v11 = vadd.f32 %v9042_v28, %v8923_v48 }
 0x9f5   : > { %v9044_v25 = vpop.f32.mrf.mxu0  ;;  %v9091_v27 = vadd.f32 %v9083_v58, %v8925_v52 }
 0x9f6   : > { %v9085_v63 = vpop.f32.mrf.mxu1 }
 0x9f7   : > { %v9045_v33 = vpop.f32.mrf.mxu0 }
 0x9f8   : > { %v9086_v14 = vpop.f32.mrf.mxu1 }
 0x9f9   : > { %v9206_v31 = vpop.f32.mrf.mxu0  ;;  %v10133_v14 = vld [vmem:[%s10394_s23] sm:$0xff] }
 0x9fa   : > { %v9247_v13 = vpop.f32.mrf.mxu1  ;;  %v9254_v3 = vadd.f32 %v9206_v31, %v9088_v1 }
 0x9fb   : > { %v9208_v37 = vpop.f32.mrf.mxu0  ;;  %v9256_v25 = vadd.f32 %v9247_v13, %v9090_v49  ;;  %v10134_v13 = vld [vmem:[%s10394_s23 + $0x8] sm:$0xff] }
 0x9fc   : > { %v9249_v57 = vpop.f32.mrf.mxu1  ;;  %v9255_v62 = vadd.f32 %v9208_v37, %v9089_v11 }
 0x9fd   : > { %v9210_v17 = vpop.f32.mrf.mxu0  ;;  %v9257_v19 = vadd.f32 %v9249_v57, %v9091_v27 }
 0x9fe   : > { %v9251_v59 = vpop.f32.mrf.mxu1 }
 0x9ff   : > { %v9211_v23 = vpop.f32.mrf.mxu0 }
 0xa00   : > { %v9252_v50 = vpop.f32.mrf.mxu1 }
 0xa01   : > { %v9372_v54 = vpop.f32.mrf.mxu0 }
 0xa02   : > { %v9413_v15 = vpop.f32.mrf.mxu1  ;;  %v9420_v24 = vadd.f32 %v9372_v54, %v9254_v3 }
 0xa03   : > { %v9374_v39 = vpop.f32.mrf.mxu0  ;;  %v9422_v44 = vadd.f32 %v9413_v15, %v9256_v25 }
 0xa04   : > { %v9415_v34 = vpop.f32.mrf.mxu1  ;;  %v9421_v53 = vadd.f32 %v9374_v39, %v9255_v62 }
 0xa05   : > { %v9376_v0 = vpop.f32.mrf.mxu0  ;;  %v9423_v16 = vadd.f32 %v9415_v34, %v9257_v19 }
 0xa06   : > { %v9417_v45 = vpop.f32.mrf.mxu1 }
 0xa07   : > { %v9377_v9 = vpop.f32.mrf.mxu0 }
 0xa08   : > { %v9418_v40 = vpop.f32.mrf.mxu1 }
 0xa09   : > { %v9538_v10 = vpop.f32.mrf.mxu0 }
 0xa0a   : > { %v9586_v12 = vadd.f32 %v9538_v10, %v9420_v24  ;;  %v9579_v63 = vpop.f32.mrf.mxu1 }
 0xa0b   : > { %v9540_v36 = vpop.f32.mrf.mxu0  ;;  %v9588_v28 = vadd.f32 %v9579_v63, %v9422_v44 }
 0xa0c   : > { %v9596_v33 = vadd.f32 %v9594_v51, %v9586_v12  ;;  %v9587_v2 = vadd.f32 %v9540_v36, %v9421_v53  ;;  %v9581_v46 = vpop.f32.mrf.mxu1 }
 0xa0d   : > { %v9542_v58 = vpop.f32.mrf.mxu0  ;;  %v9598_v47 = vadd.f32 %v9594_v51, %v9588_v28  ;;  %v9589_v5 = vadd.f32 %v9581_v46, %v9423_v16 }
 0xa0e   : > { %v9600_v31 = vadd.f32 %v10133_v14, %v9596_v33  ;;  %v9597_v8 = vadd.f32 %v9594_v51, %v9587_v2  ;;  %v9583_v43 = vpop.f32.mrf.mxu1 }
 0xa0f   : > { %v9543_v42 = vpop.f32.mrf.mxu0  ;;  %v9602_v37 = vadd.f32 %v10134_v13, %v9598_v47  ;;  %v9599_v26 = vadd.f32 %v9594_v51, %v9589_v5 }
 0xa10   : > { %v9601_v60 = vadd.f32 %v9597_v8, %v14393_v38  ;;  %v9584_v30 = vpop.f32.mrf.mxu1  ;;  %v9604_v57 = vmax.f32 %v9600_v31, 0.0 }
 0xa11   : > { %v9603_v6 = vadd.f32 %v9599_v26, %v14394_v29  ;;  %v9606_v4 = vmax.f32 %v9602_v37, 0.0 }
 0xa12   : > { %v9605_v17 = vmax.f32 %v9601_v60, 0.0 }
 0xa13   : > { %v9607_v59 = vmax.f32 %v9603_v6, 0.0 }
 0xa14   : > { %v9612_v35 = vcombine.low %v9604_v57, %v9605_v17 }
 0xa15   : > { %v9613_v23 = vcombine.low %v9606_v4, %v9607_v59 }
 0xa16   : > { %9616 = vst [vmem:[%s294_s22] sm:$0xff] %v9612_v35 }
 0xa17   : > { %9617 = vst [vmem:[%s294_s22 + $0x8] sm:$0xff] %v9613_v23 }
 0xa18   : > { %10176 = shalt.err (!%p10173_p10)
}
 0xa19   : > { %s10177_s21 = scalar_lea.hbm %s9631_s26, 256  ;;  %s10181_s19 = scalar_lea.hbm %s13881_s7, 512 }
 0xa1a   : > { %p10178_p2 = scmp.ne.s32.totalorder %s9631_s26, %s10177_s21  ;;  %p10182_p7 = scmp.lt.s32.totalorder %s9631_s26, %s13881_s7 }
 0xa1b   : > { %p10183_p0 = scmp.lt.s32.totalorder %s10181_s19, %s10177_s21 }
 0xa1c   : > { %p10179_p4 = pnand %p10178_p2, %p14396_p12 }
 0xa1d   : > { %p10184_p6 = por %p10183_p0, %p10182_p7 }
 0xa1e   : > { %p10180_p9 = pneg %p10179_p4 }
 0xa20   : > { %p10185_p11 = pnand %p10184_p6, %p10180_p9 }
 0xa22   : > { %10188 = shalt.err (!%p10185_p11)
}
 0xa23   : > { %10049 = dma.vmem_to_hbm [thread:$0]  (%p14396_p12), %s9634_s25, 256, %s9631_s26, %s9619_s17  }
 0xa24 PF: > { %s14397_s11 = sld [smem:[#allocation14_spill]]  ;;  %s9645_s20 = sand.u32 1, %s10215_s24  }
 0xa25   : > { %s14398_s27 = sld [smem:[#allocation11_spill]]  ;;  %s9646_s30 = scalar_lea.sflag [#allocation5], %s9645_s20 }
 0xa2a   : > { %p14399_p13 = scmp.ne.s32.totalorder %s14397_s11, 0 }
 0xa2b   : > { %p14400_p1 = scmp.ge.s32.totalorder %s14398_s27, 2 }
 0xa2d   : > { %p10056_p3 = pnand %p14400_p1, %p14399_p13 }
 0xa2f   : > { %p10057_p5 = pneg %p10056_p3 }
 0xa31   : > { %10210 = dma.done.wait (%p10057_p5), %s9646_s30, 256  }
 0xa32   : > { %10212 = vsyncadd (%p10057_p5), %s9646_s30, 4294967040  ;;  %s14401_s27 = sld [smem:[#allocation12_spill]] }
 0xa33   : > { %s14402_s24 = sld [smem:[#allocation9_spill]] }
 0xa34   : > { %s14403_s25 = sld [smem:[#allocation10_spill]] }
 0xa35   : > { %s14404_s26 = sld [smem:[#allocation13_spill]] }
 0xa38   : > { %p20_p8 = scmp.ge.s32.totalorder %s14401_s27, 4  }
 0xa3a   :  { %22 = sbr.rel (!%p20_p8) target bundleno = 9 (0x9), region = 171 }
 0xa3f   :  { %9651 = vsyncpa [#allocation4], 1 }
 0xa40   :  { %9653 = vsyncpa [#allocation4 + $0x1], 1 }
 0xa41   :  { %9654 = vsyncpa [#allocation5], 1 }
 0xa42   :  { %9656 = vsyncpa [#allocation5 + $0x1], 1 }

</bundles_post_ra>
